<compile_context>
chip_gen: v5e
topology: v5e:2x2
jax: 0.10.0
libtpu: 0.0.40
codegen_flags: <defaults>
</compile_context>

<pallas_src>
import functools
import math

import jax
import jax.numpy as jnp
from jax.experimental import pallas as pl
from jax.experimental.pallas import tpu as pltpu


# ----------------------------------------------------------------------------
# activation helpers (f32 VPU math, fused into the matmul kernels' epilogues)
# ----------------------------------------------------------------------------
def _hardswish(x):
    return x * jnp.clip(x + 3.0, 0.0, 6.0) * (1.0 / 6.0)


def _hardsigmoid(x):
    return jnp.clip(x + 3.0, 0.0, 6.0) * (1.0 / 6.0)


def _full_spec(arr):
    nd = arr.ndim
    return pl.BlockSpec(arr.shape, lambda n, _nd=nd: (0,) * _nd)


# ----------------------------------------------------------------------------
# fused inverted-residual block kernel
#   expand 1x1 -> depthwise kxk (halo in VMEM scratch) -> optional SE ->
#   project 1x1 -> optional residual, all inside one pallas_call.
# ----------------------------------------------------------------------------
def _make_block_kernel(H, W, Cin, Cexp, Cout, k, stride, use_se, has_expand,
                       residual):
    pad = (k - 1) // 2
    Ho, Wo = H // stride, W // stride
    col0 = 8 - pad  # interior is stored at sublane offset 8 (tile aligned)

    def kernel(*refs):
        idx = 0
        x_ref = refs[idx]; idx += 1
        if has_expand:
            exp_w, exp_s, exp_b = refs[idx:idx + 3]; idx += 3
        dw_w, dw_s, dw_b = refs[idx:idx + 3]; idx += 3
        if use_se:
            se_w1, se_b1, se_w2, se_b2 = refs[idx:idx + 4]; idx += 4
        proj_w, proj_s, proj_b = refs[idx:idx + 3]; idx += 3
        out_ref = refs[idx]; idx += 1
        xh_ref = refs[idx]                         # VMEM scratch (H+2p, W+16, Cexp)

        # ---- expand 1x1 conv + BN + hardswish --------------------------------
        x2 = x_ref[...].reshape(H * W, Cin).astype(jnp.float32)
        if has_expand:
            h = jnp.dot(x2, exp_w[...], preferred_element_type=jnp.float32)
            h = _hardswish(h * exp_s[...] + exp_b[...])            # (H*W, Cexp)
        else:
            h = x2

        # ---- write expanded activation into zero-padded VMEM scratch ---------
        # (store offsets are tile-aligned: major offset `pad`, sublane offset 8)
        xh_ref[...] = jnp.zeros(xh_ref.shape, xh_ref.dtype)
        xh_ref[pad:pad + H, 8:8 + W, :] = h.reshape(H, W, Cexp)

        # ---- depthwise kxk conv + BN + hardswish ------------------------------
        acc = jnp.zeros((H, W, Cexp), jnp.float32)
        for dy in range(k):
            for dx in range(k):
                wtap = dw_w[dy * k + dx:dy * k + dx + 1, :].reshape(1, 1, Cexp)
                patch = xh_ref[dy:dy + H, col0 + dx:col0 + dx + W, :]
                acc = acc + patch * wtap
        y = _hardswish(acc * dw_s[...].reshape(1, 1, Cexp)
                       + dw_b[...].reshape(1, 1, Cexp))
        y2 = y.reshape(H * W, Cexp)

        # ---- stride-2 subsample (in-kernel selection matmul) ------------------
        if stride > 1:
            rows = jax.lax.broadcasted_iota(jnp.int32, (Ho * Wo, H * W), 0)
            cols = jax.lax.broadcasted_iota(jnp.int32, (Ho * Wo, H * W), 1)
            tgt = (rows // Wo) * (stride * W) + (rows % Wo) * stride
            sel = (cols == tgt).astype(jnp.float32)
            y2 = jnp.dot(sel, y2, preferred_element_type=jnp.float32)

        # ---- squeeze-excite ----------------------------------------------------
        if use_se:
            m = jnp.mean(y2, axis=0, keepdims=True)                # (1, Cexp)
            g = jnp.maximum(
                jnp.dot(m, se_w1[...], preferred_element_type=jnp.float32)
                + se_b1[...], 0.0)
            g = _hardsigmoid(
                jnp.dot(g, se_w2[...], preferred_element_type=jnp.float32)
                + se_b2[...])
            y2 = y2 * g

        # ---- project 1x1 conv + BN (+ residual) -------------------------------
        o = jnp.dot(y2, proj_w[...], preferred_element_type=jnp.float32)
        o = o * proj_s[...] + proj_b[...]
        if residual:
            o = o + x2
        out_ref[...] = o.reshape(1, Ho, Wo, Cout).astype(out_ref.dtype)

    return kernel


def inverted_residual_block(x, p, cfg):
    cin, k, exp, cout, use_se, stride = cfg
    N, H, W, C = x.shape
    assert C == cin
    # kernel assumes tile-aligned spatial dims (pre/post-stride W multiple of 8)
    assert H % 8 == 0 and W % 8 == 0 and (W // stride) % 8 == 0
    Ho, Wo = H // stride, W // stride
    pad = (k - 1) // 2
    has_expand = exp != cin
    residual = stride == 1 and cin == cout

    inputs = [x]
    in_specs = [pl.BlockSpec((1, H, W, cin), lambda n: (n, 0, 0, 0))]

    def add(arr):
        inputs.append(arr)
        in_specs.append(_full_spec(arr))

    if has_expand:
        add(p["exp_w"]); add(p["exp_s"]); add(p["exp_b"])
    add(p["dw_w"]); add(p["dw_s"]); add(p["dw_b"])
    if use_se:
        add(p["se_w1"]); add(p["se_b1"]); add(p["se_w2"]); add(p["se_b2"])
    add(p["proj_w"]); add(p["proj_s"]); add(p["proj_b"])

    kernel = _make_block_kernel(H, W, cin, exp, cout, k, stride, use_se,
                                has_expand, residual)
    return pl.pallas_call(
        kernel,
        out_shape=jax.ShapeDtypeStruct((N, Ho, Wo, cout), x.dtype),
        grid=(N,),
        in_specs=in_specs,
        out_specs=pl.BlockSpec((1, Ho, Wo, cout), lambda n: (n, 0, 0, 0)),
        scratch_shapes=[pltpu.VMEM((H + 2 * pad, W + 16, exp), jnp.float32)],
        compiler_params=pltpu.CompilerParams(
            dimension_semantics=("parallel",)),
    )(*inputs)


# ----------------------------------------------------------------------------
# fused classifier tail kernel
#   last 1x1 conv + BN + hardswish -> global avg pool -> Linear (+bias) ->
#   hardswish -> (Dropout = identity in eval) -> CosineLinear, one pallas_call.
# ----------------------------------------------------------------------------
def _tail_kernel(x_ref, lcw, lcs, lcb, fcw, fcb, cwt, cb, sg,
                 feat_ref, logit_ref):
    _, H, W, C = x_ref.shape
    x2 = x_ref[...].reshape(H * W, C).astype(jnp.float32)

    # last conv (1x1) + BN + hardswish
    h = jnp.dot(x2, lcw[...], preferred_element_type=jnp.float32)
    h = _hardswish(h * lcs[...] + lcb[...])                    # (H*W, 960)

    # adaptive avg pool (1x1) + flatten
    pooled = jnp.mean(h, axis=0, keepdims=True)                # (1, 960)

    # classifier[0]: Linear(960, 1280)   (feat=True returns this, pre-activation)
    lin = jnp.dot(pooled, fcw[...], preferred_element_type=jnp.float32) + fcb[...]
    feat_ref[...] = lin.astype(feat_ref.dtype)

    # classifier[1]: Hardswish; classifier[2]: Dropout -> identity (eval)
    # TODO(synk): Dropout(p=0.2) training-mode RNG is not modeled (eval identity).
    hc = _hardswish(lin)                                       # (1, 1280)

    # classifier[3]: CosineLinear.  PyTorch concatenates a ones column to the
    # input and the bias column to the weight *before* L2-normalizing; we fold
    # that into the norms so F=1280 stays lane-aligned (no 257-wide concat).
    w = cwt[...]                                               # (1280, Cls)
    b = cb[...]                                                # (1, Cls)
    num = jnp.dot(hc, w, preferred_element_type=jnp.float32) + b
    xn = jnp.sqrt(jnp.sum(hc * hc, axis=1, keepdims=True) + 1.0)      # ||[x,1]||
    wn = jnp.sqrt(jnp.sum(w * w, axis=0, keepdims=True) + b * b)      # ||[w,b]||
    eps = 1e-8
    denom = jnp.maximum(xn, eps) * jnp.maximum(wn, eps)
    logit_ref[...] = (sg[0, 0] * num / denom).astype(logit_ref.dtype)


def classifier_tail(x, lc, cls0, cos):
    N, H, W, C = x.shape
    F = cls0["w"].shape[1]
    Cls = cos["weight"].shape[0]
    w_t = jnp.transpose(cos["weight"])                 # (F, Cls), tiny
    b_row = jnp.reshape(cos["bias"], (1, Cls))
    sg = jnp.reshape(jnp.asarray(cos["sigma"], jnp.float32), (1, 1))

    feats, logits = pl.pallas_call(
        _tail_kernel,
        out_shape=(jax.ShapeDtypeStruct((N, F), jnp.float32),
                   jax.ShapeDtypeStruct((N, Cls), jnp.float32)),
        grid=(N,),
        in_specs=[
            pl.BlockSpec((1, H, W, C), lambda n: (n, 0, 0, 0)),
            _full_spec(lc["w"]), _full_spec(lc["s"]), _full_spec(lc["b"]),
            _full_spec(cls0["w"]), _full_spec(cls0["b"]),
            _full_spec(w_t), _full_spec(b_row), _full_spec(sg),
        ],
        out_specs=(pl.BlockSpec((1, F), lambda n: (n, 0)),
                   pl.BlockSpec((1, Cls), lambda n: (n, 0))),
        compiler_params=pltpu.CompilerParams(
            dimension_semantics=("parallel",)),
    )(x, lc["w"], lc["s"], lc["b"], cls0["w"], cls0["b"], w_t, b_row, sg)
    return feats, logits


# ----------------------------------------------------------------------------
# network assembly
# ----------------------------------------------------------------------------
def mobnet_classifier_forward(x_nchw, params, feat=False):
    """Eval-mode forward of MobNet_ClassifierF. Input is NCHW like PyTorch."""
    x = jnp.transpose(x_nchw, (0, 2, 3, 1))            # NCHW -> NHWC (once)
    for p, cfg in zip(params["blocks"], BLOCK_CFGS):
        x = inverted_residual_block(x, p, cfg)
    features, logits = classifier_tail(x, params["last_conv"],
                                       params["cls0"], params["cos"])
    if feat:
        return features, logits
    return logits


# ----------------------------------------------------------------------------
# deterministic synthetic parameters (no checkpoint loading)
# ----------------------------------------------------------------------------
# torchvision mobilenet_v3_large bneck configs 8..15 (all hardswish):
# (cin, kernel, expanded, cout, use_se, stride)
BLOCK_CFGS = [
    (80, 3, 200, 80, False, 1),
    (80, 3, 184, 80, False, 1),
    (80, 3, 184, 80, False, 1),
    (80, 3, 480, 112, True, 1),
    (112, 3, 672, 112, True, 1),
    (112, 5, 672, 160, True, 2),
    (160, 5, 960, 160, True, 1),
    (160, 5, 960, 160, True, 1),
]
LAST_CONV_OUT = 960      # features[16]: Conv 160 -> 960 (= 6 * 160)
LAST_CHANNEL = 1280      # classifier[0] output (self.out_feats)
NUM_CLASSES = 10


def make_params(key):
    keys = iter(jax.random.split(key, 512))

    def nrm(shape, std=0.05):
        return std * jax.random.normal(next(keys), shape, jnp.float32)

    def bn(c):
        # fold eval-mode BatchNorm (eps=1e-3) into per-channel scale / bias
        gamma = 1.0 + 0.1 * jax.random.normal(next(keys), (1, c), jnp.float32)
        beta = 0.1 * jax.random.normal(next(keys), (1, c), jnp.float32)
        mean = 0.05 * jax.random.normal(next(keys), (1, c), jnp.float32)
        var = 1.0 + 0.1 * jax.random.uniform(next(keys), (1, c), jnp.float32)
        s = gamma / jnp.sqrt(var + 1e-3)
        return s, beta - mean * s

    blocks = []
    for cfg in BLOCK_CFGS:
        cin, k, exp, cout, use_se, stride = cfg
        p = {}
        if exp != cin:
            p["exp_w"] = nrm((cin, exp))
            p["exp_s"], p["exp_b"] = bn(exp)
        p["dw_w"] = nrm((k * k, exp), std=0.15)
        p["dw_s"], p["dw_b"] = bn(exp)
        if use_se:
            cr = exp // 4    # == _make_divisible(exp // 4, 8) for these widths
            p["se_w1"] = nrm((exp, cr))
            p["se_b1"] = nrm((1, cr))
            p["se_w2"] = nrm((cr, exp))
            p["se_b2"] = nrm((1, exp))
        p["proj_w"] = nrm((exp, cout))
        p["proj_s"], p["proj_b"] = bn(cout)
        blocks.append(p)

    cin_last = BLOCK_CFGS[-1][3]
    last_conv = {"w": nrm((cin_last, LAST_CONV_OUT))}
    last_conv["s"], last_conv["b"] = bn(LAST_CONV_OUT)

    cls0 = {"w": nrm((LAST_CONV_OUT, LAST_CHANNEL)),
            "b": nrm((1, LAST_CHANNEL))}

    # CosineLinear.reset_parameters: weight ~ N(0, 0.01), sigma = 1, bias ~ U(-b, b)
    bound = 1.0 / math.sqrt(LAST_CHANNEL)
    cos = {
        "weight": 0.01 * jax.random.normal(
            next(keys), (NUM_CLASSES, LAST_CHANNEL), jnp.float32),
        "bias": jax.random.uniform(
            next(keys), (NUM_CLASSES, 1), jnp.float32, -bound, bound),
        "sigma": jnp.float32(1.0),
    }
    return {"blocks": blocks, "last_conv": last_conv, "cls0": cls0, "cos": cos}


if __name__ == "__main__":
    key = jax.random.PRNGKey(0)
    kx, kp = jax.random.split(key)
    params = make_params(kp)

    # feature map entering mobilenet_v3_large.features[8] (stride-16 point):
    # NCHW like PyTorch, batch=2, 80 channels, 16x16 spatial (<=> 256x256 image)
    x = jax.random.normal(kx, (2, 80, 16, 16), jnp.float32)

    logits = mobnet_classifier_forward(x, params, feat=False)
    logits = jax.block_until_ready(logits)
    feats, logits2 = mobnet_classifier_forward(x, params, feat=True)
    feats = jax.block_until_ready(feats)
    logits2 = jax.block_until_ready(logits2)

    assert logits.shape == (2, NUM_CLASSES)
    assert feats.shape == (2, LAST_CHANNEL)
    assert bool(jnp.all(jnp.isfinite(logits)))
    assert bool(jnp.all(jnp.isfinite(feats)))
    assert bool(jnp.allclose(logits, logits2))
    print("KERNEL_OK")
</pallas_src>

<mosaic_0001>
module attributes {stable_mosaic.version = 11 : i64} {
  func.func @kernel(%arg0: i32, %arg1: memref<1x16x16x80xf32, #tpu.memory_space<vmem>>, %arg2: memref<80x200xf32, #tpu.memory_space<vmem>>, %arg3: memref<1x200xf32, #tpu.memory_space<vmem>>, %arg4: memref<1x200xf32, #tpu.memory_space<vmem>>, %arg5: memref<9x200xf32, #tpu.memory_space<vmem>>, %arg6: memref<1x200xf32, #tpu.memory_space<vmem>>, %arg7: memref<1x200xf32, #tpu.memory_space<vmem>>, %arg8: memref<200x80xf32, #tpu.memory_space<vmem>>, %arg9: memref<1x80xf32, #tpu.memory_space<vmem>>, %arg10: memref<1x80xf32, #tpu.memory_space<vmem>>, %arg11: memref<1x16x16x80xf32, #tpu.memory_space<vmem>>, %arg12: memref<18x32x200xf32, #tpu.memory_space<vmem>>) attributes {dimension_semantics = [#tpu.dimension_semantics<parallel>], iteration_bounds = array<i64: 2>, scalar_prefetch = 0 : i64, scratch_operands = 1 : i64, tpu.core_type = #tpu.core_type<tc>, window_params = [{transform_indices = @transform_0, window_bounds = array<i64: 1, 16, 16, 80>}, {pipeline_mode = #tpu.pipeline_mode<synchronous>, transform_indices = @transform_1, window_bounds = array<i64: 80, 200>}, {pipeline_mode = #tpu.pipeline_mode<synchronous>, transform_indices = @transform_2, window_bounds = array<i64: 1, 200>}, {pipeline_mode = #tpu.pipeline_mode<synchronous>, transform_indices = @transform_3, window_bounds = array<i64: 1, 200>}, {pipeline_mode = #tpu.pipeline_mode<synchronous>, transform_indices = @transform_4, window_bounds = array<i64: 9, 200>}, {pipeline_mode = #tpu.pipeline_mode<synchronous>, transform_indices = @transform_5, window_bounds = array<i64: 1, 200>}, {pipeline_mode = #tpu.pipeline_mode<synchronous>, transform_indices = @transform_6, window_bounds = array<i64: 1, 200>}, {pipeline_mode = #tpu.pipeline_mode<synchronous>, transform_indices = @transform_7, window_bounds = array<i64: 200, 80>}, {pipeline_mode = #tpu.pipeline_mode<synchronous>, transform_indices = @transform_8, window_bounds = array<i64: 1, 80>}, {pipeline_mode = #tpu.pipeline_mode<synchronous>, transform_indices = @transform_9, window_bounds = array<i64: 1, 80>}, {transform_indices = @transform_10, window_bounds = array<i64: 1, 16, 16, 80>}]} {
    %c0 = arith.constant 0 : index
    %c0_0 = arith.constant 0 : index
    %c0_1 = arith.constant 0 : index
    %c0_2 = arith.constant 0 : index
    %0 = vector.load %arg1[%c0, %c0_0, %c0_1, %c0_2] : memref<1x16x16x80xf32, #tpu.memory_space<vmem>>, vector<1x16x16x80xf32>
    %1 = vector.shape_cast %0 : vector<1x16x16x80xf32> to vector<256x80xf32>
    %c0_3 = arith.constant 0 : index
    %c0_4 = arith.constant 0 : index
    %2 = vector.load %arg2[%c0_3, %c0_4] : memref<80x200xf32, #tpu.memory_space<vmem>>, vector<80x200xf32>
    %cst = arith.constant dense<0.000000e+00> : vector<256x200xf32>
    %3 = tpu.matmul %1, %2, %cst {dimension_numbers = #tpu.dot_dimension_numbers<[1], [0], [0], [1], [0, 0, 1, 1], [], []>} : vector<256x80xf32>, vector<80x200xf32>, vector<256x200xf32> -> vector<256x200xf32>
    %c0_5 = arith.constant 0 : index
    %c0_6 = arith.constant 0 : index
    %4 = vector.load %arg3[%c0_5, %c0_6] : memref<1x200xf32, #tpu.memory_space<vmem>>, vector<1x200xf32>
    %5 = vector.broadcast %4 : vector<1x200xf32> to vector<256x200xf32>
    %6 = arith.mulf %3, %5 : vector<256x200xf32>
    %c0_7 = arith.constant 0 : index
    %c0_8 = arith.constant 0 : index
    %7 = vector.load %arg4[%c0_7, %c0_8] : memref<1x200xf32, #tpu.memory_space<vmem>>, vector<1x200xf32>
    %8 = vector.broadcast %7 : vector<1x200xf32> to vector<256x200xf32>
    %9 = arith.addf %6, %8 : vector<256x200xf32>
    %cst_9 = arith.constant 3.000000e+00 : f32
    %10 = vector.broadcast %cst_9 : f32 to vector<256x200xf32>
    %11 = arith.addf %9, %10 : vector<256x200xf32>
    %cst_10 = arith.constant 0.000000e+00 : f32
    %cst_11 = arith.constant 6.000000e+00 : f32
    %12 = vector.broadcast %cst_10 : f32 to vector<256x200xf32>
    %13 = arith.maximumf %12, %11 : vector<256x200xf32>
    %14 = vector.broadcast %cst_11 : f32 to vector<256x200xf32>
    %15 = arith.minimumf %14, %13 : vector<256x200xf32>
    %16 = arith.mulf %9, %15 : vector<256x200xf32>
    %cst_12 = arith.constant 0.166666672 : f32
    %17 = vector.broadcast %cst_12 : f32 to vector<256x200xf32>
    %18 = arith.mulf %16, %17 : vector<256x200xf32>
    %cst_13 = arith.constant 0.000000e+00 : f32
    %19 = vector.broadcast %cst_13 : f32 to vector<18x32x200xf32>
    %c0_14 = arith.constant 0 : index
    %c0_15 = arith.constant 0 : index
    %c0_16 = arith.constant 0 : index
    %20 = vector.load %arg12[%c0_14, %c0_15, %c0_16] : memref<18x32x200xf32, #tpu.memory_space<vmem>>, vector<18x32x200xf32>
    tpu.vector_store %arg12[%c0_14, %c0_15, %c0_16], %19 {strides = array<i32>} : memref<18x32x200xf32, #tpu.memory_space<vmem>>, vector<18x32x200xf32>,
    %21 = vector.shape_cast %18 : vector<256x200xf32> to vector<16x16x200xf32>
    %c1 = arith.constant 1 : index
    %c8 = arith.constant 8 : index
    %c0_17 = arith.constant 0 : index
    %22 = vector.load %arg12[%c1, %c8, %c0_17] : memref<18x32x200xf32, #tpu.memory_space<vmem>>, vector<16x16x200xf32>
    tpu.vector_store %arg12[%c1, %c8, %c0_17], %21 {strides = array<i32>} : memref<18x32x200xf32, #tpu.memory_space<vmem>>, vector<16x16x200xf32>,
    %cst_18 = arith.constant 0.000000e+00 : f32
    %23 = vector.broadcast %cst_18 : f32 to vector<16x16x200xf32>
    %c0_19 = arith.constant 0 : index
    %c0_20 = arith.constant 0 : index
    %24 = vector.load %arg5[%c0_19, %c0_20] : memref<9x200xf32, #tpu.memory_space<vmem>>, vector<1x200xf32>
    %25 = vector.shape_cast %24 : vector<1x200xf32> to vector<1x1x200xf32>
    %c0_21 = arith.constant 0 : index
    %c7 = arith.constant 7 : index
    %c0_22 = arith.constant 0 : index
    %26 = vector.load %arg12[%c0_21, %c7, %c0_22] : memref<18x32x200xf32, #tpu.memory_space<vmem>>, vector<16x16x200xf32>
    %27 = vector.broadcast %25 : vector<1x1x200xf32> to vector<16x16x200xf32>
    %28 = arith.mulf %26, %27 : vector<16x16x200xf32>
    %29 = arith.addf %23, %28 : vector<16x16x200xf32>
    %c1_23 = arith.constant 1 : index
    %c0_24 = arith.constant 0 : index
    %30 = vector.load %arg5[%c1_23, %c0_24] : memref<9x200xf32, #tpu.memory_space<vmem>>, vector<1x200xf32>
    %31 = vector.shape_cast %30 : vector<1x200xf32> to vector<1x1x200xf32>
    %c0_25 = arith.constant 0 : index
    %c8_26 = arith.constant 8 : index
    %c0_27 = arith.constant 0 : index
    %32 = vector.load %arg12[%c0_25, %c8_26, %c0_27] : memref<18x32x200xf32, #tpu.memory_space<vmem>>, vector<16x16x200xf32>
    %33 = vector.broadcast %31 : vector<1x1x200xf32> to vector<16x16x200xf32>
    %34 = arith.mulf %32, %33 : vector<16x16x200xf32>
    %35 = arith.addf %29, %34 : vector<16x16x200xf32>
    %c2 = arith.constant 2 : index
    %c0_28 = arith.constant 0 : index
    %36 = vector.load %arg5[%c2, %c0_28] : memref<9x200xf32, #tpu.memory_space<vmem>>, vector<1x200xf32>
    %37 = vector.shape_cast %36 : vector<1x200xf32> to vector<1x1x200xf32>
    %c0_29 = arith.constant 0 : index
    %c9 = arith.constant 9 : index
    %c0_30 = arith.constant 0 : index
    %38 = vector.load %arg12[%c0_29, %c9, %c0_30] : memref<18x32x200xf32, #tpu.memory_space<vmem>>, vector<16x16x200xf32>
    %39 = vector.broadcast %37 : vector<1x1x200xf32> to vector<16x16x200xf32>
    %40 = arith.mulf %38, %39 : vector<16x16x200xf32>
    %41 = arith.addf %35, %40 : vector<16x16x200xf32>
    %c3 = arith.constant 3 : index
    %c0_31 = arith.constant 0 : index
    %42 = vector.load %arg5[%c3, %c0_31] : memref<9x200xf32, #tpu.memory_space<vmem>>, vector<1x200xf32>
    %43 = vector.shape_cast %42 : vector<1x200xf32> to vector<1x1x200xf32>
    %c1_32 = arith.constant 1 : index
    %c7_33 = arith.constant 7 : index
    %c0_34 = arith.constant 0 : index
    %44 = vector.load %arg12[%c1_32, %c7_33, %c0_34] : memref<18x32x200xf32, #tpu.memory_space<vmem>>, vector<16x16x200xf32>
    %45 = vector.broadcast %43 : vector<1x1x200xf32> to vector<16x16x200xf32>
    %46 = arith.mulf %44, %45 : vector<16x16x200xf32>
    %47 = arith.addf %41, %46 : vector<16x16x200xf32>
    %c4 = arith.constant 4 : index
    %c0_35 = arith.constant 0 : index
    %48 = vector.load %arg5[%c4, %c0_35] : memref<9x200xf32, #tpu.memory_space<vmem>>, vector<1x200xf32>
    %49 = vector.shape_cast %48 : vector<1x200xf32> to vector<1x1x200xf32>
    %c1_36 = arith.constant 1 : index
    %c8_37 = arith.constant 8 : index
    %c0_38 = arith.constant 0 : index
    %50 = vector.load %arg12[%c1_36, %c8_37, %c0_38] : memref<18x32x200xf32, #tpu.memory_space<vmem>>, vector<16x16x200xf32>
    %51 = vector.broadcast %49 : vector<1x1x200xf32> to vector<16x16x200xf32>
    %52 = arith.mulf %50, %51 : vector<16x16x200xf32>
    %53 = arith.addf %47, %52 : vector<16x16x200xf32>
    %c5 = arith.constant 5 : index
    %c0_39 = arith.constant 0 : index
    %54 = vector.load %arg5[%c5, %c0_39] : memref<9x200xf32, #tpu.memory_space<vmem>>, vector<1x200xf32>
    %55 = vector.shape_cast %54 : vector<1x200xf32> to vector<1x1x200xf32>
    %c1_40 = arith.constant 1 : index
    %c9_41 = arith.constant 9 : index
    %c0_42 = arith.constant 0 : index
    %56 = vector.load %arg12[%c1_40, %c9_41, %c0_42] : memref<18x32x200xf32, #tpu.memory_space<vmem>>, vector<16x16x200xf32>
    %57 = vector.broadcast %55 : vector<1x1x200xf32> to vector<16x16x200xf32>
    %58 = arith.mulf %56, %57 : vector<16x16x200xf32>
    %59 = arith.addf %53, %58 : vector<16x16x200xf32>
    %c6 = arith.constant 6 : index
    %c0_43 = arith.constant 0 : index
    %60 = vector.load %arg5[%c6, %c0_43] : memref<9x200xf32, #tpu.memory_space<vmem>>, vector<1x200xf32>
    %61 = vector.shape_cast %60 : vector<1x200xf32> to vector<1x1x200xf32>
    %c2_44 = arith.constant 2 : index
    %c7_45 = arith.constant 7 : index
    %c0_46 = arith.constant 0 : index
    %62 = vector.load %arg12[%c2_44, %c7_45, %c0_46] : memref<18x32x200xf32, #tpu.memory_space<vmem>>, vector<16x16x200xf32>
    %63 = vector.broadcast %61 : vector<1x1x200xf32> to vector<16x16x200xf32>
    %64 = arith.mulf %62, %63 : vector<16x16x200xf32>
    %65 = arith.addf %59, %64 : vector<16x16x200xf32>
    %c7_47 = arith.constant 7 : index
    %c0_48 = arith.constant 0 : index
    %66 = vector.load %arg5[%c7_47, %c0_48] : memref<9x200xf32, #tpu.memory_space<vmem>>, vector<1x200xf32>
    %67 = vector.shape_cast %66 : vector<1x200xf32> to vector<1x1x200xf32>
    %c2_49 = arith.constant 2 : index
    %c8_50 = arith.constant 8 : index
    %c0_51 = arith.constant 0 : index
    %68 = vector.load %arg12[%c2_49, %c8_50, %c0_51] : memref<18x32x200xf32, #tpu.memory_space<vmem>>, vector<16x16x200xf32>
    %69 = vector.broadcast %67 : vector<1x1x200xf32> to vector<16x16x200xf32>
    %70 = arith.mulf %68, %69 : vector<16x16x200xf32>
    %71 = arith.addf %65, %70 : vector<16x16x200xf32>
    %c8_52 = arith.constant 8 : index
    %c0_53 = arith.constant 0 : index
    %72 = vector.load %arg5[%c8_52, %c0_53] : memref<9x200xf32, #tpu.memory_space<vmem>>, vector<1x200xf32>
    %73 = vector.shape_cast %72 : vector<1x200xf32> to vector<1x1x200xf32>
    %c2_54 = arith.constant 2 : index
    %c9_55 = arith.constant 9 : index
    %c0_56 = arith.constant 0 : index
    %74 = vector.load %arg12[%c2_54, %c9_55, %c0_56] : memref<18x32x200xf32, #tpu.memory_space<vmem>>, vector<16x16x200xf32>
    %75 = vector.broadcast %73 : vector<1x1x200xf32> to vector<16x16x200xf32>
    %76 = arith.mulf %74, %75 : vector<16x16x200xf32>
    %77 = arith.addf %71, %76 : vector<16x16x200xf32>
    %c0_57 = arith.constant 0 : index
    %c0_58 = arith.constant 0 : index
    %78 = vector.load %arg6[%c0_57, %c0_58] : memref<1x200xf32, #tpu.memory_space<vmem>>, vector<1x200xf32>
    %79 = vector.shape_cast %78 : vector<1x200xf32> to vector<1x1x200xf32>
    %80 = vector.broadcast %79 : vector<1x1x200xf32> to vector<16x16x200xf32>
    %81 = arith.mulf %77, %80 : vector<16x16x200xf32>
    %c0_59 = arith.constant 0 : index
    %c0_60 = arith.constant 0 : index
    %82 = vector.load %arg7[%c0_59, %c0_60] : memref<1x200xf32, #tpu.memory_space<vmem>>, vector<1x200xf32>
    %83 = vector.shape_cast %82 : vector<1x200xf32> to vector<1x1x200xf32>
    %84 = vector.broadcast %83 : vector<1x1x200xf32> to vector<16x16x200xf32>
    %85 = arith.addf %81, %84 : vector<16x16x200xf32>
    %cst_61 = arith.constant 3.000000e+00 : f32
    %86 = vector.broadcast %cst_61 : f32 to vector<16x16x200xf32>
    %87 = arith.addf %85, %86 : vector<16x16x200xf32>
    %cst_62 = arith.constant 0.000000e+00 : f32
    %cst_63 = arith.constant 6.000000e+00 : f32
    %88 = vector.broadcast %cst_62 : f32 to vector<16x16x200xf32>
    %89 = arith.maximumf %88, %87 : vector<16x16x200xf32>
    %90 = vector.broadcast %cst_63 : f32 to vector<16x16x200xf32>
    %91 = arith.minimumf %90, %89 : vector<16x16x200xf32>
    %92 = arith.mulf %85, %91 : vector<16x16x200xf32>
    %cst_64 = arith.constant 0.166666672 : f32
    %93 = vector.broadcast %cst_64 : f32 to vector<16x16x200xf32>
    %94 = arith.mulf %92, %93 : vector<16x16x200xf32>
    %95 = vector.shape_cast %94 : vector<16x16x200xf32> to vector<256x200xf32>
    %c0_65 = arith.constant 0 : index
    %c0_66 = arith.constant 0 : index
    %96 = vector.load %arg8[%c0_65, %c0_66] : memref<200x80xf32, #tpu.memory_space<vmem>>, vector<200x80xf32>
    %cst_67 = arith.constant dense<0.000000e+00> : vector<256x80xf32>
    %97 = tpu.matmul %95, %96, %cst_67 {dimension_numbers = #tpu.dot_dimension_numbers<[1], [0], [0], [1], [0, 0, 1, 1], [], []>} : vector<256x200xf32>, vector<200x80xf32>, vector<256x80xf32> -> vector<256x80xf32>
    %c0_68 = arith.constant 0 : index
    %c0_69 = arith.constant 0 : index
    %98 = vector.load %arg9[%c0_68, %c0_69] : memref<1x80xf32, #tpu.memory_space<vmem>>, vector<1x80xf32>
    %99 = vector.broadcast %98 : vector<1x80xf32> to vector<256x80xf32>
    %100 = arith.mulf %97, %99 : vector<256x80xf32>
    %c0_70 = arith.constant 0 : index
    %c0_71 = arith.constant 0 : index
    %101 = vector.load %arg10[%c0_70, %c0_71] : memref<1x80xf32, #tpu.memory_space<vmem>>, vector<1x80xf32>
    %102 = vector.broadcast %101 : vector<1x80xf32> to vector<256x80xf32>
    %103 = arith.addf %100, %102 : vector<256x80xf32>
    %104 = arith.addf %103, %1 : vector<256x80xf32>
    %105 = vector.shape_cast %104 : vector<256x80xf32> to vector<1x16x16x80xf32>
    %c0_72 = arith.constant 0 : index
    %c0_73 = arith.constant 0 : index
    %c0_74 = arith.constant 0 : index
    %c0_75 = arith.constant 0 : index
    %106 = vector.load %arg11[%c0_72, %c0_73, %c0_74, %c0_75] : memref<1x16x16x80xf32, #tpu.memory_space<vmem>>, vector<1x16x16x80xf32>
    tpu.vector_store %arg11[%c0_72, %c0_73, %c0_74, %c0_75], %105 {strides = array<i32>} : memref<1x16x16x80xf32, #tpu.memory_space<vmem>>, vector<1x16x16x80xf32>,
    return
  }
  func.func @transform_0(%arg0: i32) -> (i32, i32, i32, i32) {
    %c0_i32 = arith.constant 0 : i32
    %c0_i32_0 = arith.constant 0 : i32
    %c0_i32_1 = arith.constant 0 : i32
    %c0_i32_2 = arith.constant 0 : i32
    return %arg0, %c0_i32, %c0_i32_0, %c0_i32_1 : i32, i32, i32, i32
  }
  func.func @transform_1(%arg0: i32) -> (i32, i32) {
    %c0_i32 = arith.constant 0 : i32
    %c0_i32_0 = arith.constant 0 : i32
    %c0_i32_1 = arith.constant 0 : i32
    return %c0_i32, %c0_i32_0 : i32, i32
  }
  func.func @transform_2(%arg0: i32) -> (i32, i32) {
    %c0_i32 = arith.constant 0 : i32
    %c0_i32_0 = arith.constant 0 : i32
    %c0_i32_1 = arith.constant 0 : i32
    return %c0_i32, %c0_i32_0 : i32, i32
  }
  func.func @transform_3(%arg0: i32) -> (i32, i32) {
    %c0_i32 = arith.constant 0 : i32
    %c0_i32_0 = arith.constant 0 : i32
    %c0_i32_1 = arith.constant 0 : i32
    return %c0_i32, %c0_i32_0 : i32, i32
  }
  func.func @transform_4(%arg0: i32) -> (i32, i32) {
    %c0_i32 = arith.constant 0 : i32
    %c0_i32_0 = arith.constant 0 : i32
    %c0_i32_1 = arith.constant 0 : i32
    return %c0_i32, %c0_i32_0 : i32, i32
  }
  func.func @transform_5(%arg0: i32) -> (i32, i32) {
    %c0_i32 = arith.constant 0 : i32
    %c0_i32_0 = arith.constant 0 : i32
    %c0_i32_1 = arith.constant 0 : i32
    return %c0_i32, %c0_i32_0 : i32, i32
  }
  func.func @transform_6(%arg0: i32) -> (i32, i32) {
    %c0_i32 = arith.constant 0 : i32
    %c0_i32_0 = arith.constant 0 : i32
    %c0_i32_1 = arith.constant 0 : i32
    return %c0_i32, %c0_i32_0 : i32, i32
  }
  func.func @transform_7(%arg0: i32) -> (i32, i32) {
    %c0_i32 = arith.constant 0 : i32
    %c0_i32_0 = arith.constant 0 : i32
    %c0_i32_1 = arith.constant 0 : i32
    return %c0_i32, %c0_i32_0 : i32, i32
  }
  func.func @transform_8(%arg0: i32) -> (i32, i32) {
    %c0_i32 = arith.constant 0 : i32
    %c0_i32_0 = arith.constant 0 : i32
    %c0_i32_1 = arith.constant 0 : i32
    return %c0_i32, %c0_i32_0 : i32, i32
  }
  func.func @transform_9(%arg0: i32) -> (i32, i32) {
    %c0_i32 = arith.constant 0 : i32
    %c0_i32_0 = arith.constant 0 : i32
    %c0_i32_1 = arith.constant 0 : i32
    return %c0_i32, %c0_i32_0 : i32, i32
  }
  func.func @transform_10(%arg0: i32) -> (i32, i32, i32, i32) {
    %c0_i32 = arith.constant 0 : i32
    %c0_i32_0 = arith.constant 0 : i32
    %c0_i32_1 = arith.constant 0 : i32
    %c0_i32_2 = arith.constant 0 : i32
    return %arg0, %c0_i32, %c0_i32_0, %c0_i32_1 : i32, i32, i32, i32
  }
}

</mosaic_0001>

<bundles_post_ra>
// kernel: tpu_custom_call.1
= control target key start
LH: loop header
LB: loop body
LE: loop exit
PB: predicated region body
PF: predicated region fallthrough
CT: control target
= control target key end

     0   :  { %15 = vsyncpa [#allocation4], 0  ;;  %s11914_s0 = inlined_call_operand.hbm [shape: f32[2,16,16,80], index: 0, kind: input, shape index: {}]   ;;  %s11915_s1 = inlined_call_operand.vmem [shape: f32[80,200], index: 1, kind: input, shape index: {}]   ;;  %s11916_s2 = inlined_call_operand.vmem [shape: f32[1,200], index: 2, kind: input, shape index: {}]   ;;  %s11917_s3 = inlined_call_operand.vmem [shape: f32[1,200], index: 3, kind: input, shape index: {}]   ;;  %s11918_s4 = inlined_call_operand.vmem [shape: f32[9,200], index: 4, kind: input, shape index: {}]   ;;  %s11919_s5 = inlined_call_operand.vmem [shape: f32[1,200], index: 5, kind: input, shape index: {}]   ;;  %s11920_s6 = inlined_call_operand.vmem [shape: f32[1,200], index: 6, kind: input, shape index: {}]   ;;  %s11921_s7 = inlined_call_operand.vmem [shape: f32[200,80], index: 7, kind: input, shape index: {}]   ;;  %s11922_s8 = inlined_call_operand.vmem [shape: f32[1,80], index: 8, kind: input, shape index: {}]   ;;  %s11923_s9 = inlined_call_operand.vmem [shape: f32[1,80], index: 9, kind: input, shape index: {}]   ;;  %s11924_s10 = inlined_call_operand.hbm [shape: f32[2,16,16,80], index: 10, kind: output, shape index: {}]  }
   0x1   :  { %17 = vsyncpa [#allocation4 + $0x1], 0 }
   0x2   :  { %18 = vsyncpa [#allocation5], 0 }
   0x3   :  { %20 = vsyncpa [#allocation5 + $0x1], 0  ;;  %s7405_s13 = smov 0   ;;  %s7407_s14 = smov 0  }
   0x4   :  { %s7409_s15 = smov 0   ;;  %s7411_s16 = smov 0  }
   0x5 LB: > { %12313 = sst [smem:[#allocation9_spill]] %s7339_s15  ;;  %s7426_s17 = sadd.s32 4294967295, %s7343_s16   ;;  %s7343_s16 = sphi %s7411_s16, %s12728_s16   ;;  %s7339_s15 = sphi %s7409_s15, %s12730_s15   ;;  %s7335_s14 = sphi %s7407_s14, %s12732_s14   ;;  %s7331_s13 = sphi %s7405_s13, %s12731_s13  }
   0x6   : > { %s7035_s18 = sadd.s32 4294967294, %s7343_s16   ;;  %s7430_s19 = sadd.s32 1, %s7343_s16  }
   0x7   : > { %12314 = sst [smem:[#allocation10_spill]] %s7430_s19  ;;  %s33_s20 = sadd.s32 1, %s7339_s15 }
   0x8   : > { %s30_s21 = ssub.s32 %s7343_s16, %s7430_s19  ;;  %p40_p0 = scmp.ne.s32.totalorder %s7339_s15, %s7335_s14 }
   0x9   : > { %p31_p1 = scmp.eq.s32.totalorder %s30_s21, 0  ;;  %p41_p2 = scmp.eq.s32.totalorder %s7343_s16, 0 }
   0xa   : > { %p46_p3 = scmp.ne.s32.totalorder %s7335_s14, %s7331_s13  ;;  %p47_p4 = scmp.eq.s32.totalorder %s7426_s17, 0 }
   0xb   : > { %s7442_s22 = scalar_select %p31_p1, %s7339_s15, %s33_s20  }
   0xc   : > { %p7444_p5 = por %p41_p2, %p40_p0  ;;  %p7448_p6 = por %p47_p4, %p46_p3 }
   0xd   : > { %12315 = sst [smem:[#allocation11_spill]] %s7442_s22  ;;  %p259_p7 = scmp.eq.s32.totalorder %s7426_s17, 1 }
   0xe   : > { %p265_p8 = scmp.eq.s32.totalorder %s7035_s18, 1  ;;  %p7167_p10 = scmp.lt.s32.totalorder %s7343_s16, 2 }
   0xf   : > { %p7455_p11 = por %p259_p7, %p40_p0  ;;  %s312_s27 = sand.u32 1, %s7339_s15  }
  0x10   : > { %p7459_p12 = por %p265_p8, %p46_p3  ;;  %s7153_s28 = sshll.u32 %s7343_s16, 8 }
  0x11   : > { %s7038_s29 = sshll.u32 %s312_s27, 8  ;;  %s321_s12 = scalar_lea.hbm %s11914_s0, %s7153_s28 }
  0x12   : > { %s12319_s26 = scalar_select %p7459_p12, 1, 0 }
  0x13   : > { %s322_s20 = sshll.u32 %s321_s12, 4  ;;  %s316_s18 = scalar_lea.vmem [#allocation3], %s7038_s29  ;;  %s323_s20 = int_to_ptr.hbm [resolvable:$true] %s322_s20 }
  0x14   : > { %12320 = sst [smem:[#allocation12_spill]] %s12319_s26  ;;  %s324_s21 = sshll.u32 %s316_s18, 4  ;;  %s325_s21 = int_to_ptr.vmem [resolvable:$true] %s324_s21 }
  0x15   : > { %p7470_p13 = pnand %p7167_p10, %p7444_p5  ;;  %p7041_p0 = scmp.ge.s32.totalorder %s7343_s16, 1 }
  0x16   : > { %p332_p1 = scmp.lt.s32.totalorder %s7343_s16, 3  ;;  %s313_s15 = scalar_lea.sflag [#allocation4], %s312_s27 }
  0x17   : > { %s7247_s19 = sshra.s32 %s323_s20, 4  ;;  %p7251_p3 = pneg %p7470_p13  ;;  %s7248_s19 = int_to_ptr.hbm [resolvable:$true] %s7247_s19 }
  0x18   : > { %s7249_s26 = scalar_lea.hbm %s7248_s19, 256  ;;  %s7254_s23 = scalar_lea.hbm %s11914_s0, 512 }
  0x19   : > { %p7250_p2 = scmp.ne.s32.totalorder %s7248_s19, %s7249_s26  ;;  %p7255_p5 = scmp.lt.s32.totalorder %s7248_s19, %s11914_s0 }
  0x1a   : > { %p7256_p8 = scmp.lt.s32.totalorder %s7254_s23, %s7249_s26 }
  0x1b   : > { %p7252_p4 = pnand %p7251_p3, %p7250_p2 }
  0x1c   : > { %p7257_p10 = por %p7256_p8, %p7255_p5 }
  0x1d   : > { %p7253_p7 = pneg %p7252_p4 }
  0x1f   : > { %p7258_p9 = pnand %p7257_p10, %p7253_p7 }
  0x21   : > { %7261 = shalt.err (!%p7258_p9)
}
  0x22   : > { %s7345_s27 = smov 128   ;;  %s7346_s12 = smov 8  }
  0x23   : > { %7162 = dma.hbm_to_vmem [thread:$0]  (!%p7470_p13), %s323_s20, 4096, %s325_s21, %s313_s15, %s7345_s27, %s7345_s27, %s7346_s12  }
  0x24   : > { %p333_p2 = pnand %p7041_p0, %p332_p1 }
  0x26   : > { %336 = sbr.rel (%p333_p2) target bundleno = 1327 (0x52f), region = 60 }
  0x2b   : > { %s7491_s18 = sand.u32 1, %s7335_s14  }
  0x2c   : > { %s7042_s19 = sshll.u32 %s7491_s18, 8  ;;  %s339_s26 = scalar_lea.sflag [#allocation4], %s7491_s18 }
  0x2d   : > { %s7497_s28 = scalar_lea.vmem [#allocation3], %s7042_s19 }
  0x2e   : > { %7322 = dma.done.wait (%p7448_p6), %s339_s26, 4096  }
  0x2f   : > { %7324 = vsyncadd (%p7448_p6), %s339_s26, 4294963200  ;;  %v430_v0 = vld [vmem:[%s11915_s1 + $0x90] sm:$0xff]  ;;  %v431_v1 = vld [vmem:[%s11915_s1 + $0x98] sm:$0xff]  ;;  %vm432_vm0 = vcmask 654336   ;;  %v7347_v33 = vmov 0.0   ;;  %vm1216_vm1 = vcmask 588800  }
  0x30   : > { %v428_v2 = vld [vmem:[%s11915_s1 + $0x80] sm:$0xff]  ;;  %535 = vmatpush.msra.mxu0 %v430_v0  ;;  %648 = vmatpush.msra.mxu1 %v431_v1  ;;  %v429_v3 = vld [vmem:[%s11915_s1 + $0x88] sm:$0xff]  ;;  %v426_v4 = vld [vmem:[%s11915_s1 + $0x70] sm:$0xff]  ;;  %1215 = vst [vmem:[#allocation2] sm:$0xff] %v7347_v33  ;;  %vm1886_vm2 = vcmask 1046528   ;;  %vm2438_vm3 = vcmask 1045504  }
  0x31   : > { %v427_v5 = vld [vmem:[%s11915_s1 + $0x78] sm:$0xff]  ;;  %v424_v6 = vld [vmem:[%s11915_s1 + $0x60] sm:$0xff]  ;;  %v425_v7 = vld [vmem:[%s11915_s1 + $0x68] sm:$0xff]  ;;  %1218 = vst [vmem:[#allocation2 + $0x10] sm:$0xff] %v7347_v33  ;;  %vm6302_vm4 = vcmask 1040384   ;;  %s10164_s15 = scalar_lea.vmem [#allocation6], %s7042_s19 }
  0x32   : > { %536 = vmatpush.msra.mxu0 %v428_v2  ;;  %649 = vmatpush.msra.mxu1 %v429_v3  ;;  %v422_v8 = vld [vmem:[%s11915_s1 + $0x50] sm:$0xff]  ;;  %v423_v9 = vld [vmem:[%s11915_s1 + $0x58] sm:$0xff]  ;;  %v420_v10 = vld [vmem:[%s11915_s1 + $0x40] sm:$0xff]  ;;  %1220 = vst [vmem:[#allocation2 + $0x20] sm:$0xff] %v7347_v33  ;;  %s7154_s19 = sshll.u32 %s7426_s17, 8  ;;  %s6959_s29 = sshll.u32 %s10164_s15, 4  ;;  %s6960_s29 = int_to_ptr.vmem [resolvable:$true] %s6959_s29 }
  0x33   : > { %v421_v11 = vld [vmem:[%s11915_s1 + $0x48] sm:$0xff]  ;;  %v418_v12 = vld [vmem:[%s11915_s1 + $0x30] sm:$0xff]  ;;  %v419_v13 = vld [vmem:[%s11915_s1 + $0x38] sm:$0xff]  ;;  %1222 = vst [vmem:[#allocation2 + $0x30] sm:$0xff] %v7347_v33  ;;  %s6958_s21 = scalar_lea.hbm %s11924_s10, %s7154_s19  ;;  %s6947_s17 = scalar_lea.sflag [#allocation5], %s7491_s18 }
  0x34   : > { %537 = vmatpush.msra.mxu0 %v426_v4  ;;  %650 = vmatpush.msra.mxu1 %v427_v5  ;;  %v416_v14 = vld [vmem:[%s11915_s1 + $0x20] sm:$0xff]  ;;  %v417_v15 = vld [vmem:[%s11915_s1 + $0x28] sm:$0xff]  ;;  %v414_v16 = vld [vmem:[%s11915_s1 + $0x10] sm:$0xff]  ;;  %1224 = vst [vmem:[#allocation2 + $0x40] sm:$0xff] %v7347_v33  ;;  %s6961_s23 = sshll.u32 %s6958_s21, 4  ;;  %s7297_s12 = scalar_lea.hbm %s11924_s10, 512  ;;  %s6962_s23 = int_to_ptr.hbm [resolvable:$true] %s6961_s23 }
  0x35   : > { %v415_v17 = vld [vmem:[%s11915_s1 + $0x18] sm:$0xff]  ;;  %v412_v18 = vld [vmem:[%s11915_s1] sm:$0xff]  ;;  %v413_v19 = vld [vmem:[%s11915_s1 + $0x8] sm:$0xff]  ;;  %1230 = vst [vmem:[#allocation2 + $0x70] sm:$0xff] %v7347_v33  ;;  %s7291_s30 = sshra.s32 %s6962_s23, 4  ;;  %s7292_s30 = int_to_ptr.hbm [resolvable:$true] %s7291_s30 }
  0x36   : > { %538 = vmatpush.msra.mxu0 %v424_v6  ;;  %651 = vmatpush.msra.mxu1 %v425_v7  ;;  %v380_v20 = vld [vmem:[%s7497_s28] sm:$0xff]  ;;  %v381_v21 = vld [vmem:[%s7497_s28 + $0x8] sm:$0xff]  ;;  %v382_v22 = vld [vmem:[%s7497_s28 + $0x10] sm:$0xff]  ;;  %1232 = vst [vmem:[#allocation2 + $0x80] sm:$0xff] %v7347_v33  ;;  %s7293_s11 = scalar_lea.hbm %s7292_s30, 256  ;;  %p7298_p0 = scmp.lt.s32.totalorder %s7292_s30, %s11924_s10 }
  0x37   : > { %v383_v23 = vld [vmem:[%s7497_s28 + $0x18] sm:$0xff]  ;;  %v384_v24 = vld [vmem:[%s7497_s28 + $0x20] sm:$0xff]  ;;  %v385_v25 = vld [vmem:[%s7497_s28 + $0x28] sm:$0xff]  ;;  %1238 = vst [vmem:[#allocation2 + $0xb0] sm:$0xff] %v7347_v33  ;;  %p7294_p6 = scmp.ne.s32.totalorder %s7292_s30, %s7293_s11  ;;  %p7299_p1 = scmp.lt.s32.totalorder %s7297_s12, %s7293_s11 }
  0x38   : > { %539 = vmatpush.msra.mxu0 %v422_v8  ;;  %652 = vmatpush.msra.mxu1 %v423_v9  ;;  %v386_v26 = vld [vmem:[%s7497_s28 + $0x30] sm:$0xff]  ;;  %v387_v27 = vld [vmem:[%s7497_s28 + $0x38] sm:$0xff]  ;;  %v388_v28 = vld [vmem:[%s7497_s28 + $0x40] sm:$0xff]  ;;  %1240 = vst [vmem:[#allocation2 + $0xc0] sm:$0xff] %v7347_v33 }
  0x39   : > { %v389_v29 = vld [vmem:[%s7497_s28 + $0x48] sm:$0xff]  ;;  %v390_v30 = vld [vmem:[%s7497_s28 + $0x50] sm:$0xff]  ;;  %v391_v31 = vld [vmem:[%s7497_s28 + $0x58] sm:$0xff]  ;;  %1246 = vst [vmem:[#allocation2 + $0xf0] sm:$0xff] %v7347_v33  ;;  %p7295_p9 = pnand %p7294_p6, %p7455_p11  ;;  %p7300_p3 = por %p7299_p1, %p7298_p0 }
  0x3a   : > { %540 = vmatpush.msra.mxu0 %v420_v10  ;;  %653 = vmatpush.msra.mxu1 %v421_v11  ;;  %v392_v32 = vld [vmem:[%s7497_s28 + $0x60] sm:$0xff]  ;;  %v393_v34 = vld [vmem:[%s7497_s28 + $0x68] sm:$0xff]  ;;  %1248 = vst [vmem:[#allocation2 + $0x100] sm:$0xff] %v7347_v33  ;;  %v394_v35 = vld [vmem:[%s7497_s28 + $0x70] sm:$0xff] }
  0x3b   : > { %1254 = vst [vmem:[#allocation2 + $0x130] sm:$0xff] %v7347_v33  ;;  %v395_v36 = vld [vmem:[%s7497_s28 + $0x78] sm:$0xff]  ;;  %v755_v37 = vld [vmem:[%s11916_s2] sm:$0x3]  ;;  %v2177_v10 = vld [vmem:[#allocation2 + $0x10] sm:$0xfe]  ;;  %p7296_p13 = pneg %p7295_p9 }
  0x3c   : > { %541 = vmatpush.msra.mxu0 %v418_v12  ;;  %654 = vmatpush.msra.mxu1 %v419_v13  ;;  %1256 = vst [vmem:[#allocation2 + $0x140] sm:$0xff] %v7347_v33  ;;  %v825_v38 = vld [vmem:[%s11917_s3] sm:$0x3]  ;;  %v7644_v39 = vperm.slane %v755_v37, 0  ;;  %v7647_v40 = vperm.slane %v755_v37, 1  ;;  %v397_v12 = vld [vmem:[%s7497_s28 + $0x88] sm:$0xff] }
  0x3d   : > { %1262 = vst [vmem:[#allocation2 + $0x170] sm:$0xff] %v7347_v33  ;;  %v7650_v41 = vperm.slane %v825_v38, 0  ;;  %v7653_v42 = vperm.slane %v825_v38, 1  ;;  %v396_v45 = vld [vmem:[%s7497_s28 + $0x80] sm:$0xff]  ;;  %p7301_p4 = pnand %p7300_p3, %p7296_p13 }
  0x3e   : > { %542 = vmatpush.msra.mxu0 %v416_v14  ;;  %655 = vmatpush.msra.mxu1 %v417_v15  ;;  %1264 = vst [vmem:[#allocation2 + $0x180] sm:$0xff] %v7347_v33  ;;  %v7108_v0 = vld [vmem:[%s11918_s4 + $0x1] ss:$8 sm:$0x3]  ;;  %v1426_v13 = vld [vmem:[#allocation2] sm:$0x80] }
  0x3f   : > { %1270 = vst [vmem:[#allocation2 + $0x1b0] sm:$0xff] %v7347_v33  ;;  %v7731_v1 = vperm.slane %v7108_v0, 0  ;;  %v7738_v4 = vld [vmem:[%s11918_s4 + $0x2] ss:$8 sm:$0x3]  ;;  %v7802_v38 = vperm.slane %v7108_v0, 1 }
  0x40   : > { %543 = vmatpush.msra.mxu0 %v414_v16  ;;  %656 = vmatpush.msra.mxu1 %v415_v17  ;;  %1272 = vst [vmem:[#allocation2 + $0x1c0] sm:$0xff] %v7347_v33  ;;  %v1425_v6 = vld [vmem:[%s11918_s4] ss:$8 sm:$0x3]  ;;  %v7748_v8 = vperm.slane %v7738_v4, 0 }
  0x41   : > { %1278 = vst [vmem:[#allocation2 + $0x1f0] sm:$0xff] %v7347_v33  ;;  %v1758_v7 = vmul.f32 0.0, %v7731_v1  ;;  %v7752_v9 = vperm.slane %v1425_v6, 0  ;;  %v7842_v0 = vld [vmem:[%s11918_s4 + $0x5] ss:$8 sm:$0x3] }
  0x42   : > { %544 = vmatpush.msra.mxu0 %v412_v18  ;;  %657 = vmatpush.msra.mxu1 %v413_v19  ;;  %1280 = vst [vmem:[#allocation2 + $0x200] sm:$0xff] %v7347_v33  ;;  %v2246_v15 = vmul.f32 %v7748_v8, %v2177_v10  ;;  %v7762_v16 = vmul.f32 0.0, %v7748_v8 }
  0x43   : > { %7044 = vmatmul.msk.f32.vlgmr.msra.gmra.mxu0 %vm432_vm0, %v380_v20  ;;  %7076 = vmatmul.msk.f32.vlgmr.msra.gmra.mxu1 %vm432_vm0, %v380_v20  ;;  %1286 = vst [vmem:[#allocation2 + $0x230] sm:$0xff] %v7347_v33  ;;  %v7758_v14 = vrot.slane %v1758_v7, 1  ;;  %v1527_v18 = vmul.f32 %v7752_v9, %v1426_v13  ;;  %v1529_v19 = vmul.f32 0.0, %v7752_v9 }
  0x44   : > { %1288 = vst [vmem:[#allocation2 + $0x240] sm:$0xff] %v7347_v33 }
  0x45   : > { %1294 = vst [vmem:[#allocation2 + $0x270] sm:$0xff] %v7347_v33 }
  0x46   : > { %1296 = vst [vmem:[#allocation2 + $0x280] sm:$0xff] %v7347_v33 }
  0x47   : > { %1302 = vst [vmem:[#allocation2 + $0x2b0] sm:$0xff] %v7347_v33 }
  0x48   : > { %1304 = vst [vmem:[#allocation2 + $0x2c0] sm:$0xff] %v7347_v33 }
  0x49   : > { %1310 = vst [vmem:[#allocation2 + $0x2f0] sm:$0xff] %v7347_v33 }
  0x4a   : > { %1312 = vst [vmem:[#allocation2 + $0x300] sm:$0xff] %v7347_v33 }
  0x4b   : > { %7045 = vmatmul.msk.f32.gmra.mxu0 %vm432_vm0, %v381_v21  ;;  %7077 = vmatmul.msk.f32.gmra.mxu1 %vm432_vm0, %v381_v21  ;;  %1318 = vst [vmem:[#allocation2 + $0x330] sm:$0xff] %v7347_v33  ;;  %v2439_v21 = vrot.slane %v2246_v15, 2 }
  0x4c   : > { %1320 = vst [vmem:[#allocation2 + $0x340] sm:$0xff] %v7347_v33 }
  0x4d   : > { %1326 = vst [vmem:[#allocation2 + $0x370] sm:$0xff] %v7347_v33 }
  0x4e   : > { %1328 = vst [vmem:[#allocation2 + $0x380] sm:$0xff] %v7347_v33 }
  0x4f   : > { %1334 = vst [vmem:[#allocation2 + $0x3b0] sm:$0xff] %v7347_v33 }
  0x50   : > { %1336 = vst [vmem:[#allocation2 + $0x3c0] sm:$0xff] %v7347_v33 }
  0x51   : > { %1342 = vst [vmem:[#allocation2 + $0x3f0] sm:$0xff] %v7347_v33 }
  0x52   : > { %1344 = vst [vmem:[#allocation2 + $0x400] sm:$0xff] %v7347_v33 }
  0x53   : > { %7046 = vmatmul.msk.f32.gmra.mxu0 %vm432_vm0, %v382_v22  ;;  %7078 = vmatmul.msk.f32.gmra.mxu1 %vm432_vm0, %v382_v22  ;;  %1350 = vst [vmem:[#allocation2 + $0x430] sm:$0xff] %v7347_v33  ;;  %v11933_v22 = vrot.slane %v7762_v16, 2 }
  0x54   : > { %1352 = vst [vmem:[#allocation2 + $0x440] sm:$0xff] %v7347_v33 }
  0x55   : > { %1354 = vst [vmem:[#allocation2 + $0x450] sm:$0xff] %v7347_v33 }
  0x56   : > { %1356 = vst [vmem:[#allocation2 + $0x460] sm:$0xff] %v7347_v33 }
  0x57   : > { %1358 = vst [vmem:[#allocation2 + $0x470] sm:$0xff] %v7347_v33 }
  0x58   : > { %1227 = vst.msk [vmem:[#allocation2 + $0x58] sm:$0xff] %vm1216_vm1, %v7347_v33 }
  0x59   : > { %1217 = vst.msk [vmem:[#allocation2 + $0x8] sm:$0xff] %vm1216_vm1, %v7347_v33 }
  0x5a   : > { %1219 = vst.msk [vmem:[#allocation2 + $0x18] sm:$0xff] %vm1216_vm1, %v7347_v33 }
  0x5b   : > { %7047 = vmatmul.msk.f32.gmra.mxu0 %vm432_vm0, %v383_v23  ;;  %7079 = vmatmul.msk.f32.gmra.mxu1 %vm432_vm0, %v383_v23  ;;  %1221 = vst.msk [vmem:[#allocation2 + $0x28] sm:$0xff] %vm1216_vm1, %v7347_v33  ;;  %v2079_v23 = vadd.f32 %v7758_v14, %v1527_v18 }
  0x5c   : > { %1223 = vst.msk [vmem:[#allocation2 + $0x38] sm:$0xff] %vm1216_vm1, %v7347_v33 }
  0x5d   : > { %1225 = vst.msk [vmem:[#allocation2 + $0x48] sm:$0xff] %vm1216_vm1, %v7347_v33 }
  0x5e   : > { %1229 = vst.msk [vmem:[#allocation2 + $0x68] sm:$0xff] %vm1216_vm1, %v7347_v33 }
  0x5f   : > { %1231 = vst.msk [vmem:[#allocation2 + $0x78] sm:$0xff] %vm1216_vm1, %v7347_v33 }
  0x60   : > { %1233 = vst.msk [vmem:[#allocation2 + $0x88] sm:$0xff] %vm1216_vm1, %v7347_v33 }
  0x61   : > { %1235 = vst.msk [vmem:[#allocation2 + $0x98] sm:$0xff] %vm1216_vm1, %v7347_v33 }
  0x62   : > { %1237 = vst.msk [vmem:[#allocation2 + $0xa8] sm:$0xff] %vm1216_vm1, %v7347_v33 }
  0x63   : > { %7048 = vmatmul.msk.f32.gmra.mxu0 %vm432_vm0, %v384_v24  ;;  %7080 = vmatmul.msk.f32.gmra.mxu1 %vm432_vm0, %v384_v24  ;;  %1239 = vst.msk [vmem:[#allocation2 + $0xb8] sm:$0xff] %vm1216_vm1, %v7347_v33  ;;  %v2081_v24 = vadd.f32 %v7758_v14, %v1529_v19 }
  0x64   : > { %1241 = vst.msk [vmem:[#allocation2 + $0xc8] sm:$0xff] %vm1216_vm1, %v7347_v33 }
  0x65   : > { %1243 = vst.msk [vmem:[#allocation2 + $0xd8] sm:$0xff] %vm1216_vm1, %v7347_v33 }
  0x66   : > { %1245 = vst.msk [vmem:[#allocation2 + $0xe8] sm:$0xff] %vm1216_vm1, %v7347_v33 }
  0x67   : > { %1247 = vst.msk [vmem:[#allocation2 + $0xf8] sm:$0xff] %vm1216_vm1, %v7347_v33 }
  0x68   : > { %1249 = vst.msk [vmem:[#allocation2 + $0x108] sm:$0xff] %vm1216_vm1, %v7347_v33 }
  0x69   : > { %1251 = vst.msk [vmem:[#allocation2 + $0x118] sm:$0xff] %vm1216_vm1, %v7347_v33 }
  0x6a   : > { %1253 = vst.msk [vmem:[#allocation2 + $0x128] sm:$0xff] %vm1216_vm1, %v7347_v33 }
  0x6b   : > { %7049 = vmatmul.msk.f32.gmra.mxu0 %vm432_vm0, %v385_v25  ;;  %7081 = vmatmul.msk.f32.gmra.mxu1 %vm432_vm0, %v385_v25  ;;  %1255 = vst.msk [vmem:[#allocation2 + $0x138] sm:$0xff] %vm1216_vm1, %v7347_v33  ;;  %v7780_v25 = vld [vmem:[%s11918_s4 + $0x3] ss:$8 sm:$0x3] }
  0x6c   : > { %1257 = vst.msk [vmem:[#allocation2 + $0x148] sm:$0xff] %vm1216_vm1, %v7347_v33 }
  0x6d   : > { %1259 = vst.msk [vmem:[#allocation2 + $0x158] sm:$0xff] %vm1216_vm1, %v7347_v33 }
  0x6e   : > { %1261 = vst.msk [vmem:[#allocation2 + $0x168] sm:$0xff] %vm1216_vm1, %v7347_v33 }
  0x6f   : > { %1263 = vst.msk [vmem:[#allocation2 + $0x178] sm:$0xff] %vm1216_vm1, %v7347_v33 }
  0x70   : > { %1265 = vst.msk [vmem:[#allocation2 + $0x188] sm:$0xff] %vm1216_vm1, %v7347_v33 }
  0x71   : > { %12322 = vst [vmem:[#allocation13_spill] sm:$0xff] %v7731_v1 }
  0x72   : > { %1267 = vst.msk [vmem:[#allocation2 + $0x198] sm:$0xff] %vm1216_vm1, %v7347_v33 }
  0x73   : > { %7050 = vmatmul.msk.f32.gmra.mxu0 %vm432_vm0, %v386_v26  ;;  %7082 = vmatmul.msk.f32.gmra.mxu1 %vm432_vm0, %v386_v26  ;;  %1269 = vst.msk [vmem:[#allocation2 + $0x1a8] sm:$0xff] %vm1216_vm1, %v7347_v33 }
  0x74   : > { %12323 = vst [vmem:[#allocation14_spill] sm:$0xff] %v7748_v8 }
  0x75   : > { %1271 = vst.msk [vmem:[#allocation2 + $0x1b8] sm:$0xff] %vm1216_vm1, %v7347_v33 }
  0x76   : > { %12324 = vst [vmem:[#allocation15_spill] sm:$0xff] %v7752_v9 }
  0x77   : > { %1273 = vst.msk [vmem:[#allocation2 + $0x1c8] sm:$0xff] %vm1216_vm1, %v7347_v33 }
  0x78   : > { %1275 = vst.msk [vmem:[#allocation2 + $0x1d8] sm:$0xff] %vm1216_vm1, %v7347_v33 }
  0x79   : > { %1277 = vst.msk [vmem:[#allocation2 + $0x1e8] sm:$0xff] %vm1216_vm1, %v7347_v33 }
  0x7a   : > { %1279 = vst.msk [vmem:[#allocation2 + $0x1f8] sm:$0xff] %vm1216_vm1, %v7347_v33 }
  0x7b   : > { %7051 = vmatmul.msk.f32.gmra.mxu0 %vm432_vm0, %v387_v27  ;;  %7083 = vmatmul.msk.f32.gmra.mxu1 %vm432_vm0, %v387_v27  ;;  %1281 = vst.msk [vmem:[#allocation2 + $0x208] sm:$0xff] %vm1216_vm1, %v7347_v33  ;;  %v2442_v27 = vsel %vm2438_vm3, %v2439_v21, %v11933_v22 }
  0x7c   : > { %1283 = vst.msk [vmem:[#allocation2 + $0x218] sm:$0xff] %vm1216_vm1, %v7347_v33 }
  0x7d   : > { %1285 = vst.msk [vmem:[#allocation2 + $0x228] sm:$0xff] %vm1216_vm1, %v7347_v33 }
  0x7e   : > { %12326 = vst [vmem:[#allocation17_spill] sm:$0xff] %v7802_v38 }
  0x7f   : > { %1287 = vst.msk [vmem:[#allocation2 + $0x238] sm:$0xff] %vm1216_vm1, %v7347_v33 }
  0x80   : > { %1289 = vst.msk [vmem:[#allocation2 + $0x248] sm:$0xff] %vm1216_vm1, %v7347_v33 }
  0x81   : > { %1291 = vst.msk [vmem:[#allocation2 + $0x258] sm:$0xff] %vm1216_vm1, %v7347_v33 }
  0x82   : > { %1293 = vst.msk [vmem:[#allocation2 + $0x268] sm:$0xff] %vm1216_vm1, %v7347_v33 }
  0x83   : > { %7052 = vmatmul.msk.f32.gmra.mxu0 %vm432_vm0, %v388_v28  ;;  %7084 = vmatmul.msk.f32.gmra.mxu1 %vm432_vm0, %v388_v28  ;;  %v2793_v28 = vld [vmem:[#allocation2 + $0x40] sm:$0x80]  ;;  %1295 = vst.msk [vmem:[#allocation2 + $0x278] sm:$0xff] %vm1216_vm1, %v7347_v33 }
  0x84   : > { %1297 = vst.msk [vmem:[#allocation2 + $0x288] sm:$0xff] %vm1216_vm1, %v7347_v33 }
  0x85   : > { %1299 = vst.msk [vmem:[#allocation2 + $0x298] sm:$0xff] %vm1216_vm1, %v7347_v33 }
  0x86   : > { %1301 = vst.msk [vmem:[#allocation2 + $0x2a8] sm:$0xff] %vm1216_vm1, %v7347_v33 }
  0x87   : > { %1303 = vst.msk [vmem:[#allocation2 + $0x2b8] sm:$0xff] %vm1216_vm1, %v7347_v33 }
  0x88   : > { %1305 = vst.msk [vmem:[#allocation2 + $0x2c8] sm:$0xff] %vm1216_vm1, %v7347_v33 }
  0x89   : > { %1307 = vst.msk [vmem:[#allocation2 + $0x2d8] sm:$0xff] %vm1216_vm1, %v7347_v33 }
  0x8a   : > { %1309 = vst.msk [vmem:[#allocation2 + $0x2e8] sm:$0xff] %vm1216_vm1, %v7347_v33 }
  0x8b   : > { %7053 = vmatmul.msk.f32.gmra.mxu0 %vm432_vm0, %v389_v29  ;;  %7085 = vmatmul.msk.f32.gmra.mxu1 %vm432_vm0, %v389_v29  ;;  %v7788_v29 = vperm.slane %v7780_v25, 0  ;;  %1311 = vst.msk [vmem:[#allocation2 + $0x2f8] sm:$0xff] %vm1216_vm1, %v7347_v33 }
  0x8c   : > { %1313 = vst.msk [vmem:[#allocation2 + $0x308] sm:$0xff] %vm1216_vm1, %v7347_v33 }
  0x8d   : > { %1315 = vst.msk [vmem:[#allocation2 + $0x318] sm:$0xff] %vm1216_vm1, %v7347_v33 }
  0x8e   : > { %1317 = vst.msk [vmem:[#allocation2 + $0x328] sm:$0xff] %vm1216_vm1, %v7347_v33 }
  0x8f   : > { %1319 = vst.msk [vmem:[#allocation2 + $0x338] sm:$0xff] %vm1216_vm1, %v7347_v33 }
  0x90   : > { %1321 = vst.msk [vmem:[#allocation2 + $0x348] sm:$0xff] %vm1216_vm1, %v7347_v33 }
  0x91   : > { %1323 = vst.msk [vmem:[#allocation2 + $0x358] sm:$0xff] %vm1216_vm1, %v7347_v33 }
  0x92   : > { %1325 = vst.msk [vmem:[#allocation2 + $0x368] sm:$0xff] %vm1216_vm1, %v7347_v33 }
  0x93   : > { %7054 = vmatmul.msk.f32.gmra.mxu0 %vm432_vm0, %v390_v30  ;;  %7086 = vmatmul.msk.f32.gmra.mxu1 %vm432_vm0, %v390_v30  ;;  %1327 = vst.msk [vmem:[#allocation2 + $0x378] sm:$0xff] %vm1216_vm1, %v7347_v33 }
  0x94   : > { %1329 = vst.msk [vmem:[#allocation2 + $0x388] sm:$0xff] %vm1216_vm1, %v7347_v33 }
  0x95   : > { %1331 = vst.msk [vmem:[#allocation2 + $0x398] sm:$0xff] %vm1216_vm1, %v7347_v33 }
  0x96   : > { %1333 = vst.msk [vmem:[#allocation2 + $0x3a8] sm:$0xff] %vm1216_vm1, %v7347_v33 }
  0x97   : > { %1335 = vst.msk [vmem:[#allocation2 + $0x3b8] sm:$0xff] %vm1216_vm1, %v7347_v33 }
  0x98   : > { %1337 = vst.msk [vmem:[#allocation2 + $0x3c8] sm:$0xff] %vm1216_vm1, %v7347_v33 }
  0x99   : > { %1339 = vst.msk [vmem:[#allocation2 + $0x3d8] sm:$0xff] %vm1216_vm1, %v7347_v33 }
  0x9a   : > { %1341 = vst.msk [vmem:[#allocation2 + $0x3e8] sm:$0xff] %vm1216_vm1, %v7347_v33 }
  0x9b   : > { %7055 = vmatmul.msk.f32.gmra.mxu0 %vm432_vm0, %v391_v31  ;;  %7087 = vmatmul.msk.f32.gmra.mxu1 %vm432_vm0, %v391_v31  ;;  %v7795_v31 = vld [vmem:[%s11918_s4 + $0x4] ss:$8 sm:$0x3]  ;;  %1343 = vst.msk [vmem:[#allocation2 + $0x3f8] sm:$0xff] %vm1216_vm1, %v7347_v33 }
  0x9c   : > { %v7800_v37 = vperm.slane %v7795_v31, 0  ;;  %1345 = vst.msk [vmem:[#allocation2 + $0x408] sm:$0xff] %vm1216_vm1, %v7347_v33 }
  0x9d   : > { %1347 = vst.msk [vmem:[#allocation2 + $0x418] sm:$0xff] %vm1216_vm1, %v7347_v33 }
  0x9e   : > { %12325 = vst [vmem:[#allocation16_spill] sm:$0xff] %v7800_v37 }
  0x9f   : > { %1349 = vst.msk [vmem:[#allocation2 + $0x428] sm:$0xff] %vm1216_vm1, %v7347_v33 }
  0xa0   : > { %1351 = vst.msk [vmem:[#allocation2 + $0x438] sm:$0xff] %vm1216_vm1, %v7347_v33 }
  0xa1   : > { %1353 = vst.msk [vmem:[#allocation2 + $0x448] sm:$0xff] %vm1216_vm1, %v7347_v33 }
  0xa2   : > { %1355 = vst.msk [vmem:[#allocation2 + $0x458] sm:$0xff] %vm1216_vm1, %v7347_v33 }
  0xa3   : > { %7056 = vmatmul.msk.f32.gmra.mxu0 %vm432_vm0, %v392_v32  ;;  %7088 = vmatmul.msk.f32.gmra.mxu1 %vm432_vm0, %v392_v32  ;;  %1357 = vst.msk [vmem:[#allocation2 + $0x468] sm:$0xff] %vm1216_vm1, %v7347_v33 }
  0xa4   : > { %1359 = vst.msk [vmem:[#allocation2 + $0x478] sm:$0xff] %vm1216_vm1, %v7347_v33  ;;  %v6499_v33 = vld [vmem:[%s11921_s7 + $0x20] sm:$0xff] }
  0xab   : > { %7057 = vmatmul.msk.f32.gmra.mxu0 %vm432_vm0, %v393_v34  ;;  %7089 = vmatmul.msk.f32.gmra.mxu1 %vm432_vm0, %v393_v34 }
  0xb3   : > { %7058 = vmatmul.msk.f32.gmra.mxu0 %vm432_vm0, %v394_v35  ;;  %7090 = vmatmul.msk.f32.gmra.mxu1 %vm432_vm0, %v394_v35 }
  0xbb   : > { %7059 = vmatmul.msk.f32.gmra.mxu0 %vm432_vm0, %v395_v36  ;;  %7091 = vmatmul.msk.f32.gmra.mxu1 %vm432_vm0, %v395_v36  ;;  %v2695_v36 = vadd.f32 %v2439_v21, %v2079_v23 }
  0xc0   : > { %v546_v43 = vpop.f32.mrf.mxu0  ;;  %v659_v44 = vpop.f32.mrf.mxu1 }
  0xc1   : > { %v761_v46 = vmul.f32 %v7644_v39, %v546_v43  ;;  %v762_v47 = vmul.f32 %v7647_v40, %v659_v44 }
  0xc3   : > { %v831_v48 = vadd.f32 %v7650_v41, %v761_v46  ;;  %v832_v49 = vadd.f32 %v7653_v42, %v762_v47  ;;  %7060 = vmatmul.msk.f32.gmra.mxu0 %vm432_vm0, %v396_v45  ;;  %7092 = vmatmul.msk.f32.gmra.mxu1 %vm432_vm0, %v396_v45  ;;  %v2697_v45 = vadd.f32 %v2442_v27, %v2081_v24  ;;  %v1429_v47 = vld [vmem:[#allocation2 + $0x18] sm:$0xff] }
  0xc4   : > { %v2894_v46 = vmul.f32 %v7788_v29, %v2793_v28  ;;  %v7874_v28 = vld [vmem:[%s11918_s4 + $0x6] ss:$8 sm:$0x3] }
  0xc5   : > { %v895_v50 = vadd.f32 3.0, %v831_v48  ;;  %v896_v51 = vadd.f32 3.0, %v832_v49 }
  0xc7   : > { %v959_v52 = vmax.f32 %v895_v50, 0.0  ;;  %v960_v53 = vmax.f32 %v896_v51, 0.0  ;;  %v398_v50 = vld [vmem:[%s7497_s28 + $0x90] sm:$0xff] }
  0xc8   : > { %v549_v60 = vpop.f32.mrf.mxu0  ;;  %v662_v3 = vpop.f32.mrf.mxu1 }
  0xc9   : > { %v1023_v54 = vmin.f32 %v959_v52, 6.0  ;;  %v1024_v55 = vmin.f32 %v960_v53, 6.0  ;;  %v763_v61 = vmul.f32 %v7644_v39, %v549_v60  ;;  %v764_v5 = vmul.f32 %v7647_v40, %v662_v3 }
  0xca   : > { %v7818_v53 = vperm.slane %v1425_v6, 1  ;;  %v7847_v6 = vperm.slane %v7842_v0, 0 }
  0xcb   : > { %v1087_v56 = vmul.f32 %v1023_v54, %v831_v48  ;;  %v1088_v57 = vmul.f32 %v1024_v55, %v832_v49  ;;  %v833_v62 = vadd.f32 %v7650_v41, %v763_v61  ;;  %v834_v11 = vadd.f32 %v7653_v42, %v764_v5  ;;  %7061 = vmatmul.msk.f32.gmra.mxu0 %vm432_vm0, %v397_v12  ;;  %v7809_v48 = vld [vmem:[#allocation2 + $0x28] sm:$0xff] }
  0xcc   : > { %7093 = vmatmul.msk.f32.gmra.mxu1 %vm432_vm0, %v397_v12  ;;  %12327 = vst [vmem:[#allocation18_spill] sm:$0xff] %v7818_v53  ;;  %v7835_v60 = vmul.f32 %v7802_v38, %v7809_v48  ;;  %v7857_v13 = vmul.f32 %v7818_v53, %v1429_v47 }
  0xcd   : > { %v7678_v58 = vmul.f32 0.16666667, %v1087_v56  ;;  %v1152_v59 = vmul.f32 0.16666667, %v1088_v57  ;;  %v897_v63 = vadd.f32 3.0, %v833_v62  ;;  %v898_v20 = vadd.f32 3.0, %v834_v11 }
  0xce   : > { %v1427_v57 = vld [vmem:[#allocation2 + $0x8] sm:$0x80]  ;;  %12328 = vst [vmem:[#allocation19_spill] sm:$0xff] %v7847_v6  ;;  %v11932_v21 = vrot.slane %v7835_v60, 1 }
  0xcf   : > { %1361 = vst [vmem:[#allocation2 + $0x50] sm:$0xff] %v7678_v58  ;;  %v961_v2 = vmax.f32 %v897_v63, 0.0  ;;  %v962_v26 = vmax.f32 %v898_v20, 0.0  ;;  %v2896_v51 = vmul.f32 %v7788_v29, %v7678_v58  ;;  %v3125_v52 = vmul.f32 %v7800_v37, %v7678_v58 }
  0xd0   : > { %1362 = vst.msk [vmem:[#allocation2 + $0x58] sm:$0xff] %vm1216_vm1, %v1152_v59  ;;  %v552_v34 = vpop.f32.mrf.mxu0  ;;  %v665_v35 = vpop.f32.mrf.mxu1  ;;  %v1759_v59 = vmul.f32 %v7802_v38, %v1429_v47  ;;  %v2990_v63 = vadd.f32 %v2894_v46, %v2695_v36  ;;  %v1528_v7 = vmul.f32 %v7818_v53, %v1427_v57  ;;  %v7882_v36 = vperm.slane %v7738_v4, 1  ;;  %v2178_v47 = vld [vmem:[#allocation2 + $0x18] sm:$0xfe] }
  0xd1   : > { %v1025_v17 = vmin.f32 %v961_v2, 6.0  ;;  %v1026_v32 = vmin.f32 %v962_v26, 6.0  ;;  %v765_v43 = vmul.f32 %v7644_v39, %v552_v34  ;;  %v766_v44 = vmul.f32 %v7647_v40, %v665_v35 }
  0xd2   : > { %v2992_v2 = vadd.f32 %v2896_v51, %v2697_v45  ;;  %v3253_v3 = vrot.slane %v3125_v52, 1  ;;  %v1888_v20 = vrot.slane %v1759_v59, 1  ;;  %v7901_v51 = vld [vmem:[%s11918_s4 + $0x7] ss:$8 sm:$0x3] }
  0xd3   : > { %v1089_v30 = vmul.f32 %v1025_v17, %v833_v62  ;;  %v1090_v49 = vmul.f32 %v1026_v32, %v834_v11  ;;  %v835_v55 = vadd.f32 %v7650_v41, %v765_v43  ;;  %v836_v56 = vadd.f32 %v7653_v42, %v766_v44  ;;  %7062 = vmatmul.msk.f32.gmra.mxu0 %vm432_vm0, %v398_v50 }
  0xd4   : > { %7094 = vmatmul.msk.f32.gmra.mxu1 %vm432_vm0, %v398_v50  ;;  %v7896_v50 = vperm.slane %v7874_v28, 0  ;;  %v1892_v57 = vsel %vm1886_vm2, %v1888_v20, %v11932_v21  ;;  %v2080_v59 = vadd.f32 %v1888_v20, %v1528_v7  ;;  %v6510_v7 = vld [vmem:[%s11921_s7 + $0x78] sm:$0xff]  ;;  %v401_v21 = vld [vmem:[%s7497_s28 + $0xa8] sm:$0xff] }
  0xd5   : > { %v7822_v54 = vmul.f32 0.16666667, %v1089_v30  ;;  %v7830_v58 = vmul.f32 0.16666667, %v1090_v49  ;;  %v899_v61 = vadd.f32 3.0, %v835_v55  ;;  %v900_v62 = vadd.f32 3.0, %v836_v56  ;;  %6584 = vmatpush.msra.mxu2 %v6510_v7 }
  0xd6   : > { %v3543_v5 = vld [vmem:[#allocation2 + $0x50] sm:$0xfe]  ;;  %v399_v30 = vld [vmem:[%s7497_s28 + $0x98] sm:$0xff]  ;;  %v3445_v49 = vadd.f32 %v3253_v3, %v2990_v63  ;;  %12329 = vst [vmem:[#allocation20_spill] sm:$0xff] %v7896_v50 }
  0xd7   : > { %v963_v10 = vmax.f32 %v899_v61, 0.0  ;;  %v964_v11 = vmax.f32 %v900_v62, 0.0  ;;  %v7854_v12 = vmul.f32 %v7800_v37, %v7822_v54  ;;  %v3612_v18 = vmul.f32 %v7847_v6, %v3543_v5  ;;  %v7958_v7 = vld [vmem:[#allocation2 + $0x58] sm:$0xff]  ;;  %1363 = vst [vmem:[#allocation2 + $0x60] sm:$0xff] %v7822_v54 }
  0xd8   : > { %v555_v15 = vpop.f32.mrf.mxu0  ;;  %v668_v17 = vpop.f32.mrf.mxu1  ;;  %v7864_v19 = vmul.f32 %v7847_v6, %v7822_v54  ;;  %12331 = vst [vmem:[#allocation22_spill] sm:$0xff] %v7958_v7  ;;  %v8098_v37 = vperm.slane %v7874_v28, 1 }
  0xd9   : > { %v1027_v23 = vmin.f32 %v963_v10, 6.0  ;;  %v1028_v24 = vmin.f32 %v964_v11, 6.0  ;;  %v767_v26 = vmul.f32 %v7644_v39, %v555_v15  ;;  %v768_v27 = vmul.f32 %v7647_v40, %v668_v17  ;;  %1364 = vst.msk [vmem:[#allocation2 + $0x68] sm:$0xff] %vm1216_vm1, %v7830_v58 }
  0xda   : > { %v11929_v32 = vrot.slane %v7854_v12, 1  ;;  %v3804_v34 = vrot.slane %v3612_v18, 2  ;;  %v11931_v35 = vrot.slane %v7864_v19, 2  ;;  %v2247_v15 = vmul.f32 %v7882_v36, %v2178_v47 }
  0xdb   : > { %v1091_v43 = vmul.f32 %v1027_v23, %v835_v55  ;;  %v1092_v44 = vmul.f32 %v1028_v24, %v836_v56  ;;  %v837_v45 = vadd.f32 %v7650_v41, %v767_v26  ;;  %v838_v46 = vadd.f32 %v7653_v42, %v768_v27  ;;  %7063 = vmatmul.msk.f32.gmra.mxu0 %vm432_vm0, %v399_v30  ;;  %v4159_v56 = vld [vmem:[#allocation2 + $0x80] sm:$0x80] }
  0xdc   : > { %7095 = vmatmul.msk.f32.gmra.mxu1 %vm432_vm0, %v399_v30  ;;  %v3256_v4 = vsel %vm1886_vm2, %v3253_v3, %v11929_v32  ;;  %v3807_v63 = vsel %vm2438_vm3, %v3804_v34, %v11931_v35  ;;  %v7916_v3 = vperm.slane %v7901_v51, 0  ;;  %v4060_v11 = vadd.f32 %v3804_v34, %v3445_v49 }
  0xdd   : > { %v7905_v52 = vmul.f32 0.16666667, %v1091_v43  ;;  %v901_v55 = vadd.f32 3.0, %v837_v45  ;;  %v902_v61 = vadd.f32 3.0, %v838_v46  ;;  %v3447_v62 = vadd.f32 %v3256_v4, %v2992_v2  ;;  %v6509_v2 = vld [vmem:[%s11921_s7 + $0x70] sm:$0xff]  ;;  %v400_v43 = vld [vmem:[%s7497_s28 + $0xa0] sm:$0xff] }
  0xde   : > { %12330 = vst [vmem:[#allocation21_spill] sm:$0xff] %v7916_v3  ;;  %v7920_v5 = vmul.f32 0.16666667, %v1092_v44  ;;  %v4260_v23 = vmul.f32 %v7896_v50, %v4159_v56  ;;  %v7938_v26 = vmul.f32 %v7882_v36, %v7809_v48  ;;  %v2082_v44 = vadd.f32 %v1892_v57, %v7857_v13  ;;  %6585 = vmatpush.msra.mxu2 %v6509_v2  ;;  %v6508_v48 = vld [vmem:[%s11921_s7 + $0x68] sm:$0xff] }
  0xdf   : > { %v965_v10 = vmax.f32 %v901_v55, 0.0  ;;  %v966_v17 = vmax.f32 %v902_v61, 0.0  ;;  %v7934_v24 = vmul.f32 %v7916_v3, %v7905_v52  ;;  %v4062_v4 = vadd.f32 %v3807_v63, %v3447_v62  ;;  %1365 = vst [vmem:[#allocation2 + $0x90] sm:$0xff] %v7905_v52 }
  0xe0   : > { %v558_v18 = vpop.f32.mrf.mxu0  ;;  %v671_v20 = vpop.f32.mrf.mxu1  ;;  %v4262_v49 = vmul.f32 %v7896_v50, %v7905_v52  ;;  %v2440_v55 = vrot.slane %v2247_v15, 2  ;;  %v11930_v61 = vrot.slane %v7938_v26, 2  ;;  %v4356_v63 = vadd.f32 %v4260_v23, %v4060_v11  ;;  %v7971_v15 = vld [vmem:[%s11918_s4 + $0x10] ss:$8 sm:$0x3]  ;;  %6586 = vmatpush.msra.mxu2 %v6508_v48  ;;  %v6519_v48 = vld [vmem:[%s11921_s7 + $0xc0] sm:$0xff] }
  0xe1   : > { %v1029_v27 = vmin.f32 %v965_v10, 6.0  ;;  %v769_v30 = vmul.f32 %v7644_v39, %v558_v18  ;;  %v770_v34 = vmul.f32 %v7647_v40, %v671_v20  ;;  %v1030_v47 = vmin.f32 %v966_v17, 6.0  ;;  %v2794_v10 = vld [vmem:[#allocation2 + $0x48] sm:$0x80]  ;;  %v6506_v11 = vld [vmem:[%s11921_s7 + $0x58] sm:$0xff]  ;;  %6704 = vmatpush.msra.mxu3 %v6519_v48  ;;  %1366 = vst.msk [vmem:[#allocation2 + $0x98] sm:$0xff] %vm1216_vm1, %v7920_v5 }
  0xe2   : > { %v4619_v2 = vrot.slane %v7934_v24, 1  ;;  %v7978_v20 = vperm.slane %v7971_v15, 0  ;;  %v2444_v23 = vsel %vm2438_vm3, %v2440_v55, %v11930_v61  ;;  %v2696_v24 = vadd.f32 %v2440_v55, %v2080_v59 }
  0xe3   : > { %v1093_v56 = vmul.f32 %v1029_v27, %v837_v45  ;;  %v839_v13 = vadd.f32 %v7650_v41, %v769_v30  ;;  %v840_v57 = vadd.f32 %v7653_v42, %v770_v34  ;;  %v1094_v62 = vmul.f32 %v1030_v47, %v838_v46  ;;  %7064 = vmatmul.msk.f32.gmra.mxu0 %vm432_vm0, %v400_v43  ;;  %v6507_v45 = vld [vmem:[%s11921_s7 + $0x60] sm:$0xff] }
  0xe4   : > { %7096 = vmatmul.msk.f32.gmra.mxu1 %vm432_vm0, %v400_v43  ;;  %12332 = vst [vmem:[#allocation23_spill] sm:$0xff] %v7978_v20  ;;  %v7989_v27 = vperm.slane %v7780_v25, 1  ;;  %v7992_v30 = vperm.slane %v7795_v31, 1  ;;  %6587 = vmatpush.msra.mxu2 %v6507_v45  ;;  %v2698_v55 = vadd.f32 %v2444_v23, %v2082_v44  ;;  %v6505_v44 = vld [vmem:[%s11921_s7 + $0x50] sm:$0xff]  ;;  %v4358_v23 = vadd.f32 %v4262_v49, %v4062_v4  ;;  %v6504_v4 = vld [vmem:[%s11921_s7 + $0x48] sm:$0xff] }
  0xe5   : > { %v7975_v46 = vmul.f32 0.16666667, %v1093_v56  ;;  %v903_v17 = vadd.f32 3.0, %v839_v13  ;;  %v904_v18 = vadd.f32 3.0, %v840_v57  ;;  %v8044_v49 = vld [vmem:[%s11919_s5] sm:$0x3] }
  0xe6   : > { %12333 = vst [vmem:[#allocation24_spill] sm:$0xff] %v7989_v27  ;;  %v2895_v56 = vmul.f32 %v7989_v27, %v2794_v10  ;;  %v2897_v45 = vmul.f32 %v7989_v27, %v7958_v7  ;;  %6588 = vmatpush.msra.mxu2 %v6506_v11  ;;  %v6518_v10 = vld [vmem:[%s11921_s7 + $0xb8] sm:$0xff] }
  0xe7   : > { %12334 = vst [vmem:[#allocation25_spill] sm:$0xff] %v7992_v30  ;;  %v967_v34 = vmax.f32 %v903_v17, 0.0  ;;  %v968_v43 = vmax.f32 %v904_v18, 0.0  ;;  %v7998_v47 = vmul.f32 %v7916_v3, %v7975_v46  ;;  %v8002_v59 = vmul.f32 %v7978_v20, %v7975_v46  ;;  %6705 = vmatpush.msra.mxu3 %v6518_v10  ;;  %v8084_v10 = vld [vmem:[%s11920_s6] sm:$0x3] }
  0xe8   : > { %v561_v25 = vpop.f32.mrf.mxu0  ;;  %v674_v31 = vpop.f32.mrf.mxu1  ;;  %v8014_v17 = vmul.f32 %v7992_v30, %v7958_v7  ;;  %6589 = vmatpush.msra.mxu2 %v6505_v44  ;;  %v8117_v50 = vperm.slane %v8084_v10, 0  ;;  %1367 = vst [vmem:[#allocation2 + $0xa0] sm:$0xff] %v7975_v46 }
  0xe9   : > { %12335 = vst [vmem:[#allocation26_spill] sm:$0xff] %v7998_v47  ;;  %v1031_v18 = vmin.f32 %v967_v34, 6.0  ;;  %v1032_v32 = vmin.f32 %v968_v43, 6.0  ;;  %v771_v61 = vmul.f32 %v7644_v39, %v561_v25  ;;  %v772_v35 = vmul.f32 %v7647_v40, %v674_v31  ;;  %v3544_v31 = vld [vmem:[#allocation2 + $0x58] sm:$0xfe] }
  0xea   : > { %v11936_v34 = vrot.slane %v7998_v47, 1  ;;  %v8030_v43 = vadd.f32 %v4619_v2, %v4356_v63  ;;  %v2991_v25 = vadd.f32 %v2895_v56, %v2696_v24  ;;  %v1430_v63 = vld [vmem:[#allocation2 + $0x20] sm:$0x7f]  ;;  %v2179_v24 = vld [vmem:[#allocation2 + $0x30] sm:$0x1]  ;;  %v6516_v56 = vld [vmem:[%s11921_s7 + $0xa8] sm:$0xff]  ;;  %6590 = vmatpush.msra.mxu2 %v6504_v4 }
  0xeb   : > { %v1095_v11 = vmul.f32 %v1031_v18, %v839_v13  ;;  %v1096_v48 = vmul.f32 %v1032_v32, %v840_v57  ;;  %v841_v22 = vadd.f32 %v7650_v41, %v771_v61  ;;  %v8036_v38 = vadd.f32 %v7653_v42, %v772_v35  ;;  %7065 = vmatmul.msk.f32.gmra.mxu0 %vm432_vm0, %v401_v21  ;;  %v6517_v35 = vld [vmem:[%s11921_s7 + $0xb0] sm:$0xff]  ;;  %v6515_v4 = vld [vmem:[%s11921_s7 + $0xa0] sm:$0xff] }
  0xec   : > { %v8048_v32 = vmul.f32 0.16666667, %v1094_v62  ;;  %7097 = vmatmul.msk.f32.gmra.mxu1 %vm432_vm0, %v401_v21  ;;  %v4622_v13 = vsel %vm1886_vm2, %v4619_v2, %v11936_v34  ;;  %v8060_v61 = vperm.slane %v7842_v0, 1  ;;  %v6503_v21 = vld [vmem:[%s11921_s7 + $0x40] sm:$0xff]  ;;  %v8072_v18 = vperm.slane %v8044_v49, 0  ;;  %6706 = vmatpush.msra.mxu3 %v6517_v35  ;;  %v402_v47 = vld [vmem:[%s7497_s28 + $0xb0] sm:$0xff] }
  0xed   : > { %v905_v62 = vadd.f32 3.0, %v841_v22  ;;  %v8074_v0 = vadd.f32 %v2897_v45, %v2698_v55  ;;  %v4160_v34 = vld [vmem:[#allocation2 + $0x88] sm:$0x80]  ;;  %v8078_v44 = vmul.f32 0.16666667, %v1095_v11  ;;  %v906_v57 = vadd.f32 3.0, %v8036_v38  ;;  %6591 = vmatpush.msra.mxu2 %v6503_v21 }
  0xee   : > { %v12336_v2 = vrot.slane %v8014_v17, 1  ;;  %v8089_v3 = vmul.f32 %v8060_v61, %v3544_v31  ;;  %v8093_v55 = vmul.f32 0.16666667, %v1096_v48  ;;  %v8095_v11 = vadd.f32 %v4622_v13, %v4358_v23  ;;  %v6502_v48 = vld [vmem:[%s11921_s7 + $0x38] sm:$0xff]  ;;  %6707 = vmatpush.msra.mxu3 %v6516_v56  ;;  %1368 = vst.msk [vmem:[#allocation2 + $0xa8] sm:$0xff] %vm1216_vm1, %v8048_v32  ;;  %v6496_v32 = vld [vmem:[%s11921_s7 + $0x8] sm:$0xff] }
  0xef   : > { %v969_v45 = vmax.f32 %v905_v62, 0.0  ;;  %v1531_v35 = vmul.f32 %v7752_v9, %v1430_v63  ;;  %v2250_v28 = vmul.f32 %v7748_v8, %v2179_v24  ;;  %v6501_v24 = vld [vmem:[%s11921_s7 + $0x30] sm:$0xff]  ;;  %v4261_v21 = vmul.f32 %v8098_v37, %v4160_v34  ;;  %6592 = vmatpush.msra.mxu2 %v6502_v48  ;;  %1369 = vst [vmem:[#allocation2 + $0xd0] sm:$0xff] %v8078_v44 }
  0xf0   : > { %v3446_v7 = vadd.f32 %v12336_v2, %v2991_v25  ;;  %v970_v25 = vmax.f32 %v906_v57, 0.0  ;;  %v564_v31 = vpop.f32.mrf.mxu0  ;;  %v677_v2 = vpop.f32.mrf.mxu1  ;;  %v11948_v23 = vrot.slane %v8089_v3, 2  ;;  %v8131_v56 = vperm.slane %v7901_v51, 1  ;;  %6708 = vmatpush.msra.mxu3 %v6515_v4  ;;  %v3545_v34 = vld [vmem:[#allocation2 + $0x70] sm:$0x1]  ;;  %1370 = vst.msk [vmem:[#allocation2 + $0xd8] sm:$0xff] %vm1216_vm1, %v8093_v55 }
  0xf1   : > { %v1033_v13 = vmin.f32 %v969_v45, 6.0  ;;  %v773_v57 = vmul.f32 %v7644_v39, %v564_v31  ;;  %v774_v62 = vmul.f32 %v7647_v40, %v677_v2  ;;  %v6514_v45 = vld [vmem:[%s11921_s7 + $0x98] sm:$0xff]  ;;  %v8153_v48 = vperm.slane %v7971_v15, 1  ;;  %6593 = vmatpush.msra.mxu2 %v6501_v24 }
  0xf2   : > { %v1034_v63 = vmin.f32 %v970_v25, 6.0  ;;  %v4061_v31 = vadd.f32 %v11948_v23, %v3446_v7  ;;  %12337 = vst [vmem:[#allocation27_spill] sm:$0xff] %v8131_v56  ;;  %v6500_v7 = vld [vmem:[%s11921_s7 + $0x28] sm:$0xff]  ;;  %v2083_v4 = vadd.f32 %v7758_v14, %v1531_v35  ;;  %6709 = vmatpush.msra.mxu3 %v6514_v45  ;;  %v3546_v15 = vld [vmem:[#allocation2 + $0x78] sm:$0x1]  ;;  %v3616_v24 = vmul.f32 %v7847_v6, %v3545_v34 }
  0xf3   : > { %v1097_v25 = vmul.f32 %v1033_v13, %v841_v22  ;;  %v8136_v2 = vadd.f32 %v7650_v41, %v773_v57  ;;  %v8139_v8 = vadd.f32 %v7653_v42, %v774_v62  ;;  %v1431_v23 = vld [vmem:[#allocation2 + $0x28] sm:$0x7f]  ;;  %7066 = vmatmul.msk.f32.gmra.mxu0 %vm432_vm0, %v402_v47  ;;  %v6513_v22 = vld [vmem:[%s11921_s7 + $0x90] sm:$0xff]  ;;  %12338 = vst [vmem:[#allocation28_spill] sm:$0xff] %v8153_v48  ;;  %v2445_v13 = vrot.slane %v2250_v28, 2 }
  0xf4   : > { %v1098_v51 = vmul.f32 %v1034_v63, %v8036_v38  ;;  %7098 = vmatmul.msk.f32.gmra.mxu1 %vm432_vm0, %v402_v47  ;;  %v2180_v57 = vld [vmem:[#allocation2 + $0x38] sm:$0x1]  ;;  %v8160_v47 = vadd.f32 %v4261_v21, %v4061_v31  ;;  %v8163_v63 = vperm.slane %v8044_v49, 1  ;;  %v6512_v35 = vld [vmem:[%s11921_s7 + $0x88] sm:$0xff]  ;;  %v8175_v28 = vperm.slane %v8084_v10, 1  ;;  %6594 = vmatpush.msra.mxu2 %v6500_v7 }
  0xf5   : > { %v907_v38 = vadd.f32 3.0, %v8136_v2  ;;  %v908_v62 = vadd.f32 3.0, %v8139_v8  ;;  %v8166_v14 = vmul.f32 0.16666667, %v1097_v25  ;;  %v1532_v49 = vmul.f32 %v7818_v53, %v1431_v23  ;;  %6710 = vmatpush.msra.mxu3 %v6513_v22  ;;  %v1432_v7 = vld [vmem:[#allocation2 + $0x40] sm:$0x80] }
  0xf6   : > { %12339 = vst [vmem:[#allocation29_spill] sm:$0xff] %v8175_v28  ;;  %v12340_v31 = vrot.slane %v7762_v16, 2  ;;  %v2251_v25 = vmul.f32 %v7882_v36, %v2180_v57  ;;  %v1162_v10 = vmul.f32 0.16666667, %v1098_v51  ;;  %v3810_v23 = vrot.slane %v3616_v24, 2  ;;  %v403_v51 = vld [vmem:[%s7497_s28 + $0xb8] sm:$0xff]  ;;  %6595 = vmatpush.msra.mxu2 %v6499_v33 }
  0xf7   : > { %v971_v54 = vmax.f32 %v907_v38, 0.0  ;;  %v972_v45 = vmax.f32 %v908_v62, 0.0  ;;  %v12341_v53 = vrot.slane %v7835_v60, 1  ;;  %v8189_v38 = vmul.f32 %v8060_v61, %v3546_v15  ;;  %6711 = vmatpush.msra.mxu3 %v6512_v35  ;;  %v4911_v57 = vld [vmem:[#allocation2 + $0xb0] sm:$0x1]  ;;  %v6511_v60 = vld [vmem:[%s11921_s7 + $0x80] sm:$0xff] }
  0xf8   : > { %v2446_v21 = vsel %vm2438_vm3, %v12340_v31, %v2445_v13  ;;  %v567_v34 = vpop.f32.mrf.mxu0  ;;  %v680_v6 = vpop.f32.mrf.mxu1  ;;  %v12342_v62 = vrot.slane %v7864_v19, 2  ;;  %v4982_v15 = vmul.f32 %v7978_v20, %v4911_v57  ;;  %v2447_v33 = vrot.slane %v2251_v25, 2  ;;  %v6497_v19 = vld [vmem:[%s11921_s7 + $0x10] sm:$0xff]  ;;  %1371 = vst [vmem:[#allocation2 + $0xe0] sm:$0xff] %v8166_v14 }
  0xf9   : > { %v2084_v58 = vadd.f32 %v12341_v53, %v1532_v49  ;;  %v1035_v16 = vmin.f32 %v971_v54, 6.0  ;;  %v1036_v22 = vmin.f32 %v972_v45, 6.0  ;;  %v775_v13 = vmul.f32 %v7644_v39, %v567_v34  ;;  %v6498_v53 = vld [vmem:[%s11921_s7 + $0x18] sm:$0xff]  ;;  %v1434_v49 = vld [vmem:[#allocation2 + $0x50] sm:$0xff]  ;;  %6712 = vmatpush.msra.mxu3 %v6511_v60  ;;  %1372 = vst.msk [vmem:[#allocation2 + $0xe8] sm:$0xff] %vm1216_vm1, %v1162_v10 }
  0xfa   : > { %v776_v52 = vmul.f32 %v7647_v40, %v680_v6  ;;  %v8203_v5 = vadd.f32 %v2446_v21, %v2083_v4  ;;  %v8208_v6 = vsel %vm2438_vm3, %v12342_v62, %v3810_v23  ;;  %v8231_v44 = vmul.f32 %v7752_v9, %v1432_v7  ;;  %6596 = vmatpush.msra.mxu2 %v6498_v53  ;;  %v8238_v23 = vld [vmem:[#allocation2 + $0x68] sm:$0xff] }
  0xfb   : > { %v1099_v46 = vmul.f32 %v1035_v16, %v8136_v2  ;;  %v1100_v35 = vmul.f32 %v1036_v22, %v8139_v8  ;;  %v845_v24 = vadd.f32 %v7650_v41, %v775_v13  ;;  %7067 = vmatmul.msk.f32.gmra.mxu0 %vm432_vm0, %v403_v51  ;;  %v5176_v8 = vrot.slane %v4982_v15, 2  ;;  %v2797_v16 = vld [vmem:[#allocation2 + $0x60] sm:$0x7f]  ;;  %v2798_v62 = vld [vmem:[#allocation2 + $0x68] sm:$0x7f] }
  0xfc   : > { %v846_v4 = vadd.f32 %v7653_v42, %v776_v52  ;;  %7099 = vmatmul.msk.f32.gmra.mxu1 %vm432_vm0, %v403_v51  ;;  %v12343_v2 = vrot.slane %v7938_v26, 2  ;;  %v12344_v22 = vrot.slane %v8002_v59, 2  ;;  %v8246_v55 = vmul.f32 %v7752_v9, %v1434_v49  ;;  %v8248_v13 = vld [vmem:[#allocation2 + $0x60] sm:$0xff]  ;;  %6597 = vmatpush.msra.mxu2 %v6497_v19  ;;  %v4909_v51 = vld [vmem:[#allocation2 + $0x90] sm:$0xfe] }
  0xfd   : > { %v1163_v31 = vmul.f32 0.16666667, %v1099_v46  ;;  %v1164_v21 = vmul.f32 0.16666667, %v1100_v35  ;;  %v909_v25 = vadd.f32 3.0, %v845_v24  ;;  %v8251_v52 = vmul.f32 %v7731_v1, %v1434_v49  ;;  %v6495_v46 = vld [vmem:[%s11921_s7] sm:$0xff] }
  0xfe   : > { %v2448_v54 = vsel %vm2438_vm3, %v12343_v2, %v2447_v33  ;;  %v910_v26 = vadd.f32 3.0, %v846_v4  ;;  %v8243_v7 = vsel %vm2438_vm3, %v12344_v22, %v5176_v8  ;;  %v8256_v57 = vmul.f32 %v7992_v30, %v8238_v23  ;;  %v8269_v49 = vld [vmem:[#allocation2 + $0x98] sm:$0xff]  ;;  %6598 = vmatpush.msra.mxu2 %v6496_v32 }
  0xff   : > { %v8235_v34 = vadd.f32 %v2448_v54, %v2084_v58  ;;  %v973_v58 = vmax.f32 %v909_v25, 0.0  ;;  %v8260_v53 = vmul.f32 %v8060_v61, %v8238_v23  ;;  %v8263_v60 = vmul.f32 %v7788_v29, %v2797_v16  ;;  %1373 = vst [vmem:[#allocation2 + $0x110] sm:$0xff] %v1163_v31  ;;  %v404_v25 = vld [vmem:[%s7497_s28 + $0xc0] sm:$0xff] }
 0x100   : > { %v974_v15 = vmax.f32 %v910_v26, 0.0  ;;  %v570_v33 = vpop.f32.mrf.mxu0  ;;  %v683_v10 = vpop.f32.mrf.mxu1  ;;  %v4978_v35 = vmul.f32 %v7978_v20, %v4909_v51  ;;  %v8272_v19 = vmul.f32 %v7989_v27, %v2798_v62  ;;  %v8276_v8 = vmul.f32 %v7731_v1, %v8248_v13  ;;  %1374 = vst.msk [vmem:[#allocation2 + $0x118] sm:$0xff] %vm1216_vm1, %v1164_v21  ;;  %6599 = vmatpush.msra.mxu2 %v6495_v46 }
 0x101   : > { %v1037_v2 = vmin.f32 %v973_v58, 6.0  ;;  %v777_v54 = vmul.f32 %v7644_v39, %v570_v33  ;;  %v778_v31 = vmul.f32 %v7647_v40, %v683_v10  ;;  %v11956_v26 = vrot.slane %v8256_v57, 1 }
 0x102   : > { %v1038_v16 = vmin.f32 %v974_v15, 6.0  ;;  %v5170_v22 = vrot.slane %v4978_v35, 2  ;;  %v11955_v51 = vrot.slane %v8260_v53, 2  ;;  %v4263_v62 = vmul.f32 %v8098_v37, %v8269_v49  ;;  %v4910_v35 = vld [vmem:[#allocation2 + $0x98] sm:$0xfe] }
 0x103   : > { %v1101_v45 = vmul.f32 %v1037_v2, %v845_v24  ;;  %v847_v1 = vadd.f32 %v7650_v41, %v777_v54  ;;  %v848_v21 = vadd.f32 %v7653_v42, %v778_v31  ;;  %v12345_v58 = vrot.slane %v8014_v17, 1  ;;  %7068 = vmatmul.msk.f32.gmra.mxu0 %vm432_vm0, %v404_v25 }
 0x104   : > { %v1102_v33 = vmul.f32 %v1038_v16, %v846_v4  ;;  %7100 = vmatmul.msk.f32.gmra.mxu1 %vm432_vm0, %v404_v25  ;;  %v12346_v15 = vrot.slane %v8002_v59, 2  ;;  %v5426_v10 = vadd.f32 %v5170_v22, %v8030_v43  ;;  %v12347_v59 = vrot.slane %v8089_v3, 2 }
 0x105   : > { %v3258_v32 = vsel %vm1886_vm2, %v12345_v58, %v11956_v26  ;;  %v1165_v2 = vmul.f32 0.16666667, %v1101_v45  ;;  %v911_v54 = vadd.f32 3.0, %v847_v1  ;;  %v912_v31 = vadd.f32 3.0, %v848_v21  ;;  %v8301_v58 = vld [vmem:[#allocation2 + $0xa8] sm:$0xff] }
 0x106   : > { %v5173_v24 = vsel %vm2438_vm3, %v5170_v22, %v12346_v15  ;;  %v1166_v4 = vmul.f32 0.16666667, %v1102_v33  ;;  %v5528_v16 = vmul.f32 %v8072_v18, %v5426_v10  ;;  %v3448_v25 = vadd.f32 %v3258_v32, %v8074_v0 }
 0x107   : > { %v5428_v17 = vadd.f32 %v5173_v24, %v8095_v11  ;;  %v3809_v43 = vsel %vm2438_vm3, %v12347_v59, %v11955_v51  ;;  %1375 = vst [vmem:[#allocation2 + $0x120] sm:$0xff] %v1165_v2  ;;  %v975_v45 = vmax.f32 %v911_v54, 0.0  ;;  %v976_v22 = vmax.f32 %v912_v31, 0.0  ;;  %v405_v59 = vld [vmem:[%s7497_s28 + $0xc8] sm:$0xff] }
 0x108   : > { %v4492_v11 = vmul.f32 %v8131_v56, %v8269_v49  ;;  %1376 = vst.msk [vmem:[#allocation2 + $0x128] sm:$0xff] %vm1216_vm1, %v1166_v4  ;;  %v573_v33 = vpop.f32.mrf.mxu0  ;;  %v686_v24 = vpop.f32.mrf.mxu1  ;;  %v5630_v0 = vadd.f32 %v8117_v50, %v5528_v16  ;;  %v4063_v32 = vadd.f32 %v3809_v43, %v3448_v25  ;;  %v8317_v3 = vmul.f32 %v8131_v56, %v8301_v58 }
 0x109   : > { %v5530_v15 = vmul.f32 %v8072_v18, %v5428_v17  ;;  %v4979_v10 = vmul.f32 %v8153_v48, %v4910_v35  ;;  %v1039_v2 = vmin.f32 %v975_v45, 6.0  ;;  %v1040_v54 = vmin.f32 %v976_v22, 6.0 }
 0x10a   : > { %v779_v31 = vmul.f32 %v7644_v39, %v573_v33  ;;  %v780_v17 = vmul.f32 %v7647_v40, %v686_v24  ;;  %v5726_v46 = vadd.f32 3.0, %v5630_v0  ;;  %v4359_v51 = vadd.f32 %v4263_v62, %v4063_v32 }
 0x10b   : > { %v5632_v4 = vadd.f32 %v8117_v50, %v5530_v15  ;;  %v4620_v26 = vrot.slane %v4492_v11, 1  ;;  %v1103_v16 = vmul.f32 %v1039_v2, %v847_v1  ;;  %v1104_v25 = vmul.f32 %v1040_v54, %v848_v21  ;;  %7069 = vmatmul.msk.f32.gmra.mxu0 %vm432_vm0, %v405_v59 }
 0x10c   : > { %v849_v43 = vadd.f32 %v7650_v41, %v779_v31  ;;  %v850_v9 = vadd.f32 %v7653_v42, %v780_v17  ;;  %v5822_v35 = vmax.f32 %v5726_v46, 0.0  ;;  %v11961_v45 = vrot.slane %v8317_v3, 1  ;;  %7101 = vmatmul.msk.f32.gmra.mxu1 %vm432_vm0, %v405_v59 }
 0x10d   : > { %v5728_v56 = vadd.f32 3.0, %v5632_v4  ;;  %v4812_v22 = vadd.f32 %v4620_v26, %v8160_v47  ;;  %v1167_v15 = vmul.f32 0.16666667, %v1103_v16  ;;  %v1168_v33 = vmul.f32 0.16666667, %v1104_v25 }
 0x10e   : > { %v913_v62 = vadd.f32 3.0, %v849_v43  ;;  %v914_v11 = vadd.f32 3.0, %v850_v9  ;;  %v5918_v21 = vmin.f32 %v5822_v35, 6.0  ;;  %v4624_v24 = vsel %vm1886_vm2, %v4620_v26, %v11961_v45 }
 0x10f   : > { %v5824_v1 = vmax.f32 %v5728_v56, 0.0  ;;  %v8335_v46 = vmul.f32 %v8153_v48, %v8301_v58  ;;  %1377 = vst [vmem:[#allocation2 + $0x150] sm:$0xff] %v1167_v15  ;;  %v4814_v2 = vadd.f32 %v4624_v24, %v4359_v51  ;;  %v5171_v54 = vrot.slane %v4979_v10, 2 }
 0x110   : > { %v977_v47 = vmax.f32 %v913_v62, 0.0  ;;  %v978_v32 = vmax.f32 %v914_v11, 0.0  ;;  %1378 = vst.msk [vmem:[#allocation2 + $0x158] sm:$0xff] %vm1216_vm1, %v1168_v33  ;;  %v6014_v17 = vmul.f32 %v5918_v21, %v5630_v0  ;;  %v576_v59 = vpop.f32.mrf.mxu0  ;;  %v689_v16 = vpop.f32.mrf.mxu1  ;;  %v2994_v26 = vadd.f32 %v8263_v60, %v8203_v5 }
 0x111   : > { %v5920_v31 = vmin.f32 %v5824_v1, 6.0  ;;  %v5174_v56 = vrot.slane %v8335_v46, 2  ;;  %v5427_v45 = vadd.f32 %v5171_v54, %v4812_v22  ;;  %v781_v15 = vmul.f32 %v7644_v39, %v576_v59 }
 0x112   : > { %v1041_v25 = vmin.f32 %v977_v47, 6.0  ;;  %v1042_v35 = vmin.f32 %v978_v32, 6.0  ;;  %v6110_v51 = vmul.f32 0.16666667, %v6014_v17  ;;  %v782_v0 = vmul.f32 %v7647_v40, %v689_v16  ;;  %v406_v47 = vld [vmem:[%s7497_s28 + $0xd0] sm:$0xff] }
 0x113   : > { %v6016_v62 = vmul.f32 %v5920_v31, %v5632_v4  ;;  %v5175_v10 = vsel %vm2438_vm3, %v5171_v54, %v5174_v56  ;;  %v5529_v21 = vmul.f32 %v8163_v63, %v5427_v45  ;;  %v851_v22 = vadd.f32 %v7650_v41, %v781_v15  ;;  %v4163_v4 = vld [vmem:[#allocation2 + $0xa0] sm:$0x7f]  ;;  %7070 = vmatmul.msk.f32.gmra.mxu0 %vm432_vm0, %v406_v47 }
 0x114   : > { %v1105_v33 = vmul.f32 %v1041_v25, %v849_v43  ;;  %v1106_v11 = vmul.f32 %v1042_v35, %v850_v9  ;;  %v5429_v1 = vadd.f32 %v5175_v10, %v4814_v2  ;;  %v6303_v60 = vrot.slane %v6110_v51, 7  ;;  %7102 = vmatmul.msk.f32.gmra.mxu1 %vm432_vm0, %v406_v47  ;;  %v12349_v35 = vld [vmem:[#allocation20_spill] sm:$0xff]  ;;  %v4164_v51 = vld [vmem:[#allocation2 + $0xa8] sm:$0x7f] }
 0x115   : > { %v8347_v5 = vmul.f32 0.16666667, %v6016_v62  ;;  %v852_v24 = vadd.f32 %v7653_v42, %v782_v0  ;;  %v5631_v17 = vadd.f32 %v8175_v28, %v5529_v21  ;;  %v915_v43 = vadd.f32 3.0, %v851_v22 }
 0x116   : > { %v1169_v32 = vmul.f32 0.16666667, %v1105_v33  ;;  %v1170_v31 = vmul.f32 0.16666667, %v1106_v11  ;;  %v5531_v54 = vmul.f32 %v8163_v63, %v5429_v1  ;;  %v12348_v2 = vrot.slane %v7854_v12, 1 }
 0x117   : > { %v6304_v9 = vrot.slane %v8347_v5, 7  ;;  %v916_v45 = vadd.f32 3.0, %v852_v24  ;;  %v5727_v25 = vadd.f32 3.0, %v5631_v17  ;;  %v4264_v15 = vmul.f32 %v12349_v35, %v4163_v4 }
 0x118   : > { %v3449_v59 = vadd.f32 %v12348_v2, %v2994_v26  ;;  %1379 = vst [vmem:[#allocation2 + $0x160] sm:$0xff] %v1169_v32  ;;  %v5633_v16 = vadd.f32 %v8175_v28, %v5531_v54  ;;  %v2995_v62 = vadd.f32 %v8272_v19, %v8235_v34  ;;  %v979_v0 = vmax.f32 %v915_v43, 0.0  ;;  %v4912_v26 = vld [vmem:[#allocation2 + $0xb8] sm:$0x1]  ;;  %v579_v32 = vpop.f32.mrf.mxu0 }
 0x119   : > { %1380 = vst.msk [vmem:[#allocation2 + $0x168] sm:$0xff] %vm1216_vm1, %v1170_v31  ;;  %v6305_v10 = vsel %vm6302_vm4, %v6303_v60, %v6304_v9  ;;  %v980_v33 = vmax.f32 %v916_v45, 0.0  ;;  %v5823_v1 = vmax.f32 %v5727_v25, 0.0  ;;  %v12350_v21 = vrot.slane %v8256_v57, 1 }
 0x11a   : > { %v4064_v12 = vadd.f32 %v8208_v6, %v3449_v59  ;;  %6600 = vmatmul.f32.vlgmr.msra.gmra.mxu2 %v6305_v10  ;;  %v5729_v11 = vadd.f32 3.0, %v5633_v16  ;;  %v12351_v34 = vrot.slane %v8189_v38, 2  ;;  %v12352_v19 = vrot.slane %v8260_v53, 2 }
 0x11b   : > { %v3450_v4 = vadd.f32 %v12350_v21, %v2995_v62  ;;  %v1043_v31 = vmin.f32 %v979_v0, 6.0  ;;  %v1044_v60 = vmin.f32 %v980_v33, 6.0  ;;  %v4265_v43 = vmul.f32 %v8098_v37, %v4164_v51  ;;  %v12353_v62 = vld [vmem:[#allocation26_spill] sm:$0xff]  ;;  %v692_v33 = vpop.f32.mrf.mxu1 }
 0x11c   : > { %v3813_v47 = vsel %vm2438_vm3, %v12352_v19, %v12351_v34  ;;  %v4360_v54 = vadd.f32 %v4264_v15, %v4064_v12  ;;  %v5825_v6 = vmax.f32 %v5729_v11, 0.0  ;;  %v5919_v45 = vmin.f32 %v5823_v1, 6.0 }
 0x11d   : > { %v4065_v2 = vadd.f32 %v3813_v47, %v3450_v4  ;;  %v4983_v59 = vmul.f32 %v8153_v48, %v4912_v26  ;;  %v1107_v25 = vmul.f32 %v1043_v31, %v851_v22  ;;  %v1108_v57 = vmul.f32 %v1044_v60, %v852_v24 }
 0x11e   : > { %v12354_v10 = vrot.slane %v12353_v62, 1  ;;  %v783_v53 = vmul.f32 %v7644_v39, %v579_v32  ;;  %v5921_v21 = vmin.f32 %v5825_v6, 6.0  ;;  %v6015_v34 = vmul.f32 %v5919_v45, %v5631_v17 }
 0x11f   : > { %v4361_v19 = vadd.f32 %v4265_v43, %v4065_v2  ;;  %v5178_v0 = vrot.slane %v4983_v59, 2  ;;  %v1171_v15 = vmul.f32 0.16666667, %v1107_v25  ;;  %v1172_v12 = vmul.f32 0.16666667, %v1108_v57 }
 0x120   : > { %v4815_v38 = vadd.f32 %v12354_v10, %v4360_v54  ;;  %v853_v11 = vadd.f32 %v7650_v41, %v783_v53  ;;  %v6017_v1 = vmul.f32 %v5921_v21, %v5633_v16  ;;  %v6111_v26 = vmul.f32 0.16666667, %v6015_v34  ;;  %v2799_v59 = vld [vmem:[#allocation2 + $0x80] sm:$0x80]  ;;  %v12358_v10 = vld [vmem:[#allocation14_spill] sm:$0xff] }
 0x121   : > { %v12355_v22 = vrot.slane %v8317_v3, 1  ;;  %v5179_v4 = vsel %vm2438_vm3, %v5174_v56, %v5178_v0  ;;  %1381 = vst [vmem:[#allocation2 + $0x190] sm:$0xff] %v1171_v15  ;;  %v784_v32 = vmul.f32 %v7647_v40, %v692_v33  ;;  %v11970_v31 = vrot.slane %v8276_v8, 1 }
 0x122   : > { %v5430_v51 = vadd.f32 %v8243_v7, %v4815_v38  ;;  %v917_v47 = vadd.f32 3.0, %v853_v11  ;;  %v2181_v7 = vld [vmem:[#allocation2 + $0x50] sm:$0xfe]  ;;  %v8390_v60 = vmul.f32 0.16666667, %v6017_v1  ;;  %v6306_v16 = vrot.slane %v6111_v26, 7 }
 0x123   : > { %v4816_v24 = vadd.f32 %v12355_v22, %v4361_v19  ;;  %1382 = vst.msk [vmem:[#allocation2 + $0x198] sm:$0xff] %vm1216_vm1, %v1172_v12  ;;  %v12356_v46 = vrot.slane %v8251_v52, 1  ;;  %v854_v6 = vadd.f32 %v7653_v42, %v784_v32  ;;  %v8409_v34 = vmul.f32 %v12358_v10, %v8248_v13  ;;  %v8411_v19 = vld [vmem:[#allocation2 + $0x90] sm:$0xff]  ;;  %v8420_v13 = vld [vmem:[#allocation2 + $0xa0] sm:$0xff] }
 0x124   : > { %v5532_v17 = vmul.f32 %v8072_v18, %v5430_v51  ;;  %v981_v43 = vmax.f32 %v917_v47, 0.0  ;;  %v6307_v25 = vrot.slane %v8390_v60, 7  ;;  %v3547_v47 = vld [vmem:[#allocation2 + $0x90] sm:$0xfe] }
 0x125   : > { %v5431_v3 = vadd.f32 %v5179_v4, %v4816_v24  ;;  %v2085_v54 = vadd.f32 %v12356_v46, %v8231_v44  ;;  %v12357_v45 = vmov %v12356_v46  ;;  %v2252_v44 = vmul.f32 %v12358_v10, %v2181_v7  ;;  %v12359_v4 = vld [vmem:[#allocation16_spill] sm:$0xff] }
 0x126   : > { %v5634_v56 = vadd.f32 %v8117_v50, %v5532_v17  ;;  %v1896_v2 = vsel %vm1886_vm2, %v12357_v45, %v11970_v31  ;;  %v1045_v53 = vmin.f32 %v981_v43, 6.0  ;;  %v918_v21 = vadd.f32 3.0, %v854_v6 }
 0x127   : > { %v5533_v57 = vmul.f32 %v8163_v63, %v5431_v3  ;;  %v2087_v62 = vadd.f32 %v1896_v2, %v8246_v55  ;;  %v6308_v52 = vsel %vm6302_vm4, %v6306_v16, %v6307_v25  ;;  %v2449_v33 = vrot.slane %v2252_v44, 2 }
 0x128   : > { %v5730_v38 = vadd.f32 3.0, %v5634_v56  ;;  %v2900_v55 = vmul.f32 %v7788_v29, %v2799_v59  ;;  %7116 = vmatmul.msk.f32.vlgmr.msra.gmra.mxu3 %vm1216_vm1, %v6308_v52  ;;  %v1109_v12 = vmul.f32 %v1045_v53, %v853_v11  ;;  %v982_v51 = vmax.f32 %v918_v21, 0.0 }
 0x129   : > { %v5635_v0 = vadd.f32 %v8175_v28, %v5533_v57  ;;  %v11969_v1 = vrot.slane %v8409_v34, 2  ;;  %v2701_v22 = vadd.f32 %v2449_v33, %v2085_v54  ;;  %v2902_v24 = vmul.f32 %v7788_v29, %v8411_v19  ;;  %v12360_v57 = vld [vmem:[#allocation19_spill] sm:$0xff] }
 0x12a   : > { %v5826_v15 = vmax.f32 %v5730_v38, 0.0  ;;  %v3129_v17 = vmul.f32 %v12359_v4, %v8411_v19  ;;  %v1173_v7 = vmul.f32 0.16666667, %v1109_v12  ;;  %v1046_v16 = vmin.f32 %v982_v51, 6.0  ;;  %v4165_v38 = vld [vmem:[#allocation2 + $0xc0] sm:$0x80] }
 0x12b   : > { %v5731_v26 = vadd.f32 3.0, %v5635_v0  ;;  %v2452_v11 = vsel %vm2438_vm3, %v2449_v33, %v11969_v1  ;;  %v2996_v43 = vadd.f32 %v2900_v55, %v2701_v22  ;;  %v8431_v54 = vmul.f32 %v12359_v4, %v8420_v13 }
 0x12c   : > { %v5922_v32 = vmin.f32 %v5826_v15, 6.0  ;;  %v2703_v46 = vadd.f32 %v2452_v11, %v2087_v62  ;;  %1383 = vst [vmem:[#allocation2 + $0x1a0] sm:$0xff] %v1173_v7  ;;  %v1110_v2 = vmul.f32 %v1046_v16, %v854_v6  ;;  %v3259_v59 = vrot.slane %v3129_v17, 1  ;;  %v8439_v62 = vld [vmem:[#allocation2 + $0xd0] sm:$0xff]  ;;  %v12361_v11 = vld [vmem:[#allocation21_spill] sm:$0xff] }
 0x12d   : > { %v5827_v3 = vmax.f32 %v5731_v26, 0.0  ;;  %v3618_v44 = vmul.f32 %v12360_v57, %v3547_v47  ;;  %v11963_v52 = vrot.slane %v8431_v54, 1  ;;  %v8437_v33 = vmul.f32 %v12360_v57, %v8420_v13 }
 0x12e   : > { %v6018_v45 = vmul.f32 %v5922_v32, %v5634_v56  ;;  %v2998_v21 = vadd.f32 %v2902_v24, %v2703_v46  ;;  %v1174_v15 = vmul.f32 0.16666667, %v1110_v2  ;;  %v3451_v12 = vadd.f32 %v3259_v59, %v2996_v43  ;;  %v4913_v24 = vld [vmem:[#allocation2 + $0xd0] sm:$0xfe]  ;;  %v1433_v43 = vld [vmem:[#allocation2 + $0x48] sm:$0x80] }
 0x12f   : > { %v5923_v53 = vmin.f32 %v5827_v3, 6.0  ;;  %v3814_v56 = vrot.slane %v3618_v44, 2  ;;  %v3262_v6 = vsel %vm1886_vm2, %v3259_v59, %v11963_v52  ;;  %v11967_v26 = vrot.slane %v8437_v33, 2 }
 0x130   : > { %v6114_v55 = vmul.f32 0.16666667, %v6018_v45  ;;  %v4266_v22 = vmul.f32 %v12349_v35, %v4165_v38  ;;  %1384 = vst.msk [vmem:[#allocation2 + $0x1a8] sm:$0xff] %vm1216_vm1, %v1174_v15  ;;  %v3453_v47 = vadd.f32 %v3262_v6, %v2998_v21  ;;  %v4268_v7 = vmul.f32 %v12349_v35, %v8439_v62  ;;  %v2182_v15 = vld [vmem:[#allocation2 + $0x58] sm:$0xfe] }
 0x131   : > { %v6019_v51 = vmul.f32 %v5923_v53, %v5635_v0  ;;  %v4066_v32 = vadd.f32 %v3814_v56, %v3451_v12  ;;  %v3817_v0 = vsel %vm2438_vm3, %v3814_v56, %v11967_v26  ;;  %v4495_v3 = vmul.f32 %v12361_v11, %v8439_v62  ;;  %v12367_v26 = vld [vmem:[#allocation27_spill] sm:$0xff] }
 0x132   : > { %v6309_v17 = vrot.slane %v6114_v55, 7  ;;  %v8456_v46 = vmul.f32 %v12361_v11, %v8166_v14  ;;  %v4068_v2 = vadd.f32 %v3817_v0, %v3453_v47  ;;  %v4984_v44 = vmul.f32 %v7978_v20, %v4913_v24 }
 0x133   : > { %v6115_v16 = vmul.f32 0.16666667, %v6019_v51  ;;  %v4362_v59 = vadd.f32 %v4266_v22, %v4066_v32  ;;  %v4625_v53 = vrot.slane %v4495_v3, 1  ;;  %v8465_v55 = vmul.f32 %v7978_v20, %v8166_v14  ;;  %v12362_v51 = vld [vmem:[#allocation18_spill] sm:$0xff] }
 0x134   : > { %v6310_v45 = vsel %vm6302_vm4, %v6304_v9, %v6309_v17  ;;  %v11962_v21 = vrot.slane %v8456_v46, 1  ;;  %v4364_v12 = vadd.f32 %v4268_v7, %v4068_v2  ;;  %v5180_v56 = vrot.slane %v4984_v44, 2  ;;  %v12363_v9 = vld [vmem:[#allocation22_spill] sm:$0xff]  ;;  %v12364_v7 = vld [vmem:[#allocation17_spill] sm:$0xff] }
 0x135   : > { %6603 = vmatmul.f32.gmra.mxu2 %v6310_v45  ;;  %v6311_v38 = vrot.slane %v6115_v16, 7  ;;  %v1534_v5 = vmul.f32 %v12362_v51, %v1433_v43  ;;  %v1536_v6 = vmul.f32 %v12363_v9, %v12362_v51  ;;  %v2800_v22 = vld [vmem:[#allocation2 + $0x88] sm:$0x80]  ;;  %v4817_v47 = vadd.f32 %v4625_v53, %v4362_v59 }
 0x136   : > { %v4628_v17 = vsel %vm1886_vm2, %v4625_v53, %v11962_v21  ;;  %v11964_v14 = vrot.slane %v8465_v55, 2  ;;  %v1763_v16 = vmul.f32 %v12363_v9, %v12364_v7  ;;  %v8482_v0 = vmul.f32 %v8238_v23, %v12364_v7  ;;  %v407_v21 = vld [vmem:[%s7497_s28 + $0xd8] sm:$0xff] }
 0x137   : > { %v6312_v24 = vsel %vm6302_vm4, %v6307_v25, %v6311_v38  ;;  %v4819_v32 = vadd.f32 %v4628_v17, %v4364_v12  ;;  %v2253_v60 = vmul.f32 %v7882_v36, %v2182_v15  ;;  %v5432_v3 = vadd.f32 %v5180_v56, %v4817_v47  ;;  %v4166_v47 = vld [vmem:[#allocation2 + $0xc8] sm:$0x80]  ;;  %7071 = vmatmul.msk.f32.gmra.mxu0 %vm432_vm0, %v407_v21 }
 0x138   : > { %7117 = vmatmul.msk.f32.gmra.mxu3 %vm1216_vm1, %v6312_v24  ;;  %v5183_v25 = vsel %vm2438_vm3, %v5180_v56, %v11964_v14  ;;  %v8490_v43 = vmul.f32 %v8238_v23, %v7882_v36  ;;  %v2901_v45 = vmul.f32 %v7989_v27, %v2800_v22  ;;  %v1894_v59 = vrot.slane %v1763_v16, 1  ;;  %v3548_v23 = vld [vmem:[#allocation2 + $0x98] sm:$0xfe]  ;;  %7103 = vmatmul.msk.f32.gmra.mxu1 %vm432_vm0, %v407_v21 }
 0x139   : > { %v5434_v2 = vadd.f32 %v5183_v25, %v4819_v32  ;;  %v11966_v44 = vrot.slane %v8482_v0, 1  ;;  %v2450_v38 = vrot.slane %v2253_v60, 2  ;;  %v5534_v53 = vmul.f32 %v8072_v18, %v5432_v3 }
 0x13a   : > { %v11965_v15 = vrot.slane %v8490_v43, 2  ;;  %v2903_v12 = vmul.f32 %v8269_v49, %v7989_v27  ;;  %v3130_v56 = vmul.f32 %v8269_v49, %v7992_v30  ;;  %v2086_v24 = vadd.f32 %v1894_v59, %v1534_v5 }
 0x13b   : > { %v5536_v9 = vmul.f32 %v8072_v18, %v5434_v2  ;;  %v1898_v22 = vsel %vm1886_vm2, %v1894_v59, %v11966_v44  ;;  %v8506_v17 = vmul.f32 %v8301_v58, %v7992_v30  ;;  %v5636_v32 = vadd.f32 %v8117_v50, %v5534_v53  ;;  %v8515_v59 = vld [vmem:[#allocation2 + $0xd8] sm:$0xff] }
 0x13c   : > { %v2088_v16 = vadd.f32 %v1898_v22, %v1536_v6  ;;  %v2454_v49 = vsel %vm2438_vm3, %v2450_v38, %v11965_v15  ;;  %v3260_v60 = vrot.slane %v3130_v56, 1  ;;  %v2702_v3 = vadd.f32 %v2450_v38, %v2086_v24  ;;  %12365 = vst [vmem:[#allocation26_spill] sm:$0xff] %v8515_v59  ;;  %v8523_v22 = vld [vmem:[#allocation2 + $0xe8] sm:$0xff]  ;;  %v4914_v24 = vld [vmem:[#allocation2 + $0xd8] sm:$0xfe] }
 0x13d   : > { %v5638_v25 = vadd.f32 %v8117_v50, %v5536_v9  ;;  %v11968_v2 = vrot.slane %v8506_v17, 1  ;;  %v3619_v5 = vmul.f32 %v8060_v61, %v3548_v23  ;;  %v5732_v52 = vadd.f32 3.0, %v5636_v32  ;;  %12366 = vst [vmem:[#allocation14_spill] sm:$0xff] %v8523_v22 }
 0x13e   : > { %v2704_v14 = vadd.f32 %v2454_v49, %v2088_v16  ;;  %v8520_v6 = vmul.f32 %v8301_v58, %v8060_v61  ;;  %v4267_v53 = vmul.f32 %v8098_v37, %v4166_v47  ;;  %v2997_v56 = vadd.f32 %v2901_v45, %v2702_v3 }
 0x13f   : > { %v5734_v38 = vadd.f32 3.0, %v5638_v25  ;;  %v3264_v23 = vsel %vm1886_vm2, %v3260_v60, %v11968_v2  ;;  %v3815_v9 = vrot.slane %v3619_v5, 2  ;;  %v5828_v16 = vmax.f32 %v5732_v52, 0.0 }
 0x140   : > { %v2999_v49 = vadd.f32 %v2903_v12, %v2704_v14  ;;  %v11976_v58 = vrot.slane %v8520_v6, 2  ;;  %v4269_v47 = vmul.f32 %v8098_v37, %v8515_v59  ;;  %v3452_v44 = vadd.f32 %v3260_v60, %v2997_v56  ;;  %v582_v12 = vpop.f32.mrf.mxu0  ;;  %v695_v56 = vpop.f32.mrf.mxu1 }
 0x141   : > { %v5830_v15 = vmax.f32 %v5734_v38, 0.0  ;;  %v4496_v21 = vmul.f32 %v12367_v26, %v8515_v59  ;;  %v8537_v45 = vmul.f32 %v12367_v26, %v8523_v22  ;;  %v5924_v3 = vmin.f32 %v5828_v16, 6.0  ;;  %v1436_v16 = vld [vmem:[#allocation2 + $0x60] sm:$0x7f] }
 0x142   : > { %v3454_v2 = vadd.f32 %v3264_v23, %v2999_v49  ;;  %v3819_v52 = vsel %vm2438_vm3, %v3815_v9, %v11976_v58  ;;  %v4985_v14 = vmul.f32 %v8153_v48, %v4914_v24  ;;  %v4067_v1 = vadd.f32 %v3815_v9, %v3452_v44 }
 0x143   : > { %v5926_v5 = vmin.f32 %v5830_v15, 6.0  ;;  %v4626_v38 = vrot.slane %v4496_v21, 1  ;;  %v11977_v60 = vrot.slane %v8537_v45, 1  ;;  %v6020_v31 = vmul.f32 %v5924_v3, %v5636_v32 }
 0x144   : > { %v4069_v30 = vadd.f32 %v3819_v52, %v3454_v2  ;;  %v8546_v26 = vmul.f32 %v8153_v48, %v8523_v22  ;;  %v5181_v23 = vrot.slane %v4985_v14, 2  ;;  %v4363_v59 = vadd.f32 %v4267_v53, %v4067_v1  ;;  %v12369_v14 = vld [vmem:[#allocation15_spill] sm:$0xff]  ;;  %v2803_v53 = vld [vmem:[#allocation2 + $0xa0] sm:$0x7f] }
 0x145   : > { %v6022_v49 = vmul.f32 %v5926_v5, %v5638_v25  ;;  %v4630_v24 = vsel %vm1886_vm2, %v4626_v38, %v11977_v60  ;;  %v785_v44 = vmul.f32 %v7644_v39, %v582_v12  ;;  %v6116_v15 = vmul.f32 0.16666667, %v6020_v31  ;;  %v2183_v1 = vld [vmem:[#allocation2 + $0x70] sm:$0x1] }
 0x146   : > { %v4365_v9 = vadd.f32 %v4269_v47, %v4069_v30  ;;  %v11978_v21 = vrot.slane %v8546_v26, 2  ;;  %v786_v32 = vmul.f32 %v7647_v40, %v695_v56  ;;  %v4818_v3 = vadd.f32 %v4626_v38, %v4363_v59  ;;  %v3549_v47 = vld [vmem:[#allocation2 + $0xb0] sm:$0x1] }
 0x147   : > { %v8554_v2 = vmul.f32 0.16666667, %v6022_v49  ;;  %v855_v52 = vadd.f32 %v7650_v41, %v785_v44  ;;  %v1537_v25 = vmul.f32 %v12369_v14, %v1436_v16  ;;  %v6313_v5 = vrot.slane %v6116_v15, 7  ;;  %v4169_v44 = vld [vmem:[#allocation2 + $0xe0] sm:$0x7f] }
 0x148   : > { %v4820_v58 = vadd.f32 %v4630_v24, %v4365_v9  ;;  %v5185_v31 = vsel %vm2438_vm3, %v5181_v23, %v11978_v21  ;;  %v856_v30 = vadd.f32 %v7653_v42, %v786_v32  ;;  %v5433_v56 = vadd.f32 %v5181_v23, %v4818_v3  ;;  %v4915_v9 = vld [vmem:[#allocation2 + $0xf0] sm:$0x1]  ;;  %v1437_v3 = vld [vmem:[#allocation2 + $0x68] sm:$0x7f] }
 0x149   : > { %12368 = vst [vmem:[#allocation16_spill] sm:$0xff] %v8554_v2  ;;  %v11982_v12 = vrot.slane %v8554_v2, 7  ;;  %v919_v49 = vadd.f32 3.0, %v855_v52  ;;  %v12370_v59 = vrot.slane %v8276_v8, 1  ;;  %v2256_v15 = vmul.f32 %v12358_v10, %v2183_v1 }
 0x14a   : > { %v5435_v16 = vadd.f32 %v5185_v31, %v4820_v58  ;;  %v920_v60 = vadd.f32 3.0, %v856_v30  ;;  %v2904_v24 = vmul.f32 %v7788_v29, %v2803_v53  ;;  %v5535_v21 = vmul.f32 %v8163_v63, %v5433_v56 }
 0x14b   : > { %v2089_v38 = vadd.f32 %v12370_v59, %v1537_v25  ;;  %v6315_v32 = vsel %vm6302_vm4, %v6313_v5, %v11982_v12  ;;  %v983_v22 = vmax.f32 %v919_v49, 0.0  ;;  %v3622_v23 = vmul.f32 %v12360_v57, %v3549_v47 }
 0x14c   : > { %6606 = vmatmul.f32.gmra.mxu2 %v6315_v32  ;;  %v5537_v8 = vmul.f32 %v8163_v63, %v5435_v16  ;;  %v984_v58 = vmax.f32 %v920_v60, 0.0  ;;  %v2455_v25 = vrot.slane %v2256_v15, 2  ;;  %v4270_v1 = vmul.f32 %v12349_v35, %v4169_v44  ;;  %v2184_v16 = vld [vmem:[#allocation2 + $0x78] sm:$0x1] }
 0x14d   : > { %v5637_v53 = vadd.f32 %v8175_v28, %v5535_v21  ;;  %v1047_v31 = vmin.f32 %v983_v22, 6.0  ;;  %v3820_v59 = vrot.slane %v3622_v23, 2  ;;  %v4988_v7 = vmul.f32 %v7978_v20, %v4915_v9  ;;  %v2804_v21 = vld [vmem:[#allocation2 + $0xa8] sm:$0x7f]  ;;  %v1438_v23 = vld [vmem:[#allocation2 + $0x80] sm:$0x80] }
 0x14e   : > { %v5639_v5 = vadd.f32 %v8175_v28, %v5537_v8  ;;  %v1048_v56 = vmin.f32 %v984_v58, 6.0  ;;  %v12371_v49 = vrot.slane %v8409_v34, 2  ;;  %v1538_v32 = vmul.f32 %v12362_v51, %v1437_v3  ;;  %v3550_v20 = vld [vmem:[#allocation2 + $0xb8] sm:$0x1] }
 0x14f   : > { %v5733_v60 = vadd.f32 3.0, %v5637_v53  ;;  %v1111_v15 = vmul.f32 %v1047_v31, %v855_v52  ;;  %v12372_v44 = vrot.slane %v8437_v33, 2  ;;  %v5186_v8 = vrot.slane %v4988_v7, 2 }
 0x150   : > { %v2456_v47 = vsel %vm2438_vm3, %v12371_v49, %v2455_v25  ;;  %v5735_v9 = vadd.f32 3.0, %v5639_v5  ;;  %v1112_v2 = vmul.f32 %v1048_v56, %v856_v30  ;;  %v12373_v58 = vrot.slane %v8482_v0, 1  ;;  %v4170_v25 = vld [vmem:[#allocation2 + $0xe8] sm:$0x7f] }
 0x151   : > { %v2705_v12 = vadd.f32 %v2456_v47, %v2089_v38  ;;  %v3821_v22 = vsel %vm2438_vm3, %v12372_v44, %v3820_v59  ;;  %v5829_v49 = vmax.f32 %v5733_v60, 0.0  ;;  %v1175_v3 = vmul.f32 0.16666667, %v1111_v15  ;;  %v4916_v38 = vld [vmem:[#allocation2 + $0xf8] sm:$0x1] }
 0x152   : > { %v2090_v34 = vadd.f32 %v12373_v58, %v1538_v32  ;;  %v2257_v52 = vmul.f32 %v7882_v36, %v2184_v16  ;;  %v5831_v31 = vmax.f32 %v5735_v9, 0.0  ;;  %v1176_v33 = vmul.f32 0.16666667, %v1112_v2  ;;  %v585_v9 = vpop.f32.mrf.mxu0 }
 0x153   : > { %v3000_v51 = vadd.f32 %v2904_v24, %v2705_v12  ;;  %v12374_v59 = vrot.slane %v8465_v55, 2  ;;  %v2905_v7 = vmul.f32 %v7989_v27, %v2804_v21  ;;  %v5925_v30 = vmin.f32 %v5829_v49, 6.0  ;;  %1385 = vst [vmem:[#allocation2 + $0x1d0] sm:$0xff] %v1175_v3 }
 0x154   : > { %v12375_v0 = vrot.slane %v8431_v54, 1  ;;  %v2457_v32 = vrot.slane %v2257_v52, 2  ;;  %v3623_v12 = vmul.f32 %v8060_v61, %v3550_v20  ;;  %v5927_v24 = vmin.f32 %v5831_v31, 6.0  ;;  %1386 = vst.msk [vmem:[#allocation2 + $0x1d8] sm:$0xff] %vm1216_vm1, %v1176_v33  ;;  %v2185_v33 = vld [vmem:[#allocation2 + $0x90] sm:$0xfe] }
 0x155   : > { %v5187_v47 = vsel %vm2438_vm3, %v12374_v59, %v5186_v8  ;;  %v4271_v2 = vmul.f32 %v8098_v37, %v4170_v25  ;;  %v4989_v55 = vmul.f32 %v8153_v48, %v4916_v38  ;;  %v1539_v16 = vmul.f32 %v12369_v14, %v1438_v23  ;;  %v698_v8 = vpop.f32.mrf.mxu1 }
 0x156   : > { %v3455_v56 = vadd.f32 %v12375_v0, %v3000_v51  ;;  %v6021_v60 = vmul.f32 %v5925_v30, %v5637_v53  ;;  %v12376_v44 = vrot.slane %v8490_v43, 2  ;;  %v3822_v54 = vrot.slane %v3623_v12, 2  ;;  %v408_v51 = vld [vmem:[%s7497_s28 + $0xe0] sm:$0xff] }
 0x157   : > { %v6023_v20 = vmul.f32 %v5927_v24, %v5639_v5  ;;  %v5188_v49 = vrot.slane %v4989_v55, 2  ;;  %7072 = vmatmul.msk.f32.gmra.mxu0 %vm432_vm0, %v408_v51  ;;  %7104 = vmatmul.msk.f32.gmra.mxu1 %vm432_vm0, %v408_v51  ;;  %v787_v25 = vmul.f32 %v7644_v39, %v585_v9  ;;  %v788_v3 = vmul.f32 %v7647_v40, %v698_v8  ;;  %v12381_v12 = vld [vmem:[#allocation13_spill] sm:$0xff] }
 0x158   : > { %v4070_v15 = vadd.f32 %v3821_v22, %v3455_v56  ;;  %v2458_v21 = vsel %vm2438_vm3, %v12376_v44, %v2457_v32  ;;  %v6117_v23 = vmul.f32 0.16666667, %v6021_v60  ;;  %v12377_v22 = vrot.slane %v8520_v6, 2 }
 0x159   : > { %v2706_v58 = vadd.f32 %v2458_v21, %v2090_v34  ;;  %v8609_v52 = vmul.f32 0.16666667, %v6023_v20  ;;  %v12378_v5 = vrot.slane %v8546_v26, 2  ;;  %v857_v31 = vadd.f32 %v7650_v41, %v787_v25  ;;  %v2805_v25 = vld [vmem:[#allocation2 + $0xc0] sm:$0x80] }
 0x15a   : > { %v4366_v53 = vadd.f32 %v4270_v1, %v4070_v15  ;;  %v3823_v43 = vsel %vm2438_vm3, %v12377_v22, %v3822_v54  ;;  %v6316_v59 = vrot.slane %v6117_v23, 7  ;;  %v12379_v30 = vrot.slane %v8456_v46, 1 }
 0x15b   : > { %v3001_v38 = vadd.f32 %v2905_v7, %v2706_v58  ;;  %v5189_v34 = vsel %vm2438_vm3, %v12378_v5, %v5188_v49  ;;  %v858_v6 = vadd.f32 %v7653_v42, %v788_v3  ;;  %v1541_v0 = vmul.f32 %v8411_v19, %v12369_v14 }
 0x15c   : > { %v4821_v1 = vadd.f32 %v12379_v30, %v4366_v53  ;;  %v6317_v56 = vrot.slane %v8609_v52, 7  ;;  %v12380_v7 = vrot.slane %v8506_v17, 1  ;;  %v921_v26 = vadd.f32 3.0, %v857_v31  ;;  %v4172_v52 = vld [vmem:[#allocation2 + $0x108] sm:$0x80] }
 0x15d   : > { %v1766_v24 = vmul.f32 %v8411_v19, %v12381_v12  ;;  %v922_v60 = vadd.f32 3.0, %v858_v6  ;;  %v8627_v46 = vmul.f32 %v8420_v13, %v12381_v12  ;;  %v2258_v15 = vmul.f32 %v12358_v10, %v2185_v33 }
 0x15e   : > { %v3456_v32 = vadd.f32 %v12380_v7, %v3001_v38  ;;  %v5436_v55 = vadd.f32 %v5187_v47, %v4821_v1  ;;  %v6318_v44 = vsel %vm6302_vm4, %v6316_v59, %v6317_v56  ;;  %v985_v54 = vmax.f32 %v921_v26, 0.0  ;;  %v8651_v1 = vld [vmem:[#allocation2 + $0xe0] sm:$0xff]  ;;  %v3551_v7 = vld [vmem:[#allocation2 + $0xd0] sm:$0xfe] }
 0x15f   : > { %v1899_v17 = vrot.slane %v1766_v24, 1  ;;  %7118 = vmatmul.msk.f32.gmra.mxu3 %vm1216_vm1, %v6318_v44  ;;  %v986_v19 = vmax.f32 %v922_v60, 0.0  ;;  %v11994_v47 = vrot.slane %v8627_v46, 1  ;;  %v8638_v9 = vmul.f32 %v8420_v13, %v12358_v10 }
 0x160   : > { %v4071_v21 = vadd.f32 %v3823_v43, %v3456_v32  ;;  %v5538_v51 = vmul.f32 %v8072_v18, %v5436_v55  ;;  %v1049_v20 = vmin.f32 %v985_v54, 6.0  ;;  %v2459_v49 = vrot.slane %v2258_v15, 2  ;;  %v8657_v15 = vld [vmem:[#allocation2 + $0x110] sm:$0xff] }
 0x161   : > { %v2091_v58 = vadd.f32 %v1899_v17, %v1539_v16  ;;  %v1050_v53 = vmin.f32 %v986_v19, 6.0  ;;  %v1902_v22 = vsel %vm1886_vm2, %v1899_v17, %v11994_v47  ;;  %v11993_v43 = vrot.slane %v8638_v9, 2 }
 0x162   : > { %v4367_v8 = vadd.f32 %v4271_v2, %v4071_v21  ;;  %v5640_v23 = vadd.f32 %v8117_v50, %v5538_v51  ;;  %v12382_v3 = vrot.slane %v8537_v45, 1  ;;  %v1113_v5 = vmul.f32 %v1049_v20, %v857_v31  ;;  %v4171_v31 = vld [vmem:[#allocation2 + $0x100] sm:$0x80]  ;;  %v4917_v20 = vld [vmem:[#allocation2 + $0x110] sm:$0xfe] }
 0x163   : > { %v2093_v13 = vadd.f32 %v1902_v22, %v1541_v0  ;;  %v2707_v33 = vadd.f32 %v2459_v49, %v2091_v58  ;;  %v1114_v59 = vmul.f32 %v1050_v53, %v858_v6  ;;  %v2462_v16 = vsel %vm2438_vm3, %v2459_v49, %v11993_v43 }
 0x164   : > { %v4822_v38 = vadd.f32 %v12382_v3, %v4367_v8  ;;  %v5736_v2 = vadd.f32 3.0, %v5640_v23  ;;  %v2906_v30 = vmul.f32 %v7788_v29, %v2805_v25  ;;  %v1177_v26 = vmul.f32 0.16666667, %v1113_v5  ;;  %v8671_v8 = vld [vmem:[#allocation2 + $0x120] sm:$0xff] }
 0x165   : > { %v2709_v24 = vadd.f32 %v2462_v16, %v2093_v13  ;;  %v2908_v45 = vmul.f32 %v8439_v62, %v7788_v29  ;;  %v1178_v55 = vmul.f32 0.16666667, %v1114_v59  ;;  %v3133_v6 = vmul.f32 %v8439_v62, %v12359_v4  ;;  %v12383_v59 = vld [vmem:[#allocation23_spill] sm:$0xff] }
 0x166   : > { %v5437_v32 = vadd.f32 %v5189_v34, %v4822_v38  ;;  %v5832_v0 = vmax.f32 %v5736_v2, 0.0  ;;  %v3002_v60 = vadd.f32 %v2906_v30, %v2707_v33  ;;  %1387 = vst [vmem:[#allocation2 + $0x1e0] sm:$0xff] %v1177_v26  ;;  %v8662_v34 = vmul.f32 %v12359_v4, %v8651_v1  ;;  %v1439_v26 = vld [vmem:[#allocation2 + $0x88] sm:$0x80] }
 0x167   : > { %v3004_v21 = vadd.f32 %v2908_v45, %v2709_v24  ;;  %v3624_v54 = vmul.f32 %v12360_v57, %v3551_v7  ;;  %1388 = vst.msk [vmem:[#allocation2 + $0x1e8] sm:$0xff] %vm1216_vm1, %v1178_v55  ;;  %v3265_v51 = vrot.slane %v3133_v6, 1  ;;  %v8668_v19 = vmul.f32 %v12360_v57, %v8651_v1  ;;  %v1441_v55 = vld [vmem:[#allocation2 + $0x98] sm:$0xff] }
 0x168   : > { %v5539_v44 = vmul.f32 %v8163_v63, %v5437_v32  ;;  %v5928_v17 = vmin.f32 %v5832_v0, 6.0  ;;  %v4272_v62 = vmul.f32 %v12349_v35, %v4171_v31  ;;  %v11987_v49 = vrot.slane %v8662_v34, 1 }
 0x169   : > { %v3824_v25 = vrot.slane %v3624_v54, 2  ;;  %v4274_v53 = vmul.f32 %v12349_v35, %v8657_v15  ;;  %v3457_v3 = vadd.f32 %v3265_v51, %v3002_v60  ;;  %v11992_v38 = vrot.slane %v8668_v19, 2 }
 0x16a   : > { %v5641_v58 = vadd.f32 %v8175_v28, %v5539_v44  ;;  %v6024_v22 = vmul.f32 %v5928_v17, %v5640_v23  ;;  %v4499_v5 = vmul.f32 %v12361_v11, %v8657_v15  ;;  %v3268_v33 = vsel %vm1886_vm2, %v3265_v51, %v11987_v49 }
 0x16b   : > { %v8685_v2 = vmul.f32 %v12361_v11, %v8671_v8  ;;  %v4990_v16 = vmul.f32 %v12383_v59, %v4917_v20  ;;  %v3459_v7 = vadd.f32 %v3268_v33, %v3004_v21  ;;  %v3827_v23 = vsel %vm2438_vm3, %v3824_v25, %v11992_v38  ;;  %v1726_v21 = vld [vmem:[#allocation2 + $0xa8] sm:$0xff] }
 0x16c   : > { %v5737_v13 = vadd.f32 3.0, %v5641_v58  ;;  %v6120_v30 = vmul.f32 0.16666667, %v6024_v22  ;;  %v4072_v32 = vadd.f32 %v3824_v25, %v3457_v3  ;;  %v4631_v45 = vrot.slane %v4499_v5, 1  ;;  %v12384_v25 = vld [vmem:[#allocation18_spill] sm:$0xff]  ;;  %v12385_v5 = vld [vmem:[#allocation16_spill] sm:$0xff] }
 0x16d   : > { %v11988_v31 = vrot.slane %v8685_v2, 1  ;;  %v8694_v0 = vmul.f32 %v12383_v59, %v8671_v8  ;;  %v4074_v6 = vadd.f32 %v3827_v23, %v3459_v7  ;;  %v5190_v54 = vrot.slane %v4990_v16, 2  ;;  %v2186_v3 = vld [vmem:[#allocation2 + $0x98] sm:$0xfe]  ;;  %v2806_v16 = vld [vmem:[#allocation2 + $0xc8] sm:$0x80] }
 0x16e   : > { %v5833_v24 = vmax.f32 %v5737_v13, 0.0  ;;  %v6319_v60 = vrot.slane %v6120_v30, 7  ;;  %v4368_v44 = vadd.f32 %v4272_v62, %v4072_v32  ;;  %v1540_v22 = vmul.f32 %v12384_v25, %v1439_v26  ;;  %v12387_v32 = vld [vmem:[#allocation17_spill] sm:$0xff] }
 0x16f   : > { %v4634_v51 = vsel %vm1886_vm2, %v4631_v45, %v11988_v31  ;;  %v11991_v20 = vrot.slane %v8694_v0, 2  ;;  %v12386_v13 = vrot.slane %v12385_v5, 7  ;;  %v4370_v49 = vadd.f32 %v4274_v53, %v4074_v6 }
 0x170   : > { %v5929_v17 = vmin.f32 %v5833_v24, 6.0  ;;  %v4823_v30 = vadd.f32 %v4631_v45, %v4368_v44  ;;  %v1542_v62 = vmul.f32 %v12384_v25, %v1441_v55  ;;  %v1767_v24 = vmul.f32 %v12387_v32, %v1441_v55 }
 0x171   : > { %v6320_v33 = vsel %vm6302_vm4, %v12386_v13, %v6319_v60  ;;  %v5193_v23 = vsel %vm2438_vm3, %v5190_v54, %v11991_v20  ;;  %v8710_v26 = vmul.f32 %v12387_v32, %v1726_v21  ;;  %v4825_v31 = vadd.f32 %v4634_v51, %v4370_v49  ;;  %v12388_v51 = vld [vmem:[#allocation26_spill] sm:$0xff]  ;;  %v4918_v20 = vld [vmem:[#allocation2 + $0x118] sm:$0xfe]  ;;  %v1442_v32 = vld [vmem:[#allocation2 + $0xa0] sm:$0x7f] }
 0x172   : > { %6609 = vmatmul.f32.gmra.mxu2 %v6320_v33  ;;  %v6025_v7 = vmul.f32 %v5929_v17, %v5641_v58  ;;  %v5438_v5 = vadd.f32 %v5190_v54, %v4823_v30  ;;  %v2259_v60 = vmul.f32 %v7882_v36, %v2186_v3  ;;  %v8714_v53 = vmul.f32 %v7882_v36, %v1726_v21  ;;  %v3552_v30 = vld [vmem:[#allocation2 + $0xd8] sm:$0xfe] }
 0x173   : > { %v1900_v6 = vrot.slane %v1767_v24, 1  ;;  %v11990_v58 = vrot.slane %v8710_v26, 1  ;;  %v2907_v44 = vmul.f32 %v7989_v27, %v2806_v16  ;;  %v5440_v17 = vadd.f32 %v5193_v23, %v4825_v31 }
 0x174   : > { %v6121_v45 = vmul.f32 0.16666667, %v6025_v7  ;;  %v5540_v13 = vmul.f32 %v8072_v18, %v5438_v5  ;;  %v2460_v55 = vrot.slane %v2259_v60, 2  ;;  %v11989_v33 = vrot.slane %v8714_v53, 2  ;;  %v12389_v60 = vld [vmem:[#allocation25_spill] sm:$0xff] }
 0x175   : > { %v1904_v54 = vsel %vm1886_vm2, %v1900_v6, %v11990_v58  ;;  %v2092_v21 = vadd.f32 %v1900_v6, %v1540_v22  ;;  %v2909_v3 = vmul.f32 %v12388_v51, %v7989_v27  ;;  %v5542_v7 = vmul.f32 %v8072_v18, %v5440_v17  ;;  %v409_v17 = vld [vmem:[%s7497_s28 + $0xe8] sm:$0xff] }
 0x176   : > { %v6321_v49 = vrot.slane %v6121_v45, 7  ;;  %v5642_v31 = vadd.f32 %v8117_v50, %v5540_v13  ;;  %v2094_v16 = vadd.f32 %v1904_v54, %v1542_v62  ;;  %v2464_v23 = vsel %vm2438_vm3, %v2460_v55, %v11989_v33  ;;  %v12390_v45 = vld [vmem:[#allocation14_spill] sm:$0xff]  ;;  %7073 = vmatmul.msk.f32.gmra.mxu0 %vm432_vm0, %v409_v17  ;;  %7105 = vmatmul.msk.f32.gmra.mxu1 %vm432_vm0, %v409_v17 }
 0x177   : > { %v2708_v5 = vadd.f32 %v2460_v55, %v2092_v21  ;;  %v3134_v22 = vmul.f32 %v12388_v51, %v12389_v60  ;;  %v8737_v6 = vmul.f32 %v12390_v45, %v12389_v60  ;;  %v5644_v62 = vadd.f32 %v8117_v50, %v5542_v7  ;;  %v8749_v51 = vld [vmem:[#allocation2 + $0x118] sm:$0xff] }
 0x178   : > { %v6322_v24 = vsel %vm6302_vm4, %v6317_v56, %v6321_v49  ;;  %v5738_v13 = vadd.f32 3.0, %v5642_v31  ;;  %v2710_v54 = vadd.f32 %v2464_v23, %v2094_v16  ;;  %v3625_v33 = vmul.f32 %v8060_v61, %v3552_v30  ;;  %12391 = vst [vmem:[#allocation22_spill] sm:$0xff] %v8749_v51  ;;  %v8752_v30 = vld [vmem:[#allocation2 + $0x128] sm:$0xff] }
 0x179   : > { %7119 = vmatmul.msk.f32.gmra.mxu3 %vm1216_vm1, %v6322_v24  ;;  %v3003_v56 = vadd.f32 %v2907_v44, %v2708_v5  ;;  %v3266_v55 = vrot.slane %v3134_v22, 1  ;;  %v11995_v49 = vrot.slane %v8737_v6, 1  ;;  %v8747_v21 = vmul.f32 %v12390_v45, %v8060_v61  ;;  %12392 = vst [vmem:[#allocation15_spill] sm:$0xff] %v8752_v30 }
 0x17a   : > { %v5740_v7 = vadd.f32 3.0, %v5644_v62  ;;  %v5834_v24 = vmax.f32 %v5738_v13, 0.0  ;;  %v3005_v16 = vadd.f32 %v2909_v3, %v2710_v54  ;;  %v3825_v23 = vrot.slane %v3625_v33, 2  ;;  %v12393_v13 = vld [vmem:[#allocation27_spill] sm:$0xff] }
 0x17b   : > { %v3270_v44 = vsel %vm1886_vm2, %v3266_v55, %v11995_v49  ;;  %v3458_v5 = vadd.f32 %v3266_v55, %v3003_v56  ;;  %v11997_v22 = vrot.slane %v8747_v21, 2  ;;  %v4273_v58 = vmul.f32 %v8098_v37, %v4172_v52 }
 0x17c   : > { %v5836_v38 = vmax.f32 %v5740_v7, 0.0  ;;  %v5930_v43 = vmin.f32 %v5834_v24, 6.0  ;;  %v3460_v47 = vadd.f32 %v3270_v44, %v3005_v16  ;;  %v4275_v17 = vmul.f32 %v8098_v37, %v8749_v51  ;;  %v588_v16 = vpop.f32.mrf.mxu0 }
 0x17d   : > { %v3829_v33 = vsel %vm2438_vm3, %v3825_v23, %v11997_v22  ;;  %v4073_v3 = vadd.f32 %v3825_v23, %v3458_v5  ;;  %v4500_v54 = vmul.f32 %v12393_v13, %v8749_v51  ;;  %v8768_v56 = vmul.f32 %v12393_v13, %v8752_v30  ;;  %v701_v5 = vpop.f32.mrf.mxu1 }
 0x17e   : > { %v5932_v52 = vmin.f32 %v5836_v38, 6.0  ;;  %v6026_v55 = vmul.f32 %v5930_v43, %v5642_v31  ;;  %v4075_v7 = vadd.f32 %v3829_v33, %v3460_v47  ;;  %v4991_v24 = vmul.f32 %v8153_v48, %v4918_v20 }
 0x17f   : > { %v4369_v44 = vadd.f32 %v4273_v58, %v4073_v3  ;;  %v4632_v49 = vrot.slane %v4500_v54, 1  ;;  %v12003_v60 = vrot.slane %v8768_v56, 1  ;;  %v8774_v23 = vmul.f32 %v8153_v48, %v8752_v30  ;;  %v2187_v58 = vld [vmem:[#allocation2 + $0xb0] sm:$0x1]  ;;  %v2809_v54 = vld [vmem:[#allocation2 + $0xe0] sm:$0x7f] }
 0x180   : > { %v6028_v22 = vmul.f32 %v5932_v52, %v5644_v62  ;;  %v6122_v51 = vmul.f32 0.16666667, %v6026_v55  ;;  %v4371_v45 = vadd.f32 %v4275_v17, %v4075_v7  ;;  %v5191_v13 = vrot.slane %v4991_v24, 2 }
 0x181   : > { %v4636_v47 = vsel %vm1886_vm2, %v4632_v49, %v12003_v60  ;;  %v4824_v43 = vadd.f32 %v4632_v49, %v4369_v44  ;;  %v12004_v38 = vrot.slane %v8774_v23, 2  ;;  %v789_v20 = vmul.f32 %v7644_v39, %v588_v16  ;;  %v4175_v16 = vld [vmem:[#allocation2 + $0x120] sm:$0x7f] }
 0x182   : > { %v8781_v31 = vmul.f32 0.16666667, %v6028_v22  ;;  %v6323_v33 = vrot.slane %v6122_v51, 7  ;;  %v4826_v3 = vadd.f32 %v4636_v47, %v4371_v45  ;;  %v790_v62 = vmul.f32 %v7647_v40, %v701_v5  ;;  %v3553_v45 = vld [vmem:[#allocation2 + $0xf0] sm:$0x1] }
 0x183   : > { %v5195_v17 = vsel %vm2438_vm3, %v5191_v13, %v12004_v38  ;;  %v5439_v52 = vadd.f32 %v5191_v13, %v4824_v43  ;;  %v859_v55 = vadd.f32 %v7650_v41, %v789_v20  ;;  %v1543_v49 = vmul.f32 %v12369_v14, %v1442_v32  ;;  %v4919_v43 = vld [vmem:[#allocation2 + $0x130] sm:$0x1] }
 0x184   : > { %12394 = vst [vmem:[#allocation13_spill] sm:$0xff] %v8781_v31  ;;  %v12005_v7 = vrot.slane %v8781_v31, 7  ;;  %v5441_v24 = vadd.f32 %v5195_v17, %v4826_v3  ;;  %v860_v22 = vadd.f32 %v7653_v42, %v790_v62  ;;  %v2262_v51 = vmul.f32 %v12358_v10, %v2187_v58 }
 0x185   : > { %v5541_v44 = vmul.f32 %v8163_v63, %v5439_v52  ;;  %v923_v5 = vadd.f32 3.0, %v859_v55  ;;  %v12395_v47 = vrot.slane %v8627_v46, 1  ;;  %v2910_v13 = vmul.f32 %v7788_v29, %v2809_v54 }
 0x186   : > { %v6325_v32 = vsel %vm6302_vm4, %v6323_v33, %v12005_v7  ;;  %v5543_v20 = vmul.f32 %v8163_v63, %v5441_v24  ;;  %v924_v3 = vadd.f32 3.0, %v860_v22  ;;  %v2465_v62 = vrot.slane %v2262_v51, 2 }
 0x187   : > { %v2095_v60 = vadd.f32 %v12395_v47, %v1543_v49  ;;  %6612 = vmatmul.f32.gmra.mxu2 %v6325_v32  ;;  %v5643_v58 = vadd.f32 %v8175_v28, %v5541_v44  ;;  %v987_v17 = vmax.f32 %v923_v5, 0.0  ;;  %v3628_v52 = vmul.f32 %v12360_v57, %v3553_v45  ;;  %v1443_v49 = vld [vmem:[#allocation2 + $0xa8] sm:$0x7f] }
 0x188   : > { %v4276_v46 = vmul.f32 %v12349_v35, %v4175_v16  ;;  %v5645_v54 = vadd.f32 %v8175_v28, %v5543_v20  ;;  %v988_v47 = vmax.f32 %v924_v3, 0.0  ;;  %v12396_v38 = vrot.slane %v8638_v9, 2  ;;  %v2188_v16 = vld [vmem:[#allocation2 + $0xb8] sm:$0x1] }
 0x189   : > { %v4994_v24 = vmul.f32 %v12383_v59, %v4919_v43  ;;  %v5739_v7 = vadd.f32 3.0, %v5643_v58  ;;  %v1051_v51 = vmin.f32 %v987_v17, 6.0  ;;  %v3830_v30 = vrot.slane %v3628_v52, 2 }
 0x18a   : > { %v2466_v33 = vsel %vm2438_vm3, %v12396_v38, %v2465_v62  ;;  %v5741_v44 = vadd.f32 3.0, %v5645_v54  ;;  %v1052_v5 = vmin.f32 %v988_v47, 6.0  ;;  %v1544_v45 = vmul.f32 %v12384_v25, %v1443_v49  ;;  %v2810_v38 = vld [vmem:[#allocation2 + $0xe8] sm:$0x7f]  ;;  %v3554_v62 = vld [vmem:[#allocation2 + $0xf8] sm:$0x1] }
 0x18b   : > { %v2711_v32 = vadd.f32 %v2466_v33, %v2095_v60  ;;  %v5196_v31 = vrot.slane %v4994_v24, 2  ;;  %v5835_v11 = vmax.f32 %v5739_v7, 0.0  ;;  %v1115_v35 = vmul.f32 %v1051_v51, %v859_v55  ;;  %v4176_v49 = vld [vmem:[#allocation2 + $0x128] sm:$0x7f]  ;;  %v1444_v33 = vld [vmem:[#allocation2 + $0xc0] sm:$0x80] }
 0x18c   : > { %v12397_v3 = vrot.slane %v8668_v19, 2  ;;  %v5837_v43 = vmax.f32 %v5741_v44, 0.0  ;;  %v1116_v59 = vmul.f32 %v1052_v5, %v860_v22  ;;  %v12398_v60 = vrot.slane %v8694_v0, 2  ;;  %v4920_v24 = vld [vmem:[#allocation2 + $0x138] sm:$0x1] }
 0x18d   : > { %v3006_v20 = vadd.f32 %v2910_v13, %v2711_v32  ;;  %v12399_v52 = vrot.slane %v8710_v26, 1  ;;  %v5931_v7 = vmin.f32 %v5835_v11, 6.0  ;;  %v1179_v55 = vmul.f32 0.16666667, %v1115_v35 }
 0x18e   : > { %v3831_v9 = vsel %vm2438_vm3, %v12397_v3, %v3830_v30  ;;  %v5197_v17 = vsel %vm2438_vm3, %v12398_v60, %v5196_v31  ;;  %v12400_v13 = vrot.slane %v8662_v34, 1  ;;  %v2263_v30 = vmul.f32 %v7882_v36, %v2188_v16  ;;  %v1446_v31 = vld [vmem:[#allocation2 + $0xd0] sm:$0xff] }
 0x18f   : > { %v2096_v47 = vadd.f32 %v12399_v52, %v1544_v45  ;;  %v5933_v51 = vmin.f32 %v5837_v43, 6.0  ;;  %v1180_v32 = vmul.f32 0.16666667, %v1116_v59  ;;  %v2911_v22 = vmul.f32 %v7989_v27, %v2810_v38  ;;  %1389 = vst [vmem:[#allocation2 + $0x210] sm:$0xff] %v1179_v55 }
 0x190   : > { %v3461_v19 = vadd.f32 %v12400_v13, %v3006_v20  ;;  %v3629_v0 = vmul.f32 %v8060_v61, %v3554_v62  ;;  %v6027_v26 = vmul.f32 %v5931_v7, %v5643_v58  ;;  %v2467_v5 = vrot.slane %v2263_v30, 2  ;;  %v410_v58 = vld [vmem:[%s7497_s28 + $0xf0] sm:$0xff]  ;;  %v591_v62 = vpop.f32.mrf.mxu0 }
 0x191   : > { %v4277_v35 = vmul.f32 %v8098_v37, %v4176_v49  ;;  %v6029_v11 = vmul.f32 %v5933_v51, %v5645_v54  ;;  %1390 = vst.msk [vmem:[#allocation2 + $0x218] sm:$0xff] %vm1216_vm1, %v1180_v32  ;;  %v4995_v45 = vmul.f32 %v8153_v48, %v4920_v24  ;;  %v1545_v59 = vmul.f32 %v12369_v14, %v1444_v33 }
 0x192   : > { %v4076_v44 = vadd.f32 %v3831_v9, %v3461_v19  ;;  %v3832_v34 = vrot.slane %v3629_v0, 2  ;;  %v6123_v16 = vmul.f32 0.16666667, %v6027_v26  ;;  %v12401_v3 = vrot.slane %v8714_v53, 2  ;;  %v704_v9 = vpop.f32.mrf.mxu1  ;;  %7074 = vmatmul.msk.f32.gmra.mxu0 %vm432_vm0, %v410_v58  ;;  %7106 = vmatmul.msk.f32.gmra.mxu1 %vm432_vm0, %v410_v58  ;;  %v2189_v19 = vld [vmem:[#allocation2 + $0xd0] sm:$0xfe] }
 0x193   : > { %v1547_v43 = vmul.f32 %v12369_v14, %v1446_v31  ;;  %v8831_v60 = vmul.f32 0.16666667, %v6029_v11  ;;  %v12402_v52 = vrot.slane %v8747_v21, 2  ;;  %v5198_v7 = vrot.slane %v4995_v45, 2 }
 0x194   : > { %v4372_v20 = vadd.f32 %v4276_v46, %v4076_v44  ;;  %v2468_v38 = vsel %vm2438_vm3, %v12401_v3, %v2467_v5  ;;  %v6326_v53 = vrot.slane %v6123_v16, 7  ;;  %v12403_v46 = vrot.slane %v8685_v2, 1 }
 0x195   : > { %v2712_v54 = vadd.f32 %v2468_v38, %v2096_v47  ;;  %v3833_v49 = vsel %vm2438_vm3, %v12402_v52, %v3832_v34  ;;  %v791_v55 = vmul.f32 %v7644_v39, %v591_v62  ;;  %v792_v13 = vmul.f32 %v7647_v40, %v704_v9 }
 0x196   : > { %v4827_v33 = vadd.f32 %v12403_v46, %v4372_v20  ;;  %v6327_v47 = vrot.slane %v8831_v60, 7  ;;  %v12404_v21 = vrot.slane %v8774_v23, 2  ;;  %v1770_v51 = vmul.f32 %v12381_v12, %v1446_v31 }
 0x197   : > { %v3007_v30 = vadd.f32 %v2911_v22, %v2712_v54  ;;  %v861_v0 = vadd.f32 %v7650_v41, %v791_v55  ;;  %v862_v2 = vadd.f32 %v7653_v42, %v792_v13  ;;  %v8851_v26 = vmul.f32 %v8651_v1, %v12381_v12 }
 0x198   : > { %v5199_v24 = vsel %vm2438_vm3, %v12404_v21, %v5198_v7  ;;  %v5442_v32 = vadd.f32 %v5197_v17, %v4827_v33  ;;  %v6328_v44 = vsel %vm6302_vm4, %v6326_v53, %v6327_v47  ;;  %v12405_v22 = vrot.slane %v8737_v6, 1  ;;  %v2811_v6 = vld [vmem:[#allocation2 + $0x100] sm:$0x80] }
 0x199   : > { %v1905_v5 = vrot.slane %v1770_v51, 1  ;;  %v2264_v11 = vmul.f32 %v12358_v10, %v2189_v19  ;;  %7120 = vmatmul.msk.f32.gmra.mxu3 %vm1216_vm1, %v6328_v44  ;;  %v925_v31 = vadd.f32 3.0, %v861_v0  ;;  %v926_v34 = vadd.f32 3.0, %v862_v2  ;;  %v3555_v44 = vld [vmem:[#allocation2 + $0x110] sm:$0xfe] }
 0x19a   : > { %v3462_v23 = vadd.f32 %v12405_v22, %v3007_v30  ;;  %v5544_v17 = vmul.f32 %v8072_v18, %v5442_v32  ;;  %v12019_v45 = vrot.slane %v8851_v26, 1  ;;  %v8864_v3 = vmul.f32 %v8651_v1, %v12358_v10 }
 0x19b   : > { %v2097_v20 = vadd.f32 %v1905_v5, %v1545_v59  ;;  %v2469_v38 = vrot.slane %v2264_v11, 2  ;;  %v989_v62 = vmax.f32 %v925_v31, 0.0  ;;  %v990_v9 = vmax.f32 %v926_v34, 0.0  ;;  %v4177_v11 = vld [vmem:[#allocation2 + $0x140] sm:$0x80] }
 0x19c   : > { %v4077_v16 = vadd.f32 %v3833_v49, %v3462_v23  ;;  %v5646_v58 = vadd.f32 %v8117_v50, %v5544_v17  ;;  %v1908_v54 = vsel %vm1886_vm2, %v1905_v5, %v12019_v45  ;;  %v12017_v53 = vrot.slane %v8864_v3, 2  ;;  %v8885_v17 = vld [vmem:[#allocation2 + $0x150] sm:$0xff] }
 0x19d   : > { %v2099_v7 = vadd.f32 %v1908_v54, %v1547_v43  ;;  %v2713_v49 = vadd.f32 %v2469_v38, %v2097_v20  ;;  %v1053_v46 = vmin.f32 %v989_v62, 6.0  ;;  %v1054_v33 = vmin.f32 %v990_v9, 6.0  ;;  %v12407_v54 = vld [vmem:[#allocation20_spill] sm:$0xff] }
 0x19e   : > { %v4373_v52 = vadd.f32 %v4277_v35, %v4077_v16  ;;  %v5742_v59 = vadd.f32 3.0, %v5646_v58  ;;  %v2912_v1 = vmul.f32 %v7788_v29, %v2811_v6  ;;  %v12406_v55 = vrot.slane %v8768_v56, 1  ;;  %v8890_v6 = vld [vmem:[#allocation2 + $0x160] sm:$0xff] }
 0x19f   : > { %v2472_v19 = vsel %vm2438_vm3, %v2469_v38, %v12017_v53  ;;  %v2914_v30 = vmul.f32 %v8657_v15, %v7788_v29  ;;  %v3137_v35 = vmul.f32 %v8657_v15, %v12359_v4  ;;  %v1117_v21 = vmul.f32 %v1053_v46, %v861_v0  ;;  %v411_v53 = vld [vmem:[%s7497_s28 + $0xf8] sm:$0xff] }
 0x1a0   : > { %v4828_v13 = vadd.f32 %v12406_v55, %v4373_v52  ;;  %v5838_v43 = vmax.f32 %v5742_v59, 0.0  ;;  %v1118_v51 = vmul.f32 %v1054_v33, %v862_v2  ;;  %v2715_v32 = vadd.f32 %v2472_v19, %v2099_v7  ;;  %v12408_v33 = vld [vmem:[#allocation21_spill] sm:$0xff]  ;;  %7075 = vmatmul.msk.f32.gmra.mxu0 %vm432_vm0, %v411_v53  ;;  %7107 = vmatmul.msk.f32.gmra.mxu1 %vm432_vm0, %v411_v53 }
 0x1a1   : > { %v3008_v23 = vadd.f32 %v2912_v1, %v2713_v49  ;;  %v8883_v56 = vmul.f32 %v8671_v8, %v12359_v4  ;;  %v3271_v5 = vrot.slane %v3137_v35, 1  ;;  %v1181_v34 = vmul.f32 0.16666667, %v1117_v21  ;;  %v4921_v49 = vld [vmem:[#allocation2 + $0x150] sm:$0xfe] }
 0x1a2   : > { %v5443_v22 = vadd.f32 %v5199_v24, %v4828_v13  ;;  %v5934_v31 = vmin.f32 %v5838_v43, 6.0  ;;  %v1182_v16 = vmul.f32 0.16666667, %v1118_v51  ;;  %v3010_v20 = vadd.f32 %v2914_v30, %v2715_v32  ;;  %v12409_v51 = vld [vmem:[#allocation23_spill] sm:$0xff] }
 0x1a3   : > { %v12012_v0 = vrot.slane %v8883_v56, 1  ;;  %v3463_v2 = vadd.f32 %v3271_v5, %v3008_v23  ;;  %v3630_v24 = vmul.f32 %v12360_v57, %v3555_v44  ;;  %1391 = vst [vmem:[#allocation2 + $0x220] sm:$0xff] %v1181_v34  ;;  %v8894_v9 = vmul.f32 %v8671_v8, %v12360_v57  ;;  %v1445_v44 = vld [vmem:[#allocation2 + $0xc8] sm:$0x80] }
 0x1a4   : > { %v5545_v38 = vmul.f32 %v8163_v63, %v5443_v22  ;;  %v6030_v62 = vmul.f32 %v5934_v31, %v5646_v58  ;;  %v4278_v52 = vmul.f32 %v12407_v54, %v4177_v11  ;;  %v4280_v7 = vmul.f32 %v12407_v54, %v8885_v17  ;;  %1392 = vst.msk [vmem:[#allocation2 + $0x228] sm:$0xff] %vm1216_vm1, %v1182_v16  ;;  %v1447_v31 = vld [vmem:[#allocation2 + $0xd8] sm:$0xff] }
 0x1a5   : > { %v3274_v46 = vsel %vm1886_vm2, %v3271_v5, %v12012_v0  ;;  %v3834_v58 = vrot.slane %v3630_v24, 2  ;;  %v4503_v1 = vmul.f32 %v12408_v33, %v8885_v17  ;;  %v12015_v19 = vrot.slane %v8894_v9, 2  ;;  %v12410_v24 = vld [vmem:[#allocation13_spill] sm:$0xff] }
 0x1a6   : > { %v5647_v59 = vadd.f32 %v8175_v28, %v5545_v38  ;;  %v6126_v55 = vmul.f32 0.16666667, %v6030_v62  ;;  %v3465_v13 = vadd.f32 %v3274_v46, %v3010_v20  ;;  %v8909_v30 = vmul.f32 %v12408_v33, %v8890_v6  ;;  %v1448_v33 = vld [vmem:[#allocation2 + $0xe0] sm:$0x7f] }
 0x1a7   : > { %v4078_v43 = vadd.f32 %v3834_v58, %v3463_v2  ;;  %v4637_v21 = vrot.slane %v4503_v1, 1  ;;  %v4996_v32 = vmul.f32 %v12409_v51, %v4921_v49  ;;  %v3837_v23 = vsel %vm2438_vm3, %v3834_v58, %v12015_v19  ;;  %v2190_v2 = vld [vmem:[#allocation2 + $0xd8] sm:$0xfe] }
 0x1a8   : > { %v5743_v35 = vadd.f32 3.0, %v5647_v59  ;;  %v6329_v22 = vrot.slane %v6126_v55, 7  ;;  %v12013_v5 = vrot.slane %v8909_v30, 1  ;;  %v8918_v11 = vmul.f32 %v12409_v51, %v8890_v6 }
 0x1a9   : > { %v4080_v16 = vadd.f32 %v3837_v23, %v3465_v13  ;;  %v4374_v20 = vadd.f32 %v4278_v52, %v4078_v43  ;;  %v5200_v38 = vrot.slane %v4996_v32, 2  ;;  %v12411_v62 = vrot.slane %v12410_v24, 7  ;;  %v2812_v13 = vld [vmem:[#allocation2 + $0x108] sm:$0x80]  ;;  %v12412_v32 = vld [vmem:[#allocation17_spill] sm:$0xff] }
 0x1aa   : > { %v5839_v34 = vmax.f32 %v5743_v35, 0.0  ;;  %v4640_v46 = vsel %vm1886_vm2, %v4637_v21, %v12013_v5  ;;  %v12014_v58 = vrot.slane %v8918_v11, 2  ;;  %v1546_v1 = vmul.f32 %v12384_v25, %v1445_v44  ;;  %v12413_v23 = vld [vmem:[#allocation14_spill] sm:$0xff] }
 0x1ab   : > { %v6330_v49 = vsel %vm6302_vm4, %v12411_v62, %v6329_v22  ;;  %v4376_v0 = vadd.f32 %v4280_v7, %v4080_v16  ;;  %v4829_v35 = vadd.f32 %v4637_v21, %v4374_v20  ;;  %v1548_v52 = vmul.f32 %v12384_v25, %v1447_v31 }
 0x1ac   : > { %6615 = vmatmul.f32.gmra.mxu2 %v6330_v49  ;;  %v5935_v55 = vmin.f32 %v5839_v34, 6.0  ;;  %v5203_v43 = vsel %vm2438_vm3, %v5200_v38, %v12014_v58  ;;  %v1771_v22 = vmul.f32 %v12412_v32, %v1447_v31  ;;  %v8935_v24 = vmul.f32 %v12413_v23, %v12412_v32 }
 0x1ad   : > { %v2265_v62 = vmul.f32 %v7882_v36, %v2190_v2  ;;  %v4831_v49 = vadd.f32 %v4640_v46, %v4376_v0  ;;  %v5444_v34 = vadd.f32 %v5200_v38, %v4829_v35  ;;  %v8940_v7 = vmul.f32 %v12413_v23, %v7882_v36  ;;  %v12414_v38 = vld [vmem:[#allocation22_spill] sm:$0xff] }
 0x1ae   : > { %v6031_v44 = vmul.f32 %v5935_v55, %v5647_v59  ;;  %v1906_v21 = vrot.slane %v1771_v22, 1  ;;  %v12016_v16 = vrot.slane %v8935_v24, 1  ;;  %v2913_v5 = vmul.f32 %v7989_v27, %v2812_v13  ;;  %v12415_v55 = vld [vmem:[#allocation25_spill] sm:$0xff] }
 0x1af   : > { %v2470_v20 = vrot.slane %v2265_v62, 2  ;;  %v5446_v58 = vadd.f32 %v5203_v43, %v4831_v49  ;;  %v5546_v19 = vmul.f32 %v8072_v18, %v5444_v34  ;;  %v12018_v2 = vrot.slane %v8940_v7, 2  ;;  %v3556_v62 = vld [vmem:[#allocation2 + $0x118] sm:$0xfe] }
 0x1b0   : > { %v6127_v31 = vmul.f32 0.16666667, %v6031_v44  ;;  %v1910_v0 = vsel %vm1886_vm2, %v1906_v21, %v12016_v16  ;;  %v2098_v59 = vadd.f32 %v1906_v21, %v1546_v1  ;;  %v2915_v46 = vmul.f32 %v12414_v38, %v7989_v27  ;;  %v12416_v1 = vld [vmem:[#allocation15_spill] sm:$0xff]  ;;  %v4178_v16 = vld [vmem:[#allocation2 + $0x148] sm:$0x80] }
 0x1b1   : > { %v3138_v35 = vmul.f32 %v12414_v38, %v12415_v55  ;;  %v5548_v13 = vmul.f32 %v8072_v18, %v5446_v58  ;;  %v5648_v43 = vadd.f32 %v8117_v50, %v5546_v19  ;;  %v2100_v23 = vadd.f32 %v1910_v0, %v1548_v52 }
 0x1b2   : > { %v6331_v22 = vrot.slane %v6127_v31, 7  ;;  %v2474_v44 = vsel %vm2438_vm3, %v2470_v20, %v12018_v2  ;;  %v2714_v49 = vadd.f32 %v2470_v20, %v2098_v59  ;;  %v8960_v34 = vmul.f32 %v12416_v1, %v12415_v55 }
 0x1b3   : > { %v3272_v21 = vrot.slane %v3138_v35, 1  ;;  %v5650_v19 = vadd.f32 %v8117_v50, %v5548_v13  ;;  %v5744_v52 = vadd.f32 3.0, %v5648_v43  ;;  %v2716_v31 = vadd.f32 %v2474_v44, %v2100_v23  ;;  %v8979_v44 = vld [vmem:[#allocation2 + $0x168] sm:$0xff] }
 0x1b4   : > { %v6332_v58 = vsel %vm6302_vm4, %v6327_v47, %v6331_v22  ;;  %v3009_v20 = vadd.f32 %v2913_v5, %v2714_v49  ;;  %v12022_v0 = vrot.slane %v8960_v34, 1  ;;  %v3631_v59 = vmul.f32 %v8060_v61, %v3556_v62  ;;  %v8976_v47 = vld [vmem:[#allocation2 + $0x158] sm:$0xff]  ;;  %12418 = vst [vmem:[#allocation16_spill] sm:$0xff] %v8979_v44 }
 0x1b5   : > { %7121 = vmatmul.msk.f32.gmra.mxu3 %vm1216_vm1, %v6332_v58  ;;  %v8974_v60 = vmul.f32 %v12416_v1, %v8060_v61  ;;  %12417 = vst [vmem:[#allocation18_spill] sm:$0xff] %v8976_v47  ;;  %v5746_v35 = vadd.f32 3.0, %v5650_v19  ;;  %v5840_v22 = vmax.f32 %v5744_v52, 0.0  ;;  %v3011_v13 = vadd.f32 %v2915_v46, %v2716_v31  ;;  %v4922_v58 = vld [vmem:[#allocation2 + $0x158] sm:$0xfe]  ;;  %v12419_v31 = vld [vmem:[#allocation27_spill] sm:$0xff] }
 0x1b6   : > { %v4279_v23 = vmul.f32 %v8098_v37, %v4178_v16  ;;  %v3276_v53 = vsel %vm1886_vm2, %v3272_v21, %v12022_v0  ;;  %v3464_v5 = vadd.f32 %v3272_v21, %v3009_v20  ;;  %v3835_v49 = vrot.slane %v3631_v59, 2 }
 0x1b7   : > { %v12024_v62 = vrot.slane %v8974_v60, 2  ;;  %v5842_v2 = vmax.f32 %v5746_v35, 0.0  ;;  %v5936_v45 = vmin.f32 %v5840_v22, 6.0  ;;  %v3466_v55 = vadd.f32 %v3276_v53, %v3011_v13  ;;  %v594_v13 = vpop.f32.mrf.mxu0 }
 0x1b8   : > { %v4281_v52 = vmul.f32 %v8098_v37, %v8976_v47  ;;  %v4079_v46 = vadd.f32 %v3835_v49, %v3464_v5  ;;  %v4504_v1 = vmul.f32 %v12419_v31, %v8976_v47  ;;  %v8994_v21 = vmul.f32 %v12419_v31, %v8979_v44 }
 0x1b9   : > { %v3839_v16 = vsel %vm2438_vm3, %v3835_v49, %v12024_v62  ;;  %v5938_v20 = vmin.f32 %v5842_v2, 6.0  ;;  %v6032_v59 = vmul.f32 %v5936_v45, %v5648_v43  ;;  %v4997_v22 = vmul.f32 %v8153_v48, %v4922_v58  ;;  %v707_v49 = vpop.f32.mrf.mxu1 }
 0x1ba   : > { %v4081_v35 = vadd.f32 %v3839_v16, %v3466_v55  ;;  %v4375_v53 = vadd.f32 %v4279_v23, %v4079_v46  ;;  %v4638_v0 = vrot.slane %v4504_v1, 1  ;;  %v12030_v32 = vrot.slane %v8994_v21, 1  ;;  %v2191_v1 = vld [vmem:[#allocation2 + $0xf0] sm:$0x1]  ;;  %v2815_v46 = vld [vmem:[#allocation2 + $0x120] sm:$0x7f] }
 0x1bb   : > { %v9000_v5 = vmul.f32 %v8153_v48, %v8979_v44  ;;  %v6034_v62 = vmul.f32 %v5938_v20, %v5650_v19  ;;  %v6128_v47 = vmul.f32 0.16666667, %v6032_v59  ;;  %v5201_v31 = vrot.slane %v4997_v22, 2 }
 0x1bc   : > { %v4377_v38 = vadd.f32 %v4281_v52, %v4081_v35  ;;  %v4642_v45 = vsel %vm1886_vm2, %v4638_v0, %v12030_v32  ;;  %v4830_v2 = vadd.f32 %v4638_v0, %v4375_v53  ;;  %v793_v43 = vmul.f32 %v7644_v39, %v594_v13  ;;  %v4181_v13 = vld [vmem:[#allocation2 + $0x160] sm:$0x7f] }
 0x1bd   : > { %v12031_v55 = vrot.slane %v9000_v5, 2  ;;  %v9007_v23 = vmul.f32 0.16666667, %v6034_v62  ;;  %v6333_v58 = vrot.slane %v6128_v47, 7  ;;  %v794_v19 = vmul.f32 %v7647_v40, %v707_v49 }
 0x1be   : > { %v4832_v16 = vadd.f32 %v4642_v45, %v4377_v38  ;;  %v5445_v20 = vadd.f32 %v5201_v31, %v4830_v2  ;;  %v863_v59 = vadd.f32 %v7650_v41, %v793_v43  ;;  %v1549_v0 = vmul.f32 %v12369_v14, %v1448_v33  ;;  %v3557_v38 = vld [vmem:[#allocation2 + $0x130] sm:$0x1] }
 0x1bf   : > { %12420 = vst [vmem:[#allocation26_spill] sm:$0xff] %v9007_v23  ;;  %v5205_v52 = vsel %vm2438_vm3, %v5201_v31, %v12031_v55  ;;  %v12032_v35 = vrot.slane %v9007_v23, 7  ;;  %v864_v62 = vadd.f32 %v7653_v42, %v794_v19  ;;  %v2268_v47 = vmul.f32 %v12358_v10, %v2191_v1  ;;  %v4923_v2 = vld [vmem:[#allocation2 + $0x170] sm:$0x1] }
 0x1c0   : > { %v5447_v22 = vadd.f32 %v5205_v52, %v4832_v16  ;;  %v5547_v53 = vmul.f32 %v8163_v63, %v5445_v20  ;;  %v927_v49 = vadd.f32 3.0, %v863_v59  ;;  %v12421_v45 = vrot.slane %v8851_v26, 1 }
 0x1c1   : > { %v2916_v31 = vmul.f32 %v7788_v29, %v2815_v46  ;;  %v6335_v33 = vsel %vm6302_vm4, %v6333_v58, %v12032_v35  ;;  %v928_v16 = vadd.f32 3.0, %v864_v62  ;;  %v2475_v19 = vrot.slane %v2268_v47, 2 }
 0x1c2   : > { %v2101_v32 = vadd.f32 %v12421_v45, %v1549_v0  ;;  %v5549_v43 = vmul.f32 %v8163_v63, %v5447_v22  ;;  %6618 = vmatmul.f32.gmra.mxu2 %v6335_v33  ;;  %v5649_v1 = vadd.f32 %v8175_v28, %v5547_v53  ;;  %v991_v52 = vmax.f32 %v927_v49, 0.0  ;;  %v1449_v0 = vld [vmem:[#allocation2 + $0xe8] sm:$0x7f] }
 0x1c3   : > { %v3634_v20 = vmul.f32 %v12360_v57, %v3557_v38  ;;  %v4282_v26 = vmul.f32 %v12407_v54, %v4181_v13  ;;  %v992_v45 = vmax.f32 %v928_v16, 0.0  ;;  %v12422_v55 = vrot.slane %v8864_v3, 2  ;;  %v2192_v13 = vld [vmem:[#allocation2 + $0xf8] sm:$0x1] }
 0x1c4   : > { %v5651_v46 = vadd.f32 %v8175_v28, %v5549_v43  ;;  %v5000_v22 = vmul.f32 %v12409_v51, %v4923_v2  ;;  %v5745_v35 = vadd.f32 3.0, %v5649_v1  ;;  %v1055_v47 = vmin.f32 %v991_v52, 6.0 }
 0x1c5   : > { %v2476_v58 = vsel %vm2438_vm3, %v12422_v55, %v2475_v19  ;;  %v3840_v44 = vrot.slane %v3634_v20, 2  ;;  %v1056_v49 = vmin.f32 %v992_v45, 6.0  ;;  %v1550_v38 = vmul.f32 %v12384_v25, %v1449_v0  ;;  %v2816_v55 = vld [vmem:[#allocation2 + $0x128] sm:$0x7f]  ;;  %v3558_v19 = vld [vmem:[#allocation2 + $0x138] sm:$0x1] }
 0x1c6   : > { %v2717_v33 = vadd.f32 %v2476_v58, %v2101_v32  ;;  %v5747_v53 = vadd.f32 3.0, %v5651_v46  ;;  %v5206_v23 = vrot.slane %v5000_v22, 2  ;;  %v5841_v54 = vmax.f32 %v5745_v35, 0.0  ;;  %v4182_v0 = vld [vmem:[#allocation2 + $0x168] sm:$0x7f] }
 0x1c7   : > { %v1119_v57 = vmul.f32 %v1055_v47, %v863_v59  ;;  %v12423_v16 = vrot.slane %v8894_v9, 2  ;;  %v1120_v51 = vmul.f32 %v1056_v49, %v864_v62  ;;  %v12424_v32 = vrot.slane %v8918_v11, 2  ;;  %v1450_v58 = vld [vmem:[#allocation2 + $0x100] sm:$0x80]  ;;  %v4924_v22 = vld [vmem:[#allocation2 + $0x178] sm:$0x1] }
 0x1c8   : > { %v3012_v43 = vadd.f32 %v2916_v31, %v2717_v33  ;;  %v5843_v2 = vmax.f32 %v5747_v53, 0.0  ;;  %v12425_v20 = vrot.slane %v8935_v24, 1  ;;  %v5937_v35 = vmin.f32 %v5841_v54, 6.0 }
 0x1c9   : > { %v3841_v3 = vsel %vm2438_vm3, %v12423_v16, %v3840_v44  ;;  %v5207_v52 = vsel %vm2438_vm3, %v12424_v32, %v5206_v23  ;;  %v1183_v59 = vmul.f32 0.16666667, %v1119_v57  ;;  %v12426_v31 = vrot.slane %v8883_v56, 1 }
 0x1ca   : > { %v2102_v45 = vadd.f32 %v12425_v20, %v1550_v38  ;;  %v2269_v44 = vmul.f32 %v7882_v36, %v2192_v13  ;;  %v5939_v47 = vmin.f32 %v5843_v2, 6.0  ;;  %v1184_v33 = vmul.f32 0.16666667, %v1120_v51 }
 0x1cb   : > { %v3467_v9 = vadd.f32 %v12426_v31, %v3012_v43  ;;  %v2917_v62 = vmul.f32 %v7989_v27, %v2816_v55  ;;  %v3635_v11 = vmul.f32 %v8060_v61, %v3558_v19  ;;  %v6033_v23 = vmul.f32 %v5937_v35, %v5649_v1  ;;  %1393 = vst [vmem:[#allocation2 + $0x250] sm:$0xff] %v1183_v59  ;;  %v597_v1 = vpop.f32.mrf.mxu0  ;;  %v710_v55 = vpop.f32.mrf.mxu1  ;;  %v2193_v59 = vld [vmem:[#allocation2 + $0x110] sm:$0xfe] }
 0x1cc   : > { %v2477_v53 = vrot.slane %v2269_v44, 2  ;;  %v4283_v49 = vmul.f32 %v8098_v37, %v4182_v0  ;;  %v6035_v54 = vmul.f32 %v5939_v47, %v5651_v46  ;;  %1394 = vst.msk [vmem:[#allocation2 + $0x258] sm:$0xff] %vm1216_vm1, %v1184_v33  ;;  %v5001_v56 = vmul.f32 %v8153_v48, %v4924_v22 }
 0x1cd   : > { %v4082_v24 = vadd.f32 %v3841_v3, %v3467_v9  ;;  %v3842_v57 = vrot.slane %v3635_v11, 2  ;;  %v1551_v38 = vmul.f32 %v12369_v14, %v1450_v58  ;;  %v6129_v13 = vmul.f32 0.16666667, %v6033_v23 }
 0x1ce   : > { %v12427_v43 = vrot.slane %v8940_v7, 2  ;;  %v1553_v3 = vmul.f32 %v8657_v15, %v12369_v14  ;;  %v9057_v19 = vmul.f32 0.16666667, %v6035_v54  ;;  %v12428_v2 = vrot.slane %v8974_v60, 2 }
 0x1cf   : > { %v4378_v51 = vadd.f32 %v4282_v26, %v4082_v24  ;;  %v5208_v20 = vrot.slane %v5001_v56, 2  ;;  %v6336_v0 = vrot.slane %v6129_v13, 7  ;;  %v12429_v26 = vrot.slane %v8909_v30, 1 }
 0x1d0   : > { %v2478_v16 = vsel %vm2438_vm3, %v12427_v43, %v2477_v53  ;;  %v3843_v32 = vsel %vm2438_vm3, %v12428_v2, %v3842_v57  ;;  %v795_v7 = vmul.f32 %v7644_v39, %v597_v1  ;;  %v796_v35 = vmul.f32 %v7647_v40, %v710_v55 }
 0x1d1   : > { %v2718_v46 = vadd.f32 %v2478_v16, %v2102_v45  ;;  %v4833_v58 = vadd.f32 %v12429_v26, %v4378_v51  ;;  %v6337_v31 = vrot.slane %v9057_v19, 7  ;;  %v12430_v44 = vrot.slane %v9000_v5, 2 }
 0x1d2   : > { %v1774_v60 = vmul.f32 %v8657_v15, %v12381_v12  ;;  %v865_v47 = vadd.f32 %v7650_v41, %v795_v7  ;;  %v866_v30 = vadd.f32 %v7653_v42, %v796_v35  ;;  %v9076_v33 = vmul.f32 %v8671_v8, %v12381_v12 }
 0x1d3   : > { %v3013_v9 = vadd.f32 %v2917_v62, %v2718_v46  ;;  %v5209_v45 = vsel %vm2438_vm3, %v12430_v44, %v5208_v20  ;;  %v5448_v22 = vadd.f32 %v5207_v52, %v4833_v58  ;;  %v6338_v62 = vsel %vm6302_vm4, %v6336_v0, %v6337_v31 }
 0x1d4   : > { %v12431_v5 = vrot.slane %v8960_v34, 1  ;;  %v1911_v23 = vrot.slane %v1774_v60, 1  ;;  %v2270_v24 = vmul.f32 %v12358_v10, %v2193_v59  ;;  %7122 = vmatmul.msk.f32.gmra.mxu3 %vm1216_vm1, %v6338_v62  ;;  %v929_v52 = vadd.f32 3.0, %v865_v47  ;;  %v2817_v34 = vld [vmem:[#allocation2 + $0x140] sm:$0x80] }
 0x1d5   : > { %v5550_v15 = vmul.f32 %v8072_v18, %v5448_v22  ;;  %v930_v53 = vadd.f32 3.0, %v866_v30  ;;  %v12046_v54 = vrot.slane %v9076_v33, 1  ;;  %v9089_v13 = vmul.f32 %v8671_v8, %v12358_v10  ;;  %v3559_v22 = vld [vmem:[#allocation2 + $0x150] sm:$0xfe] }
 0x1d6   : > { %v3468_v11 = vadd.f32 %v12431_v5, %v3013_v9  ;;  %v2103_v56 = vadd.f32 %v1911_v23, %v1551_v38  ;;  %v2479_v51 = vrot.slane %v2270_v24, 2  ;;  %v993_v16 = vmax.f32 %v929_v52, 0.0  ;;  %v9110_v24 = vld [vmem:[#allocation2 + $0x190] sm:$0xff] }
 0x1d7   : > { %v5652_v43 = vadd.f32 %v8117_v50, %v5550_v15  ;;  %v994_v1 = vmax.f32 %v930_v53, 0.0  ;;  %v1914_v55 = vsel %vm1886_vm2, %v1911_v23, %v12046_v54  ;;  %v12043_v20 = vrot.slane %v9089_v13, 2  ;;  %v4183_v23 = vld [vmem:[#allocation2 + $0x180] sm:$0x80] }
 0x1d8   : > { %v4083_v57 = vadd.f32 %v3843_v32, %v3468_v11  ;;  %v2105_v2 = vadd.f32 %v1914_v55, %v1553_v3  ;;  %v2719_v32 = vadd.f32 %v2479_v51, %v2103_v56  ;;  %v1057_v0 = vmin.f32 %v993_v16, 6.0  ;;  %v12434_v55 = vld [vmem:[#allocation20_spill] sm:$0xff] }
 0x1d9   : > { %v5748_v38 = vadd.f32 3.0, %v5652_v43  ;;  %v1058_v26 = vmin.f32 %v994_v1, 6.0  ;;  %v2918_v8 = vmul.f32 %v7788_v29, %v2817_v34  ;;  %v12432_v58 = vrot.slane %v8994_v21, 1  ;;  %v9115_v34 = vld [vmem:[#allocation2 + $0x1a0] sm:$0xff] }
 0x1da   : > { %v4379_v46 = vadd.f32 %v4283_v49, %v4083_v57  ;;  %v2482_v35 = vsel %vm2438_vm3, %v2479_v51, %v12043_v20  ;;  %v2920_v59 = vmul.f32 %v8885_v17, %v7788_v29  ;;  %v3141_v49 = vmul.f32 %v8885_v17, %v12359_v4  ;;  %v12433_v51 = vld [vmem:[#allocation19_spill] sm:$0xff] }
 0x1db   : > { %v5844_v3 = vmax.f32 %v5748_v38, 0.0  ;;  %v1121_v9 = vmul.f32 %v1057_v0, %v865_v47  ;;  %v1122_v44 = vmul.f32 %v1058_v26, %v866_v30  ;;  %v2721_v60 = vadd.f32 %v2482_v35, %v2105_v2  ;;  %v12435_v26 = vld [vmem:[#allocation21_spill] sm:$0xff] }
 0x1dc   : > { %v4834_v7 = vadd.f32 %v12432_v58, %v4379_v46  ;;  %v3014_v5 = vadd.f32 %v2918_v8, %v2719_v32  ;;  %v9108_v21 = vmul.f32 %v8890_v6, %v12359_v4  ;;  %v3277_v11 = vrot.slane %v3141_v49, 1  ;;  %v4925_v32 = vld [vmem:[#allocation2 + $0x190] sm:$0xfe] }
 0x1dd   : > { %v5940_v15 = vmin.f32 %v5844_v3, 6.0  ;;  %v1185_v52 = vmul.f32 0.16666667, %v1121_v9  ;;  %v1186_v53 = vmul.f32 0.16666667, %v1122_v44  ;;  %v3016_v57 = vadd.f32 %v2920_v59, %v2721_v60  ;;  %v12436_v44 = vld [vmem:[#allocation23_spill] sm:$0xff] }
 0x1de   : > { %v5449_v62 = vadd.f32 %v5209_v45, %v4834_v7  ;;  %v12040_v47 = vrot.slane %v9108_v21, 1  ;;  %v3469_v30 = vadd.f32 %v3277_v11, %v3014_v5  ;;  %v3636_v45 = vmul.f32 %v12433_v51, %v3559_v22  ;;  %v1451_v22 = vld [vmem:[#allocation2 + $0x108] sm:$0x80] }
 0x1df   : > { %v6036_v16 = vmul.f32 %v5940_v15, %v5652_v43  ;;  %1395 = vst [vmem:[#allocation2 + $0x260] sm:$0xff] %v1185_v52  ;;  %v9119_v1 = vmul.f32 %v8890_v6, %v12433_v51  ;;  %v4284_v46 = vmul.f32 %v12434_v55, %v4183_v23  ;;  %v4286_v2 = vmul.f32 %v12434_v55, %v9110_v24 }
 0x1e0   : > { %v5551_v56 = vmul.f32 %v8163_v63, %v5449_v62  ;;  %1396 = vst.msk [vmem:[#allocation2 + $0x268] sm:$0xff] %vm1216_vm1, %v1186_v53  ;;  %v3280_v0 = vsel %vm1886_vm2, %v3277_v11, %v12040_v47  ;;  %v3844_v43 = vrot.slane %v3636_v45, 2  ;;  %v4507_v8 = vmul.f32 %v12435_v26, %v9110_v24 }
 0x1e1   : > { %v6132_v58 = vmul.f32 0.16666667, %v6036_v16  ;;  %v3471_v7 = vadd.f32 %v3280_v0, %v3016_v57  ;;  %v12042_v35 = vrot.slane %v9119_v1, 2  ;;  %v9134_v59 = vmul.f32 %v12435_v26, %v9115_v34  ;;  %v1454_v26 = vld [vmem:[#allocation2 + $0x120] sm:$0x7f] }
 0x1e2   : > { %v5653_v38 = vadd.f32 %v8175_v28, %v5551_v56  ;;  %v4084_v3 = vadd.f32 %v3844_v43, %v3469_v30  ;;  %v4643_v9 = vrot.slane %v4507_v8, 1  ;;  %v5002_v60 = vmul.f32 %v12436_v44, %v4925_v32  ;;  %v2194_v56 = vld [vmem:[#allocation2 + $0x118] sm:$0xfe]  ;;  %v12437_v30 = vld [vmem:[#allocation26_spill] sm:$0xff] }
 0x1e3   : > { %v6339_v62 = vrot.slane %v6132_v58, 7  ;;  %v3847_v5 = vsel %vm2438_vm3, %v3844_v43, %v12042_v35  ;;  %v12039_v11 = vrot.slane %v9134_v59, 1  ;;  %v9143_v23 = vmul.f32 %v12436_v44, %v9115_v34 }
 0x1e4   : > { %v5749_v49 = vadd.f32 3.0, %v5653_v38  ;;  %v4086_v52 = vadd.f32 %v3847_v5, %v3471_v7  ;;  %v4380_v53 = vadd.f32 %v4284_v46, %v4084_v3  ;;  %v5210_v57 = vrot.slane %v5002_v60, 2  ;;  %v12439_v46 = vld [vmem:[#allocation22_spill] sm:$0xff] }
 0x1e5   : > { %v12438_v45 = vrot.slane %v12437_v30, 7  ;;  %v4646_v32 = vsel %vm1886_vm2, %v4643_v9, %v12039_v11  ;;  %v12041_v0 = vrot.slane %v9143_v23, 2  ;;  %v1552_v43 = vmul.f32 %v12384_v25, %v1451_v22  ;;  %v2818_v3 = vld [vmem:[#allocation2 + $0x148] sm:$0x80]  ;;  %v12441_v30 = vld [vmem:[#allocation15_spill] sm:$0xff] }
 0x1e6   : > { %v5845_v15 = vmax.f32 %v5749_v49, 0.0  ;;  %v4382_v58 = vadd.f32 %v4286_v2, %v4086_v52  ;;  %v4835_v49 = vadd.f32 %v4643_v9, %v4380_v53  ;;  %v1554_v7 = vmul.f32 %v12439_v46, %v12384_v25 }
 0x1e7   : > { %v6340_v16 = vsel %vm6302_vm4, %v12438_v45, %v6339_v62  ;;  %v5213_v60 = vsel %vm2438_vm3, %v5210_v57, %v12041_v0  ;;  %v12440_v62 = vld [vmem:[#allocation17_spill] sm:$0xff]  ;;  %v2271_v22 = vmul.f32 %v7882_v36, %v2194_v56  ;;  %v9167_v52 = vmul.f32 %v12441_v30, %v7882_v36  ;;  %v12442_v56 = vld [vmem:[#allocation18_spill] sm:$0xff] }
 0x1e8   : > { %6621 = vmatmul.f32.gmra.mxu2 %v6340_v16  ;;  %v5941_v8 = vmin.f32 %v5845_v15, 6.0  ;;  %v1775_v5 = vmul.f32 %v12439_v46, %v12440_v62  ;;  %v9162_v45 = vmul.f32 %v12441_v30, %v12440_v62  ;;  %v4837_v2 = vadd.f32 %v4646_v32, %v4382_v58  ;;  %v3560_v30 = vld [vmem:[#allocation2 + $0x158] sm:$0xfe] }
 0x1e9   : > { %v5450_v9 = vadd.f32 %v5210_v57, %v4835_v49  ;;  %v2480_v11 = vrot.slane %v2271_v22, 2  ;;  %v2919_v47 = vmul.f32 %v7989_v27, %v2818_v3  ;;  %v12044_v20 = vrot.slane %v9167_v52, 2 }
 0x1ea   : > { %v6037_v15 = vmul.f32 %v5941_v8, %v5653_v38  ;;  %v1912_v53 = vrot.slane %v1775_v5, 1  ;;  %v12045_v16 = vrot.slane %v9162_v45, 1  ;;  %v5452_v0 = vadd.f32 %v5213_v60, %v4837_v2  ;;  %v12443_v8 = vld [vmem:[#allocation25_spill] sm:$0xff] }
 0x1eb   : > { %v5552_v35 = vmul.f32 %v8072_v18, %v5450_v9  ;;  %v2921_v32 = vmul.f32 %v12442_v56, %v7989_v27  ;;  %v3142_v58 = vmul.f32 %v12442_v56, %v12443_v8  ;;  %v2484_v22 = vsel %vm2438_vm3, %v2480_v11, %v12044_v20 }
 0x1ec   : > { %v6133_v46 = vmul.f32 0.16666667, %v6037_v15  ;;  %v1916_v38 = vsel %vm1886_vm2, %v1912_v53, %v12045_v16  ;;  %v2104_v57 = vadd.f32 %v1912_v53, %v1552_v43  ;;  %v5554_v3 = vmul.f32 %v8072_v18, %v5452_v0  ;;  %v12444_v43 = vld [vmem:[#allocation16_spill] sm:$0xff]  ;;  %v4184_v53 = vld [vmem:[#allocation2 + $0x188] sm:$0x80] }
 0x1ed   : > { %v5654_v60 = vadd.f32 %v8117_v50, %v5552_v35  ;;  %v2106_v5 = vadd.f32 %v1916_v38, %v1554_v7  ;;  %v9187_v2 = vmul.f32 %v12444_v43, %v12443_v8  ;;  %v3278_v9 = vrot.slane %v3142_v58, 1  ;;  %v9200_v58 = vld [vmem:[#allocation2 + $0x198] sm:$0xff] }
 0x1ee   : > { %v6341_v49 = vrot.slane %v6133_v46, 7  ;;  %v2720_v15 = vadd.f32 %v2480_v11, %v2104_v57  ;;  %v5656_v0 = vadd.f32 %v8117_v50, %v5554_v3  ;;  %v3637_v11 = vmul.f32 %v8060_v61, %v3560_v30  ;;  %12445 = vst [vmem:[#allocation13_spill] sm:$0xff] %v9200_v58  ;;  %v9203_v3 = vld [vmem:[#allocation2 + $0x1a8] sm:$0xff] }
 0x1ef   : > { %v5750_v35 = vadd.f32 3.0, %v5654_v60  ;;  %v2722_v7 = vadd.f32 %v2484_v22, %v2106_v5  ;;  %v12049_v20 = vrot.slane %v9187_v2, 1  ;;  %v9198_v57 = vmul.f32 %v12444_v43, %v8060_v61  ;;  %12446 = vst [vmem:[#allocation14_spill] sm:$0xff] %v9203_v3 }
 0x1f0   : > { %v6342_v46 = vsel %vm6302_vm4, %v6337_v31, %v6341_v49  ;;  %v3015_v38 = vadd.f32 %v2919_v47, %v2720_v15  ;;  %v5752_v19 = vadd.f32 3.0, %v5656_v0  ;;  %v4285_v49 = vmul.f32 %v8098_v37, %v4184_v53  ;;  %v4926_v15 = vld [vmem:[#allocation2 + $0x198] sm:$0xfe] }
 0x1f1   : > { %7123 = vmatmul.msk.f32.gmra.mxu3 %vm1216_vm1, %v6342_v46  ;;  %v5846_v16 = vmax.f32 %v5750_v35, 0.0  ;;  %v3017_v31 = vadd.f32 %v2921_v32, %v2722_v7  ;;  %v3282_v47 = vsel %vm1886_vm2, %v3278_v9, %v12049_v20  ;;  %v3845_v22 = vrot.slane %v3637_v11, 2  ;;  %v12447_v7 = vld [vmem:[#allocation27_spill] sm:$0xff] }
 0x1f2   : > { %v3470_v5 = vadd.f32 %v3278_v9, %v3015_v38  ;;  %v12051_v30 = vrot.slane %v9198_v57, 2  ;;  %v5848_v46 = vmax.f32 %v5752_v19, 0.0  ;;  %v4287_v35 = vmul.f32 %v8098_v37, %v9200_v58 }
 0x1f3   : > { %v5942_v54 = vmin.f32 %v5846_v16, 6.0  ;;  %v3472_v8 = vadd.f32 %v3282_v47, %v3017_v31  ;;  %v4508_v43 = vmul.f32 %v12447_v7, %v9200_v58  ;;  %v9218_v9 = vmul.f32 %v12447_v7, %v9203_v3  ;;  %v600_v31 = vpop.f32.mrf.mxu0 }
 0x1f4   : > { %v3849_v32 = vsel %vm2438_vm3, %v3845_v22, %v12051_v30  ;;  %v4085_v53 = vadd.f32 %v3845_v22, %v3470_v5  ;;  %v5944_v38 = vmin.f32 %v5848_v46, 6.0  ;;  %v5003_v16 = vmul.f32 %v8153_v48, %v4926_v15  ;;  %v713_v22 = vpop.f32.mrf.mxu1 }
 0x1f5   : > { %v6038_v11 = vmul.f32 %v5942_v54, %v5654_v60  ;;  %v4087_v19 = vadd.f32 %v3849_v32, %v3472_v8  ;;  %v4644_v20 = vrot.slane %v4508_v43, 1  ;;  %v12057_v62 = vrot.slane %v9218_v9, 1 }
 0x1f6   : > { %v4381_v47 = vadd.f32 %v4285_v49, %v4085_v53  ;;  %v9224_v5 = vmul.f32 %v8153_v48, %v9203_v3  ;;  %v6040_v30 = vmul.f32 %v5944_v38, %v5656_v0  ;;  %v5211_v7 = vrot.slane %v5003_v16, 2  ;;  %v2195_v49 = vld [vmem:[#allocation2 + $0x130] sm:$0x1]  ;;  %v2821_v53 = vld [vmem:[#allocation2 + $0x160] sm:$0x7f] }
 0x1f7   : > { %v6134_v58 = vmul.f32 0.16666667, %v6038_v11  ;;  %v4383_v56 = vadd.f32 %v4287_v35, %v4087_v19  ;;  %v4648_v54 = vsel %vm1886_vm2, %v4644_v20, %v12057_v62  ;;  %v797_v43 = vmul.f32 %v7644_v39, %v600_v31  ;;  %v4187_v31 = vld [vmem:[#allocation2 + $0x1a0] sm:$0x7f] }
 0x1f8   : > { %v4836_v8 = vadd.f32 %v4644_v20, %v4381_v47  ;;  %v12058_v60 = vrot.slane %v9224_v5, 2  ;;  %v9231_v15 = vmul.f32 0.16666667, %v6040_v30  ;;  %v798_v0 = vmul.f32 %v7647_v40, %v713_v22 }
 0x1f9   : > { %v6343_v46 = vrot.slane %v6134_v58, 7  ;;  %v4838_v32 = vadd.f32 %v4648_v54, %v4383_v56  ;;  %v867_v11 = vadd.f32 %v7650_v41, %v797_v43  ;;  %v1555_v20 = vmul.f32 %v12369_v14, %v1454_v26  ;;  %v3561_v56 = vld [vmem:[#allocation2 + $0x170] sm:$0x1] }
 0x1fa   : > { %12448 = vst [vmem:[#allocation26_spill] sm:$0xff] %v9231_v15  ;;  %v5215_v35 = vsel %vm2438_vm3, %v5211_v7, %v12058_v60  ;;  %v5451_v38 = vadd.f32 %v5211_v7, %v4836_v8  ;;  %v12059_v19 = vrot.slane %v9231_v15, 7  ;;  %v868_v30 = vadd.f32 %v7653_v42, %v798_v0  ;;  %v4927_v8 = vld [vmem:[#allocation2 + $0x1b0] sm:$0x1] }
 0x1fb   : > { %v5453_v16 = vadd.f32 %v5215_v35, %v4838_v32  ;;  %v2274_v58 = vmul.f32 %v12358_v10, %v2195_v49  ;;  %v931_v22 = vadd.f32 3.0, %v867_v11  ;;  %v12449_v54 = vrot.slane %v9076_v33, 1 }
 0x1fc   : > { %v5553_v47 = vmul.f32 %v8163_v63, %v5451_v38  ;;  %v2922_v7 = vmul.f32 %v7788_v29, %v2821_v53  ;;  %v6345_v26 = vsel %vm6302_vm4, %v6343_v46, %v12059_v19  ;;  %v932_v32 = vadd.f32 3.0, %v868_v30 }
 0x1fd   : > { %v2107_v62 = vadd.f32 %v12449_v54, %v1555_v20  ;;  %v5555_v43 = vmul.f32 %v8163_v63, %v5453_v16  ;;  %v2485_v0 = vrot.slane %v2274_v58, 2  ;;  %6624 = vmatmul.f32.gmra.mxu2 %v6345_v26  ;;  %v995_v35 = vmax.f32 %v931_v22, 0.0  ;;  %v1455_v20 = vld [vmem:[#allocation2 + $0x128] sm:$0x7f] }
 0x1fe   : > { %v5655_v49 = vadd.f32 %v8175_v28, %v5553_v47  ;;  %v3640_v38 = vmul.f32 %v12433_v51, %v3561_v56  ;;  %v4288_v33 = vmul.f32 %v12434_v55, %v4187_v31  ;;  %v996_v54 = vmax.f32 %v932_v32, 0.0  ;;  %v2196_v31 = vld [vmem:[#allocation2 + $0x138] sm:$0x1] }
 0x1ff   : > { %v5657_v53 = vadd.f32 %v8175_v28, %v5555_v43  ;;  %v12450_v60 = vrot.slane %v9089_v13, 2  ;;  %v5006_v16 = vmul.f32 %v12436_v44, %v4927_v8  ;;  %v1059_v58 = vmin.f32 %v995_v35, 6.0 }
 0x200   : > { %v5751_v19 = vadd.f32 3.0, %v5655_v49  ;;  %v3850_v3 = vrot.slane %v3640_v38, 2  ;;  %v1060_v22 = vmin.f32 %v996_v54, 6.0  ;;  %v1556_v56 = vmul.f32 %v12384_v25, %v1455_v20  ;;  %v4188_v20 = vld [vmem:[#allocation2 + $0x1a8] sm:$0x7f] }
 0x201   : > { %v2486_v46 = vsel %vm2438_vm3, %v12450_v60, %v2485_v0  ;;  %v5753_v47 = vadd.f32 3.0, %v5657_v53  ;;  %v5216_v15 = vrot.slane %v5006_v16, 2  ;;  %v1123_v51 = vmul.f32 %v1059_v58, %v867_v11  ;;  %v2822_v60 = vld [vmem:[#allocation2 + $0x168] sm:$0x7f]  ;;  %v3562_v0 = vld [vmem:[#allocation2 + $0x178] sm:$0x1] }
 0x202   : > { %v2723_v26 = vadd.f32 %v2486_v46, %v2107_v62  ;;  %v5847_v55 = vmax.f32 %v5751_v19, 0.0  ;;  %v12451_v32 = vrot.slane %v9119_v1, 2  ;;  %v1124_v44 = vmul.f32 %v1060_v22, %v868_v30  ;;  %v1456_v46 = vld [vmem:[#allocation2 + $0x140] sm:$0x80]  ;;  %v4928_v16 = vld [vmem:[#allocation2 + $0x1b8] sm:$0x1] }
 0x203   : > { %v5849_v8 = vmax.f32 %v5753_v47, 0.0  ;;  %v12452_v62 = vrot.slane %v9143_v23, 2  ;;  %v12453_v38 = vrot.slane %v9162_v45, 1  ;;  %v1187_v11 = vmul.f32 0.16666667, %v1123_v51 }
 0x204   : > { %v3018_v43 = vadd.f32 %v2922_v7, %v2723_v26  ;;  %v3851_v13 = vsel %vm2438_vm3, %v12451_v32, %v3850_v3  ;;  %v5943_v19 = vmin.f32 %v5847_v55, 6.0  ;;  %v12454_v7 = vrot.slane %v9108_v21, 1 }
 0x205   : > { %v5217_v35 = vsel %vm2438_vm3, %v12452_v62, %v5216_v15  ;;  %v2108_v54 = vadd.f32 %v12453_v38, %v1556_v56  ;;  %v2275_v3 = vmul.f32 %v7882_v36, %v2196_v31  ;;  %v5945_v58 = vmin.f32 %v5849_v8, 6.0  ;;  %1397 = vst [vmem:[#allocation2 + $0x290] sm:$0xff] %v1187_v11  ;;  %v2197_v11 = vld [vmem:[#allocation2 + $0x150] sm:$0xfe] }
 0x206   : > { %v3473_v1 = vadd.f32 %v12454_v7, %v3018_v43  ;;  %v1188_v26 = vmul.f32 0.16666667, %v1124_v44  ;;  %v2923_v30 = vmul.f32 %v7989_v27, %v2822_v60  ;;  %v3641_v23 = vmul.f32 %v8060_v61, %v3562_v0  ;;  %v716_v60 = vpop.f32.mrf.mxu1 }
 0x207   : > { %v6039_v15 = vmul.f32 %v5943_v19, %v5655_v49  ;;  %v2487_v47 = vrot.slane %v2275_v3, 2  ;;  %v4289_v22 = vmul.f32 %v8098_v37, %v4188_v20  ;;  %v6041_v55 = vmul.f32 %v5945_v58, %v5657_v53  ;;  %v603_v49 = vpop.f32.mrf.mxu0 }
 0x208   : > { %v4088_v45 = vadd.f32 %v3851_v13, %v3473_v1  ;;  %1398 = vst.msk [vmem:[#allocation2 + $0x298] sm:$0xff] %vm1216_vm1, %v1188_v26  ;;  %v3852_v21 = vrot.slane %v3641_v23, 2  ;;  %v5007_v51 = vmul.f32 %v8153_v48, %v4928_v16  ;;  %v1557_v56 = vmul.f32 %v12369_v14, %v1456_v46 }
 0x209   : > { %v6135_v31 = vmul.f32 0.16666667, %v6039_v15  ;;  %v12455_v43 = vrot.slane %v9167_v52, 2  ;;  %v1559_v13 = vmul.f32 %v8885_v17, %v12369_v14  ;;  %v9281_v0 = vmul.f32 0.16666667, %v6041_v55 }
 0x20a   : > { %v4384_v44 = vadd.f32 %v4288_v33, %v4088_v45  ;;  %v12456_v8 = vrot.slane %v9198_v57, 2  ;;  %v5218_v38 = vrot.slane %v5007_v51, 2  ;;  %v12457_v33 = vrot.slane %v9134_v59, 1 }
 0x20b   : > { %v2488_v32 = vsel %vm2438_vm3, %v12455_v43, %v2487_v47  ;;  %v6346_v20 = vrot.slane %v6135_v31, 7  ;;  %v799_v52 = vmul.f32 %v7644_v39, %v603_v49  ;;  %v800_v19 = vmul.f32 %v7647_v40, %v716_v60 }
 0x20c   : > { %v2724_v53 = vadd.f32 %v2488_v32, %v2108_v54  ;;  %v3853_v62 = vsel %vm2438_vm3, %v12456_v8, %v3852_v21  ;;  %v4839_v46 = vadd.f32 %v12457_v33, %v4384_v44  ;;  %v6347_v7 = vrot.slane %v9281_v0, 7 }
 0x20d   : > { %v12458_v3 = vrot.slane %v9224_v5, 2  ;;  %v1778_v57 = vmul.f32 %v8885_v17, %v12381_v12  ;;  %v869_v58 = vadd.f32 %v7650_v41, %v799_v52  ;;  %v870_v59 = vadd.f32 %v7653_v42, %v800_v19 }
 0x20e   : > { %v3019_v1 = vadd.f32 %v2923_v30, %v2724_v53  ;;  %v5454_v16 = vadd.f32 %v5217_v35, %v4839_v46  ;;  %v9300_v26 = vmul.f32 %v8890_v6, %v12381_v12  ;;  %v6348_v30 = vsel %vm6302_vm4, %v6346_v20, %v6347_v7 }
 0x20f   : > { %v5219_v54 = vsel %vm2438_vm3, %v12458_v3, %v5218_v38  ;;  %v12459_v5 = vrot.slane %v9187_v2, 1  ;;  %v1917_v15 = vrot.slane %v1778_v57, 1  ;;  %v2276_v45 = vmul.f32 %v12358_v10, %v2197_v11  ;;  %7124 = vmatmul.msk.f32.gmra.mxu3 %vm1216_vm1, %v6348_v30  ;;  %v2823_v2 = vld [vmem:[#allocation2 + $0x180] sm:$0x80] }
 0x210   : > { %v5556_v17 = vmul.f32 %v8072_v18, %v5454_v16  ;;  %v933_v35 = vadd.f32 3.0, %v869_v58  ;;  %v934_v47 = vadd.f32 3.0, %v870_v59  ;;  %v12073_v55 = vrot.slane %v9300_v26, 1  ;;  %v3563_v16 = vld [vmem:[#allocation2 + $0x190] sm:$0xfe] }
 0x211   : > { %v3474_v23 = vadd.f32 %v12459_v5, %v3019_v1  ;;  %v2109_v51 = vadd.f32 %v1917_v15, %v1557_v56  ;;  %v9313_v31 = vmul.f32 %v8890_v6, %v12358_v10  ;;  %v2489_v44 = vrot.slane %v2276_v45, 2  ;;  %v9334_v45 = vld [vmem:[#allocation2 + $0x1d0] sm:$0xff] }
 0x212   : > { %v5658_v43 = vadd.f32 %v8117_v50, %v5556_v17  ;;  %v997_v32 = vmax.f32 %v933_v35, 0.0  ;;  %v998_v49 = vmax.f32 %v934_v47, 0.0  ;;  %v1920_v60 = vsel %vm1886_vm2, %v1917_v15, %v12073_v55  ;;  %v4189_v15 = vld [vmem:[#allocation2 + $0x1c0] sm:$0x80] }
 0x213   : > { %v4089_v21 = vadd.f32 %v3853_v62, %v3474_v23  ;;  %v2111_v8 = vadd.f32 %v1920_v60, %v1559_v13  ;;  %v12070_v38 = vrot.slane %v9313_v31, 2  ;;  %v2725_v62 = vadd.f32 %v2489_v44, %v2109_v51  ;;  %v12462_v60 = vld [vmem:[#allocation20_spill] sm:$0xff] }
 0x214   : > { %v5754_v56 = vadd.f32 3.0, %v5658_v43  ;;  %v1061_v20 = vmin.f32 %v997_v32, 6.0  ;;  %v1062_v33 = vmin.f32 %v998_v49, 6.0  ;;  %v2924_v6 = vmul.f32 %v7788_v29, %v2823_v2  ;;  %v9339_v2 = vld [vmem:[#allocation2 + $0x1e0] sm:$0xff] }
 0x215   : > { %v4385_v53 = vadd.f32 %v4289_v22, %v4089_v21  ;;  %v12460_v46 = vrot.slane %v9218_v9, 1  ;;  %v2492_v19 = vsel %vm2438_vm3, %v2489_v44, %v12070_v38  ;;  %v2926_v11 = vmul.f32 %v9110_v24, %v7788_v29  ;;  %v12461_v44 = vld [vmem:[#allocation19_spill] sm:$0xff] }
 0x216   : > { %v3145_v22 = vmul.f32 %v9110_v24, %v12359_v4  ;;  %v5850_v13 = vmax.f32 %v5754_v56, 0.0  ;;  %v1125_v1 = vmul.f32 %v1061_v20, %v869_v58  ;;  %v1126_v3 = vmul.f32 %v1062_v33, %v870_v59  ;;  %v12463_v33 = vld [vmem:[#allocation21_spill] sm:$0xff] }
 0x217   : > { %v4840_v52 = vadd.f32 %v12460_v46, %v4385_v53  ;;  %v2727_v57 = vadd.f32 %v2492_v19, %v2111_v8  ;;  %v3020_v5 = vadd.f32 %v2924_v6, %v2725_v62  ;;  %v9332_v9 = vmul.f32 %v9115_v34, %v12359_v4  ;;  %v4929_v62 = vld [vmem:[#allocation2 + $0x1d0] sm:$0xfe] }
 0x218   : > { %v3283_v23 = vrot.slane %v3145_v22, 1  ;;  %v5946_v17 = vmin.f32 %v5850_v13, 6.0  ;;  %v1189_v35 = vmul.f32 0.16666667, %v1125_v1  ;;  %v1190_v47 = vmul.f32 0.16666667, %v1126_v3 }
 0x219   : > { %v5455_v30 = vadd.f32 %v5219_v54, %v4840_v52  ;;  %v3022_v21 = vadd.f32 %v2926_v11, %v2727_v57  ;;  %v12067_v58 = vrot.slane %v9332_v9, 1  ;;  %v3642_v54 = vmul.f32 %v12461_v44, %v3563_v16  ;;  %v12464_v3 = vld [vmem:[#allocation23_spill] sm:$0xff]  ;;  %v1457_v16 = vld [vmem:[#allocation2 + $0x148] sm:$0x80] }
 0x21a   : > { %v3475_v59 = vadd.f32 %v3283_v23, %v3020_v5  ;;  %v6042_v32 = vmul.f32 %v5946_v17, %v5658_v43  ;;  %1399 = vst [vmem:[#allocation2 + $0x2a0] sm:$0xff] %v1189_v35  ;;  %v9343_v49 = vmul.f32 %v9115_v34, %v12461_v44  ;;  %v4290_v53 = vmul.f32 %v12462_v60, %v4189_v15 }
 0x21b   : > { %v5557_v51 = vmul.f32 %v8163_v63, %v5455_v30  ;;  %v4292_v8 = vmul.f32 %v12462_v60, %v9334_v45  ;;  %1400 = vst.msk [vmem:[#allocation2 + $0x2a8] sm:$0xff] %vm1216_vm1, %v1190_v47  ;;  %v3286_v20 = vsel %vm1886_vm2, %v3283_v23, %v12067_v58  ;;  %v3854_v43 = vrot.slane %v3642_v54, 2 }
 0x21c   : > { %v4511_v6 = vmul.f32 %v12463_v33, %v9334_v45  ;;  %v6138_v46 = vmul.f32 0.16666667, %v6042_v32  ;;  %v3477_v52 = vadd.f32 %v3286_v20, %v3022_v21  ;;  %v12069_v19 = vrot.slane %v9343_v49, 2 }
 0x21d   : > { %v5659_v56 = vadd.f32 %v8175_v28, %v5557_v51  ;;  %v9358_v11 = vmul.f32 %v12463_v33, %v9339_v2  ;;  %v4090_v13 = vadd.f32 %v3854_v43, %v3475_v59  ;;  %v5008_v57 = vmul.f32 %v12464_v3, %v4929_v62  ;;  %v2198_v51 = vld [vmem:[#allocation2 + $0x158] sm:$0xfe]  ;;  %v12465_v59 = vld [vmem:[#allocation26_spill] sm:$0xff]  ;;  %v1460_v33 = vld [vmem:[#allocation2 + $0x160] sm:$0x7f] }
 0x21e   : > { %v4649_v1 = vrot.slane %v4511_v6, 1  ;;  %v6349_v30 = vrot.slane %v6138_v46, 7  ;;  %v3857_v5 = vsel %vm2438_vm3, %v3854_v43, %v12069_v19  ;;  %v9367_v15 = vmul.f32 %v12464_v3, %v9339_v2 }
 0x21f   : > { %v5755_v22 = vadd.f32 3.0, %v5659_v56  ;;  %v12066_v23 = vrot.slane %v9358_v11, 1  ;;  %v4092_v35 = vadd.f32 %v3857_v5, %v3477_v52  ;;  %v4386_v47 = vadd.f32 %v4290_v53, %v4090_v13  ;;  %v12467_v53 = vld [vmem:[#allocation18_spill] sm:$0xff] }
 0x220   : > { %v5220_v21 = vrot.slane %v5008_v57, 2  ;;  %v12466_v54 = vrot.slane %v12465_v59, 7  ;;  %v12068_v20 = vrot.slane %v9367_v15, 2  ;;  %v1558_v43 = vmul.f32 %v12384_v25, %v1457_v16  ;;  %v2824_v13 = vld [vmem:[#allocation2 + $0x188] sm:$0x80]  ;;  %v12469_v59 = vld [vmem:[#allocation16_spill] sm:$0xff] }
 0x221   : > { %v5851_v17 = vmax.f32 %v5755_v22, 0.0  ;;  %v4652_v62 = vsel %vm1886_vm2, %v4649_v1, %v12066_v23  ;;  %v4388_v46 = vadd.f32 %v4292_v8, %v4092_v35  ;;  %v4841_v22 = vadd.f32 %v4649_v1, %v4386_v47 }
 0x222   : > { %v6350_v32 = vsel %vm6302_vm4, %v12466_v54, %v6349_v30  ;;  %v1560_v52 = vmul.f32 %v12467_v53, %v12384_v25  ;;  %v5223_v57 = vsel %vm2438_vm3, %v5220_v21, %v12068_v20  ;;  %v12468_v30 = vld [vmem:[#allocation17_spill] sm:$0xff]  ;;  %v2277_v16 = vmul.f32 %v7882_v36, %v2198_v51 }
 0x223   : > { %6627 = vmatmul.f32.gmra.mxu2 %v6350_v32  ;;  %v5947_v6 = vmin.f32 %v5851_v17, 6.0  ;;  %v1779_v5 = vmul.f32 %v12467_v53, %v12468_v30  ;;  %v9386_v54 = vmul.f32 %v12469_v59, %v12468_v30  ;;  %v4843_v8 = vadd.f32 %v4652_v62, %v4388_v46  ;;  %v12470_v51 = vld [vmem:[#allocation13_spill] sm:$0xff] }
 0x224   : > { %v5456_v1 = vadd.f32 %v5220_v21, %v4841_v22  ;;  %v9391_v35 = vmul.f32 %v12469_v59, %v7882_v36  ;;  %v2490_v23 = vrot.slane %v2277_v16, 2  ;;  %v2925_v58 = vmul.f32 %v7989_v27, %v2824_v13  ;;  %v3564_v59 = vld [vmem:[#allocation2 + $0x198] sm:$0xfe] }
 0x225   : > { %v6043_v17 = vmul.f32 %v5947_v6, %v5659_v56  ;;  %v1918_v47 = vrot.slane %v1779_v5, 1  ;;  %v12072_v32 = vrot.slane %v9386_v54, 1  ;;  %v5458_v20 = vadd.f32 %v5223_v57, %v4843_v8  ;;  %v12471_v6 = vld [vmem:[#allocation25_spill] sm:$0xff] }
 0x226   : > { %v5558_v19 = vmul.f32 %v8072_v18, %v5456_v1  ;;  %v12071_v38 = vrot.slane %v9391_v35, 2  ;;  %v2927_v62 = vmul.f32 %v12470_v51, %v7989_v27  ;;  %v3146_v46 = vmul.f32 %v12470_v51, %v12471_v6 }
 0x227   : > { %v6139_v53 = vmul.f32 0.16666667, %v6043_v17  ;;  %v1922_v56 = vsel %vm1886_vm2, %v1918_v47, %v12072_v32  ;;  %v2110_v21 = vadd.f32 %v1918_v47, %v1558_v43  ;;  %v5560_v13 = vmul.f32 %v8072_v18, %v5458_v20  ;;  %v12472_v43 = vld [vmem:[#allocation14_spill] sm:$0xff] }
 0x228   : > { %v5660_v57 = vadd.f32 %v8117_v50, %v5558_v19  ;;  %v2112_v5 = vadd.f32 %v1922_v56, %v1560_v52  ;;  %v2494_v16 = vsel %vm2438_vm3, %v2490_v23, %v12071_v38  ;;  %v9411_v8 = vmul.f32 %v12472_v43, %v12471_v6  ;;  %v4190_v47 = vld [vmem:[#allocation2 + $0x1c8] sm:$0x80] }
 0x229   : > { %v6351_v22 = vrot.slane %v6139_v53, 7  ;;  %v2726_v17 = vadd.f32 %v2490_v23, %v2110_v21  ;;  %v3284_v1 = vrot.slane %v3146_v46, 1  ;;  %v5662_v20 = vadd.f32 %v8117_v50, %v5560_v13  ;;  %v9424_v46 = vld [vmem:[#allocation2 + $0x1d8] sm:$0xff]  ;;  %v9427_v13 = vld [vmem:[#allocation2 + $0x1e8] sm:$0xff] }
 0x22a   : > { %v5756_v19 = vadd.f32 3.0, %v5660_v57  ;;  %v2728_v52 = vadd.f32 %v2494_v16, %v2112_v5  ;;  %v12076_v38 = vrot.slane %v9411_v8, 1  ;;  %v3643_v23 = vmul.f32 %v8060_v61, %v3564_v59  ;;  %12473 = vst [vmem:[#allocation22_spill] sm:$0xff] %v9424_v46 }
 0x22b   : > { %v6352_v53 = vsel %vm6302_vm4, %v6347_v7, %v6351_v22  ;;  %v3021_v56 = vadd.f32 %v2925_v58, %v2726_v17  ;;  %v9422_v21 = vmul.f32 %v12472_v43, %v8060_v61  ;;  %v5758_v0 = vadd.f32 3.0, %v5662_v20  ;;  %12474 = vst [vmem:[#allocation15_spill] sm:$0xff] %v9427_v13  ;;  %v4930_v17 = vld [vmem:[#allocation2 + $0x1d8] sm:$0xfe] }
 0x22c   : > { %7125 = vmatmul.msk.f32.gmra.mxu3 %vm1216_vm1, %v6352_v53  ;;  %v5852_v32 = vmax.f32 %v5756_v19, 0.0  ;;  %v3023_v7 = vadd.f32 %v2927_v62, %v2728_v52  ;;  %v4291_v22 = vmul.f32 %v8098_v37, %v4190_v47  ;;  %v3288_v58 = vsel %vm1886_vm2, %v3284_v1, %v12076_v38  ;;  %v12475_v52 = vld [vmem:[#allocation27_spill] sm:$0xff] }
 0x22d   : > { %v3476_v5 = vadd.f32 %v3284_v1, %v3021_v56  ;;  %v3855_v16 = vrot.slane %v3643_v23, 2  ;;  %v12078_v59 = vrot.slane %v9422_v21, 2  ;;  %v5854_v53 = vmax.f32 %v5758_v0, 0.0 }
 0x22e   : > { %v5948_v55 = vmin.f32 %v5852_v32, 6.0  ;;  %v3478_v6 = vadd.f32 %v3288_v58, %v3023_v7  ;;  %v4293_v19 = vmul.f32 %v8098_v37, %v9424_v46  ;;  %v4512_v43 = vmul.f32 %v12475_v52, %v9424_v46  ;;  %v606_v7 = vpop.f32.mrf.mxu0 }
 0x22f   : > { %v3859_v62 = vsel %vm2438_vm3, %v3855_v16, %v12078_v59  ;;  %v4091_v47 = vadd.f32 %v3855_v16, %v3476_v5  ;;  %v9442_v1 = vmul.f32 %v12475_v52, %v9427_v13  ;;  %v5950_v56 = vmin.f32 %v5854_v53, 6.0  ;;  %v719_v16 = vpop.f32.mrf.mxu1 }
 0x230   : > { %v6044_v23 = vmul.f32 %v5948_v55, %v5660_v57  ;;  %v4093_v0 = vadd.f32 %v3859_v62, %v3478_v6  ;;  %v5009_v32 = vmul.f32 %v8153_v48, %v4930_v17  ;;  %v4650_v38 = vrot.slane %v4512_v43, 1 }
 0x231   : > { %v4387_v58 = vadd.f32 %v4291_v22, %v4091_v47  ;;  %v12084_v30 = vrot.slane %v9442_v1, 1  ;;  %v9448_v5 = vmul.f32 %v8153_v48, %v9427_v13  ;;  %v6046_v59 = vmul.f32 %v5950_v56, %v5662_v20  ;;  %v2199_v22 = vld [vmem:[#allocation2 + $0x170] sm:$0x1]  ;;  %v2827_v47 = vld [vmem:[#allocation2 + $0x1a0] sm:$0x7f] }
 0x232   : > { %v6140_v46 = vmul.f32 0.16666667, %v6044_v23  ;;  %v4389_v51 = vadd.f32 %v4293_v19, %v4093_v0  ;;  %v5221_v52 = vrot.slane %v5009_v32, 2  ;;  %v801_v43 = vmul.f32 %v7644_v39, %v606_v7  ;;  %v4193_v7 = vld [vmem:[#allocation2 + $0x1e0] sm:$0x7f] }
 0x233   : > { %v4654_v55 = vsel %vm1886_vm2, %v4650_v38, %v12084_v30  ;;  %v4842_v6 = vadd.f32 %v4650_v38, %v4387_v58  ;;  %v12085_v57 = vrot.slane %v9448_v5, 2  ;;  %v9455_v17 = vmul.f32 0.16666667, %v6046_v59 }
 0x234   : > { %v6353_v53 = vrot.slane %v6140_v46, 7  ;;  %v4844_v62 = vadd.f32 %v4654_v55, %v4389_v51  ;;  %v802_v20 = vmul.f32 %v7647_v40, %v719_v16  ;;  %v871_v23 = vadd.f32 %v7650_v41, %v801_v43  ;;  %v3565_v51 = vld [vmem:[#allocation2 + $0x1b0] sm:$0x1] }
 0x235   : > { %12476 = vst [vmem:[#allocation26_spill] sm:$0xff] %v9455_v17  ;;  %v5225_v19 = vsel %vm2438_vm3, %v5221_v52, %v12085_v57  ;;  %v5457_v56 = vadd.f32 %v5221_v52, %v4842_v6  ;;  %v1561_v38 = vmul.f32 %v12369_v14, %v1460_v33  ;;  %v12086_v0 = vrot.slane %v9455_v17, 7  ;;  %v4931_v6 = vld [vmem:[#allocation2 + $0x1f0] sm:$0x1] }
 0x236   : > { %v5459_v32 = vadd.f32 %v5225_v19, %v4844_v62  ;;  %v872_v59 = vadd.f32 %v7653_v42, %v802_v20  ;;  %v2280_v46 = vmul.f32 %v12358_v10, %v2199_v22  ;;  %v935_v16 = vadd.f32 3.0, %v871_v23 }
 0x237   : > { %v5559_v58 = vmul.f32 %v8163_v63, %v5457_v56  ;;  %v12477_v55 = vrot.slane %v9300_v26, 1  ;;  %v2928_v52 = vmul.f32 %v7788_v29, %v2827_v47  ;;  %v6355_v33 = vsel %vm6302_vm4, %v6353_v53, %v12086_v0 }
 0x238   : > { %v5561_v43 = vmul.f32 %v8163_v63, %v5459_v32  ;;  %v936_v62 = vadd.f32 3.0, %v872_v59  ;;  %v2495_v20 = vrot.slane %v2280_v46, 2  ;;  %6630 = vmatmul.f32.gmra.mxu2 %v6355_v33  ;;  %v999_v19 = vmax.f32 %v935_v16, 0.0 }
 0x239   : > { %v2113_v30 = vadd.f32 %v12477_v55, %v1561_v38  ;;  %v5661_v22 = vadd.f32 %v8175_v28, %v5559_v58  ;;  %v3646_v56 = vmul.f32 %v12461_v44, %v3565_v51  ;;  %v4294_v26 = vmul.f32 %v12462_v60, %v4193_v7  ;;  %v1461_v38 = vld [vmem:[#allocation2 + $0x168] sm:$0x7f]  ;;  %v2200_v7 = vld [vmem:[#allocation2 + $0x178] sm:$0x1] }
 0x23a   : > { %v5663_v47 = vadd.f32 %v8175_v28, %v5561_v43  ;;  %v1000_v55 = vmax.f32 %v936_v62, 0.0  ;;  %v12478_v57 = vrot.slane %v9313_v31, 2  ;;  %v5012_v32 = vmul.f32 %v12464_v3, %v4931_v6 }
 0x23b   : > { %v5757_v0 = vadd.f32 3.0, %v5661_v22  ;;  %v1063_v46 = vmin.f32 %v999_v19, 6.0  ;;  %v3860_v13 = vrot.slane %v3646_v56, 2  ;;  %v1562_v51 = vmul.f32 %v12384_v25, %v1461_v38  ;;  %v4194_v38 = vld [vmem:[#allocation2 + $0x1e8] sm:$0x7f] }
 0x23c   : > { %v2496_v53 = vsel %vm2438_vm3, %v12478_v57, %v2495_v20  ;;  %v5759_v58 = vadd.f32 3.0, %v5663_v47  ;;  %v1064_v16 = vmin.f32 %v1000_v55, 6.0  ;;  %v5226_v17 = vrot.slane %v5012_v32, 2  ;;  %v2828_v57 = vld [vmem:[#allocation2 + $0x1a8] sm:$0x7f] }
 0x23d   : > { %v2729_v33 = vadd.f32 %v2496_v53, %v2113_v30  ;;  %v5853_v60 = vmax.f32 %v5757_v0, 0.0  ;;  %v1127_v44 = vmul.f32 %v1063_v46, %v871_v23  ;;  %v12479_v62 = vrot.slane %v9343_v49, 2  ;;  %v3566_v20 = vld [vmem:[#allocation2 + $0x1b8] sm:$0x1]  ;;  %v1462_v53 = vld [vmem:[#allocation2 + $0x180] sm:$0x80] }
 0x23e   : > { %v5855_v6 = vmax.f32 %v5759_v58, 0.0  ;;  %v1128_v3 = vmul.f32 %v1064_v16, %v872_v59  ;;  %v12480_v30 = vrot.slane %v9367_v15, 2  ;;  %v12481_v56 = vrot.slane %v9386_v54, 1  ;;  %v4932_v32 = vld [vmem:[#allocation2 + $0x1f8] sm:$0x1] }
 0x23f   : > { %v3024_v43 = vadd.f32 %v2928_v52, %v2729_v33  ;;  %v3861_v31 = vsel %vm2438_vm3, %v12479_v62, %v3860_v13  ;;  %v5949_v0 = vmin.f32 %v5853_v60, 6.0  ;;  %v1191_v23 = vmul.f32 0.16666667, %v1127_v44 }
 0x240   : > { %v5227_v19 = vsel %vm2438_vm3, %v12480_v30, %v5226_v17  ;;  %v2114_v55 = vadd.f32 %v12481_v56, %v1562_v51  ;;  %v12482_v52 = vrot.slane %v9332_v9, 1  ;;  %v2281_v13 = vmul.f32 %v7882_v36, %v2200_v7 }
 0x241   : > { %v5951_v46 = vmin.f32 %v5855_v6, 6.0  ;;  %v1192_v33 = vmul.f32 0.16666667, %v1128_v3  ;;  %v2929_v59 = vmul.f32 %v7989_v27, %v2828_v57  ;;  %v3647_v15 = vmul.f32 %v8060_v61, %v3566_v20  ;;  %1401 = vst [vmem:[#allocation2 + $0x2d0] sm:$0xff] %v1191_v23  ;;  %v722_v57 = vpop.f32.mrf.mxu1  ;;  %v2201_v23 = vld [vmem:[#allocation2 + $0x190] sm:$0xfe] }
 0x242   : > { %v3479_v49 = vadd.f32 %v12482_v52, %v3024_v43  ;;  %v6045_v17 = vmul.f32 %v5949_v0, %v5661_v22  ;;  %v2497_v58 = vrot.slane %v2281_v13, 2  ;;  %v4295_v16 = vmul.f32 %v8098_v37, %v4194_v38  ;;  %v609_v22 = vpop.f32.mrf.mxu0 }
 0x243   : > { %v6047_v60 = vmul.f32 %v5951_v46, %v5663_v47  ;;  %1402 = vst.msk [vmem:[#allocation2 + $0x2d8] sm:$0xff] %vm1216_vm1, %v1192_v33  ;;  %v3862_v9 = vrot.slane %v3647_v15, 2  ;;  %v5013_v44 = vmul.f32 %v8153_v48, %v4932_v32  ;;  %v1563_v51 = vmul.f32 %v12369_v14, %v1462_v53 }
 0x244   : > { %v4094_v54 = vadd.f32 %v3861_v31, %v3479_v49  ;;  %v6141_v7 = vmul.f32 0.16666667, %v6045_v17  ;;  %v12483_v43 = vrot.slane %v9391_v35, 2  ;;  %v1565_v31 = vmul.f32 %v9110_v24, %v12369_v14 }
 0x245   : > { %v9505_v20 = vmul.f32 0.16666667, %v6047_v60  ;;  %v12484_v6 = vrot.slane %v9422_v21, 2  ;;  %v5228_v56 = vrot.slane %v5013_v44, 2  ;;  %v803_v35 = vmul.f32 %v7644_v39, %v609_v22 }
 0x246   : > { %v4390_v3 = vadd.f32 %v4294_v26, %v4094_v54  ;;  %v2498_v62 = vsel %vm2438_vm3, %v12483_v43, %v2497_v58  ;;  %v6356_v38 = vrot.slane %v6141_v7, 7  ;;  %v12485_v26 = vrot.slane %v9358_v11, 1 }
 0x247   : > { %v2730_v47 = vadd.f32 %v2498_v62, %v2114_v55  ;;  %v3863_v30 = vsel %vm2438_vm3, %v12484_v6, %v3862_v9  ;;  %v804_v0 = vmul.f32 %v7647_v40, %v722_v57  ;;  %v6357_v52 = vrot.slane %v9505_v20, 7 }
 0x248   : > { %v4845_v53 = vadd.f32 %v12485_v26, %v4390_v3  ;;  %v12486_v13 = vrot.slane %v9448_v5, 2  ;;  %v1782_v21 = vmul.f32 %v9110_v24, %v12381_v12  ;;  %v873_v46 = vadd.f32 %v7650_v41, %v803_v35 }
 0x249   : > { %v3025_v49 = vadd.f32 %v2929_v59, %v2730_v47  ;;  %v874_v11 = vadd.f32 %v7653_v42, %v804_v0  ;;  %v9524_v33 = vmul.f32 %v9115_v34, %v12381_v12  ;;  %v6358_v59 = vsel %vm6302_vm4, %v6356_v38, %v6357_v52 }
 0x24a   : > { %v5229_v55 = vsel %vm2438_vm3, %v12486_v13, %v5228_v56  ;;  %v5460_v32 = vadd.f32 %v5227_v19, %v4845_v53  ;;  %v12487_v5 = vrot.slane %v9411_v8, 1  ;;  %v1923_v17 = vrot.slane %v1782_v21, 1  ;;  %7126 = vmatmul.msk.f32.gmra.mxu3 %vm1216_vm1, %v6358_v59  ;;  %v2829_v8 = vld [vmem:[#allocation2 + $0x1c0] sm:$0x80] }
 0x24b   : > { %v2282_v54 = vmul.f32 %v12358_v10, %v2201_v23  ;;  %v937_v19 = vadd.f32 3.0, %v873_v46  ;;  %v938_v58 = vadd.f32 3.0, %v874_v11  ;;  %v12100_v60 = vrot.slane %v9524_v33, 1 }
 0x24c   : > { %v3480_v15 = vadd.f32 %v12487_v5, %v3025_v49  ;;  %v5562_v24 = vmul.f32 %v8072_v18, %v5460_v32  ;;  %v2115_v44 = vadd.f32 %v1923_v17, %v1563_v51  ;;  %v9537_v7 = vmul.f32 %v9115_v34, %v12358_v10  ;;  %v3567_v32 = vld [vmem:[#allocation2 + $0x1d0] sm:$0xfe] }
 0x24d   : > { %v2499_v3 = vrot.slane %v2282_v54, 2  ;;  %v1001_v62 = vmax.f32 %v937_v19, 0.0  ;;  %v1002_v22 = vmax.f32 %v938_v58, 0.0  ;;  %v1926_v57 = vsel %vm1886_vm2, %v1923_v17, %v12100_v60  ;;  %v4195_v17 = vld [vmem:[#allocation2 + $0x200] sm:$0x80]  ;;  %v9558_v54 = vld [vmem:[#allocation2 + $0x210] sm:$0xff] }
 0x24e   : > { %v4095_v9 = vadd.f32 %v3863_v30, %v3480_v15  ;;  %v5664_v43 = vadd.f32 %v8117_v50, %v5562_v24  ;;  %v2117_v6 = vadd.f32 %v1926_v57, %v1565_v31  ;;  %v12097_v56 = vrot.slane %v9537_v7, 2  ;;  %v12490_v57 = vld [vmem:[#allocation20_spill] sm:$0xff] }
 0x24f   : > { %v2731_v30 = vadd.f32 %v2499_v3, %v2115_v44  ;;  %v1065_v38 = vmin.f32 %v1001_v62, 6.0  ;;  %v1066_v26 = vmin.f32 %v1002_v22, 6.0  ;;  %v2930_v34 = vmul.f32 %v7788_v29, %v2829_v8  ;;  %v9563_v8 = vld [vmem:[#allocation2 + $0x220] sm:$0xff] }
 0x250   : > { %v4391_v47 = vadd.f32 %v4295_v16, %v4095_v9  ;;  %v5760_v51 = vadd.f32 3.0, %v5664_v43  ;;  %v12488_v53 = vrot.slane %v9442_v1, 1  ;;  %v2502_v0 = vsel %vm2438_vm3, %v2499_v3, %v12097_v56  ;;  %v12489_v3 = vld [vmem:[#allocation19_spill] sm:$0xff] }
 0x251   : > { %v2932_v23 = vmul.f32 %v9334_v45, %v7788_v29  ;;  %v3149_v16 = vmul.f32 %v9334_v45, %v12359_v4  ;;  %v1129_v49 = vmul.f32 %v1065_v38, %v873_v46  ;;  %v1130_v13 = vmul.f32 %v1066_v26, %v874_v11  ;;  %v12491_v26 = vld [vmem:[#allocation21_spill] sm:$0xff] }
 0x252   : > { %v4846_v35 = vadd.f32 %v12488_v53, %v4391_v47  ;;  %v5856_v31 = vmax.f32 %v5760_v51, 0.0  ;;  %v2733_v21 = vadd.f32 %v2502_v0, %v2117_v6  ;;  %v3026_v5 = vadd.f32 %v2930_v34, %v2731_v30  ;;  %v4933_v30 = vld [vmem:[#allocation2 + $0x210] sm:$0xfe] }
 0x253   : > { %v9556_v1 = vmul.f32 %v9339_v2, %v12359_v4  ;;  %v3289_v15 = vrot.slane %v3149_v16, 1  ;;  %v1193_v19 = vmul.f32 0.16666667, %v1129_v49  ;;  %v1194_v58 = vmul.f32 0.16666667, %v1130_v13  ;;  %v12492_v13 = vld [vmem:[#allocation23_spill] sm:$0xff] }
 0x254   : > { %v5461_v59 = vadd.f32 %v5229_v55, %v4846_v35  ;;  %v5952_v24 = vmin.f32 %v5856_v31, 6.0  ;;  %v3028_v9 = vadd.f32 %v2932_v23, %v2733_v21  ;;  %v3648_v55 = vmul.f32 %v12489_v3, %v3567_v32  ;;  %v1463_v32 = vld [vmem:[#allocation2 + $0x188] sm:$0x80] }
 0x255   : > { %v12094_v46 = vrot.slane %v9556_v1, 1  ;;  %v3481_v11 = vadd.f32 %v3289_v15, %v3026_v5  ;;  %1403 = vst [vmem:[#allocation2 + $0x2e0] sm:$0xff] %v1193_v19  ;;  %v9567_v22 = vmul.f32 %v9339_v2, %v12489_v3  ;;  %v4296_v47 = vmul.f32 %v12490_v57, %v4195_v17 }
 0x256   : > { %v5563_v44 = vmul.f32 %v8163_v63, %v5461_v59  ;;  %v6048_v62 = vmul.f32 %v5952_v24, %v5664_v43  ;;  %v4298_v6 = vmul.f32 %v12490_v57, %v9558_v54  ;;  %1404 = vst.msk [vmem:[#allocation2 + $0x2e8] sm:$0xff] %vm1216_vm1, %v1194_v58  ;;  %v3864_v43 = vrot.slane %v3648_v55, 2 }
 0x257   : > { %v3292_v38 = vsel %vm1886_vm2, %v3289_v15, %v12094_v46  ;;  %v4515_v34 = vmul.f32 %v12491_v26, %v9558_v54  ;;  %v12096_v0 = vrot.slane %v9567_v22, 2  ;;  %v9582_v23 = vmul.f32 %v12491_v26, %v9563_v8  ;;  %v1466_v26 = vld [vmem:[#allocation2 + $0x1a0] sm:$0x7f] }
 0x258   : > { %v5665_v51 = vadd.f32 %v8175_v28, %v5563_v44  ;;  %v6144_v53 = vmul.f32 0.16666667, %v6048_v62  ;;  %v3483_v35 = vadd.f32 %v3292_v38, %v3028_v9  ;;  %v4096_v31 = vadd.f32 %v3864_v43, %v3481_v11  ;;  %v2202_v44 = vld [vmem:[#allocation2 + $0x198] sm:$0xfe]  ;;  %v12493_v11 = vld [vmem:[#allocation26_spill] sm:$0xff] }
 0x259   : > { %v4655_v49 = vrot.slane %v4515_v34, 1  ;;  %v5014_v21 = vmul.f32 %v12492_v13, %v4933_v30  ;;  %v3867_v5 = vsel %vm2438_vm3, %v3864_v43, %v12096_v0  ;;  %v12093_v15 = vrot.slane %v9582_v23, 1 }
 0x25a   : > { %v5761_v16 = vadd.f32 3.0, %v5665_v51  ;;  %v6359_v59 = vrot.slane %v6144_v53, 7  ;;  %v9591_v17 = vmul.f32 %v12492_v13, %v9563_v8  ;;  %v4098_v19 = vadd.f32 %v3867_v5, %v3483_v35 }
 0x25b   : > { %v4392_v58 = vadd.f32 %v4296_v47, %v4096_v31  ;;  %v5230_v9 = vrot.slane %v5014_v21, 2  ;;  %v12494_v55 = vrot.slane %v12493_v11, 7  ;;  %v4658_v30 = vsel %vm1886_vm2, %v4655_v49, %v12093_v15  ;;  %v12495_v47 = vld [vmem:[#allocation13_spill] sm:$0xff]  ;;  %v2830_v31 = vld [vmem:[#allocation2 + $0x1c8] sm:$0x80] }
 0x25c   : > { %v5857_v24 = vmax.f32 %v5761_v16, 0.0  ;;  %v12095_v38 = vrot.slane %v9591_v17, 2  ;;  %v1564_v43 = vmul.f32 %v12384_v25, %v1463_v32  ;;  %v4394_v53 = vadd.f32 %v4298_v6, %v4098_v19  ;;  %v12497_v11 = vld [vmem:[#allocation14_spill] sm:$0xff] }
 0x25d   : > { %v6360_v62 = vsel %vm6302_vm4, %v12494_v55, %v6359_v59  ;;  %v4847_v16 = vadd.f32 %v4655_v49, %v4392_v58  ;;  %v1566_v35 = vmul.f32 %v12495_v47, %v12384_v25  ;;  %v12496_v59 = vld [vmem:[#allocation17_spill] sm:$0xff]  ;;  %v2283_v32 = vmul.f32 %v7882_v36, %v2202_v44  ;;  %v12498_v44 = vld [vmem:[#allocation22_spill] sm:$0xff] }
 0x25e   : > { %6633 = vmatmul.f32.gmra.mxu2 %v6360_v62  ;;  %v5953_v34 = vmin.f32 %v5857_v24, 6.0  ;;  %v5233_v21 = vsel %vm2438_vm3, %v5230_v9, %v12095_v38  ;;  %v1783_v5 = vmul.f32 %v12495_v47, %v12496_v59  ;;  %v9610_v55 = vmul.f32 %v12497_v11, %v12496_v59 }
 0x25f   : > { %v4849_v6 = vadd.f32 %v4658_v30, %v4394_v53  ;;  %v5462_v49 = vadd.f32 %v5230_v9, %v4847_v16  ;;  %v9615_v19 = vmul.f32 %v12497_v11, %v7882_v36  ;;  %v2500_v15 = vrot.slane %v2283_v32, 2  ;;  %v3568_v11 = vld [vmem:[#allocation2 + $0x1d8] sm:$0xfe] }
 0x260   : > { %v6049_v24 = vmul.f32 %v5953_v34, %v5665_v51  ;;  %v1924_v58 = vrot.slane %v1783_v5, 1  ;;  %v12099_v62 = vrot.slane %v9610_v55, 1  ;;  %v2931_v46 = vmul.f32 %v7989_v27, %v2830_v31  ;;  %v12499_v34 = vld [vmem:[#allocation25_spill] sm:$0xff] }
 0x261   : > { %v5464_v38 = vadd.f32 %v5233_v21, %v4849_v6  ;;  %v5564_v0 = vmul.f32 %v8072_v18, %v5462_v49  ;;  %v12098_v56 = vrot.slane %v9615_v19, 2  ;;  %v2933_v30 = vmul.f32 %v12498_v44, %v7989_v27 }
 0x262   : > { %v6145_v47 = vmul.f32 0.16666667, %v6049_v24  ;;  %v1928_v51 = vsel %vm1886_vm2, %v1924_v58, %v12099_v62  ;;  %v2116_v9 = vadd.f32 %v1924_v58, %v1564_v43  ;;  %v3150_v53 = vmul.f32 %v12498_v44, %v12499_v34  ;;  %v12500_v43 = vld [vmem:[#allocation15_spill] sm:$0xff]  ;;  %v4196_v58 = vld [vmem:[#allocation2 + $0x208] sm:$0x80] }
 0x263   : > { %v5566_v31 = vmul.f32 %v8072_v18, %v5464_v38  ;;  %v5666_v21 = vadd.f32 %v8117_v50, %v5564_v0  ;;  %v2118_v5 = vadd.f32 %v1928_v51, %v1566_v35  ;;  %v2504_v32 = vsel %vm2438_vm3, %v2500_v15, %v12098_v56 }
 0x264   : > { %v6361_v16 = vrot.slane %v6145_v47, 7  ;;  %v2732_v24 = vadd.f32 %v2500_v15, %v2116_v9  ;;  %v9635_v6 = vmul.f32 %v12500_v43, %v12499_v34  ;;  %v3290_v49 = vrot.slane %v3150_v53, 1  ;;  %v9648_v53 = vld [vmem:[#allocation2 + $0x218] sm:$0xff] }
 0x265   : > { %v5668_v38 = vadd.f32 %v8117_v50, %v5566_v31  ;;  %v5762_v0 = vadd.f32 3.0, %v5666_v21  ;;  %v2734_v35 = vadd.f32 %v2504_v32, %v2118_v5  ;;  %v3649_v15 = vmul.f32 %v8060_v61, %v3568_v11  ;;  %12501 = vst [vmem:[#allocation18_spill] sm:$0xff] %v9648_v53  ;;  %v9651_v31 = vld [vmem:[#allocation2 + $0x228] sm:$0xff] }
 0x266   : > { %v6362_v47 = vsel %vm6302_vm4, %v6357_v52, %v6361_v16  ;;  %v3027_v51 = vadd.f32 %v2931_v46, %v2732_v24  ;;  %v12103_v56 = vrot.slane %v9635_v6, 1  ;;  %v9646_v9 = vmul.f32 %v12500_v43, %v8060_v61  ;;  %12502 = vst [vmem:[#allocation16_spill] sm:$0xff] %v9651_v31  ;;  %v4934_v24 = vld [vmem:[#allocation2 + $0x218] sm:$0xfe] }
 0x267   : > { %7127 = vmatmul.msk.f32.gmra.mxu3 %vm1216_vm1, %v6362_v47  ;;  %v5764_v20 = vadd.f32 3.0, %v5668_v38  ;;  %v5858_v62 = vmax.f32 %v5762_v0, 0.0  ;;  %v3029_v52 = vadd.f32 %v2933_v30, %v2734_v35  ;;  %v4297_v16 = vmul.f32 %v8098_v37, %v4196_v58  ;;  %v12503_v35 = vld [vmem:[#allocation27_spill] sm:$0xff] }
 0x268   : > { %v3294_v46 = vsel %vm1886_vm2, %v3290_v49, %v12103_v56  ;;  %v3482_v5 = vadd.f32 %v3290_v49, %v3027_v51  ;;  %v3865_v32 = vrot.slane %v3649_v15, 2  ;;  %v12105_v11 = vrot.slane %v9646_v9, 2 }
 0x269   : > { %v5860_v47 = vmax.f32 %v5764_v20, 0.0  ;;  %v5954_v60 = vmin.f32 %v5858_v62, 6.0  ;;  %v3484_v34 = vadd.f32 %v3294_v46, %v3029_v52  ;;  %v4299_v0 = vmul.f32 %v8098_v37, %v9648_v53  ;;  %v612_v52 = vpop.f32.mrf.mxu0 }
 0x26a   : > { %v3869_v30 = vsel %vm2438_vm3, %v3865_v32, %v12105_v11  ;;  %v4097_v58 = vadd.f32 %v3865_v32, %v3482_v5  ;;  %v4516_v43 = vmul.f32 %v12503_v35, %v9648_v53  ;;  %v9666_v49 = vmul.f32 %v12503_v35, %v9651_v31  ;;  %v725_v32 = vpop.f32.mrf.mxu1 }
 0x26b   : > { %v5956_v51 = vmin.f32 %v5860_v47, 6.0  ;;  %v6050_v15 = vmul.f32 %v5954_v60, %v5666_v21  ;;  %v4099_v20 = vadd.f32 %v3869_v30, %v3484_v34  ;;  %v5015_v62 = vmul.f32 %v8153_v48, %v4934_v24 }
 0x26c   : > { %v4393_v46 = vadd.f32 %v4297_v16, %v4097_v58  ;;  %v4656_v56 = vrot.slane %v4516_v43, 1  ;;  %v12111_v59 = vrot.slane %v9666_v49, 1  ;;  %v9672_v5 = vmul.f32 %v8153_v48, %v9651_v31  ;;  %v2203_v16 = vld [vmem:[#allocation2 + $0x1b0] sm:$0x1]  ;;  %v2833_v58 = vld [vmem:[#allocation2 + $0x1e0] sm:$0x7f] }
 0x26d   : > { %v6052_v11 = vmul.f32 %v5956_v51, %v5668_v38  ;;  %v6146_v53 = vmul.f32 0.16666667, %v6050_v15  ;;  %v4395_v44 = vadd.f32 %v4299_v0, %v4099_v20  ;;  %v5231_v35 = vrot.slane %v5015_v62, 2 }
 0x26e   : > { %v4660_v60 = vsel %vm1886_vm2, %v4656_v56, %v12111_v59  ;;  %v4848_v34 = vadd.f32 %v4656_v56, %v4393_v46  ;;  %v12112_v21 = vrot.slane %v9672_v5, 2  ;;  %v805_v43 = vmul.f32 %v7644_v39, %v612_v52  ;;  %v4199_v52 = vld [vmem:[#allocation2 + $0x220] sm:$0x7f] }
 0x26f   : > { %v9679_v24 = vmul.f32 0.16666667, %v6052_v11  ;;  %v6363_v47 = vrot.slane %v6146_v53, 7  ;;  %v4850_v30 = vadd.f32 %v4660_v60, %v4395_v44  ;;  %v806_v38 = vmul.f32 %v7647_v40, %v725_v32  ;;  %v3569_v44 = vld [vmem:[#allocation2 + $0x1f0] sm:$0x1] }
 0x270   : > { %v5235_v0 = vsel %vm2438_vm3, %v5231_v35, %v12112_v21  ;;  %v5463_v51 = vadd.f32 %v5231_v35, %v4848_v34  ;;  %v875_v15 = vadd.f32 %v7650_v41, %v805_v43  ;;  %v1567_v56 = vmul.f32 %v12369_v14, %v1466_v26  ;;  %v4935_v34 = vld [vmem:[#allocation2 + $0x230] sm:$0x1] }
 0x271   : > { %12504 = vst [vmem:[#allocation26_spill] sm:$0xff] %v9679_v24  ;;  %v12113_v20 = vrot.slane %v9679_v24, 7  ;;  %v5465_v62 = vadd.f32 %v5235_v0, %v4850_v30  ;;  %v876_v11 = vadd.f32 %v7653_v42, %v806_v38  ;;  %v2286_v53 = vmul.f32 %v12358_v10, %v2203_v16 }
 0x272   : > { %v5565_v46 = vmul.f32 %v8163_v63, %v5463_v51  ;;  %v939_v32 = vadd.f32 3.0, %v875_v15  ;;  %v12505_v60 = vrot.slane %v9524_v33, 1  ;;  %v2934_v35 = vmul.f32 %v7788_v29, %v2833_v58 }
 0x273   : > { %v6365_v26 = vsel %vm6302_vm4, %v6363_v47, %v12113_v20  ;;  %v5567_v43 = vmul.f32 %v8163_v63, %v5465_v62  ;;  %v940_v30 = vadd.f32 3.0, %v876_v11  ;;  %v2505_v38 = vrot.slane %v2286_v53, 2 }
 0x274   : > { %v2119_v59 = vadd.f32 %v12505_v60, %v1567_v56  ;;  %6636 = vmatmul.f32.gmra.mxu2 %v6365_v26  ;;  %v5667_v16 = vadd.f32 %v8175_v28, %v5565_v46  ;;  %v1003_v0 = vmax.f32 %v939_v32, 0.0  ;;  %v3652_v51 = vmul.f32 %v12489_v3, %v3569_v44  ;;  %v1467_v56 = vld [vmem:[#allocation2 + $0x1a8] sm:$0x7f] }
 0x275   : > { %v4300_v33 = vmul.f32 %v12490_v57, %v4199_v52  ;;  %v5669_v58 = vadd.f32 %v8175_v28, %v5567_v43  ;;  %v1004_v60 = vmax.f32 %v940_v30, 0.0  ;;  %v12506_v21 = vrot.slane %v9537_v7, 2  ;;  %v2204_v52 = vld [vmem:[#allocation2 + $0x1b8] sm:$0x1] }
 0x276   : > { %v5018_v62 = vmul.f32 %v12492_v13, %v4935_v34  ;;  %v5763_v20 = vadd.f32 3.0, %v5667_v16  ;;  %v1067_v53 = vmin.f32 %v1003_v0, 6.0  ;;  %v3870_v31 = vrot.slane %v3652_v51, 2 }
 0x277   : > { %v2506_v47 = vsel %vm2438_vm3, %v12506_v21, %v2505_v38  ;;  %v5765_v46 = vadd.f32 3.0, %v5669_v58  ;;  %v1068_v32 = vmin.f32 %v1004_v60, 6.0  ;;  %v1568_v44 = vmul.f32 %v12384_v25, %v1467_v56  ;;  %v2834_v21 = vld [vmem:[#allocation2 + $0x1e8] sm:$0x7f]  ;;  %v3570_v38 = vld [vmem:[#allocation2 + $0x1f8] sm:$0x1] }
 0x278   : > { %v2735_v26 = vadd.f32 %v2506_v47, %v2119_v59  ;;  %v5236_v24 = vrot.slane %v5018_v62, 2  ;;  %v5859_v57 = vmax.f32 %v5763_v20, 0.0  ;;  %v1131_v3 = vmul.f32 %v1067_v53, %v875_v15  ;;  %v4200_v56 = vld [vmem:[#allocation2 + $0x228] sm:$0x7f]  ;;  %v1468_v47 = vld [vmem:[#allocation2 + $0x1c0] sm:$0x80] }
 0x279   : > { %v12507_v30 = vrot.slane %v9567_v22, 2  ;;  %v5861_v34 = vmax.f32 %v5765_v46, 0.0  ;;  %v1132_v13 = vmul.f32 %v1068_v32, %v876_v11  ;;  %v12508_v59 = vrot.slane %v9591_v17, 2  ;;  %v4936_v62 = vld [vmem:[#allocation2 + $0x238] sm:$0x1] }
 0x27a   : > { %v3030_v43 = vadd.f32 %v2934_v35, %v2735_v26  ;;  %v12509_v51 = vrot.slane %v9610_v55, 1  ;;  %v5955_v20 = vmin.f32 %v5859_v57, 6.0  ;;  %v1195_v15 = vmul.f32 0.16666667, %v1131_v3 }
 0x27b   : > { %v3871_v7 = vsel %vm2438_vm3, %v12507_v30, %v3870_v31  ;;  %v5237_v0 = vsel %vm2438_vm3, %v12508_v59, %v5236_v24  ;;  %v12510_v35 = vrot.slane %v9556_v1, 1  ;;  %v2287_v31 = vmul.f32 %v7882_v36, %v2204_v52 }
 0x27c   : > { %v2120_v60 = vadd.f32 %v12509_v51, %v1568_v44  ;;  %v5957_v53 = vmin.f32 %v5861_v34, 6.0  ;;  %v1196_v26 = vmul.f32 0.16666667, %v1132_v13  ;;  %v2935_v11 = vmul.f32 %v7989_v27, %v2834_v21  ;;  %1405 = vst [vmem:[#allocation2 + $0x310] sm:$0xff] %v1195_v15  ;;  %v728_v21 = vpop.f32.mrf.mxu1  ;;  %v2205_v15 = vld [vmem:[#allocation2 + $0x1d0] sm:$0xfe] }
 0x27d   : > { %v3485_v22 = vadd.f32 %v12510_v35, %v3030_v43  ;;  %v3653_v17 = vmul.f32 %v8060_v61, %v3570_v38  ;;  %v6051_v24 = vmul.f32 %v5955_v20, %v5667_v16  ;;  %v2507_v46 = vrot.slane %v2287_v31, 2  ;;  %v615_v16 = vpop.f32.mrf.mxu0 }
 0x27e   : > { %v4301_v32 = vmul.f32 %v8098_v37, %v4200_v56  ;;  %v6053_v57 = vmul.f32 %v5957_v53, %v5669_v58  ;;  %1406 = vst.msk [vmem:[#allocation2 + $0x318] sm:$0xff] %vm1216_vm1, %v1196_v26  ;;  %v5019_v3 = vmul.f32 %v8153_v48, %v4936_v62  ;;  %v1569_v44 = vmul.f32 %v12369_v14, %v1468_v47 }
 0x27f   : > { %v4100_v55 = vadd.f32 %v3871_v7, %v3485_v22  ;;  %v3872_v1 = vrot.slane %v3653_v17, 2  ;;  %v6147_v52 = vmul.f32 0.16666667, %v6051_v24  ;;  %v12511_v43 = vrot.slane %v9615_v19, 2 }
 0x280   : > { %v1571_v7 = vmul.f32 %v9334_v45, %v12369_v14  ;;  %v9729_v38 = vmul.f32 0.16666667, %v6053_v57  ;;  %v12512_v34 = vrot.slane %v9646_v9, 2  ;;  %v5238_v51 = vrot.slane %v5019_v3, 2 }
 0x281   : > { %v4396_v13 = vadd.f32 %v4300_v33, %v4100_v55  ;;  %v2508_v30 = vsel %vm2438_vm3, %v12511_v43, %v2507_v46  ;;  %v6366_v56 = vrot.slane %v6147_v52, 7  ;;  %v12513_v33 = vrot.slane %v9582_v23, 1 }
 0x282   : > { %v2736_v58 = vadd.f32 %v2508_v30, %v2120_v60  ;;  %v3873_v59 = vsel %vm2438_vm3, %v12512_v34, %v3872_v1  ;;  %v807_v19 = vmul.f32 %v7644_v39, %v615_v16  ;;  %v808_v20 = vmul.f32 %v7647_v40, %v728_v21 }
 0x283   : > { %v4851_v47 = vadd.f32 %v12513_v33, %v4396_v13  ;;  %v6367_v35 = vrot.slane %v9729_v38, 7  ;;  %v12514_v31 = vrot.slane %v9672_v5, 2  ;;  %v1786_v9 = vmul.f32 %v9334_v45, %v12381_v12 }
 0x284   : > { %v3031_v22 = vadd.f32 %v2935_v11, %v2736_v58  ;;  %v877_v53 = vadd.f32 %v7650_v41, %v807_v19  ;;  %v878_v23 = vadd.f32 %v7653_v42, %v808_v20  ;;  %v9748_v26 = vmul.f32 %v9339_v2, %v12381_v12 }
 0x285   : > { %v5239_v60 = vsel %vm2438_vm3, %v12514_v31, %v5238_v51  ;;  %v5466_v62 = vadd.f32 %v5237_v0, %v4851_v47  ;;  %v6368_v11 = vsel %vm6302_vm4, %v6366_v56, %v6367_v35  ;;  %v12515_v5 = vrot.slane %v9635_v6, 1  ;;  %v2835_v6 = vld [vmem:[#allocation2 + $0x200] sm:$0x80] }
 0x286   : > { %v1929_v24 = vrot.slane %v1786_v9, 1  ;;  %v2288_v55 = vmul.f32 %v12358_v10, %v2205_v15  ;;  %7128 = vmatmul.msk.f32.gmra.mxu3 %vm1216_vm1, %v6368_v11  ;;  %v941_v0 = vadd.f32 3.0, %v877_v53  ;;  %v942_v46 = vadd.f32 3.0, %v878_v23 }
 0x287   : > { %v3486_v17 = vadd.f32 %v12515_v5, %v3031_v22  ;;  %v5568_v45 = vmul.f32 %v8072_v18, %v5466_v62  ;;  %v12127_v57 = vrot.slane %v9748_v26, 1  ;;  %v9761_v52 = vmul.f32 %v9339_v2, %v12358_v10  ;;  %v3571_v62 = vld [vmem:[#allocation2 + $0x210] sm:$0xfe] }
 0x288   : > { %v2121_v3 = vadd.f32 %v1929_v24, %v1569_v44  ;;  %v2509_v13 = vrot.slane %v2288_v55, 2  ;;  %v1005_v30 = vmax.f32 %v941_v0, 0.0  ;;  %v1006_v16 = vmax.f32 %v942_v46, 0.0  ;;  %v9782_v55 = vld [vmem:[#allocation2 + $0x250] sm:$0xff] }
 0x289   : > { %v4101_v1 = vadd.f32 %v3873_v59, %v3486_v17  ;;  %v5670_v43 = vadd.f32 %v8117_v50, %v5568_v45  ;;  %v1932_v21 = vsel %vm1886_vm2, %v1929_v24, %v12127_v57  ;;  %v12124_v51 = vrot.slane %v9761_v52, 2  ;;  %v4201_v24 = vld [vmem:[#allocation2 + $0x240] sm:$0x80] }
 0x28a   : > { %v2123_v34 = vadd.f32 %v1932_v21, %v1571_v7  ;;  %v2737_v59 = vadd.f32 %v2509_v13, %v2121_v3  ;;  %v1069_v56 = vmin.f32 %v1005_v30, 6.0  ;;  %v1070_v33 = vmin.f32 %v1006_v16, 6.0  ;;  %v12518_v21 = vld [vmem:[#allocation20_spill] sm:$0xff] }
 0x28b   : > { %v4397_v58 = vadd.f32 %v4301_v32, %v4101_v1  ;;  %v5766_v44 = vadd.f32 3.0, %v5670_v43  ;;  %v2936_v2 = vmul.f32 %v7788_v29, %v2835_v6  ;;  %v12516_v47 = vrot.slane %v9666_v49, 1  ;;  %v9787_v6 = vld [vmem:[#allocation2 + $0x260] sm:$0xff] }
 0x28c   : > { %v2512_v20 = vsel %vm2438_vm3, %v2509_v13, %v12124_v51  ;;  %v2938_v15 = vmul.f32 %v9558_v54, %v7788_v29  ;;  %v3153_v32 = vmul.f32 %v9558_v54, %v12359_v4  ;;  %v1133_v22 = vmul.f32 %v1069_v56, %v877_v53  ;;  %v12517_v13 = vld [vmem:[#allocation19_spill] sm:$0xff] }
 0x28d   : > { %v4852_v19 = vadd.f32 %v12516_v47, %v4397_v58  ;;  %v5862_v7 = vmax.f32 %v5766_v44, 0.0  ;;  %v1134_v31 = vmul.f32 %v1070_v33, %v878_v23  ;;  %v2739_v9 = vadd.f32 %v2512_v20, %v2123_v34  ;;  %v12519_v33 = vld [vmem:[#allocation21_spill] sm:$0xff] }
 0x28e   : > { %v3032_v5 = vadd.f32 %v2936_v2, %v2737_v59  ;;  %v9780_v49 = vmul.f32 %v9563_v8, %v12359_v4  ;;  %v3295_v17 = vrot.slane %v3153_v32, 1  ;;  %v1197_v0 = vmul.f32 0.16666667, %v1133_v22  ;;  %v4937_v59 = vld [vmem:[#allocation2 + $0x250] sm:$0xfe] }
 0x28f   : > { %v5467_v11 = vadd.f32 %v5239_v60, %v4852_v19  ;;  %v5958_v45 = vmin.f32 %v5862_v7, 6.0  ;;  %v1198_v46 = vmul.f32 0.16666667, %v1134_v31  ;;  %v3034_v1 = vadd.f32 %v2938_v15, %v2739_v9  ;;  %v12520_v31 = vld [vmem:[#allocation23_spill] sm:$0xff] }
 0x290   : > { %v12121_v53 = vrot.slane %v9780_v49, 1  ;;  %v3487_v23 = vadd.f32 %v3295_v17, %v3032_v5  ;;  %v3654_v60 = vmul.f32 %v12517_v13, %v3571_v62  ;;  %1407 = vst [vmem:[#allocation2 + $0x320] sm:$0xff] %v1197_v0  ;;  %v9791_v16 = vmul.f32 %v9563_v8, %v12517_v13  ;;  %v1469_v62 = vld [vmem:[#allocation2 + $0x1c8] sm:$0x80] }
 0x291   : > { %v5569_v3 = vmul.f32 %v8163_v63, %v5467_v11  ;;  %v6054_v30 = vmul.f32 %v5958_v45, %v5670_v43  ;;  %v4302_v58 = vmul.f32 %v12518_v21, %v4201_v24  ;;  %v4304_v34 = vmul.f32 %v12518_v21, %v9782_v55  ;;  %1408 = vst.msk [vmem:[#allocation2 + $0x328] sm:$0xff] %vm1216_vm1, %v1198_v46 }
 0x292   : > { %v3298_v56 = vsel %vm1886_vm2, %v3295_v17, %v12121_v53  ;;  %v3874_v43 = vrot.slane %v3654_v60, 2  ;;  %v4519_v2 = vmul.f32 %v12519_v33, %v9782_v55  ;;  %v12123_v20 = vrot.slane %v9791_v16, 2 }
 0x293   : > { %v5671_v44 = vadd.f32 %v8175_v28, %v5569_v3  ;;  %v6150_v47 = vmul.f32 0.16666667, %v6054_v30  ;;  %v3489_v19 = vadd.f32 %v3298_v56, %v3034_v1  ;;  %v9806_v15 = vmul.f32 %v12519_v33, %v9787_v6  ;;  %v2206_v3 = vld [vmem:[#allocation2 + $0x1d8] sm:$0xfe]  ;;  %v1472_v33 = vld [vmem:[#allocation2 + $0x1e0] sm:$0x7f] }
 0x294   : > { %v4102_v7 = vadd.f32 %v3874_v43, %v3487_v23  ;;  %v4661_v22 = vrot.slane %v4519_v2, 1  ;;  %v5020_v9 = vmul.f32 %v12520_v31, %v4937_v59  ;;  %v3877_v5 = vsel %vm2438_vm3, %v3874_v43, %v12123_v20  ;;  %v12521_v23 = vld [vmem:[#allocation26_spill] sm:$0xff] }
 0x295   : > { %v5767_v32 = vadd.f32 3.0, %v5671_v44  ;;  %v6369_v11 = vrot.slane %v6150_v47, 7  ;;  %v12120_v17 = vrot.slane %v9806_v15, 1  ;;  %v9815_v24 = vmul.f32 %v12520_v31, %v9787_v6 }
 0x296   : > { %v4104_v0 = vadd.f32 %v3877_v5, %v3489_v19  ;;  %v4398_v46 = vadd.f32 %v4302_v58, %v4102_v7  ;;  %v5240_v1 = vrot.slane %v5020_v9, 2  ;;  %v12522_v60 = vrot.slane %v12521_v23, 7  ;;  %v12523_v58 = vld [vmem:[#allocation22_spill] sm:$0xff]  ;;  %v12525_v23 = vld [vmem:[#allocation15_spill] sm:$0xff] }
 0x297   : > { %v5863_v45 = vmax.f32 %v5767_v32, 0.0  ;;  %v4664_v59 = vsel %vm1886_vm2, %v4661_v22, %v12120_v17  ;;  %v12122_v56 = vrot.slane %v9815_v24, 2  ;;  %v1570_v43 = vmul.f32 %v12384_v25, %v1469_v62  ;;  %v2836_v7 = vld [vmem:[#allocation2 + $0x208] sm:$0x80] }
 0x298   : > { %v6370_v30 = vsel %vm6302_vm4, %v12522_v60, %v6369_v11  ;;  %v4400_v47 = vadd.f32 %v4304_v34, %v4104_v0  ;;  %v4853_v32 = vadd.f32 %v4661_v22, %v4398_v46  ;;  %v1572_v19 = vmul.f32 %v12523_v58, %v12384_v25  ;;  %v12524_v11 = vld [vmem:[#allocation17_spill] sm:$0xff] }
 0x299   : > { %6639 = vmatmul.f32.gmra.mxu2 %v6370_v30  ;;  %v5959_v2 = vmin.f32 %v5863_v45, 6.0  ;;  %v5243_v9 = vsel %vm2438_vm3, %v5240_v1, %v12122_v56  ;;  %v1787_v5 = vmul.f32 %v12523_v58, %v12524_v11  ;;  %v9834_v60 = vmul.f32 %v12525_v23, %v12524_v11 }
 0x29a   : > { %v2289_v62 = vmul.f32 %v7882_v36, %v2206_v3  ;;  %v4855_v34 = vadd.f32 %v4664_v59, %v4400_v47  ;;  %v5468_v22 = vadd.f32 %v5240_v1, %v4853_v32  ;;  %v9839_v0 = vmul.f32 %v12525_v23, %v7882_v36  ;;  %v12526_v3 = vld [vmem:[#allocation18_spill] sm:$0xff]  ;;  %v3572_v23 = vld [vmem:[#allocation2 + $0x218] sm:$0xfe] }
 0x29b   : > { %v6055_v45 = vmul.f32 %v5959_v2, %v5671_v44  ;;  %v1930_v46 = vrot.slane %v1787_v5, 1  ;;  %v12126_v30 = vrot.slane %v9834_v60, 1  ;;  %v2937_v53 = vmul.f32 %v7989_v27, %v2836_v7  ;;  %v12527_v2 = vld [vmem:[#allocation25_spill] sm:$0xff] }
 0x29c   : > { %v2510_v17 = vrot.slane %v2289_v62, 2  ;;  %v5470_v56 = vadd.f32 %v5243_v9, %v4855_v34  ;;  %v5570_v20 = vmul.f32 %v8072_v18, %v5468_v22  ;;  %v12125_v51 = vrot.slane %v9839_v0, 2 }
 0x29d   : > { %v6151_v58 = vmul.f32 0.16666667, %v6055_v45  ;;  %v1934_v44 = vsel %vm1886_vm2, %v1930_v46, %v12126_v30  ;;  %v2122_v1 = vadd.f32 %v1930_v46, %v1570_v43  ;;  %v2939_v59 = vmul.f32 %v12526_v3, %v7989_v27  ;;  %v12528_v43 = vld [vmem:[#allocation16_spill] sm:$0xff]  ;;  %v4202_v46 = vld [vmem:[#allocation2 + $0x248] sm:$0x80] }
 0x29e   : > { %v3154_v47 = vmul.f32 %v12526_v3, %v12527_v2  ;;  %v5572_v7 = vmul.f32 %v8072_v18, %v5470_v56  ;;  %v5672_v9 = vadd.f32 %v8117_v50, %v5570_v20  ;;  %v2124_v5 = vadd.f32 %v1934_v44, %v1572_v19 }
 0x29f   : > { %v6371_v32 = vrot.slane %v6151_v58, 7  ;;  %v2514_v62 = vsel %vm2438_vm3, %v2510_v17, %v12125_v51  ;;  %v2738_v45 = vadd.f32 %v2510_v17, %v2122_v1  ;;  %v9859_v34 = vmul.f32 %v12528_v43, %v12527_v2 }
 0x2a0   : > { %v3296_v22 = vrot.slane %v3154_v47, 1  ;;  %v5674_v56 = vadd.f32 %v8117_v50, %v5572_v7  ;;  %v5768_v20 = vadd.f32 3.0, %v5672_v9  ;;  %v2740_v19 = vadd.f32 %v2514_v62, %v2124_v5  ;;  %v9872_v47 = vld [vmem:[#allocation2 + $0x258] sm:$0xff]  ;;  %v9875_v7 = vld [vmem:[#allocation2 + $0x268] sm:$0xff] }
 0x2a1   : > { %v6372_v58 = vsel %vm6302_vm4, %v6367_v35, %v6371_v32  ;;  %v3033_v44 = vadd.f32 %v2937_v53, %v2738_v45  ;;  %v12130_v51 = vrot.slane %v9859_v34, 1  ;;  %v3655_v17 = vmul.f32 %v8060_v61, %v3572_v23  ;;  %12529 = vst [vmem:[#allocation13_spill] sm:$0xff] %v9872_v47  ;;  %v4938_v45 = vld [vmem:[#allocation2 + $0x258] sm:$0xfe] }
 0x2a2   : > { %7129 = vmatmul.msk.f32.gmra.mxu3 %vm1216_vm1, %v6372_v58  ;;  %v9870_v1 = vmul.f32 %v12528_v43, %v8060_v61  ;;  %v5770_v38 = vadd.f32 3.0, %v5674_v56  ;;  %v5864_v30 = vmax.f32 %v5768_v20, 0.0  ;;  %v3035_v35 = vadd.f32 %v2939_v59, %v2740_v19  ;;  %12530 = vst [vmem:[#allocation14_spill] sm:$0xff] %v9875_v7  ;;  %v12531_v19 = vld [vmem:[#allocation27_spill] sm:$0xff] }
 0x2a3   : > { %v4303_v32 = vmul.f32 %v8098_v37, %v4202_v46  ;;  %v3300_v53 = vsel %vm1886_vm2, %v3296_v22, %v12130_v51  ;;  %v3488_v5 = vadd.f32 %v3296_v22, %v3033_v44  ;;  %v3875_v62 = vrot.slane %v3655_v17, 2 }
 0x2a4   : > { %v12132_v23 = vrot.slane %v9870_v1, 2  ;;  %v5866_v58 = vmax.f32 %v5770_v38, 0.0  ;;  %v5960_v57 = vmin.f32 %v5864_v30, 6.0  ;;  %v3490_v2 = vadd.f32 %v3300_v53, %v3035_v35  ;;  %v618_v35 = vpop.f32.mrf.mxu0 }
 0x2a5   : > { %v4305_v20 = vmul.f32 %v8098_v37, %v9872_v47  ;;  %v4103_v46 = vadd.f32 %v3875_v62, %v3488_v5  ;;  %v4520_v43 = vmul.f32 %v12531_v19, %v9872_v47  ;;  %v9890_v22 = vmul.f32 %v12531_v19, %v9875_v7 }
 0x2a6   : > { %v3879_v59 = vsel %vm2438_vm3, %v3875_v62, %v12132_v23  ;;  %v5962_v44 = vmin.f32 %v5866_v58, 6.0  ;;  %v6056_v17 = vmul.f32 %v5960_v57, %v5672_v9  ;;  %v5021_v30 = vmul.f32 %v8153_v48, %v4938_v45  ;;  %v731_v62 = vpop.f32.mrf.mxu1 }
 0x2a7   : > { %v4105_v38 = vadd.f32 %v3879_v59, %v3490_v2  ;;  %v4399_v53 = vadd.f32 %v4303_v32, %v4103_v46  ;;  %v4662_v51 = vrot.slane %v4520_v43, 1  ;;  %v12138_v11 = vrot.slane %v9890_v22, 1  ;;  %v2207_v32 = vld [vmem:[#allocation2 + $0x1f0] sm:$0x1]  ;;  %v2839_v46 = vld [vmem:[#allocation2 + $0x220] sm:$0x7f] }
 0x2a8   : > { %v9896_v5 = vmul.f32 %v8153_v48, %v9875_v7  ;;  %v6058_v23 = vmul.f32 %v5962_v44, %v5674_v56  ;;  %v6152_v47 = vmul.f32 0.16666667, %v6056_v17  ;;  %v5241_v19 = vrot.slane %v5021_v30, 2 }
 0x2a9   : > { %v4401_v3 = vadd.f32 %v4305_v20, %v4105_v38  ;;  %v4666_v57 = vsel %vm1886_vm2, %v4662_v51, %v12138_v11  ;;  %v4854_v2 = vadd.f32 %v4662_v51, %v4399_v53  ;;  %v809_v43 = vmul.f32 %v7644_v39, %v618_v35  ;;  %v4205_v35 = vld [vmem:[#allocation2 + $0x260] sm:$0x7f] }
 0x2aa   : > { %v12139_v9 = vrot.slane %v9896_v5, 2  ;;  %v9903_v45 = vmul.f32 0.16666667, %v6058_v23  ;;  %v6373_v58 = vrot.slane %v6152_v47, 7  ;;  %v810_v56 = vmul.f32 %v7647_v40, %v731_v62 }
 0x2ab   : > { %v4856_v59 = vadd.f32 %v4666_v57, %v4401_v3  ;;  %v5469_v44 = vadd.f32 %v5241_v19, %v4854_v2  ;;  %v879_v17 = vadd.f32 %v7650_v41, %v809_v43  ;;  %v1573_v51 = vmul.f32 %v12369_v14, %v1472_v33  ;;  %v3573_v3 = vld [vmem:[#allocation2 + $0x230] sm:$0x1] }
 0x2ac   : > { %12532 = vst [vmem:[#allocation26_spill] sm:$0xff] %v9903_v45  ;;  %v5245_v20 = vsel %vm2438_vm3, %v5241_v19, %v12139_v9  ;;  %v12140_v38 = vrot.slane %v9903_v45, 7  ;;  %v880_v23 = vadd.f32 %v7653_v42, %v810_v56  ;;  %v2292_v47 = vmul.f32 %v12358_v10, %v2207_v32  ;;  %v4939_v2 = vld [vmem:[#allocation2 + $0x270] sm:$0x1] }
 0x2ad   : > { %v5471_v30 = vadd.f32 %v5245_v20, %v4856_v59  ;;  %v5571_v53 = vmul.f32 %v8163_v63, %v5469_v44  ;;  %v943_v62 = vadd.f32 3.0, %v879_v17  ;;  %v12533_v57 = vrot.slane %v9748_v26, 1 }
 0x2ae   : > { %v2940_v19 = vmul.f32 %v7788_v29, %v2839_v46  ;;  %v6375_v33 = vsel %vm6302_vm4, %v6373_v58, %v12140_v38  ;;  %v944_v59 = vadd.f32 3.0, %v880_v23  ;;  %v2515_v56 = vrot.slane %v2292_v47, 2 }
 0x2af   : > { %v2125_v11 = vadd.f32 %v12533_v57, %v1573_v51  ;;  %v5573_v43 = vmul.f32 %v8163_v63, %v5471_v30  ;;  %6642 = vmatmul.f32.gmra.mxu2 %v6375_v33  ;;  %v5673_v32 = vadd.f32 %v8175_v28, %v5571_v53  ;;  %v1007_v20 = vmax.f32 %v943_v62, 0.0  ;;  %v1473_v51 = vld [vmem:[#allocation2 + $0x1e8] sm:$0x7f] }
 0x2b0   : > { %v3658_v44 = vmul.f32 %v12517_v13, %v3573_v3  ;;  %v4306_v26 = vmul.f32 %v12518_v21, %v4205_v35  ;;  %v1008_v57 = vmax.f32 %v944_v59, 0.0  ;;  %v12534_v9 = vrot.slane %v9761_v52, 2  ;;  %v2208_v35 = vld [vmem:[#allocation2 + $0x1f8] sm:$0x1] }
 0x2b1   : > { %v5675_v46 = vadd.f32 %v8175_v28, %v5573_v43  ;;  %v5024_v30 = vmul.f32 %v12520_v31, %v4939_v2  ;;  %v5769_v38 = vadd.f32 3.0, %v5673_v32  ;;  %v1071_v47 = vmin.f32 %v1007_v20, 6.0 }
 0x2b2   : > { %v2516_v58 = vsel %vm2438_vm3, %v12534_v9, %v2515_v56  ;;  %v3880_v7 = vrot.slane %v3658_v44, 2  ;;  %v1072_v62 = vmin.f32 %v1008_v57, 6.0  ;;  %v1574_v3 = vmul.f32 %v12384_v25, %v1473_v51  ;;  %v2840_v9 = vld [vmem:[#allocation2 + $0x228] sm:$0x7f]  ;;  %v3574_v56 = vld [vmem:[#allocation2 + $0x238] sm:$0x1] }
 0x2b3   : > { %v2741_v33 = vadd.f32 %v2516_v58, %v2125_v11  ;;  %v5771_v53 = vadd.f32 3.0, %v5675_v46  ;;  %v5246_v45 = vrot.slane %v5024_v30, 2  ;;  %v5865_v21 = vmax.f32 %v5769_v38, 0.0  ;;  %v4206_v51 = vld [vmem:[#allocation2 + $0x268] sm:$0x7f] }
 0x2b4   : > { %v1135_v13 = vmul.f32 %v1071_v47, %v879_v17  ;;  %v12535_v59 = vrot.slane %v9791_v16, 2  ;;  %v1136_v31 = vmul.f32 %v1072_v62, %v880_v23  ;;  %v12536_v11 = vrot.slane %v9815_v24, 2  ;;  %v1474_v58 = vld [vmem:[#allocation2 + $0x200] sm:$0x80]  ;;  %v4940_v30 = vld [vmem:[#allocation2 + $0x278] sm:$0x1] }
 0x2b5   : > { %v3036_v43 = vadd.f32 %v2940_v19, %v2741_v33  ;;  %v5867_v2 = vmax.f32 %v5771_v53, 0.0  ;;  %v12537_v44 = vrot.slane %v9834_v60, 1  ;;  %v5961_v38 = vmin.f32 %v5865_v21, 6.0 }
 0x2b6   : > { %v3881_v52 = vsel %vm2438_vm3, %v12535_v59, %v3880_v7  ;;  %v5247_v20 = vsel %vm2438_vm3, %v12536_v11, %v5246_v45  ;;  %v1199_v17 = vmul.f32 0.16666667, %v1135_v13  ;;  %v12538_v19 = vrot.slane %v9780_v49, 1 }
 0x2b7   : > { %v2126_v57 = vadd.f32 %v12537_v44, %v1574_v3  ;;  %v2293_v7 = vmul.f32 %v7882_v36, %v2208_v35  ;;  %v5963_v47 = vmin.f32 %v5867_v2, 6.0  ;;  %v1200_v33 = vmul.f32 0.16666667, %v1136_v31 }
 0x2b8   : > { %v3491_v16 = vadd.f32 %v12538_v19, %v3036_v43  ;;  %v2941_v23 = vmul.f32 %v7989_v27, %v2840_v9  ;;  %v3659_v24 = vmul.f32 %v8060_v61, %v3574_v56  ;;  %v6057_v45 = vmul.f32 %v5961_v38, %v5673_v32  ;;  %1409 = vst [vmem:[#allocation2 + $0x350] sm:$0xff] %v1199_v17  ;;  %v621_v32 = vpop.f32.mrf.mxu0  ;;  %v734_v9 = vpop.f32.mrf.mxu1  ;;  %v2209_v17 = vld [vmem:[#allocation2 + $0x210] sm:$0xfe] }
 0x2b9   : > { %v2517_v53 = vrot.slane %v2293_v7, 2  ;;  %v4307_v62 = vmul.f32 %v8098_v37, %v4206_v51  ;;  %v6059_v21 = vmul.f32 %v5963_v47, %v5675_v46  ;;  %1410 = vst.msk [vmem:[#allocation2 + $0x358] sm:$0xff] %vm1216_vm1, %v1200_v33  ;;  %v5025_v13 = vmul.f32 %v8153_v48, %v4940_v30 }
 0x2ba   : > { %v4106_v60 = vadd.f32 %v3881_v52, %v3491_v16  ;;  %v3882_v49 = vrot.slane %v3659_v24, 2  ;;  %v1575_v3 = vmul.f32 %v12369_v14, %v1474_v58  ;;  %v6153_v35 = vmul.f32 0.16666667, %v6057_v45 }
 0x2bb   : > { %v12539_v43 = vrot.slane %v9839_v0, 2  ;;  %v1577_v52 = vmul.f32 %v9558_v54, %v12369_v14  ;;  %v9953_v56 = vmul.f32 0.16666667, %v6059_v21  ;;  %v12540_v2 = vrot.slane %v9870_v1, 2 }
 0x2bc   : > { %v4402_v31 = vadd.f32 %v4306_v26, %v4106_v60  ;;  %v5248_v44 = vrot.slane %v5025_v13, 2  ;;  %v6376_v51 = vrot.slane %v6153_v35, 7  ;;  %v12541_v26 = vrot.slane %v9806_v15, 1 }
 0x2bd   : > { %v2518_v59 = vsel %vm2438_vm3, %v12539_v43, %v2517_v53  ;;  %v3883_v11 = vsel %vm2438_vm3, %v12540_v2, %v3882_v49  ;;  %v811_v0 = vmul.f32 %v7644_v39, %v621_v32  ;;  %v812_v38 = vmul.f32 %v7647_v40, %v734_v9 }
 0x2be   : > { %v2742_v46 = vadd.f32 %v2518_v59, %v2126_v57  ;;  %v4857_v58 = vadd.f32 %v12541_v26, %v4402_v31  ;;  %v6377_v19 = vrot.slane %v9953_v56, 7  ;;  %v12542_v7 = vrot.slane %v9896_v5, 2 }
 0x2bf   : > { %v1790_v1 = vmul.f32 %v9558_v54, %v12381_v12  ;;  %v881_v47 = vadd.f32 %v7650_v41, %v811_v0  ;;  %v882_v15 = vadd.f32 %v7653_v42, %v812_v38  ;;  %v9972_v33 = vmul.f32 %v9563_v8, %v12381_v12 }
 0x2c0   : > { %v3037_v16 = vadd.f32 %v2941_v23, %v2742_v46  ;;  %v5249_v57 = vsel %vm2438_vm3, %v12542_v7, %v5248_v44  ;;  %v5472_v30 = vadd.f32 %v5247_v20, %v4857_v58  ;;  %v6378_v23 = vsel %vm6302_vm4, %v6376_v51, %v6377_v19 }
 0x2c1   : > { %v12543_v5 = vrot.slane %v9859_v34, 1  ;;  %v1935_v45 = vrot.slane %v1790_v1, 1  ;;  %v2294_v60 = vmul.f32 %v12358_v10, %v2209_v17  ;;  %7130 = vmatmul.msk.f32.gmra.mxu3 %vm1216_vm1, %v6378_v23  ;;  %v945_v20 = vadd.f32 3.0, %v881_v47  ;;  %v2841_v34 = vld [vmem:[#allocation2 + $0x240] sm:$0x80] }
 0x2c2   : > { %v5574_v54 = vmul.f32 %v8072_v18, %v5472_v30  ;;  %v946_v53 = vadd.f32 3.0, %v882_v15  ;;  %v12156_v21 = vrot.slane %v9972_v33, 1  ;;  %v9985_v35 = vmul.f32 %v9563_v8, %v12358_v10  ;;  %v3575_v30 = vld [vmem:[#allocation2 + $0x250] sm:$0xfe] }
 0x2c3   : > { %v3492_v24 = vadd.f32 %v12543_v5, %v3037_v16  ;;  %v2127_v13 = vadd.f32 %v1935_v45, %v1575_v3  ;;  %v2519_v31 = vrot.slane %v2294_v60, 2  ;;  %v1009_v59 = vmax.f32 %v945_v20, 0.0  ;;  %v10006_v60 = vld [vmem:[#allocation2 + $0x290] sm:$0xff] }
 0x2c4   : > { %v5676_v43 = vadd.f32 %v8117_v50, %v5574_v54  ;;  %v1010_v32 = vmax.f32 %v946_v53, 0.0  ;;  %v1938_v9 = vsel %vm1886_vm2, %v1935_v45, %v12156_v21  ;;  %v12154_v44 = vrot.slane %v9985_v35, 2  ;;  %v4207_v45 = vld [vmem:[#allocation2 + $0x280] sm:$0x80] }
 0x2c5   : > { %v4107_v49 = vadd.f32 %v3883_v11, %v3492_v24  ;;  %v2129_v2 = vadd.f32 %v1938_v9, %v1577_v52  ;;  %v2743_v11 = vadd.f32 %v2519_v31, %v2127_v13  ;;  %v1073_v51 = vmin.f32 %v1009_v59, 6.0  ;;  %v12545_v13 = vld [vmem:[#allocation19_spill] sm:$0xff] }
 0x2c6   : > { %v5772_v3 = vadd.f32 3.0, %v5676_v43  ;;  %v1074_v26 = vmin.f32 %v1010_v32, 6.0  ;;  %v2942_v8 = vmul.f32 %v7788_v29, %v2841_v34  ;;  %v12544_v58 = vrot.slane %v9890_v22, 1  ;;  %v12546_v32 = vld [vmem:[#allocation20_spill] sm:$0xff] }
 0x2c7   : > { %v4403_v46 = vadd.f32 %v4307_v62, %v4107_v49  ;;  %v2522_v38 = vsel %vm2438_vm3, %v2519_v31, %v12154_v44  ;;  %v2944_v17 = vmul.f32 %v9782_v55, %v7788_v29  ;;  %v3157_v62 = vmul.f32 %v9782_v55, %v12359_v4  ;;  %v10011_v31 = vld [vmem:[#allocation2 + $0x2a0] sm:$0xff] }
 0x2c8   : > { %v5868_v52 = vmax.f32 %v5772_v3, 0.0  ;;  %v1137_v16 = vmul.f32 %v1073_v51, %v881_v47  ;;  %v1138_v7 = vmul.f32 %v1074_v26, %v882_v15  ;;  %v2745_v1 = vadd.f32 %v2522_v38, %v2129_v2  ;;  %v4941_v2 = vld [vmem:[#allocation2 + $0x290] sm:$0xfe]  ;;  %v12547_v51 = vld [vmem:[#allocation21_spill] sm:$0xff] }
 0x2c9   : > { %v4858_v0 = vadd.f32 %v12544_v58, %v4403_v46  ;;  %v3038_v5 = vadd.f32 %v2942_v8, %v2743_v11  ;;  %v10004_v22 = vmul.f32 %v9787_v6, %v12359_v4  ;;  %v3301_v24 = vrot.slane %v3157_v62, 1 }
 0x2ca   : > { %v5964_v54 = vmin.f32 %v5868_v52, 6.0  ;;  %v1201_v20 = vmul.f32 0.16666667, %v1137_v16  ;;  %v1202_v53 = vmul.f32 0.16666667, %v1138_v7  ;;  %v3040_v49 = vadd.f32 %v2944_v17, %v2745_v1  ;;  %v12548_v52 = vld [vmem:[#allocation23_spill] sm:$0xff] }
 0x2cb   : > { %v5473_v23 = vadd.f32 %v5249_v57, %v4858_v0  ;;  %v12149_v47 = vrot.slane %v10004_v22, 1  ;;  %v3493_v15 = vadd.f32 %v3301_v24, %v3038_v5  ;;  %v3660_v57 = vmul.f32 %v12545_v13, %v3575_v30  ;;  %v1475_v7 = vld [vmem:[#allocation2 + $0x208] sm:$0x80] }
 0x2cc   : > { %v6060_v34 = vmul.f32 %v5964_v54, %v5676_v43  ;;  %1411 = vst [vmem:[#allocation2 + $0x360] sm:$0xff] %v1201_v20  ;;  %v10015_v59 = vmul.f32 %v9787_v6, %v12545_v13  ;;  %v4308_v9 = vmul.f32 %v12546_v32, %v4207_v45  ;;  %v4310_v46 = vmul.f32 %v12546_v32, %v10006_v60 }
 0x2cd   : > { %v5575_v55 = vmul.f32 %v8163_v63, %v5473_v23  ;;  %1412 = vst.msk [vmem:[#allocation2 + $0x368] sm:$0xff] %vm1216_vm1, %v1202_v53  ;;  %v3304_v3 = vsel %vm1886_vm2, %v3301_v24, %v12149_v47  ;;  %v3884_v43 = vrot.slane %v3660_v57, 2  ;;  %v4523_v26 = vmul.f32 %v12547_v51, %v10006_v60  ;;  %v2210_v53 = vld [vmem:[#allocation2 + $0x218] sm:$0xfe] }
 0x2ce   : > { %v6156_v6 = vmul.f32 0.16666667, %v6060_v34  ;;  %v3495_v8 = vadd.f32 %v3304_v3, %v3040_v49  ;;  %v12152_v58 = vrot.slane %v10015_v59, 2  ;;  %v10030_v0 = vmul.f32 %v12547_v51, %v10011_v31  ;;  %v12549_v49 = vld [vmem:[#allocation26_spill] sm:$0xff] }
 0x2cf   : > { %v5677_v11 = vadd.f32 %v8175_v28, %v5575_v55  ;;  %v4108_v17 = vadd.f32 %v3884_v43, %v3493_v15  ;;  %v4667_v62 = vrot.slane %v4523_v26, 1  ;;  %v5026_v16 = vmul.f32 %v12548_v52, %v4941_v2 }
 0x2d0   : > { %v6379_v1 = vrot.slane %v6156_v6, 7  ;;  %v3887_v30 = vsel %vm2438_vm3, %v3884_v43, %v12152_v58  ;;  %v12147_v23 = vrot.slane %v10030_v0, 1  ;;  %v10039_v5 = vmul.f32 %v12548_v52, %v10011_v31 }
 0x2d1   : > { %v5773_v38 = vadd.f32 3.0, %v5677_v11  ;;  %v4110_v45 = vadd.f32 %v3887_v30, %v3495_v8  ;;  %v4404_v54 = vadd.f32 %v4308_v9, %v4108_v17  ;;  %v5250_v20 = vrot.slane %v5026_v16, 2  ;;  %v12551_v9 = vld [vmem:[#allocation18_spill] sm:$0xff]  ;;  %v12552_v17 = vld [vmem:[#allocation17_spill] sm:$0xff] }
 0x2d2   : > { %v12550_v55 = vrot.slane %v12549_v49, 7  ;;  %v4670_v57 = vsel %vm1886_vm2, %v4667_v62, %v12147_v23  ;;  %v12148_v34 = vrot.slane %v10039_v5, 2  ;;  %v1576_v2 = vmul.f32 %v12384_v25, %v1475_v7  ;;  %v2842_v8 = vld [vmem:[#allocation2 + $0x248] sm:$0x80] }
 0x2d3   : > { %v5869_v24 = vmax.f32 %v5773_v38, 0.0  ;;  %v4406_v43 = vadd.f32 %v4310_v46, %v4110_v45  ;;  %v4859_v26 = vadd.f32 %v4667_v62, %v4404_v54  ;;  %v1578_v6 = vmul.f32 %v12551_v9, %v12384_v25 }
 0x2d4   : > { %v6380_v15 = vsel %vm6302_vm4, %v12550_v55, %v6379_v1  ;;  %v5253_v38 = vsel %vm2438_vm3, %v5250_v20, %v12148_v34  ;;  %v1791_v16 = vmul.f32 %v12551_v9, %v12552_v17  ;;  %v12553_v1 = vld [vmem:[#allocation16_spill] sm:$0xff]  ;;  %v2295_v7 = vmul.f32 %v7882_v36, %v2210_v53  ;;  %v12554_v53 = vld [vmem:[#allocation13_spill] sm:$0xff] }
 0x2d5   : > { %6645 = vmatmul.f32.gmra.mxu2 %v6380_v15  ;;  %v5965_v3 = vmin.f32 %v5869_v24, 6.0  ;;  %v10058_v30 = vmul.f32 %v12553_v1, %v12552_v17  ;;  %v4861_v46 = vadd.f32 %v4670_v57, %v4406_v43  ;;  %v5474_v62 = vadd.f32 %v5250_v20, %v4859_v26 }
 0x2d6   : > { %v10063_v45 = vmul.f32 %v12553_v1, %v7882_v36  ;;  %v1936_v54 = vrot.slane %v1791_v16, 1  ;;  %v2520_v55 = vrot.slane %v2295_v7, 2  ;;  %v2943_v15 = vmul.f32 %v7989_v27, %v2842_v8  ;;  %v3576_v1 = vld [vmem:[#allocation2 + $0x258] sm:$0xfe] }
 0x2d7   : > { %v6061_v24 = vmul.f32 %v5965_v3, %v5677_v11  ;;  %v12151_v49 = vrot.slane %v10058_v30, 1  ;;  %v5476_v23 = vadd.f32 %v5253_v38, %v4861_v46  ;;  %v5576_v34 = vmul.f32 %v8072_v18, %v5474_v62  ;;  %v12555_v3 = vld [vmem:[#allocation25_spill] sm:$0xff] }
 0x2d8   : > { %v12150_v47 = vrot.slane %v10063_v45, 2  ;;  %v2128_v20 = vadd.f32 %v1936_v54, %v1576_v2  ;;  %v2945_v57 = vmul.f32 %v12554_v53, %v7989_v27  ;;  %v3158_v43 = vmul.f32 %v12554_v53, %v12555_v3  ;;  %v12556_v2 = vld [vmem:[#allocation14_spill] sm:$0xff] }
 0x2d9   : > { %v6157_v9 = vmul.f32 0.16666667, %v6061_v24  ;;  %v1940_v11 = vsel %vm1886_vm2, %v1936_v54, %v12151_v49  ;;  %v5578_v8 = vmul.f32 %v8072_v18, %v5476_v23  ;;  %v5678_v38 = vadd.f32 %v8117_v50, %v5576_v34  ;;  %v4208_v54 = vld [vmem:[#allocation2 + $0x288] sm:$0x80] }
 0x2da   : > { %v2130_v16 = vadd.f32 %v1940_v11, %v1578_v6  ;;  %v2524_v7 = vsel %vm2438_vm3, %v2520_v55, %v12150_v47  ;;  %v2744_v24 = vadd.f32 %v2520_v55, %v2128_v20  ;;  %v10083_v46 = vmul.f32 %v12556_v2, %v12555_v3 }
 0x2db   : > { %v6381_v26 = vrot.slane %v6157_v9, 7  ;;  %v3302_v62 = vrot.slane %v3158_v43, 1  ;;  %v5680_v23 = vadd.f32 %v8117_v50, %v5578_v8  ;;  %v5774_v34 = vadd.f32 3.0, %v5678_v38  ;;  %v10096_v43 = vld [vmem:[#allocation2 + $0x298] sm:$0xff]  ;;  %v10099_v8 = vld [vmem:[#allocation2 + $0x2a8] sm:$0xff] }
 0x2dc   : > { %v2746_v6 = vadd.f32 %v2524_v7, %v2130_v16  ;;  %v3039_v11 = vadd.f32 %v2943_v15, %v2744_v24  ;;  %v12153_v53 = vrot.slane %v10083_v46, 1  ;;  %v3661_v55 = vmul.f32 %v8060_v61, %v3576_v1  ;;  %12557 = vst [vmem:[#allocation22_spill] sm:$0xff] %v10096_v43  ;;  %v4942_v24 = vld [vmem:[#allocation2 + $0x298] sm:$0xfe] }
 0x2dd   : > { %v6382_v9 = vsel %vm6302_vm4, %v6377_v19, %v6381_v26  ;;  %v10094_v20 = vmul.f32 %v12556_v2, %v8060_v61  ;;  %v5776_v56 = vadd.f32 3.0, %v5680_v23  ;;  %v5870_v47 = vmax.f32 %v5774_v34, 0.0  ;;  %12558 = vst [vmem:[#allocation15_spill] sm:$0xff] %v10099_v8 }
 0x2de   : > { %7131 = vmatmul.msk.f32.gmra.mxu3 %vm1216_vm1, %v6382_v9  ;;  %v3041_v19 = vadd.f32 %v2945_v57, %v2746_v6  ;;  %v4309_v26 = vmul.f32 %v8098_v37, %v4208_v54  ;;  %v3306_v15 = vsel %vm1886_vm2, %v3302_v62, %v12153_v53  ;;  %v3494_v16 = vadd.f32 %v3302_v62, %v3039_v11  ;;  %v12559_v6 = vld [vmem:[#allocation27_spill] sm:$0xff] }
 0x2df   : > { %v3885_v7 = vrot.slane %v3661_v55, 2  ;;  %v12155_v1 = vrot.slane %v10094_v20, 2  ;;  %v5872_v2 = vmax.f32 %v5776_v56, 0.0  ;;  %v5966_v9 = vmin.f32 %v5870_v47, 6.0 }
 0x2e0   : > { %v3496_v49 = vadd.f32 %v3306_v15, %v3041_v19  ;;  %v4311_v34 = vmul.f32 %v8098_v37, %v10096_v43  ;;  %v4524_v58 = vmul.f32 %v12559_v6, %v10096_v43  ;;  %v10114_v62 = vmul.f32 %v12559_v6, %v10099_v8  ;;  %v6714_v19 = vpop.f32.mrf.mxu3  ;;  %v10134_v6 = vld [vmem:[%s11923_s9] ss:$0 sm:$0xff] }
 0x2e1   : > { %v3889_v57 = vsel %vm2438_vm3, %v3885_v7, %v12155_v1  ;;  %v4109_v54 = vadd.f32 %v3885_v7, %v3494_v16  ;;  %v5968_v11 = vmin.f32 %v5872_v2, 6.0  ;;  %v6062_v55 = vmul.f32 %v5966_v9, %v5678_v38  ;;  %v10125_v7 = vld [vmem:[%s11922_s8] ss:$0 sm:$0xff]  ;;  %v624_v1 = vpop.f32.mrf.mxu0 }
 0x2e2   : > { %v4111_v56 = vadd.f32 %v3889_v57, %v3496_v49  ;;  %v5027_v47 = vmul.f32 %v8153_v48, %v4942_v24  ;;  %v4668_v53 = vrot.slane %v4524_v58, 1  ;;  %v12160_v44 = vrot.slane %v10114_v62, 1  ;;  %v6601_v24 = vpop.f32.mrf.mxu2  ;;  %v737_v57 = vpop.f32.mrf.mxu1 }
 0x2e3   : > { %v4405_v15 = vadd.f32 %v4309_v26, %v4109_v54  ;;  %v10120_v16 = vmul.f32 %v8153_v48, %v10099_v8  ;;  %v6064_v2 = vmul.f32 %v5968_v11, %v5680_v23  ;;  %v6158_v38 = vmul.f32 0.16666667, %v6062_v55  ;;  %v1478_v8 = vld [vmem:[#allocation2 + $0x220] sm:$0x7f] }
 0x2e4   : > { %v4407_v49 = vadd.f32 %v4311_v34, %v4111_v56  ;;  %v5251_v9 = vrot.slane %v5027_v47, 2  ;;  %v4672_v58 = vsel %vm1886_vm2, %v4668_v53, %v12160_v44  ;;  %v6715_v21 = vadd.f32 %v6714_v19, %v6601_v24  ;;  %v2211_v56 = vld [vmem:[#allocation2 + $0x230] sm:$0x1] }
 0x2e5   : > { %v4860_v26 = vadd.f32 %v4668_v53, %v4405_v15  ;;  %v12161_v54 = vrot.slane %v10120_v16, 2  ;;  %v10136_v23 = vmul.f32 0.16666667, %v6064_v2  ;;  %v6383_v34 = vrot.slane %v6158_v38, 7 }
 0x2e6   : > { %v4862_v11 = vadd.f32 %v4672_v58, %v4407_v49  ;;  %v813_v55 = vmul.f32 %v7644_v39, %v624_v1  ;;  %v6814_v19 = vmul.f32 %v10125_v7, %v6715_v21  ;;  %v814_v15 = vmul.f32 %v7647_v40, %v737_v57  ;;  %v3577_v21 = vld [vmem:[#allocation2 + $0x270] sm:$0x1] }
 0x2e7   : > { %12560 = vst [vmem:[#allocation23_spill] sm:$0xff] %v10136_v23  ;;  %v5255_v53 = vsel %vm2438_vm3, %v5251_v9, %v12161_v54  ;;  %v5475_v47 = vadd.f32 %v5251_v9, %v4860_v26  ;;  %v12166_v24 = vrot.slane %v10136_v23, 7  ;;  %v1579_v38 = vmul.f32 %v12369_v14, %v1478_v8  ;;  %v2845_v26 = vld [vmem:[#allocation2 + $0x260] sm:$0x7f]  ;;  %v1479_v23 = vld [vmem:[#allocation2 + $0x228] sm:$0x7f] }
 0x2e8   : > { %v5477_v44 = vadd.f32 %v5255_v53, %v4862_v11  ;;  %v883_v2 = vadd.f32 %v7650_v41, %v813_v55  ;;  %v6850_v49 = vadd.f32 %v10134_v6, %v6814_v19  ;;  %v884_v58 = vadd.f32 %v7653_v42, %v814_v15  ;;  %v7208_v15 = vld [vmem:[%s7497_s28] sm:$0xff] }
 0x2e9   : > { %v5577_v1 = vmul.f32 %v8163_v63, %v5475_v47  ;;  %v2298_v9 = vmul.f32 %v12358_v10, %v2211_v56  ;;  %v6385_v57 = vsel %vm6302_vm4, %v6383_v34, %v12166_v24  ;;  %v12561_v55 = vrot.slane %v9972_v33, 1  ;;  %v4211_v47 = vld [vmem:[#allocation2 + $0x2a0] sm:$0x7f]  ;;  %v4943_v24 = vld [vmem:[#allocation2 + $0x2b0] sm:$0x1] }
 0x2ea   : > { %v5579_v11 = vmul.f32 %v8163_v63, %v5477_v44  ;;  %v947_v53 = vadd.f32 3.0, %v883_v2  ;;  %6648 = vmatmul.f32.gmra.mxu2 %v6385_v57  ;;  %v6882_v54 = vadd.f32 %v7208_v15, %v6850_v49  ;;  %v948_v56 = vadd.f32 3.0, %v884_v58 }
 0x2eb   : > { %v2131_v8 = vadd.f32 %v12561_v55, %v1579_v38  ;;  %v5679_v19 = vadd.f32 %v8175_v28, %v5577_v1  ;;  %v2525_v3 = vrot.slane %v2298_v9, 2  ;;  %v2946_v34 = vmul.f32 %v7788_v29, %v2845_v26 }
 0x2ec   : > { %v5681_v43 = vadd.f32 %v8175_v28, %v5579_v11  ;;  %v1011_v17 = vmax.f32 %v947_v53, 0.0  ;;  %v3664_v44 = vmul.f32 %v12545_v13, %v3577_v21  ;;  %6914 = vst.msk [vmem:[%s10164_s15] sm:$0xff] %vm432_vm0, %v6882_v54  ;;  %v1012_v38 = vmax.f32 %v948_v56, 0.0  ;;  %v2212_v28 = vld [vmem:[#allocation2 + $0x238] sm:$0x1] }
 0x2ed   : > { %v5775_v33 = vadd.f32 3.0, %v5679_v19  ;;  %v12562_v1 = vrot.slane %v9985_v35, 2  ;;  %v4312_v9 = vmul.f32 %v12546_v32, %v4211_v47  ;;  %v5030_v15 = vmul.f32 %v12548_v52, %v4943_v24  ;;  %v1480_v47 = vld [vmem:[#allocation2 + $0x240] sm:$0x80]  ;;  %v4212_v24 = vld [vmem:[#allocation2 + $0x2a8] sm:$0x7f] }
 0x2ee   : > { %v5777_v57 = vadd.f32 3.0, %v5681_v43  ;;  %v1075_v26 = vmin.f32 %v1011_v17, 6.0  ;;  %v3890_v21 = vrot.slane %v3664_v44, 2  ;;  %v1076_v55 = vmin.f32 %v1012_v38, 6.0  ;;  %v3578_v38 = vld [vmem:[#allocation2 + $0x278] sm:$0x1] }
 0x2ef   : > { %v2526_v49 = vsel %vm2438_vm3, %v12562_v1, %v2525_v3  ;;  %v5871_v53 = vmax.f32 %v5775_v33, 0.0  ;;  %v1580_v51 = vmul.f32 %v12384_v25, %v1479_v23  ;;  %v12563_v35 = vrot.slane %v10015_v59, 2  ;;  %v2846_v1 = vld [vmem:[#allocation2 + $0x268] sm:$0x7f]  ;;  %v4944_v59 = vld [vmem:[#allocation2 + $0x2b8] sm:$0x1] }
 0x2f0   : > { %v2747_v11 = vadd.f32 %v2526_v49, %v2131_v8  ;;  %v5873_v13 = vmax.f32 %v5777_v57, 0.0  ;;  %v1139_v54 = vmul.f32 %v1075_v26, %v883_v2  ;;  %v1140_v17 = vmul.f32 %v1076_v55, %v884_v58 }
 0x2f1   : > { %v3891_v3 = vsel %vm2438_vm3, %v12563_v35, %v3890_v21  ;;  %v5967_v32 = vmin.f32 %v5871_v53, 6.0  ;;  %v5256_v8 = vrot.slane %v5030_v15, 2  ;;  %v12564_v44 = vrot.slane %v10058_v30, 1  ;;  %v6604_v35 = vpop.f32.mrf.mxu2 }
 0x2f2   : > { %v3042_v56 = vadd.f32 %v2946_v34, %v2747_v11  ;;  %v5969_v49 = vmin.f32 %v5873_v13, 6.0  ;;  %v1203_v23 = vmul.f32 0.16666667, %v1139_v54  ;;  %v12565_v57 = vrot.slane %v10004_v22, 1 }
 0x2f3   : > { %v2132_v33 = vadd.f32 %v12564_v44, %v1580_v51  ;;  %v2299_v34 = vmul.f32 %v7882_v36, %v2212_v28  ;;  %v6063_v26 = vmul.f32 %v5967_v32, %v5679_v19  ;;  %v1204_v11 = vmul.f32 0.16666667, %v1140_v17 }
 0x2f4   : > { %v3497_v2 = vadd.f32 %v12565_v57, %v3042_v56  ;;  %v12566_v21 = vrot.slane %v10039_v5, 2  ;;  %v2947_v53 = vmul.f32 %v7989_v27, %v2846_v1  ;;  %v6065_v30 = vmul.f32 %v5969_v49, %v5681_v43  ;;  %1413 = vst [vmem:[#allocation2 + $0x390] sm:$0xff] %v1203_v23  ;;  %v1482_v49 = vld [vmem:[#allocation2 + $0x250] sm:$0xff] }
 0x2f5   : > { %v2527_v55 = vrot.slane %v2299_v34, 2  ;;  %v3665_v13 = vmul.f32 %v8060_v61, %v3578_v38  ;;  %v6159_v15 = vmul.f32 0.16666667, %v6063_v26  ;;  %1414 = vst.msk [vmem:[#allocation2 + $0x398] sm:$0xff] %vm1216_vm1, %v1204_v11  ;;  %v4313_v28 = vmul.f32 %v8098_v37, %v4212_v24  ;;  %v627_v38 = vpop.f32.mrf.mxu0  ;;  %v740_v24 = vpop.f32.mrf.mxu1 }
 0x2f6   : > { %v5257_v58 = vsel %vm2438_vm3, %v12566_v21, %v5256_v8  ;;  %v4112_v51 = vadd.f32 %v3891_v3, %v3497_v2  ;;  %v5031_v22 = vmul.f32 %v8153_v48, %v4944_v59  ;;  %v1581_v32 = vmul.f32 %v12369_v14, %v1480_v47  ;;  %v6717_v3 = vpop.f32.mrf.mxu3  ;;  %v1739_v21 = vld [vmem:[#allocation2 + $0x260] sm:$0xff] }
 0x2f7   : > { %v10191_v5 = vmul.f32 0.16666667, %v6065_v30  ;;  %v12567_v54 = vrot.slane %v10063_v45, 2  ;;  %v3892_v56 = vrot.slane %v3665_v13, 2  ;;  %v6386_v1 = vrot.slane %v6159_v15, 7 }
 0x2f8   : > { %v4408_v19 = vadd.f32 %v4312_v9, %v4112_v51  ;;  %v5258_v8 = vrot.slane %v5031_v22, 2  ;;  %v6718_v44 = vadd.f32 %v6717_v3, %v6604_v35  ;;  %v12568_v47 = vrot.slane %v10030_v0, 1  ;;  %v2213_v30 = vld [vmem:[#allocation2 + $0x250] sm:$0xfe]  ;;  %v7209_v35 = vld [vmem:[%s7497_s28 + $0x8] sm:$0xff] }
 0x2f9   : > { %v2528_v43 = vsel %vm2438_vm3, %v12567_v54, %v2527_v55  ;;  %v6387_v23 = vrot.slane %v10191_v5, 7  ;;  %v12569_v9 = vrot.slane %v10094_v20, 2  ;;  %v815_v2 = vmul.f32 %v7644_v39, %v627_v38 }
 0x2fa   : > { %v2748_v17 = vadd.f32 %v2528_v43, %v2132_v33  ;;  %v4863_v57 = vadd.f32 %v12568_v47, %v4408_v19  ;;  %v12570_v59 = vrot.slane %v10120_v16, 2  ;;  %v6815_v26 = vmul.f32 %v10125_v7, %v6718_v44 }
 0x2fb   : > { %v3893_v45 = vsel %vm2438_vm3, %v12569_v9, %v3892_v56  ;;  %v816_v11 = vmul.f32 %v7647_v40, %v740_v24  ;;  %v6388_v0 = vsel %vm6302_vm4, %v6386_v1, %v6387_v23  ;;  %v885_v51 = vadd.f32 %v7650_v41, %v815_v2  ;;  %v2847_v9 = vld [vmem:[#allocation2 + $0x280] sm:$0x80] }
 0x2fc   : > { %v3043_v34 = vadd.f32 %v2947_v53, %v2748_v17  ;;  %v5259_v33 = vsel %vm2438_vm3, %v12570_v59, %v5258_v8  ;;  %v5478_v20 = vadd.f32 %v5257_v58, %v4863_v57  ;;  %v1583_v53 = vmul.f32 %v12369_v14, %v1482_v49  ;;  %7132 = vmatmul.msk.f32.gmra.mxu3 %vm1216_vm1, %v6388_v0 }
 0x2fd   : > { %v12571_v16 = vrot.slane %v10083_v46, 1  ;;  %v6851_v13 = vadd.f32 %v10134_v6, %v6815_v26  ;;  %v886_v15 = vadd.f32 %v7653_v42, %v816_v11  ;;  %v1794_v22 = vmul.f32 %v12381_v12, %v1482_v49 }
 0x2fe   : > { %v5580_v19 = vmul.f32 %v8072_v18, %v5478_v20  ;;  %v949_v54 = vadd.f32 3.0, %v885_v51  ;;  %v10221_v58 = vmul.f32 %v12381_v12, %v1739_v21  ;;  %v2300_v43 = vmul.f32 %v12358_v10, %v2213_v30 }
 0x2ff   : > { %v3498_v55 = vadd.f32 %v12571_v16, %v3043_v34  ;;  %v6883_v3 = vadd.f32 %v7209_v35, %v6851_v13  ;;  %v950_v46 = vadd.f32 3.0, %v886_v15  ;;  %v1941_v1 = vrot.slane %v1794_v22, 1  ;;  %v10246_v35 = vld [vmem:[#allocation2 + $0x2d0] sm:$0xff] }
 0x300   : > { %v5682_v17 = vadd.f32 %v8117_v50, %v5580_v19  ;;  %v1013_v8 = vmax.f32 %v949_v54, 0.0  ;;  %v12181_v44 = vrot.slane %v10221_v58, 1  ;;  %v10228_v38 = vmul.f32 %v12358_v10, %v1739_v21  ;;  %v3579_v54 = vld [vmem:[#allocation2 + $0x290] sm:$0xfe] }
 0x301   : > { %v4113_v56 = vadd.f32 %v3893_v45, %v3498_v55  ;;  %6915 = vst.msk [vmem:[%s10164_s15 + $0x8] sm:$0xff] %vm432_vm0, %v6883_v3  ;;  %v1014_v49 = vmax.f32 %v950_v46, 0.0  ;;  %v2133_v47 = vadd.f32 %v1941_v1, %v1581_v32  ;;  %v2529_v57 = vrot.slane %v2300_v43, 2 }
 0x302   : > { %v5778_v45 = vadd.f32 3.0, %v5682_v17  ;;  %v1077_v2 = vmin.f32 %v1013_v8, 6.0  ;;  %v1944_v34 = vsel %vm1886_vm2, %v1941_v1, %v12181_v44  ;;  %v12179_v59 = vrot.slane %v10228_v38, 2 }
 0x303   : > { %v4409_v24 = vadd.f32 %v4313_v28, %v4113_v56  ;;  %v12572_v26 = vrot.slane %v10114_v62, 1  ;;  %v1078_v21 = vmin.f32 %v1014_v49, 6.0  ;;  %v2135_v30 = vadd.f32 %v1944_v34, %v1583_v53 }
 0x304   : > { %v2749_v28 = vadd.f32 %v2529_v57, %v2133_v47  ;;  %v5874_v0 = vmax.f32 %v5778_v45, 0.0  ;;  %v1141_v20 = vmul.f32 %v1077_v2, %v885_v51  ;;  %v2532_v32 = vsel %vm2438_vm3, %v2529_v57, %v12179_v59  ;;  %v4213_v51 = vld [vmem:[#allocation2 + $0x2c0] sm:$0x80]  ;;  %v12575_v2 = vld [vmem:[#allocation20_spill] sm:$0xff] }
 0x305   : > { %v4864_v11 = vadd.f32 %v12572_v26, %v4409_v24  ;;  %v2948_v16 = vmul.f32 %v7788_v29, %v2847_v9  ;;  %v1142_v13 = vmul.f32 %v1078_v21, %v886_v15  ;;  %v2751_v22 = vadd.f32 %v2532_v32, %v2135_v30  ;;  %v12573_v24 = vld [vmem:[#allocation19_spill] sm:$0xff]  ;;  %v12574_v57 = vld [vmem:[#allocation29_spill] sm:$0xff] }
 0x306   : > { %v2950_v19 = vmul.f32 %v10006_v60, %v7788_v29  ;;  %v5970_v62 = vmin.f32 %v5874_v0, 6.0  ;;  %v1205_v43 = vmul.f32 0.16666667, %v1141_v20  ;;  %v3161_v53 = vmul.f32 %v10006_v60, %v12359_v4  ;;  %v10258_v60 = vld [vmem:[#allocation2 + $0x2e0] sm:$0xff] }
 0x307   : > { %v5479_v55 = vadd.f32 %v5259_v33, %v4864_v11  ;;  %v3044_v56 = vadd.f32 %v2948_v16, %v2749_v28  ;;  %v1206_v46 = vmul.f32 0.16666667, %v1142_v13  ;;  %v10251_v33 = vmul.f32 %v10011_v31, %v12359_v4  ;;  %v12576_v20 = vld [vmem:[#allocation21_spill] sm:$0xff] }
 0x308   : > { %v3046_v1 = vadd.f32 %v2950_v19, %v2751_v22  ;;  %v6066_v15 = vmul.f32 %v5970_v62, %v5682_v17  ;;  %1415 = vst [vmem:[#allocation2 + $0x3a0] sm:$0xff] %v1205_v43  ;;  %v3307_v8 = vrot.slane %v3161_v53, 1  ;;  %v3666_v49 = vmul.f32 %v12573_v24, %v3579_v54  ;;  %v1481_v54 = vld [vmem:[#allocation2 + $0x248] sm:$0x80] }
 0x309   : > { %v5581_v3 = vmul.f32 %v8163_v63, %v5479_v55  ;;  %v10256_v47 = vmul.f32 %v10011_v31, %v12573_v24  ;;  %1416 = vst.msk [vmem:[#allocation2 + $0x3a8] sm:$0xff] %vm1216_vm1, %v1206_v46  ;;  %v12173_v45 = vrot.slane %v10251_v33, 1  ;;  %v4314_v34 = vmul.f32 %v12575_v2, %v4213_v51  ;;  %v4945_v31 = vld [vmem:[#allocation2 + $0x2d0] sm:$0xfe]  ;;  %v1483_v51 = vld [vmem:[#allocation2 + $0x258] sm:$0xff] }
 0x30a   : > { %v4316_v17 = vmul.f32 %v12575_v2, %v10246_v35  ;;  %v6162_v26 = vmul.f32 0.16666667, %v6066_v15  ;;  %v3499_v11 = vadd.f32 %v3307_v8, %v3044_v56  ;;  %v3894_v21 = vrot.slane %v3666_v49, 2 }
 0x30b   : > { %v5683_v9 = vadd.f32 %v12574_v57, %v5581_v3  ;;  %v12178_v30 = vrot.slane %v10256_v47, 2  ;;  %v3310_v0 = vsel %vm1886_vm2, %v3307_v8, %v12173_v45  ;;  %v4527_v32 = vmul.f32 %v12576_v20, %v10246_v35  ;;  %v12577_v3 = vld [vmem:[#allocation23_spill] sm:$0xff] }
 0x30c   : > { %v10274_v16 = vmul.f32 %v12576_v20, %v10258_v60  ;;  %v6389_v55 = vrot.slane %v6162_v26, 7  ;;  %v3501_v13 = vadd.f32 %v3310_v0, %v3046_v1  ;;  %v4114_v19 = vadd.f32 %v3894_v21, %v3499_v11  ;;  %v1740_v26 = vld [vmem:[#allocation2 + $0x268] sm:$0xff]  ;;  %v2214_v11 = vld [vmem:[#allocation2 + $0x258] sm:$0xfe]  ;;  %v6607_v20 = vpop.f32.mrf.mxu2 }
 0x30d   : > { %v5779_v28 = vadd.f32 3.0, %v5683_v9  ;;  %v3897_v22 = vsel %vm2438_vm3, %v3894_v21, %v12178_v30  ;;  %v4673_v43 = vrot.slane %v4527_v32, 1  ;;  %v5032_v53 = vmul.f32 %v12548_v52, %v4945_v31 }
 0x30e   : > { %v12174_v56 = vrot.slane %v10274_v16, 1  ;;  %v12578_v46 = vrot.slane %v12577_v3, 7  ;;  %v4116_v8 = vadd.f32 %v3897_v22, %v3501_v13  ;;  %v4410_v49 = vadd.f32 %v4314_v34, %v4114_v19  ;;  %v12579_v22 = vld [vmem:[#allocation17_spill] sm:$0xff] }
 0x30f   : > { %v5875_v62 = vmax.f32 %v5779_v28, 0.0  ;;  %v10286_v1 = vmul.f32 %v12548_v52, %v10258_v60  ;;  %v5260_v31 = vrot.slane %v5032_v53, 2  ;;  %v1582_v0 = vmul.f32 %v12384_v25, %v1481_v54 }
 0x310   : > { %v6390_v15 = vsel %vm6302_vm4, %v12578_v46, %v6389_v55  ;;  %v4676_v28 = vsel %vm1886_vm2, %v4673_v43, %v12174_v56  ;;  %v4412_v32 = vadd.f32 %v4316_v17, %v4116_v8  ;;  %v4865_v3 = vadd.f32 %v4673_v43, %v4410_v49 }
 0x311   : > { %6651 = vmatmul.f32.gmra.mxu2 %v6390_v15  ;;  %v5971_v21 = vmin.f32 %v5875_v62, 6.0  ;;  %v12175_v55 = vrot.slane %v10286_v1, 2  ;;  %v1584_v34 = vmul.f32 %v12384_v25, %v1483_v51  ;;  %v1795_v19 = vmul.f32 %v12579_v22, %v1483_v51  ;;  %v2848_v15 = vld [vmem:[#allocation2 + $0x288] sm:$0x80] }
 0x312   : > { %v10296_v46 = vmul.f32 %v12579_v22, %v1740_v26  ;;  %v2301_v62 = vmul.f32 %v7882_v36, %v2214_v11  ;;  %v4867_v45 = vadd.f32 %v4676_v28, %v4412_v32  ;;  %v5480_v17 = vadd.f32 %v5260_v31, %v4865_v3 }
 0x313   : > { %v6067_v13 = vmul.f32 %v5971_v21, %v5683_v9  ;;  %v5263_v54 = vsel %vm2438_vm3, %v5260_v31, %v12175_v55  ;;  %v10303_v43 = vmul.f32 %v7882_v36, %v1740_v26  ;;  %v1942_v8 = vrot.slane %v1795_v19, 1  ;;  %v12580_v26 = vld [vmem:[#allocation22_spill] sm:$0xff]  ;;  %v3580_v19 = vld [vmem:[#allocation2 + $0x298] sm:$0xfe] }
 0x314   : > { %v12177_v9 = vrot.slane %v10296_v46, 1  ;;  %v2530_v51 = vrot.slane %v2301_v62, 2  ;;  %v5482_v49 = vadd.f32 %v5263_v54, %v4867_v45  ;;  %v5582_v21 = vmul.f32 %v8072_v18, %v5480_v17 }
 0x315   : > { %v6163_v53 = vmul.f32 0.16666667, %v6067_v13  ;;  %v12176_v11 = vrot.slane %v10303_v43, 2  ;;  %v2949_v28 = vmul.f32 %v7989_v27, %v2848_v15  ;;  %v2134_v3 = vadd.f32 %v1942_v8, %v1582_v0 }
 0x316   : > { %v1946_v31 = vsel %vm1886_vm2, %v1942_v8, %v12177_v9  ;;  %v2951_v13 = vmul.f32 %v12580_v26, %v7989_v27  ;;  %v5584_v56 = vmul.f32 %v8072_v18, %v5482_v49  ;;  %v5684_v45 = vadd.f32 %v8117_v50, %v5582_v21  ;;  %v12582_v8 = vld [vmem:[#allocation15_spill] sm:$0xff] }
 0x317   : > { %v6391_v32 = vrot.slane %v6163_v53, 7  ;;  %v2136_v62 = vadd.f32 %v1946_v31, %v1584_v34  ;;  %v2534_v54 = vsel %vm2438_vm3, %v2530_v51, %v12176_v11  ;;  %v2750_v17 = vadd.f32 %v2530_v51, %v2134_v3  ;;  %v12581_v53 = vld [vmem:[#allocation25_spill] sm:$0xff]  ;;  %v4214_v11 = vld [vmem:[#allocation2 + $0x2c8] sm:$0x80] }
 0x318   : > { %v3162_v0 = vmul.f32 %v12580_v26, %v12581_v53  ;;  %v10326_v55 = vmul.f32 %v12582_v8, %v12581_v53  ;;  %v5686_v34 = vadd.f32 %v8117_v50, %v5584_v56  ;;  %v5780_v49 = vadd.f32 3.0, %v5684_v45  ;;  %v10338_v56 = vld [vmem:[#allocation2 + $0x2e8] sm:$0xff] }
 0x319   : > { %v6392_v15 = vsel %vm6302_vm4, %v6387_v23, %v6391_v32  ;;  %v2752_v21 = vadd.f32 %v2534_v54, %v2136_v62  ;;  %v3667_v31 = vmul.f32 %v8060_v61, %v3580_v19  ;;  %v3045_v5 = vadd.f32 %v2949_v28, %v2750_v17  ;;  %v10336_v32 = vld [vmem:[#allocation2 + $0x2d8] sm:$0xff]  ;;  %12584 = vst [vmem:[#allocation18_spill] sm:$0xff] %v10338_v56 }
 0x31a   : > { %7133 = vmatmul.msk.f32.gmra.mxu3 %vm1216_vm1, %v6392_v15  ;;  %v3308_v9 = vrot.slane %v3162_v0, 1  ;;  %v12180_v23 = vrot.slane %v10326_v55, 1  ;;  %v10334_v51 = vmul.f32 %v12582_v8, %v8060_v61  ;;  %12583 = vst [vmem:[#allocation26_spill] sm:$0xff] %v10336_v32  ;;  %v5782_v3 = vadd.f32 3.0, %v5686_v34  ;;  %v4946_v17 = vld [vmem:[#allocation2 + $0x2d8] sm:$0xfe] }
 0x31b   : > { %v5876_v26 = vmax.f32 %v5780_v49, 0.0  ;;  %v3047_v15 = vadd.f32 %v2951_v13, %v2752_v21  ;;  %v3895_v30 = vrot.slane %v3667_v31, 2  ;;  %v4315_v54 = vmul.f32 %v8098_v37, %v4214_v11  ;;  %v12585_v31 = vld [vmem:[#allocation27_spill] sm:$0xff] }
 0x31c   : > { %v3312_v19 = vsel %vm1886_vm2, %v3308_v9, %v12180_v23  ;;  %v3500_v28 = vadd.f32 %v3308_v9, %v3045_v5  ;;  %v12183_v62 = vrot.slane %v10334_v51, 2  ;;  %v5878_v0 = vmax.f32 %v5782_v3, 0.0 }
 0x31d   : > { %v5972_v8 = vmin.f32 %v5876_v26, 6.0  ;;  %v3502_v59 = vadd.f32 %v3312_v19, %v3047_v15  ;;  %v4317_v49 = vmul.f32 %v8098_v37, %v10336_v32  ;;  %v4528_v23 = vmul.f32 %v12585_v31, %v10336_v32  ;;  %v6720_v15 = vpop.f32.mrf.mxu3 }
 0x31e   : > { %v3899_v13 = vsel %vm2438_vm3, %v3895_v30, %v12183_v62  ;;  %v4115_v21 = vadd.f32 %v3895_v30, %v3500_v28  ;;  %v10354_v9 = vmul.f32 %v12585_v31, %v10338_v56  ;;  %v5974_v11 = vmin.f32 %v5878_v0, 6.0  ;;  %v630_v28 = vpop.f32.mrf.mxu0  ;;  %v743_v0 = vpop.f32.mrf.mxu1 }
 0x31f   : > { %v6068_v5 = vmul.f32 %v5972_v8, %v5684_v45  ;;  %v4117_v3 = vadd.f32 %v3899_v13, %v3502_v59  ;;  %v5033_v26 = vmul.f32 %v8153_v48, %v4946_v17  ;;  %v4674_v44 = vrot.slane %v4528_v23, 1  ;;  %v1484_v17 = vld [vmem:[#allocation2 + $0x260] sm:$0x7f] }
 0x320   : > { %v4411_v19 = vadd.f32 %v4315_v54, %v4115_v21  ;;  %v12189_v53 = vrot.slane %v10354_v9, 1  ;;  %v10360_v30 = vmul.f32 %v8153_v48, %v10338_v56  ;;  %v6070_v62 = vmul.f32 %v5974_v11, %v5686_v34  ;;  %v2215_v11 = vld [vmem:[#allocation2 + $0x270] sm:$0x1]  ;;  %v1485_v56 = vld [vmem:[#allocation2 + $0x268] sm:$0x7f] }
 0x321   : > { %v6164_v32 = vmul.f32 0.16666667, %v6068_v5  ;;  %v4413_v22 = vadd.f32 %v4317_v49, %v4117_v3  ;;  %v5261_v31 = vrot.slane %v5033_v26, 2  ;;  %v6721_v54 = vadd.f32 %v6720_v15, %v6607_v20 }
 0x322   : > { %v4678_v59 = vsel %vm1886_vm2, %v4674_v44, %v12189_v53  ;;  %v4866_v45 = vadd.f32 %v4674_v44, %v4411_v19  ;;  %v12190_v23 = vrot.slane %v10360_v30, 2  ;;  %v10366_v8 = vmul.f32 0.16666667, %v6070_v62 }
 0x323   : > { %v6393_v13 = vrot.slane %v6164_v32, 7  ;;  %v4868_v21 = vadd.f32 %v4678_v59, %v4413_v22  ;;  %v817_v34 = vmul.f32 %v7644_v39, %v630_v28  ;;  %v6816_v3 = vmul.f32 %v10125_v7, %v6721_v54  ;;  %v2851_v28 = vld [vmem:[#allocation2 + $0x2a0] sm:$0x7f]  ;;  %v3581_v59 = vld [vmem:[#allocation2 + $0x2b0] sm:$0x1] }
 0x324   : > { %12586 = vst [vmem:[#allocation16_spill] sm:$0xff] %v10366_v8  ;;  %v5265_v49 = vsel %vm2438_vm3, %v5261_v31, %v12190_v23  ;;  %v5481_v5 = vadd.f32 %v5261_v31, %v4866_v45  ;;  %v818_v44 = vmul.f32 %v7647_v40, %v743_v0  ;;  %v12191_v26 = vrot.slane %v10366_v8, 7 }
 0x325   : > { %v5483_v20 = vadd.f32 %v5265_v49, %v4868_v21  ;;  %v887_v62 = vadd.f32 %v7650_v41, %v817_v34  ;;  %v1585_v22 = vmul.f32 %v12369_v14, %v1484_v17  ;;  %v6852_v15 = vadd.f32 %v10134_v6, %v6816_v3  ;;  %v4217_v34 = vld [vmem:[#allocation2 + $0x2e0] sm:$0x7f] }
 0x326   : > { %v5583_v32 = vmul.f32 %v8163_v63, %v5481_v5  ;;  %v888_v19 = vadd.f32 %v7653_v42, %v818_v44  ;;  %v2304_v31 = vmul.f32 %v12358_v10, %v2215_v11  ;;  %v6395_v0 = vsel %vm6302_vm4, %v6393_v13, %v12191_v26  ;;  %v7210_v5 = vld [vmem:[%s7497_s28 + $0x10] sm:$0xff] }
 0x327   : > { %v5585_v45 = vmul.f32 %v8163_v63, %v5483_v20  ;;  %v951_v54 = vadd.f32 3.0, %v887_v62  ;;  %v12587_v21 = vrot.slane %v10221_v58, 1  ;;  %6654 = vmatmul.f32.gmra.mxu2 %v6395_v0  ;;  %v6884_v3 = vadd.f32 %v7210_v5, %v6852_v15  ;;  %v4947_v26 = vld [vmem:[#allocation2 + $0x2f0] sm:$0x1] }
 0x328   : > { %v5685_v49 = vadd.f32 %v12574_v57, %v5583_v32  ;;  %v952_v11 = vadd.f32 3.0, %v888_v19  ;;  %v2535_v44 = vrot.slane %v2304_v31, 2  ;;  %v2952_v13 = vmul.f32 %v7788_v29, %v2851_v28 }
 0x329   : > { %v2137_v17 = vadd.f32 %v12587_v21, %v1585_v22  ;;  %v5687_v53 = vadd.f32 %v12574_v57, %v5585_v45  ;;  %v1015_v23 = vmax.f32 %v951_v54, 0.0  ;;  %v3670_v20 = vmul.f32 %v12573_v24, %v3581_v59  ;;  %6916 = vst.msk [vmem:[%s10164_s15 + $0x10] sm:$0xff] %vm432_vm0, %v6884_v3  ;;  %v2216_v57 = vld [vmem:[#allocation2 + $0x278] sm:$0x1] }
 0x32a   : > { %v5781_v58 = vadd.f32 3.0, %v5685_v49  ;;  %v1016_v22 = vmax.f32 %v952_v11, 0.0  ;;  %v12588_v0 = vrot.slane %v10228_v38, 2  ;;  %v4318_v15 = vmul.f32 %v12575_v2, %v4217_v34  ;;  %v1486_v34 = vld [vmem:[#allocation2 + $0x280] sm:$0x80] }
 0x32b   : > { %v5783_v31 = vadd.f32 3.0, %v5687_v53  ;;  %v1079_v21 = vmin.f32 %v1015_v23, 6.0  ;;  %v3900_v54 = vrot.slane %v3670_v20, 2  ;;  %v5036_v59 = vmul.f32 %v12548_v52, %v4947_v26  ;;  %v4218_v26 = vld [vmem:[#allocation2 + $0x2e8] sm:$0x7f] }
 0x32c   : > { %v2536_v32 = vsel %vm2438_vm3, %v12588_v0, %v2535_v44  ;;  %v5877_v5 = vmax.f32 %v5781_v58, 0.0  ;;  %v1080_v28 = vmin.f32 %v1016_v22, 6.0  ;;  %v1586_v8 = vmul.f32 %v12384_v25, %v1485_v56  ;;  %v2852_v0 = vld [vmem:[#allocation2 + $0x2a8] sm:$0x7f]  ;;  %v3582_v22 = vld [vmem:[#allocation2 + $0x2b8] sm:$0x1] }
 0x32d   : > { %v2753_v45 = vadd.f32 %v2536_v32, %v2137_v17  ;;  %v5879_v24 = vmax.f32 %v5783_v31, 0.0  ;;  %v1143_v3 = vmul.f32 %v1079_v21, %v887_v62  ;;  %v12589_v38 = vrot.slane %v10256_v47, 2  ;;  %v4948_v47 = vld [vmem:[#allocation2 + $0x2f8] sm:$0x1] }
 0x32e   : > { %v5973_v2 = vmin.f32 %v5877_v5, 6.0  ;;  %v1144_v23 = vmul.f32 %v1080_v28, %v888_v19  ;;  %v5266_v17 = vrot.slane %v5036_v59, 2  ;;  %v12590_v20 = vrot.slane %v10296_v46, 1 }
 0x32f   : > { %v3048_v11 = vadd.f32 %v2952_v13, %v2753_v45  ;;  %v3901_v44 = vsel %vm2438_vm3, %v12589_v38, %v3900_v54  ;;  %v5975_v32 = vmin.f32 %v5879_v24, 6.0  ;;  %v1207_v56 = vmul.f32 0.16666667, %v1143_v3  ;;  %v6610_v38 = vpop.f32.mrf.mxu2 }
 0x330   : > { %v2138_v58 = vadd.f32 %v12590_v20, %v1586_v8  ;;  %v12591_v31 = vrot.slane %v10251_v33, 1  ;;  %v2305_v13 = vmul.f32 %v7882_v36, %v2216_v57  ;;  %v6069_v21 = vmul.f32 %v5973_v2, %v5685_v49 }
 0x331   : > { %v1208_v45 = vmul.f32 0.16666667, %v1144_v23  ;;  %v12592_v54 = vrot.slane %v10286_v1, 2  ;;  %v2953_v5 = vmul.f32 %v7989_v27, %v2852_v0  ;;  %v6071_v46 = vmul.f32 %v5975_v32, %v5687_v53  ;;  %1417 = vst [vmem:[#allocation2 + $0x3d0] sm:$0xff] %v1207_v56  ;;  %v1488_v32 = vld [vmem:[#allocation2 + $0x290] sm:$0xff] }
 0x332   : > { %v3503_v62 = vadd.f32 %v12591_v31, %v3048_v11  ;;  %v2537_v28 = vrot.slane %v2305_v13, 2  ;;  %v3671_v24 = vmul.f32 %v8060_v61, %v3582_v22  ;;  %v6165_v59 = vmul.f32 0.16666667, %v6069_v21  ;;  %v633_v22 = vpop.f32.mrf.mxu0 }
 0x333   : > { %v5267_v19 = vsel %vm2438_vm3, %v12592_v54, %v5266_v17  ;;  %1418 = vst.msk [vmem:[#allocation2 + $0x3d8] sm:$0xff] %vm1216_vm1, %v1208_v45  ;;  %v4319_v33 = vmul.f32 %v8098_v37, %v4218_v26  ;;  %v5037_v57 = vmul.f32 %v8153_v48, %v4948_v47  ;;  %v1587_v2 = vmul.f32 %v12369_v14, %v1486_v34  ;;  %v746_v26 = vpop.f32.mrf.mxu1  ;;  %v1741_v54 = vld [vmem:[#allocation2 + $0x2a0] sm:$0xff] }
 0x334   : > { %v4118_v8 = vadd.f32 %v3901_v44, %v3503_v62  ;;  %v10417_v1 = vmul.f32 0.16666667, %v6071_v46  ;;  %v12593_v3 = vrot.slane %v10303_v43, 2  ;;  %v3902_v11 = vrot.slane %v3671_v24, 2  ;;  %v6723_v44 = vpop.f32.mrf.mxu3  ;;  %v2217_v46 = vld [vmem:[#allocation2 + $0x290] sm:$0xfe] }
 0x335   : > { %v6396_v0 = vrot.slane %v6165_v59, 7  ;;  %v5268_v17 = vrot.slane %v5037_v57, 2  ;;  %v6724_v20 = vadd.f32 %v6723_v44, %v6610_v38  ;;  %v12594_v34 = vrot.slane %v10274_v16, 1 }
 0x336   : > { %v4414_v49 = vadd.f32 %v4318_v15, %v4118_v8  ;;  %v2538_v53 = vsel %vm2438_vm3, %v12593_v3, %v2537_v28  ;;  %v6397_v56 = vrot.slane %v10417_v1, 7  ;;  %v12595_v15 = vrot.slane %v10334_v51, 2 }
 0x337   : > { %v2754_v23 = vadd.f32 %v2538_v53, %v2138_v58  ;;  %v819_v62 = vmul.f32 %v7644_v39, %v633_v22  ;;  %v12596_v47 = vrot.slane %v10360_v30, 2  ;;  %v6817_v21 = vmul.f32 %v10125_v7, %v6724_v20 }
 0x338   : > { %v4869_v31 = vadd.f32 %v12594_v34, %v4414_v49  ;;  %v3903_v43 = vsel %vm2438_vm3, %v12595_v15, %v3902_v11  ;;  %v820_v45 = vmul.f32 %v7647_v40, %v746_v26  ;;  %v6398_v16 = vsel %vm6302_vm4, %v6396_v0, %v6397_v56  ;;  %v7211_v11 = vld [vmem:[%s7497_s28 + $0x18] sm:$0xff]  ;;  %v2853_v34 = vld [vmem:[#allocation2 + $0x2c0] sm:$0x80] }
 0x339   : > { %v3049_v13 = vadd.f32 %v2953_v5, %v2754_v23  ;;  %v5269_v58 = vsel %vm2438_vm3, %v12596_v47, %v5268_v17  ;;  %v889_v8 = vadd.f32 %v7650_v41, %v819_v62  ;;  %v1589_v5 = vmul.f32 %v12369_v14, %v1488_v32  ;;  %7134 = vmatmul.msk.f32.gmra.mxu3 %vm1216_vm1, %v6398_v16 }
 0x33a   : > { %v5484_v51 = vadd.f32 %v5267_v19, %v4869_v31  ;;  %v12597_v30 = vrot.slane %v10326_v55, 1  ;;  %v6853_v7 = vadd.f32 %v10134_v6, %v6817_v21  ;;  %v890_v24 = vadd.f32 %v7653_v42, %v820_v45 }
 0x33b   : > { %v1798_v59 = vmul.f32 %v12381_v12, %v1488_v32  ;;  %v953_v49 = vadd.f32 3.0, %v889_v8  ;;  %v10447_v19 = vmul.f32 %v12381_v12, %v1741_v54  ;;  %v2306_v3 = vmul.f32 %v12358_v10, %v2217_v46 }
 0x33c   : > { %v3504_v28 = vadd.f32 %v12597_v30, %v3049_v13  ;;  %v5586_v57 = vmul.f32 %v8072_v18, %v5484_v51  ;;  %v6885_v38 = vadd.f32 %v7211_v11, %v6853_v7  ;;  %v954_v55 = vadd.f32 3.0, %v890_v24 }
 0x33d   : > { %v1947_v44 = vrot.slane %v1798_v59, 1  ;;  %v1017_v0 = vmax.f32 %v953_v49, 0.0  ;;  %v12206_v23 = vrot.slane %v10447_v19, 1  ;;  %v10454_v17 = vmul.f32 %v12358_v10, %v1741_v54  ;;  %v3583_v59 = vld [vmem:[#allocation2 + $0x2d0] sm:$0xfe] }
 0x33e   : > { %v4119_v53 = vadd.f32 %v3903_v43, %v3504_v28  ;;  %v5688_v6 = vadd.f32 %v8117_v50, %v5586_v57  ;;  %6917 = vst.msk [vmem:[%s10164_s15 + $0x18] sm:$0xff] %vm432_vm0, %v6885_v38  ;;  %v1018_v22 = vmax.f32 %v954_v55, 0.0  ;;  %v2539_v32 = vrot.slane %v2306_v3, 2  ;;  %v10472_v3 = vld [vmem:[#allocation2 + $0x310] sm:$0xff] }
 0x33f   : > { %v2139_v26 = vadd.f32 %v1947_v44, %v1587_v2  ;;  %v1081_v15 = vmin.f32 %v1017_v0, 6.0  ;;  %v1950_v43 = vsel %vm1886_vm2, %v1947_v44, %v12206_v23  ;;  %v12205_v62 = vrot.slane %v10454_v17, 2  ;;  %v12599_v44 = vld [vmem:[#allocation19_spill] sm:$0xff] }
 0x340   : > { %v4415_v20 = vadd.f32 %v4319_v33, %v4119_v53  ;;  %v5784_v31 = vadd.f32 3.0, %v5688_v6  ;;  %v12598_v13 = vrot.slane %v10354_v9, 1  ;;  %v1082_v21 = vmin.f32 %v1018_v22, 6.0  ;;  %v12600_v22 = vld [vmem:[#allocation29_spill] sm:$0xff] }
 0x341   : > { %v2141_v45 = vadd.f32 %v1950_v43, %v1589_v5  ;;  %v2755_v33 = vadd.f32 %v2539_v32, %v2139_v26  ;;  %v1145_v46 = vmul.f32 %v1081_v15, %v889_v8  ;;  %v2542_v2 = vsel %vm2438_vm3, %v2539_v32, %v12205_v62  ;;  %v4219_v8 = vld [vmem:[#allocation2 + $0x300] sm:$0x80] }
 0x342   : > { %v4870_v47 = vadd.f32 %v12598_v13, %v4415_v20  ;;  %v5880_v54 = vmax.f32 %v5784_v31, 0.0  ;;  %v2954_v16 = vmul.f32 %v7788_v29, %v2853_v34  ;;  %v1146_v30 = vmul.f32 %v1082_v21, %v890_v24  ;;  %v12601_v34 = vld [vmem:[#allocation20_spill] sm:$0xff] }
 0x343   : > { %v2757_v28 = vadd.f32 %v2542_v2, %v2141_v45  ;;  %v2956_v7 = vmul.f32 %v10246_v35, %v7788_v29  ;;  %v1209_v57 = vmul.f32 0.16666667, %v1145_v46  ;;  %v3165_v5 = vmul.f32 %v10246_v35, %v12359_v4  ;;  %v10484_v35 = vld [vmem:[#allocation2 + $0x320] sm:$0xff] }
 0x344   : > { %v5485_v51 = vadd.f32 %v5269_v58, %v4870_v47  ;;  %v5976_v9 = vmin.f32 %v5880_v54, 6.0  ;;  %v3050_v49 = vadd.f32 %v2954_v16, %v2755_v33  ;;  %v1210_v11 = vmul.f32 0.16666667, %v1146_v30  ;;  %v12602_v33 = vld [vmem:[#allocation21_spill] sm:$0xff] }
 0x345   : > { %v3052_v38 = vadd.f32 %v2956_v7, %v2757_v28  ;;  %v10477_v58 = vmul.f32 %v10258_v60, %v12359_v4  ;;  %1419 = vst [vmem:[#allocation2 + $0x3e0] sm:$0xff] %v1209_v57  ;;  %v3313_v55 = vrot.slane %v3165_v5, 1  ;;  %v3672_v0 = vmul.f32 %v12599_v44, %v3583_v59  ;;  %v1487_v28 = vld [vmem:[#allocation2 + $0x288] sm:$0x80]  ;;  %v12603_v5 = vld [vmem:[#allocation16_spill] sm:$0xff] }
 0x346   : > { %v5587_v53 = vmul.f32 %v8163_v63, %v5485_v51  ;;  %v6072_v24 = vmul.f32 %v5976_v9, %v5688_v6  ;;  %v10482_v20 = vmul.f32 %v10258_v60, %v12599_v44  ;;  %1420 = vst.msk [vmem:[#allocation2 + $0x3e8] sm:$0xff] %vm1216_vm1, %v1210_v11  ;;  %v4320_v31 = vmul.f32 %v12601_v34, %v4219_v8  ;;  %v4949_v60 = vld [vmem:[#allocation2 + $0x310] sm:$0xfe] }
 0x347   : > { %v12201_v32 = vrot.slane %v10477_v58, 1  ;;  %v4322_v6 = vmul.f32 %v12601_v34, %v10472_v3  ;;  %v3505_v43 = vadd.f32 %v3313_v55, %v3050_v49  ;;  %v3904_v13 = vrot.slane %v3672_v0, 2  ;;  %v1489_v49 = vld [vmem:[#allocation2 + $0x298] sm:$0xff] }
 0x348   : > { %v5689_v26 = vadd.f32 %v12600_v22, %v5587_v53  ;;  %v6168_v15 = vmul.f32 0.16666667, %v6072_v24  ;;  %v12204_v47 = vrot.slane %v10482_v20, 2  ;;  %v4531_v54 = vmul.f32 %v12602_v33, %v10472_v3  ;;  %v2218_v0 = vld [vmem:[#allocation2 + $0x298] sm:$0xfe] }
 0x349   : > { %v3316_v45 = vsel %vm1886_vm2, %v3313_v55, %v12201_v32  ;;  %v10500_v46 = vmul.f32 %v12602_v33, %v10484_v35  ;;  %v4120_v30 = vadd.f32 %v3904_v13, %v3505_v43  ;;  %v5038_v57 = vmul.f32 %v12548_v52, %v4949_v60  ;;  %v1742_v55 = vld [vmem:[#allocation2 + $0x2a8] sm:$0xff] }
 0x34a   : > { %v5785_v21 = vadd.f32 3.0, %v5689_v26  ;;  %v6399_v2 = vrot.slane %v6168_v15, 7  ;;  %v3507_v16 = vadd.f32 %v3316_v45, %v3052_v38  ;;  %v3907_v51 = vsel %vm2438_vm3, %v3904_v13, %v12204_v47 }
 0x34b   : > { %v4679_v59 = vrot.slane %v4531_v54, 1  ;;  %v12198_v9 = vrot.slane %v10500_v46, 1  ;;  %v12604_v8 = vrot.slane %v12603_v5, 7  ;;  %v4416_v24 = vadd.f32 %v4320_v31, %v4120_v30  ;;  %v2854_v5 = vld [vmem:[#allocation2 + $0x2c8] sm:$0x80] }
 0x34c   : > { %v5881_v7 = vmax.f32 %v5785_v21, 0.0  ;;  %v4122_v11 = vadd.f32 %v3907_v51, %v3507_v16  ;;  %v10512_v38 = vmul.f32 %v12548_v52, %v10484_v35  ;;  %v5270_v13 = vrot.slane %v5038_v57, 2  ;;  %v12605_v16 = vld [vmem:[#allocation17_spill] sm:$0xff] }
 0x34d   : > { %v6400_v53 = vsel %vm6302_vm4, %v12604_v8, %v6399_v2  ;;  %v4682_v43 = vsel %vm1886_vm2, %v4679_v59, %v12198_v9  ;;  %v1588_v60 = vmul.f32 %v12384_v25, %v1487_v28  ;;  %v4871_v45 = vadd.f32 %v4679_v59, %v4416_v24 }
 0x34e   : > { %6657 = vmatmul.f32.gmra.mxu2 %v6400_v53  ;;  %v5977_v15 = vmin.f32 %v5881_v7, 6.0  ;;  %v4418_v21 = vadd.f32 %v4322_v6, %v4122_v11  ;;  %v12200_v54 = vrot.slane %v10512_v38, 2  ;;  %v1590_v31 = vmul.f32 %v12384_v25, %v1489_v49 }
 0x34f   : > { %v1799_v51 = vmul.f32 %v12605_v16, %v1489_v49  ;;  %v10522_v30 = vmul.f32 %v12605_v16, %v1742_v55  ;;  %v2307_v7 = vmul.f32 %v7882_v36, %v2218_v0  ;;  %v5486_v6 = vadd.f32 %v5270_v13, %v4871_v45 }
 0x350   : > { %v6073_v2 = vmul.f32 %v5977_v15, %v5689_v26  ;;  %v4873_v8 = vadd.f32 %v4682_v43, %v4418_v21  ;;  %v5273_v28 = vsel %vm2438_vm3, %v5270_v13, %v12200_v54  ;;  %v10529_v59 = vmul.f32 %v7882_v36, %v1742_v55  ;;  %v12606_v55 = vld [vmem:[#allocation26_spill] sm:$0xff] }
 0x351   : > { %v1948_v53 = vrot.slane %v1799_v51, 1  ;;  %v12202_v26 = vrot.slane %v10522_v30, 1  ;;  %v2540_v49 = vrot.slane %v2307_v7, 2  ;;  %v5588_v24 = vmul.f32 %v8072_v18, %v5486_v6 }
 0x352   : > { %v6169_v57 = vmul.f32 0.16666667, %v6073_v2  ;;  %v5488_v11 = vadd.f32 %v5273_v28, %v4873_v8  ;;  %v12199_v0 = vrot.slane %v10529_v59, 2  ;;  %v2955_v15 = vmul.f32 %v7989_v27, %v2854_v5  ;;  %v3584_v2 = vld [vmem:[#allocation2 + $0x2d8] sm:$0xfe] }
 0x353   : > { %v1952_v13 = vsel %vm1886_vm2, %v1948_v53, %v12202_v26  ;;  %v2140_v21 = vadd.f32 %v1948_v53, %v1588_v60  ;;  %v2957_v45 = vmul.f32 %v12606_v55, %v7989_v27  ;;  %v5690_v7 = vadd.f32 %v8117_v50, %v5588_v24  ;;  %v12608_v53 = vld [vmem:[#allocation18_spill] sm:$0xff] }
 0x354   : > { %v6401_v43 = vrot.slane %v6169_v57, 7  ;;  %v5590_v51 = vmul.f32 %v8072_v18, %v5488_v11  ;;  %v2142_v8 = vadd.f32 %v1952_v13, %v1590_v31  ;;  %v2544_v28 = vsel %vm2438_vm3, %v2540_v49, %v12199_v0  ;;  %v12607_v57 = vld [vmem:[#allocation25_spill] sm:$0xff]  ;;  %v4220_v0 = vld [vmem:[#allocation2 + $0x308] sm:$0x80] }
 0x355   : > { %v2756_v6 = vadd.f32 %v2540_v49, %v2140_v21  ;;  %v3166_v60 = vmul.f32 %v12606_v55, %v12607_v57  ;;  %v10552_v9 = vmul.f32 %v12608_v53, %v12607_v57  ;;  %v5786_v11 = vadd.f32 3.0, %v5690_v7 }
 0x356   : > { %v6402_v5 = vsel %vm6302_vm4, %v6397_v56, %v6401_v43  ;;  %v5692_v31 = vadd.f32 %v8117_v50, %v5590_v51  ;;  %v2758_v24 = vadd.f32 %v2544_v28, %v2142_v8  ;;  %v3673_v13 = vmul.f32 %v8060_v61, %v3584_v2  ;;  %v10562_v43 = vld [vmem:[#allocation2 + $0x318] sm:$0xff]  ;;  %v10564_v51 = vld [vmem:[#allocation2 + $0x328] sm:$0xff] }
 0x357   : > { %7135 = vmatmul.msk.f32.gmra.mxu3 %vm1216_vm1, %v6402_v5  ;;  %v3051_v1 = vadd.f32 %v2955_v15, %v2756_v6  ;;  %v3314_v54 = vrot.slane %v3166_v60, 1  ;;  %v12203_v56 = vrot.slane %v10552_v9, 1  ;;  %v10560_v49 = vmul.f32 %v12608_v53, %v8060_v61  ;;  %12609 = vst [vmem:[#allocation13_spill] sm:$0xff] %v10562_v43  ;;  %v4950_v6 = vld [vmem:[#allocation2 + $0x318] sm:$0xfe] }
 0x358   : > { %v5788_v21 = vadd.f32 3.0, %v5692_v31  ;;  %v5882_v55 = vmax.f32 %v5786_v11, 0.0  ;;  %v3053_v5 = vadd.f32 %v2957_v45, %v2758_v24  ;;  %v3905_v32 = vrot.slane %v3673_v13, 2  ;;  %12610 = vst [vmem:[#allocation14_spill] sm:$0xff] %v10564_v51  ;;  %v12611_v13 = vld [vmem:[#allocation27_spill] sm:$0xff] }
 0x359   : > { %v3318_v2 = vsel %vm1886_vm2, %v3314_v54, %v12203_v56  ;;  %v3506_v15 = vadd.f32 %v3314_v54, %v3051_v1  ;;  %v12207_v8 = vrot.slane %v10560_v49, 2  ;;  %v4321_v28 = vmul.f32 %v8098_v37, %v4220_v0 }
 0x35a   : > { %v5884_v60 = vmax.f32 %v5788_v21, 0.0  ;;  %v5978_v53 = vmin.f32 %v5882_v55, 6.0  ;;  %v3508_v26 = vadd.f32 %v3318_v2, %v3053_v5  ;;  %v4323_v11 = vmul.f32 %v8098_v37, %v10562_v43  ;;  %v6613_v5 = vpop.f32.mrf.mxu2  ;;  %v6726_v2 = vpop.f32.mrf.mxu3 }
 0x35b   : > { %v3909_v45 = vsel %vm2438_vm3, %v3905_v32, %v12207_v8  ;;  %v4121_v24 = vadd.f32 %v3905_v32, %v3506_v15  ;;  %v4532_v56 = vmul.f32 %v12611_v13, %v10562_v43  ;;  %v10580_v54 = vmul.f32 %v12611_v13, %v10564_v51  ;;  %v636_v15 = vpop.f32.mrf.mxu0 }
 0x35c   : > { %v5980_v0 = vmin.f32 %v5884_v60, 6.0  ;;  %v6074_v1 = vmul.f32 %v5978_v53, %v5690_v7  ;;  %v4123_v21 = vadd.f32 %v3909_v45, %v3508_v26  ;;  %v5039_v55 = vmul.f32 %v8153_v48, %v4950_v6  ;;  %v749_v60 = vpop.f32.mrf.mxu1  ;;  %v1490_v6 = vld [vmem:[#allocation2 + $0x2a0] sm:$0x7f] }
 0x35d   : > { %v4417_v47 = vadd.f32 %v4321_v28, %v4121_v24  ;;  %v4680_v62 = vrot.slane %v4532_v56, 1  ;;  %v12214_v23 = vrot.slane %v10580_v54, 1  ;;  %v10586_v32 = vmul.f32 %v8153_v48, %v10564_v51 }
 0x35e   : > { %v6076_v8 = vmul.f32 %v5980_v0, %v5692_v31  ;;  %v6170_v57 = vmul.f32 0.16666667, %v6074_v1  ;;  %v4419_v13 = vadd.f32 %v4323_v11, %v4123_v21  ;;  %v5271_v43 = vrot.slane %v5039_v55, 2  ;;  %v2219_v31 = vld [vmem:[#allocation2 + $0x2b0] sm:$0x1] }
 0x35f   : > { %v4684_v26 = vsel %vm1886_vm2, %v4680_v62, %v12214_v23  ;;  %v4872_v7 = vadd.f32 %v4680_v62, %v4417_v47  ;;  %v12215_v28 = vrot.slane %v10586_v32, 2  ;;  %v6727_v56 = vadd.f32 %v6726_v2, %v6613_v5  ;;  %v10601_v62 = vld [vmem:[%s11922_s8] ss:$0 sm:$0xff] }
 0x360   : > { %v10592_v53 = vmul.f32 0.16666667, %v6076_v8  ;;  %v6403_v45 = vrot.slane %v6170_v57, 7  ;;  %v4874_v24 = vadd.f32 %v4684_v26, %v4419_v13  ;;  %v821_v51 = vmul.f32 %v7644_v39, %v636_v15  ;;  %v3585_v26 = vld [vmem:[#allocation2 + $0x2f0] sm:$0x1] }
 0x361   : > { %v5275_v11 = vsel %vm2438_vm3, %v5271_v43, %v12215_v28  ;;  %v5487_v0 = vadd.f32 %v5271_v43, %v4872_v7  ;;  %v6818_v47 = vmul.f32 %v10601_v62, %v6727_v56  ;;  %v822_v8 = vmul.f32 %v7647_v40, %v749_v60  ;;  %v10612_v43 = vld [vmem:[%s11923_s9] ss:$0 sm:$0xff] }
 0x362   : > { %12612 = vst [vmem:[#allocation23_spill] sm:$0xff] %v10592_v53  ;;  %v12217_v57 = vrot.slane %v10592_v53, 7  ;;  %v5489_v13 = vadd.f32 %v5275_v11, %v4874_v24  ;;  %v891_v1 = vadd.f32 %v7650_v41, %v821_v51  ;;  %v1591_v21 = vmul.f32 %v12369_v14, %v1490_v6  ;;  %v2857_v60 = vld [vmem:[#allocation2 + $0x2e0] sm:$0x7f]  ;;  %v1491_v53 = vld [vmem:[#allocation2 + $0x2a8] sm:$0x7f] }
 0x363   : > { %v5589_v55 = vmul.f32 %v8163_v63, %v5487_v0  ;;  %v6854_v5 = vadd.f32 %v10612_v43, %v6818_v47  ;;  %v892_v2 = vadd.f32 %v7653_v42, %v822_v8  ;;  %v2310_v15 = vmul.f32 %v12358_v10, %v2219_v31  ;;  %v4223_v11 = vld [vmem:[#allocation2 + $0x320] sm:$0x7f] }
 0x364   : > { %v6405_v51 = vsel %vm6302_vm4, %v6403_v45, %v12217_v57  ;;  %v5591_v7 = vmul.f32 %v8163_v63, %v5489_v13  ;;  %v955_v56 = vadd.f32 3.0, %v891_v1  ;;  %v12613_v6 = vrot.slane %v10447_v19, 1  ;;  %v7214_v47 = vld [vmem:[%s7497_s28 + $0x20] sm:$0xff]  ;;  %v4951_v57 = vld [vmem:[#allocation2 + $0x330] sm:$0x1] }
 0x365   : > { %6660 = vmatmul.f32.gmra.mxu2 %v6405_v51  ;;  %v5691_v0 = vadd.f32 %v12600_v22, %v5589_v55  ;;  %v6886_v8 = vadd.f32 %v7214_v47, %v6854_v5  ;;  %v956_v31 = vadd.f32 3.0, %v892_v2  ;;  %v2545_v23 = vrot.slane %v2310_v15, 2 }
 0x366   : > { %v2143_v24 = vadd.f32 %v12613_v6, %v1591_v21  ;;  %v5693_v28 = vadd.f32 %v12600_v22, %v5591_v7  ;;  %v1019_v16 = vmax.f32 %v955_v56, 0.0  ;;  %v2958_v45 = vmul.f32 %v7788_v29, %v2857_v60  ;;  %v2220_v22 = vld [vmem:[#allocation2 + $0x2b8] sm:$0x1] }
 0x367   : > { %v3676_v13 = vmul.f32 %v12599_v44, %v3585_v26  ;;  %v5787_v19 = vadd.f32 3.0, %v5691_v0  ;;  %6918 = vst.msk [vmem:[%s10164_s15 + $0x20] sm:$0xff] %vm432_vm0, %v6886_v8  ;;  %v1020_v21 = vmax.f32 %v956_v31, 0.0  ;;  %v12614_v51 = vrot.slane %v10454_v17, 2 }
 0x368   : > { %v4324_v5 = vmul.f32 %v12601_v34, %v4223_v11  ;;  %v5789_v15 = vadd.f32 3.0, %v5693_v28  ;;  %v1083_v6 = vmin.f32 %v1019_v16, 6.0  ;;  %v5042_v26 = vmul.f32 %v12548_v52, %v4951_v57  ;;  %v1492_v11 = vld [vmem:[#allocation2 + $0x2c0] sm:$0x80]  ;;  %v4224_v57 = vld [vmem:[#allocation2 + $0x328] sm:$0x7f] }
 0x369   : > { %v2546_v55 = vsel %vm2438_vm3, %v12614_v51, %v2545_v23  ;;  %v3910_v56 = vrot.slane %v3676_v13, 2  ;;  %v5883_v47 = vmax.f32 %v5787_v19, 0.0  ;;  %v1084_v60 = vmin.f32 %v1020_v21, 6.0  ;;  %v2858_v51 = vld [vmem:[#allocation2 + $0x2e8] sm:$0x7f] }
 0x36a   : > { %v2759_v7 = vadd.f32 %v2546_v55, %v2143_v24  ;;  %v1592_v33 = vmul.f32 %v12384_v25, %v1491_v53  ;;  %v5885_v44 = vmax.f32 %v5789_v15, 0.0  ;;  %v1147_v8 = vmul.f32 %v1083_v6, %v891_v1  ;;  %v3586_v21 = vld [vmem:[#allocation2 + $0x2f8] sm:$0x1] }
 0x36b   : > { %v12615_v17 = vrot.slane %v10482_v20, 2  ;;  %v5979_v34 = vmin.f32 %v5883_v47, 6.0  ;;  %v1148_v16 = vmul.f32 %v1084_v60, %v892_v2  ;;  %v5276_v24 = vrot.slane %v5042_v26, 2  ;;  %v4952_v20 = vld [vmem:[#allocation2 + $0x338] sm:$0x1] }
 0x36c   : > { %v3054_v31 = vadd.f32 %v2958_v45, %v2759_v7  ;;  %v12616_v13 = vrot.slane %v10522_v30, 1  ;;  %v5981_v55 = vmin.f32 %v5885_v44, 6.0  ;;  %v1211_v53 = vmul.f32 0.16666667, %v1147_v8 }
 0x36d   : > { %v3911_v23 = vsel %vm2438_vm3, %v12615_v17, %v3910_v56  ;;  %v12617_v15 = vrot.slane %v10477_v58, 1  ;;  %v2311_v45 = vmul.f32 %v7882_v36, %v2220_v22  ;;  %v6075_v6 = vmul.f32 %v5979_v34, %v5691_v0  ;;  %v6616_v17 = vpop.f32.mrf.mxu2 }
 0x36e   : > { %v2144_v19 = vadd.f32 %v12616_v13, %v1592_v33  ;;  %v1212_v7 = vmul.f32 0.16666667, %v1148_v16  ;;  %v12618_v56 = vrot.slane %v10512_v38, 2  ;;  %v2959_v47 = vmul.f32 %v7989_v27, %v2858_v51  ;;  %1421 = vst [vmem:[#allocation2 + $0x410] sm:$0xff] %v1211_v53 }
 0x36f   : > { %v3509_v1 = vadd.f32 %v12617_v15, %v3054_v31  ;;  %v6077_v30 = vmul.f32 %v5981_v55, %v5693_v28  ;;  %v2547_v60 = vrot.slane %v2311_v45, 2  ;;  %v3677_v44 = vmul.f32 %v8060_v61, %v3586_v21  ;;  %v639_v21 = vpop.f32.mrf.mxu0  ;;  %v1494_v55 = vld [vmem:[#allocation2 + $0x2d0] sm:$0xff] }
 0x370   : > { %v5277_v2 = vsel %vm2438_vm3, %v12618_v56, %v5276_v24  ;;  %v6171_v26 = vmul.f32 0.16666667, %v6075_v6  ;;  %1422 = vst.msk [vmem:[#allocation2 + $0x418] sm:$0xff] %vm1216_vm1, %v1212_v7  ;;  %v4325_v58 = vmul.f32 %v8098_v37, %v4224_v57  ;;  %v5043_v22 = vmul.f32 %v8153_v48, %v4952_v20  ;;  %v752_v57 = vpop.f32.mrf.mxu1  ;;  %v1743_v56 = vld [vmem:[#allocation2 + $0x2e0] sm:$0xff] }
 0x371   : > { %v4124_v33 = vadd.f32 %v3911_v23, %v3509_v1  ;;  %v1593_v34 = vmul.f32 %v12369_v14, %v1492_v11  ;;  %v10653_v38 = vmul.f32 0.16666667, %v6077_v30  ;;  %v12619_v8 = vrot.slane %v10529_v59, 2  ;;  %v6729_v23 = vpop.f32.mrf.mxu3  ;;  %v2221_v30 = vld [vmem:[#allocation2 + $0x2d0] sm:$0xfe] }
 0x372   : > { %v3912_v31 = vrot.slane %v3677_v44, 2  ;;  %v6406_v51 = vrot.slane %v6171_v26, 7  ;;  %v5278_v24 = vrot.slane %v5043_v22, 2  ;;  %v6730_v13 = vadd.f32 %v6729_v23, %v6616_v17 }
 0x373   : > { %v4420_v0 = vadd.f32 %v4324_v5, %v4124_v33  ;;  %v2548_v28 = vsel %vm2438_vm3, %v12619_v8, %v2547_v60  ;;  %v6407_v53 = vrot.slane %v10653_v38, 7  ;;  %v12620_v11 = vrot.slane %v10500_v46, 1  ;;  %v7215_v8 = vld [vmem:[%s7497_s28 + $0x28] sm:$0xff] }
 0x374   : > { %v2760_v16 = vadd.f32 %v2548_v28, %v2144_v19  ;;  %v12621_v5 = vrot.slane %v10560_v49, 2  ;;  %v823_v1 = vmul.f32 %v7644_v39, %v639_v21  ;;  %v12622_v20 = vrot.slane %v10586_v32, 2 }
 0x375   : > { %v4875_v15 = vadd.f32 %v12620_v11, %v4420_v0  ;;  %v6819_v6 = vmul.f32 %v10601_v62, %v6730_v13  ;;  %v824_v7 = vmul.f32 %v7647_v40, %v752_v57  ;;  %v6408_v46 = vsel %vm6302_vm4, %v6406_v51, %v6407_v53  ;;  %v2859_v57 = vld [vmem:[#allocation2 + $0x300] sm:$0x80] }
 0x376   : > { %v3913_v59 = vsel %vm2438_vm3, %v12621_v5, %v3912_v31  ;;  %v3055_v45 = vadd.f32 %v2959_v47, %v2760_v16  ;;  %v5279_v19 = vsel %vm2438_vm3, %v12622_v20, %v5278_v24  ;;  %v893_v33 = vadd.f32 %v7650_v41, %v823_v1  ;;  %7136 = vmatmul.msk.f32.gmra.mxu3 %vm1216_vm1, %v6408_v46 }
 0x377   : > { %v5490_v49 = vadd.f32 %v5277_v2, %v4875_v15  ;;  %v1595_v39 = vmul.f32 %v12369_v14, %v1494_v55  ;;  %v12623_v32 = vrot.slane %v10552_v9, 1  ;;  %v6855_v60 = vadd.f32 %v10612_v43, %v6819_v6 }
 0x378   : > { %v894_v40 = vadd.f32 %v7653_v42, %v824_v7  ;;  %v1802_v44 = vmul.f32 %v12381_v12, %v1494_v55  ;;  %v957_v22 = vadd.f32 3.0, %v893_v33  ;;  %v10683_v2 = vmul.f32 %v12381_v12, %v1743_v56 }
 0x379   : > { %v3510_v47 = vadd.f32 %v12623_v32, %v3055_v45  ;;  %v5592_v26 = vmul.f32 %v8072_v18, %v5490_v49  ;;  %v2312_v41 = vmul.f32 %v12358_v10, %v2221_v30  ;;  %v6887_v28 = vadd.f32 %v7215_v8, %v6855_v60 }
 0x37a   : > { %v958_v9 = vadd.f32 3.0, %v894_v40  ;;  %v1953_v31 = vrot.slane %v1802_v44, 1  ;;  %v1021_v23 = vmax.f32 %v957_v22, 0.0  ;;  %v12231_v42 = vrot.slane %v10683_v2, 1 }
 0x37b   : > { %v4125_v0 = vadd.f32 %v3913_v59, %v3510_v47  ;;  %v5694_v17 = vadd.f32 %v8117_v50, %v5592_v26  ;;  %v10690_v51 = vmul.f32 %v12358_v10, %v1743_v56  ;;  %6919 = vst.msk [vmem:[%s10164_s15 + $0x28] sm:$0xff] %vm432_vm0, %v6887_v28  ;;  %v2549_v21 = vrot.slane %v2312_v41, 2  ;;  %v3587_v47 = vld [vmem:[#allocation2 + $0x310] sm:$0xfe] }
 0x37c   : > { %v1022_v24 = vmax.f32 %v958_v9, 0.0  ;;  %v2145_v13 = vadd.f32 %v1953_v31, %v1593_v34  ;;  %v1085_v11 = vmin.f32 %v1021_v23, 6.0  ;;  %v1956_v15 = vsel %vm1886_vm2, %v1953_v31, %v12231_v42  ;;  %v10708_v26 = vld [vmem:[#allocation2 + $0x350] sm:$0xff]  ;;  %v10720_v23 = vld [vmem:[#allocation2 + $0x360] sm:$0xff] }
 0x37d   : > { %v4421_v16 = vadd.f32 %v4325_v58, %v4125_v0  ;;  %v5790_v55 = vadd.f32 3.0, %v5694_v17  ;;  %v12229_v5 = vrot.slane %v10690_v51, 2  ;;  %v12624_v59 = vrot.slane %v10580_v54, 1  ;;  %v12625_v28 = vld [vmem:[#allocation19_spill] sm:$0xff] }
 0x37e   : > { %v1086_v45 = vmin.f32 %v1022_v24, 6.0  ;;  %v2147_v20 = vadd.f32 %v1956_v15, %v1595_v39  ;;  %v2761_v58 = vadd.f32 %v2549_v21, %v2145_v13  ;;  %v1149_v7 = vmul.f32 %v1085_v11, %v893_v33  ;;  %v4225_v33 = vld [vmem:[#allocation2 + $0x340] sm:$0x80] }
 0x37f   : > { %v4876_v1 = vadd.f32 %v12624_v59, %v4421_v16  ;;  %v5886_v6 = vmax.f32 %v5790_v55, 0.0  ;;  %v2552_v34 = vsel %vm2438_vm3, %v2549_v21, %v12229_v5  ;;  %v2960_v56 = vmul.f32 %v7788_v29, %v2859_v57  ;;  %v12626_v16 = vld [vmem:[#allocation29_spill] sm:$0xff]  ;;  %v12627_v21 = vld [vmem:[#allocation20_spill] sm:$0xff] }
 0x380   : > { %v1150_v46 = vmul.f32 %v1086_v45, %v894_v40  ;;  %v2763_v49 = vadd.f32 %v2552_v34, %v2147_v20  ;;  %v2962_v32 = vmul.f32 %v10472_v3, %v7788_v29  ;;  %v1213_v60 = vmul.f32 0.16666667, %v1149_v7 }
 0x381   : > { %v5491_v30 = vadd.f32 %v5279_v19, %v4876_v1  ;;  %v5982_v54 = vmin.f32 %v5886_v6, 6.0  ;;  %v3056_v44 = vadd.f32 %v2960_v56, %v2761_v58  ;;  %v3169_v39 = vmul.f32 %v10472_v3, %v12359_v4  ;;  %v4953_v1 = vld [vmem:[#allocation2 + $0x350] sm:$0xfe]  ;;  %v12628_v58 = vld [vmem:[#allocation21_spill] sm:$0xff] }
 0x382   : > { %v1214_v41 = vmul.f32 0.16666667, %v1150_v46  ;;  %v3058_v0 = vadd.f32 %v2962_v32, %v2763_v49  ;;  %v10713_v19 = vmul.f32 %v10484_v35, %v12359_v4  ;;  %1423 = vst [vmem:[#allocation2 + $0x420] sm:$0xff] %v1213_v60  ;;  %v3678_v9 = vmul.f32 %v12625_v28, %v3587_v47  ;;  %v1493_v49 = vld [vmem:[#allocation2 + $0x2c8] sm:$0x80] }
 0x383   : > { %v5593_v22 = vmul.f32 %v8163_v63, %v5491_v30  ;;  %v6078_v40 = vmul.f32 %v5982_v54, %v5694_v17  ;;  %v3319_v8 = vrot.slane %v3169_v39, 1  ;;  %v10718_v31 = vmul.f32 %v10484_v35, %v12625_v28  ;;  %v12629_v39 = vld [vmem:[#allocation23_spill] sm:$0xff] }
 0x384   : > { %1424 = vst.msk [vmem:[#allocation2 + $0x428] sm:$0xff] %vm1216_vm1, %v1214_v41  ;;  %v12225_v13 = vrot.slane %v10713_v19, 1  ;;  %v4326_v57 = vmul.f32 %v12627_v21, %v4225_v33  ;;  %v4328_v17 = vmul.f32 %v12627_v21, %v10708_v26  ;;  %v3914_v15 = vrot.slane %v3678_v9, 2  ;;  %v2222_v9 = vld [vmem:[#allocation2 + $0x2d8] sm:$0xfe] }
 0x385   : > { %v5695_v24 = vadd.f32 %v12626_v16, %v5593_v22  ;;  %v6174_v55 = vmul.f32 0.16666667, %v6078_v40  ;;  %v3511_v11 = vadd.f32 %v3319_v8, %v3056_v44  ;;  %v12228_v59 = vrot.slane %v10718_v31, 2  ;;  %v1495_v44 = vld [vmem:[#allocation2 + $0x2d8] sm:$0xff] }
 0x386   : > { %v3322_v20 = vsel %vm1886_vm2, %v3319_v8, %v12225_v13  ;;  %v4535_v6 = vmul.f32 %v12628_v58, %v10708_v26  ;;  %v10736_v7 = vmul.f32 %v12628_v58, %v10720_v23  ;;  %v5044_v60 = vmul.f32 %v12548_v52, %v4953_v1  ;;  %v1744_v8 = vld [vmem:[#allocation2 + $0x2e8] sm:$0xff] }
 0x387   : > { %v5791_v45 = vadd.f32 3.0, %v5695_v24  ;;  %v6409_v34 = vrot.slane %v6174_v55, 7  ;;  %v3513_v56 = vadd.f32 %v3322_v20, %v3058_v0  ;;  %v3917_v30 = vsel %vm2438_vm3, %v3914_v15, %v12228_v59 }
 0x388   : > { %v4126_v46 = vadd.f32 %v3914_v15, %v3511_v11  ;;  %v4685_v47 = vrot.slane %v4535_v6, 1  ;;  %v12223_v54 = vrot.slane %v10736_v7, 1  ;;  %v12630_v33 = vrot.slane %v12629_v39, 7  ;;  %v2860_v39 = vld [vmem:[#allocation2 + $0x308] sm:$0x80] }
 0x389   : > { %v5887_v32 = vmax.f32 %v5791_v45, 0.0  ;;  %v4128_v41 = vadd.f32 %v3917_v30, %v3513_v56  ;;  %v10748_v0 = vmul.f32 %v12548_v52, %v10720_v23  ;;  %v5280_v15 = vrot.slane %v5044_v60, 2  ;;  %v12631_v56 = vld [vmem:[#allocation17_spill] sm:$0xff] }
 0x38a   : > { %v6410_v22 = vsel %vm6302_vm4, %v12630_v33, %v6409_v34  ;;  %v4422_v40 = vadd.f32 %v4326_v57, %v4126_v46  ;;  %v4688_v11 = vsel %vm1886_vm2, %v4685_v47, %v12223_v54  ;;  %v1594_v1 = vmul.f32 %v12384_v25, %v1493_v49 }
 0x38b   : > { %6663 = vmatmul.f32.gmra.mxu2 %v6410_v22  ;;  %v5983_v55 = vmin.f32 %v5887_v32, 6.0  ;;  %v4424_v45 = vadd.f32 %v4328_v17, %v4128_v41  ;;  %v12227_v6 = vrot.slane %v10748_v0, 2  ;;  %v1596_v57 = vmul.f32 %v12384_v25, %v1495_v44 }
 0x38c   : > { %v4877_v20 = vadd.f32 %v4685_v47, %v4422_v40  ;;  %v1803_v30 = vmul.f32 %v12631_v56, %v1495_v44  ;;  %v10758_v46 = vmul.f32 %v12631_v56, %v1744_v8  ;;  %v2313_v32 = vmul.f32 %v7882_v36, %v2222_v9 }
 0x38d   : > { %v6079_v34 = vmul.f32 %v5983_v55, %v5695_v24  ;;  %v4879_v33 = vadd.f32 %v4688_v11, %v4424_v45  ;;  %v5283_v49 = vsel %vm2438_vm3, %v5280_v15, %v12227_v6  ;;  %v10765_v47 = vmul.f32 %v7882_v36, %v1744_v8  ;;  %v12632_v8 = vld [vmem:[#allocation13_spill] sm:$0xff] }
 0x38e   : > { %v5492_v17 = vadd.f32 %v5280_v15, %v4877_v20  ;;  %v1954_v22 = vrot.slane %v1803_v30, 1  ;;  %v12226_v24 = vrot.slane %v10758_v46, 1  ;;  %v2550_v44 = vrot.slane %v2313_v32, 2 }
 0x38f   : > { %v6175_v60 = vmul.f32 0.16666667, %v6079_v34  ;;  %v5494_v41 = vadd.f32 %v5283_v49, %v4879_v33  ;;  %v12224_v9 = vrot.slane %v10765_v47, 2  ;;  %v2961_v55 = vmul.f32 %v7989_v27, %v2860_v39  ;;  %v3588_v34 = vld [vmem:[#allocation2 + $0x318] sm:$0xfe] }
 0x390   : > { %v5594_v40 = vmul.f32 %v8072_v18, %v5492_v17  ;;  %v1958_v15 = vsel %vm1886_vm2, %v1954_v22, %v12226_v24  ;;  %v2146_v45 = vadd.f32 %v1954_v22, %v1594_v1  ;;  %v2963_v20 = vmul.f32 %v12632_v8, %v7989_v27  ;;  %v12634_v22 = vld [vmem:[#allocation14_spill] sm:$0xff] }
 0x391   : > { %v6411_v11 = vrot.slane %v6175_v60, 7  ;;  %v5596_v30 = vmul.f32 %v8072_v18, %v5494_v41  ;;  %v2148_v33 = vadd.f32 %v1958_v15, %v1596_v57  ;;  %v2554_v49 = vsel %vm2438_vm3, %v2550_v44, %v12224_v9  ;;  %v12633_v60 = vld [vmem:[#allocation25_spill] sm:$0xff]  ;;  %v4226_v9 = vld [vmem:[#allocation2 + $0x348] sm:$0x80] }
 0x392   : > { %v5696_v32 = vadd.f32 %v8117_v50, %v5594_v40  ;;  %v2762_v17 = vadd.f32 %v2550_v44, %v2146_v45  ;;  %v3170_v1 = vmul.f32 %v12632_v8, %v12633_v60  ;;  %v10788_v54 = vmul.f32 %v12634_v22, %v12633_v60 }
 0x393   : > { %v6412_v39 = vsel %vm6302_vm4, %v6407_v53, %v6411_v11  ;;  %v5698_v57 = vadd.f32 %v8117_v50, %v5596_v30  ;;  %v2764_v40 = vadd.f32 %v2554_v49, %v2148_v33  ;;  %v3679_v15 = vmul.f32 %v8060_v61, %v3588_v34  ;;  %v10798_v11 = vld [vmem:[#allocation2 + $0x358] sm:$0xff]  ;;  %v10800_v30 = vld [vmem:[#allocation2 + $0x368] sm:$0xff] }
 0x394   : > { %7137 = vmatmul.msk.f32.gmra.mxu3 %vm1216_vm1, %v6412_v39  ;;  %v5792_v41 = vadd.f32 3.0, %v5696_v32  ;;  %v3057_v38 = vadd.f32 %v2961_v55, %v2762_v17  ;;  %v3320_v13 = vrot.slane %v3170_v1, 1  ;;  %v12230_v53 = vrot.slane %v10788_v54, 1  ;;  %12635 = vst [vmem:[#allocation22_spill] sm:$0xff] %v10798_v11  ;;  %v4954_v17 = vld [vmem:[#allocation2 + $0x358] sm:$0xfe] }
 0x395   : > { %v10796_v44 = vmul.f32 %v12634_v22, %v8060_v61  ;;  %v5794_v45 = vadd.f32 3.0, %v5698_v57  ;;  %v3059_v39 = vadd.f32 %v2963_v20, %v2764_v40  ;;  %v3915_v6 = vrot.slane %v3679_v15, 2  ;;  %12636 = vst [vmem:[#allocation15_spill] sm:$0xff] %v10800_v30  ;;  %v12637_v15 = vld [vmem:[#allocation27_spill] sm:$0xff] }
 0x396   : > { %v5888_v24 = vmax.f32 %v5792_v41, 0.0  ;;  %v3324_v34 = vsel %vm1886_vm2, %v3320_v13, %v12230_v53  ;;  %v3512_v55 = vadd.f32 %v3320_v13, %v3057_v38  ;;  %v4327_v49 = vmul.f32 %v8098_v37, %v4226_v9 }
 0x397   : > { %v12234_v33 = vrot.slane %v10796_v44, 2  ;;  %v5890_v1 = vmax.f32 %v5794_v45, 0.0  ;;  %v3514_v5 = vadd.f32 %v3324_v34, %v3059_v39  ;;  %v4329_v41 = vmul.f32 %v8098_v37, %v10798_v11  ;;  %v6619_v39 = vpop.f32.mrf.mxu2  ;;  %v6732_v34 = vpop.f32.mrf.mxu3 }
 0x398   : > { %v5984_v59 = vmin.f32 %v5888_v24, 6.0  ;;  %v4127_v40 = vadd.f32 %v3915_v6, %v3512_v55  ;;  %v4536_v53 = vmul.f32 %v12637_v15, %v10798_v11  ;;  %v10816_v13 = vmul.f32 %v12637_v15, %v10800_v30  ;;  %v1496_v55 = vld [vmem:[#allocation2 + $0x2e0] sm:$0x7f] }
 0x399   : > { %v3919_v20 = vsel %vm2438_vm3, %v3915_v6, %v12234_v33  ;;  %v5986_v9 = vmin.f32 %v5890_v1, 6.0  ;;  %v5045_v24 = vmul.f32 %v8153_v48, %v4954_v17  ;;  %v10822_v6 = vmul.f32 %v8153_v48, %v10800_v30  ;;  %v2223_v1 = vld [vmem:[#allocation2 + $0x2f0] sm:$0x1] }
 0x39a   : > { %v6080_v38 = vmul.f32 %v5984_v59, %v5696_v32  ;;  %v4129_v45 = vadd.f32 %v3919_v20, %v3514_v5  ;;  %v4423_v42 = vadd.f32 %v4327_v49, %v4127_v40  ;;  %v4686_v60 = vrot.slane %v4536_v53, 1  ;;  %v2863_v49 = vld [vmem:[#allocation2 + $0x320] sm:$0x7f] }
 0x39b   : > { %v12242_v22 = vrot.slane %v10816_v13, 1  ;;  %v6082_v33 = vmul.f32 %v5986_v9, %v5698_v57  ;;  %v5281_v56 = vrot.slane %v5045_v24, 2  ;;  %v12243_v32 = vrot.slane %v10822_v6, 2  ;;  %v3589_v57 = vld [vmem:[#allocation2 + $0x330] sm:$0x1] }
 0x39c   : > { %v6176_v11 = vmul.f32 0.16666667, %v6080_v38  ;;  %v4425_v15 = vadd.f32 %v4329_v41, %v4129_v45  ;;  %v4878_v59 = vadd.f32 %v4686_v60, %v4423_v42  ;;  %v6733_v53 = vadd.f32 %v6732_v34, %v6619_v39  ;;  %v4955_v45 = vld [vmem:[#allocation2 + $0x370] sm:$0x1] }
 0x39d   : > { %v4690_v5 = vsel %vm1886_vm2, %v4686_v60, %v12242_v22  ;;  %v10828_v17 = vmul.f32 0.16666667, %v6082_v33  ;;  %v1597_v30 = vmul.f32 %v12369_v14, %v1496_v55  ;;  %v5285_v41 = vsel %vm2438_vm3, %v5281_v56, %v12243_v32  ;;  %v4229_v60 = vld [vmem:[#allocation2 + $0x360] sm:$0x7f]  ;;  %v4230_v22 = vld [vmem:[#allocation2 + $0x368] sm:$0x7f] }
 0x39e   : > { %v6413_v20 = vrot.slane %v6176_v11, 7  ;;  %v4880_v40 = vadd.f32 %v4690_v5, %v4425_v15  ;;  %v5493_v9 = vadd.f32 %v5281_v56, %v4878_v59  ;;  %v6820_v38 = vmul.f32 %v10601_v62, %v6733_v53  ;;  %v1497_v59 = vld [vmem:[#allocation2 + $0x2e8] sm:$0x7f] }
 0x39f   : > { %v2316_v42 = vmul.f32 %v12358_v10, %v2223_v1  ;;  %v12241_v24 = vrot.slane %v10828_v17, 7  ;;  %v12638_v11 = vrot.slane %v10683_v2, 1  ;;  %v2964_v39 = vmul.f32 %v7788_v29, %v2863_v49  ;;  %v2224_v49 = vld [vmem:[#allocation2 + $0x2f8] sm:$0x1] }
 0x3a0   : > { %v5495_v33 = vadd.f32 %v5285_v41, %v4880_v40  ;;  %v5595_v34 = vmul.f32 %v8163_v63, %v5493_v9  ;;  %v6856_v55 = vadd.f32 %v10612_v43, %v6820_v38  ;;  %v3682_v5 = vmul.f32 %v12625_v28, %v3589_v57  ;;  %v2864_v40 = vld [vmem:[#allocation2 + $0x328] sm:$0x7f]  ;;  %v7216_v9 = vld [vmem:[%s7497_s28 + $0x30] sm:$0xff] }
 0x3a1   : > { %v2149_v15 = vadd.f32 %v12638_v11, %v1597_v30  ;;  %v2555_v56 = vrot.slane %v2316_v42, 2  ;;  %v6415_v1 = vsel %vm6302_vm4, %v6413_v20, %v12241_v24  ;;  %v4330_v2 = vmul.f32 %v12627_v21, %v4229_v60 }
 0x3a2   : > { %v5597_v53 = vmul.f32 %v8163_v63, %v5495_v33  ;;  %v5048_v30 = vmul.f32 %v12548_v52, %v4955_v45  ;;  %6666 = vmatmul.f32.gmra.mxu2 %v6415_v1  ;;  %v5697_v41 = vadd.f32 %v12626_v16, %v5595_v34  ;;  %v6888_v38 = vadd.f32 %v7216_v9, %v6856_v55  ;;  %v3590_v45 = vld [vmem:[#allocation2 + $0x338] sm:$0x1]  ;;  %v1498_v1 = vld [vmem:[#allocation2 + $0x300] sm:$0x80] }
 0x3a3   : > { %v12639_v57 = vrot.slane %v10690_v51, 2  ;;  %v3920_v11 = vrot.slane %v3682_v5, 2  ;;  %v1598_v60 = vmul.f32 %v12384_v25, %v1497_v59  ;;  %v12640_v34 = vrot.slane %v10718_v31, 2  ;;  %v4956_v5 = vld [vmem:[#allocation2 + $0x378] sm:$0x1] }
 0x3a4   : > { %v5699_v20 = vadd.f32 %v12626_v16, %v5597_v53  ;;  %v5286_v24 = vrot.slane %v5048_v30, 2  ;;  %v5793_v32 = vadd.f32 3.0, %v5697_v41  ;;  %6920 = vst.msk [vmem:[%s10164_s15 + $0x30] sm:$0xff] %vm432_vm0, %v6888_v38  ;;  %v2317_v51 = vmul.f32 %v7882_v36, %v2224_v49 }
 0x3a5   : > { %v2556_v42 = vsel %vm2438_vm3, %v12639_v57, %v2555_v56  ;;  %v3921_v55 = vsel %vm2438_vm3, %v12640_v34, %v3920_v11  ;;  %v2965_v56 = vmul.f32 %v7989_v27, %v2864_v40  ;;  %v12641_v30 = vrot.slane %v10748_v0, 2 }
 0x3a6   : > { %v2765_v33 = vadd.f32 %v2556_v42, %v2149_v15  ;;  %v5795_v53 = vadd.f32 3.0, %v5699_v20  ;;  %v12642_v9 = vrot.slane %v10758_v46, 1  ;;  %v5889_v38 = vmax.f32 %v5793_v32, 0.0  ;;  %v6622_v32 = vpop.f32.mrf.mxu2 }
 0x3a7   : > { %v5287_v59 = vsel %vm2438_vm3, %v12641_v30, %v5286_v24  ;;  %v2557_v42 = vrot.slane %v2317_v51, 2  ;;  %v3683_v31 = vmul.f32 %v8060_v61, %v3590_v45  ;;  %v4331_v11 = vmul.f32 %v8098_v37, %v4230_v22 }
 0x3a8   : > { %v3060_v15 = vadd.f32 %v2964_v39, %v2765_v33  ;;  %v2150_v57 = vadd.f32 %v12642_v9, %v1598_v60  ;;  %v5891_v49 = vmax.f32 %v5795_v53, 0.0  ;;  %v12643_v40 = vrot.slane %v10713_v19, 1  ;;  %v6735_v60 = vpop.f32.mrf.mxu3  ;;  %v2225_v9 = vld [vmem:[#allocation2 + $0x310] sm:$0xfe] }
 0x3a9   : > { %v5049_v27 = vmul.f32 %v8153_v48, %v4956_v5  ;;  %v1599_v39 = vmul.f32 %v12369_v14, %v1498_v1  ;;  %v5985_v0 = vmin.f32 %v5889_v38, 6.0  ;;  %v12644_v24 = vrot.slane %v10765_v47, 2 }
 0x3aa   : > { %v3515_v34 = vadd.f32 %v12643_v40, %v3060_v15  ;;  %v3922_v33 = vrot.slane %v3683_v31, 2  ;;  %v1601_v45 = vmul.f32 %v10472_v3, %v12369_v14  ;;  %v5987_v22 = vmin.f32 %v5891_v49, 6.0 }
 0x3ab   : > { %v2558_v46 = vsel %vm2438_vm3, %v12644_v24, %v2557_v42  ;;  %v5288_v19 = vrot.slane %v5049_v27, 2  ;;  %v6081_v15 = vmul.f32 %v5985_v0, %v5697_v41  ;;  %v12645_v5 = vrot.slane %v10796_v44, 2 }
 0x3ac   : > { %v4130_v51 = vadd.f32 %v3921_v55, %v3515_v34  ;;  %v2766_v53 = vadd.f32 %v2558_v46, %v2150_v57  ;;  %v6736_v30 = vadd.f32 %v6735_v60, %v6622_v32  ;;  %v1806_v47 = vmul.f32 %v10472_v3, %v12381_v12  ;;  %v2865_v34 = vld [vmem:[#allocation2 + $0x340] sm:$0x80] }
 0x3ad   : > { %v3923_v1 = vsel %vm2438_vm3, %v12645_v5, %v3922_v33  ;;  %v6083_v38 = vmul.f32 %v5987_v22, %v5699_v20  ;;  %v12646_v40 = vrot.slane %v10822_v6, 2  ;;  %v6177_v55 = vmul.f32 0.16666667, %v6081_v15 }
 0x3ae   : > { %v4426_v42 = vadd.f32 %v4330_v2, %v4130_v51  ;;  %v3061_v31 = vadd.f32 %v2965_v56, %v2766_v53  ;;  %v6821_v27 = vmul.f32 %v10601_v62, %v6736_v30  ;;  %v10890_v44 = vmul.f32 %v10484_v35, %v12381_v12 }
 0x3af   : > { %v5289_v49 = vsel %vm2438_vm3, %v12646_v40, %v5288_v19  ;;  %v1959_v41 = vrot.slane %v1806_v47, 1  ;;  %v10892_v57 = vmul.f32 0.16666667, %v6083_v38  ;;  %v12647_v3 = vrot.slane %v10736_v7, 1  ;;  %v3591_v19 = vld [vmem:[#allocation2 + $0x350] sm:$0xfe] }
 0x3b0   : > { %v12648_v2 = vrot.slane %v10788_v54, 1  ;;  %v2318_v6 = vmul.f32 %v12358_v10, %v2225_v9  ;;  %v6416_v0 = vrot.slane %v6177_v55, 7  ;;  %v6857_v62 = vadd.f32 %v10612_v43, %v6821_v27  ;;  %v7217_v54 = vld [vmem:[%s7497_s28 + $0x38] sm:$0xff] }
 0x3b1   : > { %v4881_v20 = vadd.f32 %v12647_v3, %v4426_v42  ;;  %v12254_v24 = vrot.slane %v10890_v44, 1  ;;  %v2151_v46 = vadd.f32 %v1959_v41, %v1599_v39  ;;  %v6417_v33 = vrot.slane %v10892_v57, 7 }
 0x3b2   : > { %v3516_v56 = vadd.f32 %v12648_v2, %v3061_v31  ;;  %v10904_v7 = vmul.f32 %v10484_v35, %v12358_v10  ;;  %v6889_v22 = vadd.f32 %v7217_v54, %v6857_v62  ;;  %v2559_v53 = vrot.slane %v2318_v6, 2  ;;  %v4231_v31 = vld [vmem:[#allocation2 + $0x380] sm:$0x80] }
 0x3b3   : > { %v5496_v32 = vadd.f32 %v5287_v59, %v4881_v20  ;;  %v1962_v51 = vsel %vm1886_vm2, %v1959_v41, %v12254_v24  ;;  %v2966_v43 = vmul.f32 %v7788_v29, %v2865_v34  ;;  %v6418_v39 = vsel %vm6302_vm4, %v6416_v0, %v6417_v33 }
 0x3b4   : > { %v4131_v60 = vadd.f32 %v3923_v1, %v3516_v56  ;;  %v2153_v5 = vadd.f32 %v1962_v51, %v1601_v45  ;;  %7138 = vmatmul.msk.f32.gmra.mxu3 %vm1216_vm1, %v6418_v39  ;;  %6921 = vst.msk [vmem:[%s10164_s15 + $0x38] sm:$0xff] %vm432_vm0, %v6889_v22  ;;  %v12253_v35 = vrot.slane %v10904_v7, 2  ;;  %v2767_v1 = vadd.f32 %v2559_v53, %v2151_v46  ;;  %v10939_v56 = vld [vmem:[#allocation2 + $0x390] sm:$0xff]  ;;  %v10943_v46 = vld [vmem:[#allocation2 + $0x3a0] sm:$0xff] }
 0x3b5   : > { %v5598_v59 = vmul.f32 %v8072_v18, %v5496_v32  ;;  %v2968_v30 = vmul.f32 %v10708_v26, %v7788_v29  ;;  %v3173_v47 = vmul.f32 %v10708_v26, %v12359_v4  ;;  %v12649_v38 = vrot.slane %v10816_v13, 1  ;;  %v4957_v22 = vld [vmem:[#allocation2 + $0x390] sm:$0xfe] }
 0x3b6   : > { %v4427_v15 = vadd.f32 %v4331_v11, %v4131_v60  ;;  %v10928_v11 = vmul.f32 %v10720_v23, %v12359_v4  ;;  %v3684_v45 = vmul.f32 %v12625_v28, %v3591_v19  ;;  %v2562_v40 = vsel %vm2438_vm3, %v2559_v53, %v12253_v35  ;;  %v2227_v35 = vld [vmem:[#allocation2 + $0x330] sm:$0x1] }
 0x3b7   : > { %v5700_v9 = vadd.f32 %v8117_v50, %v5598_v59  ;;  %v3062_v55 = vadd.f32 %v2966_v43, %v2767_v1  ;;  %v3325_v27 = vrot.slane %v3173_v47, 1  ;;  %v10936_v41 = vmul.f32 %v10720_v23, %v12625_v28  ;;  %v1499_v1 = vld [vmem:[#allocation2 + $0x308] sm:$0x80] }
 0x3b8   : > { %v4882_v42 = vadd.f32 %v12649_v38, %v4427_v15  ;;  %v2769_v20 = vadd.f32 %v2562_v40, %v2153_v5  ;;  %v12248_v2 = vrot.slane %v10928_v11, 1  ;;  %v3924_v34 = vrot.slane %v3684_v45, 2 }
 0x3b9   : > { %v5796_v3 = vadd.f32 3.0, %v5700_v9  ;;  %v3517_v6 = vadd.f32 %v3325_v27, %v3062_v55  ;;  %v12252_v0 = vrot.slane %v10936_v41, 2  ;;  %v4332_v62 = vmul.f32 %v12627_v21, %v4231_v31 }
 0x3ba   : > { %v5497_v13 = vadd.f32 %v5289_v49, %v4882_v42  ;;  %v3064_v54 = vadd.f32 %v2968_v30, %v2769_v20  ;;  %v3328_v49 = vsel %vm1886_vm2, %v3325_v27, %v12248_v2  ;;  %v4334_v43 = vmul.f32 %v12627_v21, %v10939_v56 }
 0x3bb   : > { %v5892_v32 = vmax.f32 %v5796_v3, 0.0  ;;  %v3927_v51 = vsel %vm2438_vm3, %v3924_v34, %v12252_v0  ;;  %v4132_v53 = vadd.f32 %v3924_v34, %v3517_v6  ;;  %v4539_v19 = vmul.f32 %v12628_v58, %v10939_v56 }
 0x3bc   : > { %v5599_v60 = vmul.f32 %v8163_v63, %v5497_v13  ;;  %v3519_v15 = vadd.f32 %v3328_v49, %v3064_v54  ;;  %v10959_v5 = vmul.f32 %v12628_v58, %v10943_v46  ;;  %v5050_v38 = vmul.f32 %v12548_v52, %v4957_v22  ;;  %v12650_v22 = vld [vmem:[#allocation17_spill] sm:$0xff] }
 0x3bd   : > { %v5988_v39 = vmin.f32 %v5892_v32, 6.0  ;;  %v4428_v30 = vadd.f32 %v4332_v62, %v4132_v53  ;;  %v4691_v47 = vrot.slane %v4539_v19, 1  ;;  %v10964_v42 = vmul.f32 %v12548_v52, %v10943_v46 }
 0x3be   : > { %v5701_v59 = vadd.f32 %v12626_v16, %v5599_v60  ;;  %v4134_v40 = vadd.f32 %v3927_v51, %v3519_v15  ;;  %v12246_v55 = vrot.slane %v10959_v5, 1  ;;  %v5290_v3 = vrot.slane %v5050_v38, 2  ;;  %v2226_v60 = vld [vmem:[#allocation2 + $0x318] sm:$0xfe] }
 0x3bf   : > { %v6084_v45 = vmul.f32 %v5988_v39, %v5700_v9  ;;  %v4883_v27 = vadd.f32 %v4691_v47, %v4428_v30  ;;  %v12251_v13 = vrot.slane %v10964_v42, 2  ;;  %v1600_v20 = vmul.f32 %v12384_v25, %v1499_v1 }
 0x3c0   : > { %v5797_v31 = vadd.f32 3.0, %v5701_v59  ;;  %v4430_v62 = vadd.f32 %v4334_v43, %v4134_v40  ;;  %v4694_v32 = vsel %vm1886_vm2, %v4691_v47, %v12246_v55  ;;  %v1602_v49 = vmul.f32 %v12632_v8, %v12384_v25  ;;  %v12651_v43 = vld [vmem:[#allocation14_spill] sm:$0xff] }
 0x3c1   : > { %v6180_v6 = vmul.f32 0.16666667, %v6084_v45  ;;  %v5293_v9 = vsel %vm2438_vm3, %v5290_v3, %v12251_v13  ;;  %v5498_v54 = vadd.f32 %v5290_v3, %v4883_v27  ;;  %v1807_v51 = vmul.f32 %v12632_v8, %v12650_v22  ;;  %v2866_v45 = vld [vmem:[#allocation2 + $0x348] sm:$0x80]  ;;  %v6738_v13 = vpop.f32.mrf.mxu3 }
 0x3c2   : > { %v5893_v34 = vmax.f32 %v5797_v31, 0.0  ;;  %v4885_v39 = vadd.f32 %v4694_v32, %v4430_v62  ;;  %v10981_v15 = vmul.f32 %v12651_v43, %v12650_v22  ;;  %v2319_v47 = vmul.f32 %v7882_v36, %v2226_v60  ;;  %v4232_v55 = vld [vmem:[#allocation2 + $0x388] sm:$0x80] }
 0x3c3   : > { %v6419_v53 = vrot.slane %v6180_v6, 7  ;;  %v5600_v1 = vmul.f32 %v8072_v18, %v5498_v54  ;;  %v1960_v30 = vrot.slane %v1807_v51, 1  ;;  %v10987_v38 = vmul.f32 %v12651_v43, %v7882_v36  ;;  %v12653_v51 = vld [vmem:[#allocation24_spill] sm:$0xff] }
 0x3c4   : > { %v5989_v19 = vmin.f32 %v5893_v34, 6.0  ;;  %v12652_v31 = vrot.slane %v10828_v17, 7  ;;  %v5500_v27 = vadd.f32 %v5293_v9, %v4885_v39  ;;  %v12249_v3 = vrot.slane %v10981_v15, 1 }
 0x3c5   : > { %v5702_v6 = vadd.f32 %v8117_v50, %v5600_v1  ;;  %v2152_v34 = vadd.f32 %v1960_v30, %v1600_v20  ;;  %v2560_v62 = vrot.slane %v2319_v47, 2  ;;  %v12247_v32 = vrot.slane %v10987_v38, 2  ;;  %v3592_v20 = vld [vmem:[#allocation2 + $0x358] sm:$0xfe]  ;;  %v12654_v47 = vld [vmem:[#allocation22_spill] sm:$0xff] }
 0x3c6   : > { %v6420_v8 = vsel %vm6302_vm4, %v12652_v31, %v6419_v53  ;;  %v6085_v40 = vmul.f32 %v5989_v19, %v5701_v59  ;;  %v5602_v54 = vmul.f32 %v8072_v18, %v5500_v27  ;;  %v1964_v17 = vsel %vm1886_vm2, %v1960_v30, %v12249_v3 }
 0x3c7   : > { %6669 = vmatmul.f32.gmra.mxu2 %v6420_v8  ;;  %v2967_v53 = vmul.f32 %v12653_v51, %v2866_v45  ;;  %v5798_v59 = vadd.f32 3.0, %v5702_v6  ;;  %v2154_v9 = vadd.f32 %v1964_v17, %v1602_v49  ;;  %v2564_v19 = vsel %vm2438_vm3, %v2560_v62, %v12247_v32  ;;  %v12655_v8 = vld [vmem:[#allocation25_spill] sm:$0xff]  ;;  %v12656_v49 = vld [vmem:[#allocation15_spill] sm:$0xff]  ;;  %v11016_v32 = vld [vmem:[#allocation2 + $0x398] sm:$0xff] }
 0x3c8   : > { %v6181_v60 = vmul.f32 0.16666667, %v6085_v40  ;;  %v2768_v39 = vadd.f32 %v2560_v62, %v2152_v34  ;;  %v5704_v1 = vadd.f32 %v8117_v50, %v5602_v54  ;;  %v2969_v31 = vmul.f32 %v12654_v47, %v12653_v51  ;;  %12657 = vst [vmem:[#allocation16_spill] sm:$0xff] %v11016_v32 }
 0x3c9   : > { %v3174_v40 = vmul.f32 %v12654_v47, %v12655_v8  ;;  %v5894_v30 = vmax.f32 %v5798_v59, 0.0  ;;  %v2770_v27 = vadd.f32 %v2564_v19, %v2154_v9  ;;  %v11010_v17 = vmul.f32 %v12656_v49, %v12655_v8 }
 0x3ca   : > { %v6421_v43 = vrot.slane %v6181_v60, 7  ;;  %v3063_v45 = vadd.f32 %v2967_v53, %v2768_v39  ;;  %v5800_v62 = vadd.f32 3.0, %v5704_v1  ;;  %v3685_v54 = vmul.f32 %v8060_v61, %v3592_v20  ;;  %v4958_v20 = vld [vmem:[#allocation2 + $0x398] sm:$0xfe] }
 0x3cb   : > { %v3326_v60 = vrot.slane %v3174_v40, 1  ;;  %v5990_v59 = vmin.f32 %v5894_v30, 6.0  ;;  %v3065_v9 = vadd.f32 %v2969_v31, %v2770_v27  ;;  %v12250_v53 = vrot.slane %v11010_v17, 1 }
 0x3cc   : > { %v6422_v34 = vsel %vm6302_vm4, %v6417_v33, %v6421_v43  ;;  %v11022_v19 = vmul.f32 %v12656_v49, %v8060_v61  ;;  %v5896_v39 = vmax.f32 %v5800_v62, 0.0  ;;  %v3925_v2 = vrot.slane %v3685_v54, 2  ;;  %v11025_v43 = vld [vmem:[#allocation2 + $0x3a8] sm:$0xff]  ;;  %v2869_v49 = vld [vmem:[#allocation2 + $0x360] sm:$0x7f] }
 0x3cd   : > { %7139 = vmatmul.msk.f32.gmra.mxu3 %vm1216_vm1, %v6422_v34  ;;  %v3518_v57 = vadd.f32 %v3326_v60, %v3063_v45  ;;  %v4333_v33 = vmul.f32 %v8098_v37, %v4232_v55  ;;  %12658 = vst [vmem:[#allocation26_spill] sm:$0xff] %v11025_v43  ;;  %v6086_v40 = vmul.f32 %v5990_v59, %v5702_v6  ;;  %v12659_v45 = vld [vmem:[#allocation27_spill] sm:$0xff] }
 0x3ce   : > { %v3330_v30 = vsel %vm1886_vm2, %v3326_v60, %v12250_v53  ;;  %v12255_v31 = vrot.slane %v11022_v19, 2  ;;  %v4335_v27 = vmul.f32 %v8098_v37, %v11016_v32  ;;  %v5992_v34 = vmin.f32 %v5896_v39, 6.0  ;;  %v6625_v53 = vpop.f32.mrf.mxu2 }
 0x3cf   : > { %v3520_v3 = vadd.f32 %v3330_v30, %v3065_v9  ;;  %v4133_v62 = vadd.f32 %v3925_v2, %v3518_v57  ;;  %v4540_v54 = vmul.f32 %v12659_v45, %v11016_v32  ;;  %v6182_v55 = vmul.f32 0.16666667, %v6086_v40  ;;  %v1502_v30 = vld [vmem:[#allocation2 + $0x320] sm:$0x7f] }
 0x3d0   : > { %v3929_v6 = vsel %vm2438_vm3, %v3925_v2, %v12255_v31  ;;  %v11040_v59 = vmul.f32 %v12659_v45, %v11025_v43  ;;  %v5051_v60 = vmul.f32 %v8153_v48, %v4958_v20  ;;  %v6088_v0 = vmul.f32 %v5992_v34, %v5704_v1 }
 0x3d1   : > { %v4135_v39 = vadd.f32 %v3929_v6, %v3520_v3  ;;  %v4429_v9 = vadd.f32 %v4333_v33, %v4133_v62  ;;  %v4692_v57 = vrot.slane %v4540_v54, 1  ;;  %v6423_v24 = vrot.slane %v6182_v55, 7  ;;  %v3593_v62 = vld [vmem:[#allocation2 + $0x370] sm:$0x1] }
 0x3d2   : > { %v12262_v40 = vrot.slane %v11040_v59, 1  ;;  %v11046_v2 = vmul.f32 %v8153_v48, %v11025_v43  ;;  %v5291_v31 = vrot.slane %v5051_v60, 2  ;;  %v11048_v45 = vmul.f32 0.16666667, %v6088_v0  ;;  %v4959_v6 = vld [vmem:[#allocation2 + $0x3b0] sm:$0x1] }
 0x3d3   : > { %v4431_v8 = vadd.f32 %v4335_v27, %v4135_v39  ;;  %v4884_v20 = vadd.f32 %v4692_v57, %v4429_v9  ;;  %v6739_v32 = vadd.f32 %v6738_v13, %v6625_v53  ;;  %v1603_v33 = vmul.f32 %v12369_v14, %v1502_v30  ;;  %v11060_v13 = vld [vmem:[%s11922_s8] ss:$0 sm:$0xff] }
 0x3d4   : > { %12660 = vst [vmem:[#allocation18_spill] sm:$0xff] %v11048_v45  ;;  %v4696_v3 = vsel %vm1886_vm2, %v4692_v57, %v12262_v40  ;;  %v12263_v1 = vrot.slane %v11046_v2, 2  ;;  %v2322_v34 = vmul.f32 %v12358_v10, %v2227_v35  ;;  %v12261_v54 = vrot.slane %v11048_v45, 7  ;;  %v4235_v27 = vld [vmem:[#allocation2 + $0x3a0] sm:$0x7f] }
 0x3d5   : > { %v4886_v55 = vadd.f32 %v4696_v3, %v4431_v8  ;;  %v5499_v0 = vadd.f32 %v5291_v31, %v4884_v20  ;;  %v6822_v53 = vmul.f32 %v11060_v13, %v6739_v32  ;;  %v12661_v35 = vrot.slane %v10890_v44, 1  ;;  %v11076_v20 = vld [vmem:[%s11923_s9] ss:$0 sm:$0xff]  ;;  %v1503_v44 = vld [vmem:[#allocation2 + $0x328] sm:$0x7f] }
 0x3d6   : > { %v5295_v60 = vsel %vm2438_vm3, %v5291_v31, %v12263_v1  ;;  %v2565_v9 = vrot.slane %v2322_v34, 2  ;;  %v2970_v8 = vmul.f32 %v7788_v29, %v2869_v49  ;;  %v6425_v57 = vsel %vm6302_vm4, %v6423_v24, %v12261_v54  ;;  %v2228_v3 = vld [vmem:[#allocation2 + $0x338] sm:$0x1] }
 0x3d7   : > { %v2155_v39 = vadd.f32 %v12661_v35, %v1603_v33  ;;  %v5501_v30 = vadd.f32 %v5295_v60, %v4886_v55  ;;  %v5601_v32 = vmul.f32 %v8163_v63, %v5499_v0  ;;  %v6858_v31 = vadd.f32 %v11076_v20, %v6822_v53  ;;  %6672 = vmatmul.f32.gmra.mxu2 %v6425_v57  ;;  %v2870_v0 = vld [vmem:[#allocation2 + $0x368] sm:$0x7f]  ;;  %v7220_v53 = vld [vmem:[%s7497_s28 + $0x40] sm:$0xff]  ;;  %v4960_v45 = vld [vmem:[#allocation2 + $0x3b8] sm:$0x1] }
 0x3d8   : > { %v12662_v49 = vrot.slane %v10904_v7, 2  ;;  %v3688_v34 = vmul.f32 %v12625_v28, %v3593_v62  ;;  %v4336_v24 = vmul.f32 %v12627_v21, %v4235_v27  ;;  %v5054_v55 = vmul.f32 %v12548_v52, %v4959_v6  ;;  %v3594_v62 = vld [vmem:[#allocation2 + $0x378] sm:$0x1] }
 0x3d9   : > { %v5603_v60 = vmul.f32 %v8163_v63, %v5501_v30  ;;  %v5703_v35 = vadd.f32 %v12626_v16, %v5601_v32  ;;  %v6890_v54 = vadd.f32 %v7220_v53, %v6858_v31  ;;  %v1604_v7 = vmul.f32 %v12384_v25, %v1503_v44  ;;  %v4236_v32 = vld [vmem:[#allocation2 + $0x3a8] sm:$0x7f] }
 0x3da   : > { %v2566_v33 = vsel %vm2438_vm3, %v12662_v49, %v2565_v9  ;;  %v3930_v57 = vrot.slane %v3688_v34, 2  ;;  %v5296_v1 = vrot.slane %v5054_v55, 2  ;;  %v2323_v9 = vmul.f32 %v7882_v36, %v2228_v3  ;;  %v1504_v49 = vld [vmem:[#allocation2 + $0x340] sm:$0x80] }
 0x3db   : > { %v2771_v40 = vadd.f32 %v2566_v33, %v2155_v39  ;;  %v5705_v27 = vadd.f32 %v12626_v16, %v5603_v60  ;;  %v5799_v43 = vadd.f32 3.0, %v5703_v35  ;;  %6922 = vst.msk [vmem:[%s10164_s15 + $0x40] sm:$0xff] %vm432_vm0, %v6890_v54  ;;  %v2971_v30 = vmul.f32 %v12653_v51, %v2870_v0 }
 0x3dc   : > { %v12663_v39 = vrot.slane %v10936_v41, 2  ;;  %v12664_v44 = vrot.slane %v10964_v42, 2  ;;  %v12665_v33 = vrot.slane %v10981_v15, 1  ;;  %v2567_v55 = vrot.slane %v2323_v9, 2 }
 0x3dd   : > { %v3066_v6 = vadd.f32 %v2970_v8, %v2771_v40  ;;  %v5801_v60 = vadd.f32 3.0, %v5705_v27  ;;  %v5895_v53 = vmax.f32 %v5799_v43, 0.0  ;;  %v12666_v40 = vrot.slane %v10928_v11, 1 }
 0x3de   : > { %v3931_v31 = vsel %vm2438_vm3, %v12663_v39, %v3930_v57  ;;  %v5297_v3 = vsel %vm2438_vm3, %v12664_v44, %v5296_v1  ;;  %v2156_v34 = vadd.f32 %v12665_v33, %v1604_v7  ;;  %v3689_v8 = vmul.f32 %v8060_v61, %v3594_v62  ;;  %v6628_v1 = vpop.f32.mrf.mxu2  ;;  %v6741_v39 = vpop.f32.mrf.mxu3 }
 0x3df   : > { %v3521_v54 = vadd.f32 %v12666_v40, %v3066_v6  ;;  %v12667_v0 = vrot.slane %v10987_v38, 2  ;;  %v4337_v57 = vmul.f32 %v8098_v37, %v4236_v32  ;;  %v5055_v42 = vmul.f32 %v8153_v48, %v4960_v45 }
 0x3e0   : > { %v1605_v15 = vmul.f32 %v12369_v14, %v1504_v49  ;;  %v5897_v7 = vmax.f32 %v5801_v60, 0.0  ;;  %v5991_v9 = vmin.f32 %v5895_v53, 6.0  ;;  %v3932_v11 = vrot.slane %v3689_v8, 2 }
 0x3e1   : > { %v2568_v41 = vsel %vm2438_vm3, %v12667_v0, %v2567_v55  ;;  %v4136_v43 = vadd.f32 %v3931_v31, %v3521_v54  ;;  %v5298_v6 = vrot.slane %v5055_v42, 2  ;;  %v6742_v33 = vadd.f32 %v6741_v39, %v6628_v1  ;;  %v2229_v0 = vld [vmem:[#allocation2 + $0x350] sm:$0xfe] }
 0x3e2   : > { %v2772_v44 = vadd.f32 %v2568_v41, %v2156_v34  ;;  %v1607_v38 = vmul.f32 %v10708_v26, %v12369_v14  ;;  %v5993_v62 = vmin.f32 %v5897_v7, 6.0  ;;  %v6087_v55 = vmul.f32 %v5991_v9, %v5703_v35  ;;  %v7221_v7 = vld [vmem:[%s7497_s28 + $0x48] sm:$0xff] }
 0x3e3   : > { %v4432_v40 = vadd.f32 %v4336_v24, %v4136_v43  ;;  %v12668_v45 = vrot.slane %v11022_v19, 2  ;;  %v12669_v49 = vrot.slane %v11046_v2, 2  ;;  %v6823_v34 = vmul.f32 %v11060_v13, %v6742_v33 }
 0x3e4   : > { %v3067_v32 = vadd.f32 %v2971_v30, %v2772_v44  ;;  %v1810_v60 = vmul.f32 %v10708_v26, %v12381_v12  ;;  %v6089_v53 = vmul.f32 %v5993_v62, %v5705_v27  ;;  %v6183_v54 = vmul.f32 0.16666667, %v6087_v55  ;;  %v3595_v55 = vld [vmem:[#allocation2 + $0x390] sm:$0xfe] }
 0x3e5   : > { %v3933_v48 = vsel %vm2438_vm3, %v12668_v45, %v3932_v11  ;;  %v5299_v31 = vsel %vm2438_vm3, %v12669_v49, %v5298_v6  ;;  %v12670_v24 = vrot.slane %v10959_v5, 1  ;;  %v12671_v30 = vrot.slane %v11010_v17, 1  ;;  %v2871_v5 = vld [vmem:[#allocation2 + $0x380] sm:$0x80] }
 0x3e6   : > { %v6859_v8 = vadd.f32 %v11076_v20, %v6823_v34  ;;  %v11129_v2 = vmul.f32 %v10720_v23, %v12381_v12  ;;  %v1965_v41 = vrot.slane %v1810_v60, 1  ;;  %v2324_v42 = vmul.f32 %v12358_v10, %v2229_v0 }
 0x3e7   : > { %v4887_v35 = vadd.f32 %v12670_v24, %v4432_v40  ;;  %v3522_v19 = vadd.f32 %v12671_v30, %v3067_v32  ;;  %v11132_v1 = vmul.f32 0.16666667, %v6089_v53  ;;  %v6426_v26 = vrot.slane %v6183_v54, 7 }
 0x3e8   : > { %v6891_v9 = vadd.f32 %v7221_v7, %v6859_v8  ;;  %v12277_v17 = vrot.slane %v11129_v2, 1  ;;  %v2157_v43 = vadd.f32 %v1965_v41, %v1605_v15  ;;  %v11138_v44 = vmul.f32 %v10720_v23, %v12358_v10 }
 0x3e9   : > { %v5502_v27 = vadd.f32 %v5297_v3, %v4887_v35  ;;  %v4137_v39 = vadd.f32 %v3933_v48, %v3522_v19  ;;  %v6427_v11 = vrot.slane %v11132_v1, 7  ;;  %v2569_v62 = vrot.slane %v2324_v42, 2  ;;  %v11173_v42 = vld [vmem:[#allocation2 + $0x3d0] sm:$0xff] }
 0x3ea   : > { %6923 = vst.msk [vmem:[%s10164_s15 + $0x48] sm:$0xff] %vm432_vm0, %v6891_v9  ;;  %v1968_v48 = vsel %vm1886_vm2, %v1965_v41, %v12277_v17  ;;  %v12276_v3 = vrot.slane %v11138_v44, 2  ;;  %v2972_v15 = vmul.f32 %v7788_v29, %v2871_v5  ;;  %v2974_v23 = vmul.f32 %v10939_v56, %v7788_v29  ;;  %v6744_v17 = vpop.f32.mrf.mxu3 }
 0x3eb   : > { %v5604_v6 = vmul.f32 %v8072_v18, %v5502_v27  ;;  %v4433_v33 = vadd.f32 %v4337_v57, %v4137_v39  ;;  %v6428_v40 = vsel %vm6302_vm4, %v6426_v26, %v6427_v11  ;;  %v12672_v32 = vrot.slane %v11040_v59, 1 }
 0x3ec   : > { %v2159_v45 = vadd.f32 %v1968_v48, %v1607_v38  ;;  %7140 = vmatmul.msk.f32.gmra.mxu3 %vm1216_vm1, %v6428_v40  ;;  %v2572_v49 = vsel %vm2438_vm3, %v2569_v62, %v12276_v3  ;;  %v2773_v34 = vadd.f32 %v2569_v62, %v2157_v43  ;;  %v3177_v60 = vmul.f32 %v10939_v56, %v12359_v4  ;;  %v4237_v38 = vld [vmem:[#allocation2 + $0x3c0] sm:$0x80]  ;;  %v6631_v3 = vpop.f32.mrf.mxu2 }
 0x3ed   : > { %v5706_v57 = vadd.f32 %v8117_v50, %v5604_v6  ;;  %v4888_v0 = vadd.f32 %v12672_v32, %v4433_v33  ;;  %v11165_v53 = vmul.f32 %v10943_v46, %v12359_v4  ;;  %v3690_v59 = vmul.f32 %v12625_v28, %v3595_v55  ;;  %v4961_v33 = vld [vmem:[#allocation2 + $0x3d0] sm:$0xfe] }
 0x3ee   : > { %v2775_v35 = vadd.f32 %v2572_v49, %v2159_v45  ;;  %v3068_v30 = vadd.f32 %v2972_v15, %v2773_v34  ;;  %v3331_v19 = vrot.slane %v3177_v60, 1  ;;  %v11171_v41 = vmul.f32 %v10943_v46, %v12625_v28 }
 0x3ef   : > { %v5802_v54 = vadd.f32 3.0, %v5706_v57  ;;  %v5503_v24 = vadd.f32 %v5299_v31, %v4888_v0  ;;  %v12270_v8 = vrot.slane %v11165_v53, 1  ;;  %v3934_v5 = vrot.slane %v3690_v59, 2  ;;  %v11176_v31 = vld [vmem:[#allocation2 + $0x3e0] sm:$0xff] }
 0x3f0   : > { %v3070_v39 = vadd.f32 %v2974_v23, %v2775_v35  ;;  %v3523_v9 = vadd.f32 %v3331_v19, %v3068_v30  ;;  %v12273_v43 = vrot.slane %v11171_v41, 2  ;;  %v4338_v6 = vmul.f32 %v12627_v21, %v4237_v38 }
 0x3f1   : > { %v5898_v26 = vmax.f32 %v5802_v54, 0.0  ;;  %v5605_v27 = vmul.f32 %v8163_v63, %v5503_v24  ;;  %v3334_v7 = vsel %vm1886_vm2, %v3331_v19, %v12270_v8  ;;  %v4340_v23 = vmul.f32 %v12627_v21, %v11173_v42  ;;  %v1505_v54 = vld [vmem:[#allocation2 + $0x348] sm:$0x80] }
 0x3f2   : > { %v3525_v15 = vadd.f32 %v3334_v7, %v3070_v39  ;;  %v3937_v55 = vsel %vm2438_vm3, %v3934_v5, %v12273_v43  ;;  %v4138_v40 = vadd.f32 %v3934_v5, %v3523_v9  ;;  %v4543_v32 = vmul.f32 %v12628_v58, %v11173_v42  ;;  %v2230_v9 = vld [vmem:[#allocation2 + $0x358] sm:$0xfe] }
 0x3f3   : > { %v5994_v62 = vmin.f32 %v5898_v26, 6.0  ;;  %v5707_v48 = vadd.f32 %v12626_v16, %v5605_v27  ;;  %v11193_v0 = vmul.f32 %v12628_v58, %v11176_v31  ;;  %v5056_v60 = vmul.f32 %v12548_v52, %v4961_v33 }
 0x3f4   : > { %v4140_v34 = vadd.f32 %v3937_v55, %v3525_v15  ;;  %v4434_v24 = vadd.f32 %v4338_v6, %v4138_v40  ;;  %v4697_v35 = vrot.slane %v4543_v32, 1  ;;  %v11199_v38 = vmul.f32 %v12548_v52, %v11176_v31  ;;  %v12673_v32 = vld [vmem:[#allocation15_spill] sm:$0xff] }
 0x3f5   : > { %v6090_v45 = vmul.f32 %v5994_v62, %v5706_v57  ;;  %v5803_v49 = vadd.f32 3.0, %v5707_v48  ;;  %v12269_v59 = vrot.slane %v11193_v0, 1  ;;  %v5300_v27 = vrot.slane %v5056_v60, 2 }
 0x3f6   : > { %v4436_v26 = vadd.f32 %v4340_v23, %v4140_v34  ;;  %v4889_v39 = vadd.f32 %v4697_v35, %v4434_v24  ;;  %v12272_v5 = vrot.slane %v11199_v38, 2  ;;  %v1606_v7 = vmul.f32 %v12384_v25, %v1505_v54  ;;  %v12674_v34 = vld [vmem:[#allocation18_spill] sm:$0xff] }
 0x3f7   : > { %v6186_v30 = vmul.f32 0.16666667, %v6090_v45  ;;  %v5899_v19 = vmax.f32 %v5803_v49, 0.0  ;;  %v4700_v57 = vsel %vm1886_vm2, %v4697_v35, %v12269_v59  ;;  %v1608_v15 = vmul.f32 %v12654_v47, %v12384_v25  ;;  %v2872_v49 = vld [vmem:[#allocation2 + $0x388] sm:$0x80] }
 0x3f8   : > { %v4891_v62 = vadd.f32 %v4700_v57, %v4436_v26  ;;  %v5303_v23 = vsel %vm2438_vm3, %v5300_v27, %v12272_v5  ;;  %v5504_v55 = vadd.f32 %v5300_v27, %v4889_v39  ;;  %v1811_v40 = vmul.f32 %v12654_v47, %v12650_v22 }
 0x3f9   : > { %v6429_v6 = vrot.slane %v6186_v30, 7  ;;  %v5995_v33 = vmin.f32 %v5899_v19, 6.0  ;;  %v11215_v45 = vmul.f32 %v12673_v32, %v12650_v22  ;;  %v12675_v60 = vrot.slane %v12674_v34, 7  ;;  %v2875_v22 = vld [vmem:[#allocation2 + $0x3a0] sm:$0x7f] }
 0x3fa   : > { %v5506_v35 = vadd.f32 %v5303_v23, %v4891_v62  ;;  %v2325_v30 = vmul.f32 %v7882_v36, %v2230_v9  ;;  %v5606_v19 = vmul.f32 %v8072_v18, %v5504_v55  ;;  %v1966_v26 = vrot.slane %v1811_v40, 1 }
 0x3fb   : > { %v6430_v54 = vsel %vm6302_vm4, %v12675_v60, %v6429_v6  ;;  %v6091_v24 = vmul.f32 %v5995_v33, %v5707_v48  ;;  %v12274_v27 = vrot.slane %v11215_v45, 1  ;;  %v11225_v47 = vmul.f32 %v12673_v32, %v7882_v36  ;;  %v12676_v32 = vld [vmem:[#allocation16_spill] sm:$0xff] }
 0x3fc   : > { %6675 = vmatmul.f32.gmra.mxu2 %v6430_v54  ;;  %v5608_v39 = vmul.f32 %v8072_v18, %v5506_v35  ;;  %v2570_v34 = vrot.slane %v2325_v30, 2  ;;  %v2973_v6 = vmul.f32 %v12653_v51, %v2872_v49  ;;  %v5708_v48 = vadd.f32 %v8117_v50, %v5606_v19  ;;  %v3596_v54 = vld [vmem:[#allocation2 + $0x398] sm:$0xfe]  ;;  %v12677_v30 = vld [vmem:[#allocation25_spill] sm:$0xff] }
 0x3fd   : > { %v6187_v57 = vmul.f32 0.16666667, %v6091_v24  ;;  %v1970_v9 = vsel %vm1886_vm2, %v1966_v26, %v12274_v27  ;;  %v2158_v33 = vadd.f32 %v1966_v26, %v1606_v7  ;;  %v12271_v62 = vrot.slane %v11225_v47, 2 }
 0x3fe   : > { %v5710_v55 = vadd.f32 %v8117_v50, %v5608_v39  ;;  %v2160_v40 = vadd.f32 %v1970_v9, %v1608_v15  ;;  %v2975_v60 = vmul.f32 %v12676_v32, %v12653_v51  ;;  %v5804_v24 = vadd.f32 3.0, %v5708_v48  ;;  %v12678_v15 = vld [vmem:[#allocation26_spill] sm:$0xff] }
 0x3ff   : > { %v6431_v23 = vrot.slane %v6187_v57, 7  ;;  %v2574_v49 = vsel %vm2438_vm3, %v2570_v34, %v12271_v62  ;;  %v2774_v35 = vadd.f32 %v2570_v34, %v2158_v33  ;;  %v3178_v19 = vmul.f32 %v12676_v32, %v12677_v30  ;;  %v4238_v9 = vld [vmem:[#allocation2 + $0x3c8] sm:$0x80]  ;;  %v11251_v33 = vld [vmem:[#allocation2 + $0x3d8] sm:$0xff] }
 0x400   : > { %v5806_v26 = vadd.f32 3.0, %v5710_v55  ;;  %v2776_v57 = vadd.f32 %v2574_v49, %v2160_v40  ;;  %v11247_v39 = vmul.f32 %v12678_v15, %v12677_v30  ;;  %v5900_v59 = vmax.f32 %v5804_v24, 0.0  ;;  %12679 = vst [vmem:[#allocation19_spill] sm:$0xff] %v11251_v33  ;;  %v11259_v24 = vld [vmem:[#allocation2 + $0x3e8] sm:$0xff] }
 0x401   : > { %v6432_v7 = vsel %vm6302_vm4, %v6427_v11, %v6431_v23  ;;  %v3069_v8 = vadd.f32 %v2973_v6, %v2774_v35  ;;  %v3332_v62 = vrot.slane %v3178_v19, 1  ;;  %v3691_v34 = vmul.f32 %v8060_v61, %v3596_v54  ;;  %12680 = vst [vmem:[#allocation29_spill] sm:$0xff] %v11259_v24  ;;  %v4962_v6 = vld [vmem:[#allocation2 + $0x3d8] sm:$0xfe] }
 0x402   : > { %7141 = vmatmul.msk.f32.gmra.mxu3 %vm1216_vm1, %v6432_v7  ;;  %v5902_v5 = vmax.f32 %v5806_v26, 0.0  ;;  %v3071_v1 = vadd.f32 %v2975_v60, %v2776_v57  ;;  %v12275_v11 = vrot.slane %v11247_v39, 1  ;;  %v11256_v23 = vmul.f32 %v12678_v15, %v8060_v61 }
 0x403   : > { %v5996_v40 = vmin.f32 %v5900_v59, 6.0  ;;  %v3524_v49 = vadd.f32 %v3332_v62, %v3069_v8  ;;  %v3935_v43 = vrot.slane %v3691_v34, 2  ;;  %v4339_v7 = vmul.f32 %v8098_v37, %v4238_v9  ;;  %v12681_v8 = vld [vmem:[#allocation27_spill] sm:$0xff] }
 0x404   : > { %v5998_v35 = vmin.f32 %v5902_v5, 6.0  ;;  %v3336_v54 = vsel %vm1886_vm2, %v3332_v62, %v12275_v11  ;;  %v12279_v60 = vrot.slane %v11256_v23, 2  ;;  %v4341_v19 = vmul.f32 %v8098_v37, %v11251_v33  ;;  %v12682_v62 = vld [vmem:[#allocation28_spill] sm:$0xff] }
 0x405   : > { %v6092_v26 = vmul.f32 %v5996_v40, %v5708_v48  ;;  %v3526_v57 = vadd.f32 %v3336_v54, %v3071_v1  ;;  %v4139_v59 = vadd.f32 %v3935_v43, %v3524_v49  ;;  %v4544_v34 = vmul.f32 %v12681_v8, %v11251_v33  ;;  %v1508_v49 = vld [vmem:[#allocation2 + $0x360] sm:$0x7f] }
 0x406   : > { %v6094_v9 = vmul.f32 %v5998_v35, %v5710_v55  ;;  %v3939_v5 = vsel %vm2438_vm3, %v3935_v43, %v12279_v60  ;;  %v11274_v27 = vmul.f32 %v12681_v8, %v11259_v24  ;;  %v5057_v11 = vmul.f32 %v12682_v62, %v4962_v6  ;;  %v2231_v60 = vld [vmem:[#allocation2 + $0x370] sm:$0x1] }
 0x407   : > { %v6188_v30 = vmul.f32 0.16666667, %v6092_v26  ;;  %v4141_v48 = vadd.f32 %v3939_v5, %v3526_v57  ;;  %v4435_v1 = vadd.f32 %v4339_v7, %v4139_v59  ;;  %v4698_v40 = vrot.slane %v4544_v34, 1  ;;  %v1509_v34 = vld [vmem:[#allocation2 + $0x368] sm:$0x7f] }
 0x408   : > { %v11277_v54 = vmul.f32 0.16666667, %v6094_v9  ;;  %v12285_v55 = vrot.slane %v11274_v27, 1  ;;  %v11282_v43 = vmul.f32 %v12682_v62, %v11259_v24  ;;  %v5301_v35 = vrot.slane %v5057_v11, 2 }
 0x409   : > { %v6433_v8 = vrot.slane %v6188_v30, 7  ;;  %v4437_v33 = vadd.f32 %v4341_v19, %v4141_v48  ;;  %v4890_v6 = vadd.f32 %v4698_v40, %v4435_v1  ;;  %v6745_v15 = vadd.f32 %v6744_v17, %v6631_v3  ;;  %v3597_v19 = vld [vmem:[#allocation2 + $0x3b0] sm:$0x1]  ;;  %v4241_v17 = vld [vmem:[#allocation2 + $0x3e0] sm:$0x7f] }
 0x40a   : > { %12683 = vst [vmem:[#allocation20_spill] sm:$0xff] %v11277_v54  ;;  %v12286_v26 = vrot.slane %v11277_v54, 7  ;;  %v4702_v7 = vsel %vm1886_vm2, %v4698_v40, %v12285_v55  ;;  %v12287_v57 = vrot.slane %v11282_v43, 2  ;;  %v1609_v59 = vmul.f32 %v12369_v14, %v1508_v49  ;;  %v4963_v3 = vld [vmem:[#allocation2 + $0x3f0] sm:$0x1] }
 0x40b   : > { %v4892_v9 = vadd.f32 %v4702_v7, %v4437_v33  ;;  %v5505_v5 = vadd.f32 %v5301_v35, %v4890_v6  ;;  %v6824_v11 = vmul.f32 %v11060_v13, %v6745_v15  ;;  %v2328_v30 = vmul.f32 %v12358_v10, %v2231_v60 }
 0x40c   : > { %v6435_v48 = vsel %vm6302_vm4, %v6433_v8, %v12286_v26  ;;  %v5305_v1 = vsel %vm2438_vm3, %v5301_v35, %v12287_v57  ;;  %v12684_v40 = vrot.slane %v11129_v2, 1  ;;  %v2976_v49 = vmul.f32 %v7788_v29, %v2875_v22  ;;  %v2232_v2 = vld [vmem:[#allocation2 + $0x378] sm:$0x1]  ;;  %v4242_v57 = vld [vmem:[#allocation2 + $0x3e8] sm:$0x7f] }
 0x40d   : > { %6678 = vmatmul.f32.gmra.mxu2 %v6435_v48  ;;  %v5507_v15 = vadd.f32 %v5305_v1, %v4892_v9  ;;  %v5607_v60 = vmul.f32 %v8163_v63, %v5505_v5  ;;  %v6860_v6 = vadd.f32 %v11076_v20, %v6824_v11  ;;  %v2575_v7 = vrot.slane %v2328_v30, 2  ;;  %v7222_v48 = vld [vmem:[%s7497_s28 + $0x50] sm:$0xff] }
 0x40e   : > { %v2161_v33 = vadd.f32 %v12684_v40, %v1609_v59  ;;  %v3694_v55 = vmul.f32 %v12625_v28, %v3597_v19  ;;  %v4342_v8 = vmul.f32 %v12627_v21, %v4241_v17  ;;  %v5060_v26 = vmul.f32 %v12548_v52, %v4963_v3  ;;  %v2876_v59 = vld [vmem:[#allocation2 + $0x3a8] sm:$0x7f]  ;;  %v3598_v19 = vld [vmem:[#allocation2 + $0x3b8] sm:$0x1] }
 0x40f   : > { %v1610_v35 = vmul.f32 %v12384_v25, %v1509_v34  ;;  %v5609_v22 = vmul.f32 %v8163_v63, %v5507_v15  ;;  %v5709_v9 = vadd.f32 %v12626_v16, %v5607_v60  ;;  %v6892_v5 = vadd.f32 %v7222_v48, %v6860_v6  ;;  %v1510_v6 = vld [vmem:[#allocation2 + $0x380] sm:$0x80] }
 0x410   : > { %v12685_v11 = vrot.slane %v11138_v44, 2  ;;  %v3940_v17 = vrot.slane %v3694_v55, 2  ;;  %v5306_v40 = vrot.slane %v5060_v26, 2  ;;  %v12686_v3 = vrot.slane %v11215_v45, 1  ;;  %v4964_v44 = vld [vmem:[#allocation2 + $0x3f8] sm:$0x1] }
 0x411   : > { %v5711_v24 = vadd.f32 %v12626_v16, %v5609_v22  ;;  %v5805_v54 = vadd.f32 3.0, %v5709_v9  ;;  %6924 = vst.msk [vmem:[%s10164_s15 + $0x50] sm:$0xff] %vm432_vm0, %v6892_v5  ;;  %v2329_v15 = vmul.f32 %v7882_v36, %v2232_v2  ;;  %v2977_v60 = vmul.f32 %v12653_v51, %v2876_v59 }
 0x412   : > { %v2576_v30 = vsel %vm2438_vm3, %v12685_v11, %v2575_v7  ;;  %v2162_v34 = vadd.f32 %v12686_v3, %v1610_v35  ;;  %v12688_v45 = vrot.slane %v11199_v38, 2  ;;  %v3695_v35 = vmul.f32 %v8060_v61, %v3598_v19  ;;  %v6634_v19 = vpop.f32.mrf.mxu2  ;;  %v6747_v3 = vpop.f32.mrf.mxu3 }
 0x413   : > { %v2777_v1 = vadd.f32 %v2576_v30, %v2161_v33  ;;  %v12687_v33 = vrot.slane %v11171_v41, 2  ;;  %v5807_v22 = vadd.f32 3.0, %v5711_v24  ;;  %v5901_v48 = vmax.f32 %v5805_v54, 0.0 }
 0x414   : > { %v5307_v26 = vsel %vm2438_vm3, %v12688_v45, %v5306_v40  ;;  %v2577_v5 = vrot.slane %v2329_v15, 2  ;;  %v4343_v2 = vmul.f32 %v8098_v37, %v4242_v57  ;;  %v12689_v59 = vrot.slane %v11165_v53, 1 }
 0x415   : > { %v3072_v7 = vadd.f32 %v2976_v49, %v2777_v1  ;;  %v3941_v55 = vsel %vm2438_vm3, %v12687_v33, %v3940_v17  ;;  %v3942_v30 = vrot.slane %v3695_v35, 2  ;;  %v5061_v49 = vmul.f32 %v12682_v62, %v4964_v44  ;;  %v2233_v35 = vld [vmem:[#allocation2 + $0x390] sm:$0xfe] }
 0x416   : > { %v1611_v41 = vmul.f32 %v12369_v14, %v1510_v6  ;;  %v5903_v1 = vmax.f32 %v5807_v22, 0.0  ;;  %v5997_v17 = vmin.f32 %v5901_v48, 6.0  ;;  %v12690_v38 = vrot.slane %v11225_v47, 2 }
 0x417   : > { %v3527_v11 = vadd.f32 %v12689_v59, %v3072_v7  ;;  %v1613_v54 = vmul.f32 %v10939_v56, %v12369_v14  ;;  %v12691_v53 = vrot.slane %v11256_v23, 2  ;;  %v5308_v44 = vrot.slane %v5061_v49, 2 }
 0x418   : > { %v2578_v40 = vsel %vm2438_vm3, %v12690_v38, %v2577_v5  ;;  %v5999_v33 = vmin.f32 %v5903_v1, 6.0  ;;  %v6093_v6 = vmul.f32 %v5997_v17, %v5709_v9  ;;  %v6748_v45 = vadd.f32 %v6747_v3, %v6634_v19 }
 0x419   : > { %v4142_v57 = vadd.f32 %v3941_v55, %v3527_v11  ;;  %v2778_v15 = vadd.f32 %v2578_v40, %v2162_v34  ;;  %v3943_v7 = vsel %vm2438_vm3, %v12691_v53, %v3942_v30  ;;  %v1814_v47 = vmul.f32 %v10939_v56, %v12381_v12  ;;  %v2877_v40 = vld [vmem:[#allocation2 + $0x3c0] sm:$0x80] }
 0x41a   : > { %v12692_v5 = vrot.slane %v11282_v43, 2  ;;  %v11347_v34 = vmul.f32 %v10943_v46, %v12381_v12  ;;  %v6095_v23 = vmul.f32 %v5999_v33, %v5711_v24  ;;  %v6189_v55 = vmul.f32 0.16666667, %v6093_v6 }
 0x41b   : > { %v4438_v22 = vadd.f32 %v4342_v8, %v4142_v57  ;;  %v3073_v48 = vadd.f32 %v2977_v60, %v2778_v15  ;;  %v6825_v11 = vmul.f32 %v11060_v13, %v6748_v45  ;;  %v1971_v9 = vrot.slane %v1814_v47, 1  ;;  %v7223_v15 = vld [vmem:[%s7497_s28 + $0x58] sm:$0xff]  ;;  %v3599_v45 = vld [vmem:[#allocation2 + $0x3d0] sm:$0xfe] }
 0x41c   : > { %v5309_v59 = vsel %vm2438_vm3, %v12692_v5, %v5308_v44  ;;  %v12693_v30 = vrot.slane %v11193_v0, 1  ;;  %v12694_v8 = vrot.slane %v11247_v39, 1  ;;  %v12298_v43 = vrot.slane %v11347_v34, 1 }
 0x41d   : > { %v2330_v49 = vmul.f32 %v12358_v10, %v2233_v35  ;;  %v11356_v1 = vmul.f32 0.16666667, %v6095_v23  ;;  %v6436_v17 = vrot.slane %v6189_v55, 7  ;;  %v6861_v24 = vadd.f32 %v11076_v20, %v6825_v11  ;;  %v4243_v55 = vld [vmem:[#allocation2 + $0x400] sm:$0x80] }
 0x41e   : > { %v4893_v56 = vadd.f32 %v12693_v30, %v4438_v22  ;;  %v3528_v60 = vadd.f32 %v12694_v8, %v3073_v48  ;;  %v2163_v38 = vadd.f32 %v1971_v9, %v1611_v41  ;;  %v1974_v0 = vsel %vm1886_vm2, %v1971_v9, %v12298_v43  ;;  %v6750_v43 = vpop.f32.mrf.mxu3 }
 0x41f   : > { %v11364_v39 = vmul.f32 %v10943_v46, %v12358_v10  ;;  %v6437_v57 = vrot.slane %v11356_v1, 7  ;;  %v6893_v53 = vadd.f32 %v7223_v15, %v6861_v24  ;;  %v2165_v44 = vadd.f32 %v1974_v0, %v1613_v54  ;;  %v11481_v1 = vld [vmem:[#allocation2 + $0x428] sm:$0xff] }
 0x420   : > { %v5508_v19 = vadd.f32 %v5307_v26, %v4893_v56  ;;  %v4143_v3 = vadd.f32 %v3943_v7, %v3528_v60  ;;  %v2579_v33 = vrot.slane %v2330_v49, 2  ;;  %v2978_v7 = vmul.f32 %v7788_v29, %v2877_v40  ;;  %12704 = vst [vmem:[#allocation23_spill] sm:$0xff] %v11481_v1 }
 0x421   : > { %v12297_v26 = vrot.slane %v11364_v39, 2  ;;  %v6438_v47 = vsel %vm6302_vm4, %v6436_v17, %v6437_v57  ;;  %6925 = vst.msk [vmem:[%s10164_s15 + $0x58] sm:$0xff] %vm432_vm0, %v6893_v53  ;;  %v2980_v35 = vmul.f32 %v11173_v42, %v7788_v29  ;;  %v3181_v54 = vmul.f32 %v11173_v42, %v12359_v4  ;;  %v11397_v17 = vld [vmem:[#allocation2 + $0x410] sm:$0xff] }
 0x422   : > { %v5610_v41 = vmul.f32 %v8072_v18, %v5508_v19  ;;  %v4439_v6 = vadd.f32 %v4343_v2, %v4143_v3  ;;  %v2779_v46 = vadd.f32 %v2579_v33, %v2163_v38  ;;  %7142 = vmatmul.msk.f32.gmra.mxu3 %vm1216_vm1, %v6438_v47  ;;  %v12695_v22 = vrot.slane %v11274_v27, 1  ;;  %v11400_v3 = vld [vmem:[#allocation2 + $0x420] sm:$0xff] }
 0x423   : > { %v2582_v5 = vsel %vm2438_vm3, %v2579_v33, %v12297_v26  ;;  %v11389_v23 = vmul.f32 %v11176_v31, %v12359_v4  ;;  %v3337_v30 = vrot.slane %v3181_v54, 1  ;;  %v3696_v56 = vmul.f32 %v12625_v28, %v3599_v45  ;;  %v1511_v54 = vld [vmem:[#allocation2 + $0x388] sm:$0x80] }
 0x424   : > { %v5712_v2 = vadd.f32 %v8117_v50, %v5610_v41  ;;  %v4894_v48 = vadd.f32 %v12695_v22, %v4439_v6  ;;  %v2781_v11 = vadd.f32 %v2582_v5, %v2165_v44  ;;  %v3074_v9 = vadd.f32 %v2978_v7, %v2779_v46  ;;  %v4965_v44 = vld [vmem:[#allocation2 + $0x410] sm:$0xfe] }
 0x425   : > { %v12292_v49 = vrot.slane %v11389_v23, 1  ;;  %v11395_v27 = vmul.f32 %v11176_v31, %v12625_v28  ;;  %v3944_v40 = vrot.slane %v3696_v56, 2  ;;  %v4344_v19 = vmul.f32 %v12627_v21, %v4243_v55 }
 0x426   : > { %v5808_v8 = vadd.f32 3.0, %v5712_v2  ;;  %v5509_v60 = vadd.f32 %v5309_v59, %v4894_v48  ;;  %v3076_v24 = vadd.f32 %v2980_v35, %v2781_v11  ;;  %v3529_v38 = vadd.f32 %v3337_v30, %v3074_v9 }
 0x427   : > { %v3340_v59 = vsel %vm1886_vm2, %v3337_v30, %v12292_v49  ;;  %v12295_v53 = vrot.slane %v11395_v27, 2  ;;  %v4346_v6 = vmul.f32 %v12627_v21, %v11397_v17  ;;  %v4547_v7 = vmul.f32 %v12628_v58, %v11397_v17 }
 0x428   : > { %v5904_v0 = vmax.f32 %v5808_v8, 0.0  ;;  %v5611_v15 = vmul.f32 %v8163_v63, %v5509_v60  ;;  %v3531_v33 = vadd.f32 %v3340_v59, %v3076_v24  ;;  %v4144_v41 = vadd.f32 %v3944_v40, %v3529_v38 }
 0x429   : > { %v3947_v46 = vsel %vm2438_vm3, %v3944_v40, %v12295_v53  ;;  %v11417_v35 = vmul.f32 %v12628_v58, %v11400_v3  ;;  %v4703_v5 = vrot.slane %v4547_v7, 1  ;;  %v5062_v55 = vmul.f32 %v12548_v52, %v4965_v44 }
 0x42a   : > { %v6000_v45 = vmin.f32 %v5904_v0, 6.0  ;;  %v5713_v47 = vadd.f32 %v12626_v16, %v5611_v15  ;;  %v4146_v22 = vadd.f32 %v3947_v46, %v3531_v33  ;;  %v4440_v48 = vadd.f32 %v4344_v19, %v4144_v41  ;;  %v2234_v15 = vld [vmem:[#allocation2 + $0x398] sm:$0xfe]  ;;  %v12696_v41 = vld [vmem:[#allocation17_spill] sm:$0xff] }
 0x42b   : > { %v12291_v30 = vrot.slane %v11417_v35, 1  ;;  %v11423_v56 = vmul.f32 %v12548_v52, %v11400_v3  ;;  %v5310_v24 = vrot.slane %v5062_v55, 2  ;;  %v1612_v38 = vmul.f32 %v12384_v25, %v1511_v54  ;;  %v12697_v54 = vld [vmem:[#allocation26_spill] sm:$0xff] }
 0x42c   : > { %v6096_v11 = vmul.f32 %v6000_v45, %v5712_v2  ;;  %v5809_v9 = vadd.f32 3.0, %v5713_v47  ;;  %v4442_v8 = vadd.f32 %v4346_v6, %v4146_v22  ;;  %v4895_v60 = vadd.f32 %v4703_v5, %v4440_v48 }
 0x42d   : > { %v4706_v19 = vsel %vm1886_vm2, %v4703_v5, %v12291_v30  ;;  %v12293_v2 = vrot.slane %v11423_v56, 2  ;;  %v1614_v33 = vmul.f32 %v12676_v32, %v12384_v25  ;;  %v1815_v6 = vmul.f32 %v12676_v32, %v12696_v41 }
 0x42e   : > { %v6192_v40 = vmul.f32 0.16666667, %v6096_v11  ;;  %v5905_v0 = vmax.f32 %v5809_v9, 0.0  ;;  %v4897_v59 = vadd.f32 %v4706_v19, %v4442_v8  ;;  %v5510_v44 = vadd.f32 %v5310_v24, %v4895_v60  ;;  %v2878_v9 = vld [vmem:[#allocation2 + $0x3c8] sm:$0x80]  ;;  %v12698_v8 = vld [vmem:[#allocation20_spill] sm:$0xff] }
 0x42f   : > { %v5313_v46 = vsel %vm2438_vm3, %v5310_v24, %v12293_v2  ;;  %v11439_v22 = vmul.f32 %v12697_v54, %v12696_v41  ;;  %v1972_v55 = vrot.slane %v1815_v6, 1  ;;  %v2331_v11 = vmul.f32 %v7882_v36, %v2234_v15 }
 0x430   : > { %v6439_v7 = vrot.slane %v6192_v40, 7  ;;  %v6001_v45 = vmin.f32 %v5905_v0, 6.0  ;;  %v5512_v48 = vadd.f32 %v5313_v46, %v4897_v59  ;;  %v5612_v5 = vmul.f32 %v8072_v18, %v5510_v44 }
 0x431   : > { %v12699_v60 = vrot.slane %v12698_v8, 7  ;;  %v12296_v0 = vrot.slane %v11439_v22, 1  ;;  %v11449_v24 = vmul.f32 %v12697_v54, %v7882_v36  ;;  %v2164_v44 = vadd.f32 %v1972_v55, %v1612_v38 }
 0x432   : > { %v6097_v40 = vmul.f32 %v6001_v45, %v5713_v47  ;;  %v5614_v19 = vmul.f32 %v8072_v18, %v5512_v48  ;;  %v5714_v59 = vadd.f32 %v8117_v50, %v5612_v5  ;;  %v2580_v6 = vrot.slane %v2331_v11, 2  ;;  %v12700_v5 = vld [vmem:[#allocation19_spill] sm:$0xff] }
 0x433   : > { %v6440_v32 = vsel %vm6302_vm4, %v12699_v60, %v6439_v7  ;;  %v1976_v46 = vsel %vm1886_vm2, %v1972_v55, %v12296_v0  ;;  %v12294_v47 = vrot.slane %v11449_v24, 2  ;;  %v2979_v7 = vmul.f32 %v12653_v51, %v2878_v9 }
 0x434   : > { %6681 = vmatmul.f32.gmra.mxu2 %v6440_v32  ;;  %v6193_v15 = vmul.f32 0.16666667, %v6097_v40  ;;  %v5716_v45 = vadd.f32 %v8117_v50, %v5614_v19  ;;  %v5810_v54 = vadd.f32 3.0, %v5714_v59  ;;  %v2166_v8 = vadd.f32 %v1976_v46, %v1614_v33  ;;  %v3600_v32 = vld [vmem:[#allocation2 + $0x3d8] sm:$0xfe]  ;;  %v12701_v40 = vld [vmem:[#allocation25_spill] sm:$0xff] }
 0x435   : > { %v2780_v60 = vadd.f32 %v2580_v6, %v2164_v44  ;;  %v2584_v38 = vsel %vm2438_vm3, %v2580_v6, %v12294_v47  ;;  %v2981_v11 = vmul.f32 %v12700_v5, %v12653_v51  ;;  %v3182_v55 = vmul.f32 %v12700_v5, %v12701_v40  ;;  %v4244_v19 = vld [vmem:[#allocation2 + $0x408] sm:$0x80]  ;;  %v12702_v44 = vld [vmem:[#allocation29_spill] sm:$0xff]  ;;  %v11474_v47 = vld [vmem:[#allocation2 + $0x418] sm:$0xff] }
 0x436   : > { %v6441_v48 = vrot.slane %v6193_v15, 7  ;;  %v5812_v30 = vadd.f32 3.0, %v5716_v45  ;;  %v5906_v49 = vmax.f32 %v5810_v54, 0.0  ;;  %v2782_v9 = vadd.f32 %v2584_v38, %v2166_v8  ;;  %12703 = vst [vmem:[#allocation21_spill] sm:$0xff] %v11474_v47  ;;  %v4247_v5 = vld [vmem:[#allocation2 + $0x420] sm:$0x7f] }
 0x437   : > { %v3075_v2 = vadd.f32 %v2979_v7, %v2780_v60  ;;  %v11471_v15 = vmul.f32 %v12702_v44, %v12701_v40  ;;  %v3338_v6 = vrot.slane %v3182_v55, 1  ;;  %v3697_v46 = vmul.f32 %v8060_v61, %v3600_v32 }
 0x438   : > { %v6442_v33 = vsel %vm6302_vm4, %v6437_v57, %v6441_v48  ;;  %v5908_v53 = vmax.f32 %v5812_v30, 0.0  ;;  %v6002_v54 = vmin.f32 %v5906_v49, 6.0  ;;  %v3077_v8 = vadd.f32 %v2981_v11, %v2782_v9  ;;  %v4966_v30 = vld [vmem:[#allocation2 + $0x418] sm:$0xfe] }
 0x439   : > { %7143 = vmatmul.msk.f32.gmra.mxu3 %vm1216_vm1, %v6442_v33  ;;  %v11479_v7 = vmul.f32 %v12702_v44, %v8060_v61  ;;  %v12301_v57 = vrot.slane %v11471_v15, 1  ;;  %v3530_v60 = vadd.f32 %v3338_v6, %v3075_v2  ;;  %v3945_v48 = vrot.slane %v3697_v46, 2  ;;  %v12705_v33 = vld [vmem:[#allocation27_spill] sm:$0xff] }
 0x43a   : > { %v4345_v38 = vmul.f32 %v8098_v37, %v4244_v19  ;;  %v6004_v32 = vmin.f32 %v5908_v53, 6.0  ;;  %v6098_v55 = vmul.f32 %v6002_v54, %v5714_v59  ;;  %v4347_v49 = vmul.f32 %v8098_v37, %v11474_v47  ;;  %v6637_v54 = vpop.f32.mrf.mxu2 }
 0x43b   : > { %v12306_v0 = vrot.slane %v11479_v7, 2  ;;  %v3342_v11 = vsel %vm1886_vm2, %v3338_v6, %v12301_v57  ;;  %v4145_v9 = vadd.f32 %v3945_v48, %v3530_v60  ;;  %v4548_v26 = vmul.f32 %v12705_v33, %v11474_v47  ;;  %v1514_v57 = vld [vmem:[#allocation2 + $0x3a0] sm:$0x7f]  ;;  %v2235_v47 = vld [vmem:[#allocation2 + $0x3b0] sm:$0x1] }
 0x43c   : > { %v11495_v2 = vmul.f32 %v12705_v33, %v11481_v1  ;;  %v6100_v53 = vmul.f32 %v6004_v32, %v5716_v45  ;;  %v6194_v59 = vmul.f32 0.16666667, %v6098_v55  ;;  %v3532_v19 = vadd.f32 %v3342_v11, %v3077_v8  ;;  %v2881_v32 = vld [vmem:[#allocation2 + $0x3e0] sm:$0x7f] }
 0x43d   : > { %v3949_v46 = vsel %vm2438_vm3, %v3945_v48, %v12306_v0  ;;  %v4441_v40 = vadd.f32 %v4345_v38, %v4145_v9  ;;  %v4704_v44 = vrot.slane %v4548_v26, 1  ;;  %v5063_v60 = vmul.f32 %v12682_v62, %v4966_v30 }
 0x43e   : > { %v12310_v6 = vrot.slane %v11495_v2, 1  ;;  %v11502_v41 = vmul.f32 0.16666667, %v6100_v53  ;;  %v6443_v33 = vrot.slane %v6194_v59, 7  ;;  %v4147_v45 = vadd.f32 %v3949_v46, %v3532_v19  ;;  %v3601_v59 = vld [vmem:[#allocation2 + $0x3f0] sm:$0x1] }
 0x43f   : > { %v11506_v8 = vmul.f32 %v12682_v62, %v11481_v1  ;;  %v4896_v26 = vadd.f32 %v4704_v44, %v4441_v40  ;;  %v5311_v38 = vrot.slane %v5063_v60, 2  ;;  %v6751_v55 = vadd.f32 %v6750_v43, %v6637_v54  ;;  %v1515_v40 = vld [vmem:[#allocation2 + $0x3a8] sm:$0x7f] }
 0x440   : > { %v4708_v48 = vsel %vm1886_vm2, %v4704_v44, %v12310_v6  ;;  %v6444_v30 = vrot.slane %v11502_v41, 7  ;;  %v4443_v11 = vadd.f32 %v4347_v49, %v4147_v45  ;;  %v1615_v53 = vmul.f32 %v12369_v14, %v1514_v57  ;;  %v4967_v6 = vld [vmem:[#allocation2 + $0x430] sm:$0x1] }
 0x441   : > { %v5314_v9 = vrot.slane %v11506_v8, 2  ;;  %v5511_v19 = vadd.f32 %v5311_v38, %v4896_v26  ;;  %v6826_v46 = vmul.f32 %v11060_v13, %v6751_v55  ;;  %v2334_v0 = vmul.f32 %v12358_v10, %v2235_v47  ;;  %v2882_v55 = vld [vmem:[#allocation2 + $0x3e8] sm:$0x7f] }
 0x442   : > { %v2982_v1 = vmul.f32 %v7788_v29, %v2881_v32  ;;  %v6445_v43 = vsel %vm6302_vm4, %v6443_v33, %v6444_v30  ;;  %v4898_v44 = vadd.f32 %v4708_v48, %v4443_v11  ;;  %v12706_v49 = vrot.slane %v11347_v34, 1  ;;  %v7224_v11 = vld [vmem:[%s7497_s28 + $0x60] sm:$0xff] }
 0x443   : > { %v5315_v57 = vsel %vm2438_vm3, %v5311_v38, %v5314_v9  ;;  %6684 = vmatmul.f32.gmra.mxu2 %v6445_v43  ;;  %v5613_v47 = vmul.f32 %v8163_v63, %v5511_v19  ;;  %v6862_v54 = vadd.f32 %v11076_v20, %v6826_v46  ;;  %v2585_v60 = vrot.slane %v2334_v0, 2  ;;  %v2236_v38 = vld [vmem:[#allocation2 + $0x3b8] sm:$0x1] }
 0x444   : > { %v2167_v13 = vadd.f32 %v12706_v49, %v1615_v53  ;;  %v3700_v45 = vmul.f32 %v12625_v28, %v3601_v59  ;;  %v5513_v32 = vadd.f32 %v5315_v57, %v4898_v44  ;;  %v4348_v33 = vmul.f32 %v12627_v21, %v4247_v5  ;;  %v3602_v59 = vld [vmem:[#allocation2 + $0x3f8] sm:$0x1]  ;;  %v4248_v44 = vld [vmem:[#allocation2 + $0x428] sm:$0x7f] }
 0x445   : > { %v5066_v48 = vmul.f32 %v12548_v52, %v4967_v6  ;;  %v1616_v26 = vmul.f32 %v12384_v25, %v1515_v40  ;;  %v5715_v34 = vadd.f32 %v12626_v16, %v5613_v47  ;;  %v6894_v53 = vadd.f32 %v7224_v11, %v6862_v54  ;;  %v4968_v57 = vld [vmem:[#allocation2 + $0x438] sm:$0x1] }
 0x446   : > { %v12707_v19 = vrot.slane %v11364_v39, 2  ;;  %v3950_v0 = vrot.slane %v3700_v45, 2  ;;  %v5615_v46 = vmul.f32 %v8163_v63, %v5513_v32  ;;  %v12708_v6 = vrot.slane %v11439_v22, 1  ;;  %v1516_v45 = vld [vmem:[#allocation2 + $0x3c0] sm:$0x80] }
 0x447   : > { %v5316_v43 = vrot.slane %v5066_v48, 2  ;;  %v5811_v49 = vadd.f32 3.0, %v5715_v34  ;;  %6926 = vst.msk [vmem:[%s10164_s15 + $0x60] sm:$0xff] %vm432_vm0, %v6894_v53  ;;  %v12709_v47 = vrot.slane %v11395_v27, 2  ;;  %v2335_v54 = vmul.f32 %v7882_v36, %v2236_v38 }
 0x448   : > { %v2586_v20 = vsel %vm2438_vm3, %v12707_v19, %v2585_v60  ;;  %v2168_v40 = vadd.f32 %v12708_v6, %v1616_v26  ;;  %v2983_v60 = vmul.f32 %v12653_v51, %v2882_v55  ;;  %v12710_v22 = vrot.slane %v11423_v56, 2  ;;  %v6753_v6 = vpop.f32.mrf.mxu3 }
 0x449   : > { %v2783_v5 = vadd.f32 %v2586_v20, %v2167_v13  ;;  %v3951_v39 = vsel %vm2438_vm3, %v12709_v47, %v3950_v0  ;;  %v5717_v13 = vadd.f32 %v12626_v16, %v5615_v46  ;;  %v3701_v26 = vmul.f32 %v8060_v61, %v3602_v59  ;;  %v6640_v59 = vpop.f32.mrf.mxu2 }
 0x44a   : > { %v5317_v48 = vsel %vm2438_vm3, %v12710_v22, %v5316_v43  ;;  %v5907_v11 = vmax.f32 %v5811_v49, 0.0  ;;  %v2587_v53 = vrot.slane %v2335_v54, 2  ;;  %v4349_v27 = vmul.f32 %v8098_v37, %v4248_v44 }
 0x44b   : > { %v3078_v32 = vadd.f32 %v2982_v1, %v2783_v5  ;;  %v5067_v19 = vmul.f32 %v12682_v62, %v4968_v57  ;;  %v5813_v20 = vadd.f32 3.0, %v5717_v13  ;;  %v12711_v38 = vrot.slane %v11389_v23, 1 }
 0x44c   : > { %v3952_v0 = vrot.slane %v3701_v26, 2  ;;  %v1617_v46 = vmul.f32 %v12369_v14, %v1516_v45  ;;  %v6003_v1 = vmin.f32 %v5907_v11, 6.0  ;;  %v12712_v56 = vrot.slane %v11449_v24, 2 }
 0x44d   : > { %v3533_v55 = vadd.f32 %v12711_v38, %v3078_v32  ;;  %v5318_v43 = vrot.slane %v5067_v19, 2  ;;  %v1619_v44 = vmul.f32 %v11173_v42, %v12369_v14  ;;  %v5909_v49 = vmax.f32 %v5813_v20, 0.0  ;;  %v2237_v32 = vld [vmem:[#allocation2 + $0x3d0] sm:$0xfe] }
 0x44e   : > { %v2588_v5 = vsel %vm2438_vm3, %v12712_v56, %v2587_v53  ;;  %v12713_v23 = vrot.slane %v11479_v7, 2  ;;  %v6099_v45 = vmul.f32 %v6003_v1, %v5715_v34  ;;  %v6754_v22 = vadd.f32 %v6753_v6, %v6640_v59  ;;  %v11576_v34 = vld [vmem:[%s11922_s8] ss:$0 sm:$0xff]  ;;  %v7227_v6 = vld [vmem:[%s7497_s28 + $0x68] sm:$0xff] }
 0x44f   : > { %v4148_v57 = vadd.f32 %v3951_v39, %v3533_v55  ;;  %v2784_v47 = vadd.f32 %v2588_v5, %v2168_v40  ;;  %v5319_v24 = vsel %vm2438_vm3, %v5314_v9, %v5318_v43  ;;  %v1818_v26 = vmul.f32 %v11173_v42, %v12381_v12 }
 0x450   : > { %v3953_v54 = vsel %vm2438_vm3, %v12713_v23, %v3952_v0  ;;  %v6005_v11 = vmin.f32 %v5909_v49, 6.0  ;;  %v11571_v40 = vmul.f32 %v11176_v31, %v12381_v12  ;;  %v6195_v7 = vmul.f32 0.16666667, %v6099_v45  ;;  %v11588_v0 = vld [vmem:[%s11923_s9] ss:$0 sm:$0xff] }
 0x451   : > { %v4444_v53 = vadd.f32 %v4348_v33, %v4148_v57  ;;  %v3079_v19 = vadd.f32 %v2983_v60, %v2784_v47  ;;  %v6827_v8 = vmul.f32 %v11576_v34, %v6754_v22  ;;  %v1977_v9 = vrot.slane %v1818_v26, 1  ;;  %v3603_v22 = vld [vmem:[#allocation2 + $0x410] sm:$0xfe] }
 0x452   : > { %v2336_v39 = vmul.f32 %v12358_v10, %v2237_v32  ;;  %v6101_v42 = vmul.f32 %v6005_v11, %v5717_v13  ;;  %v12714_v33 = vrot.slane %v11417_v35, 1  ;;  %v12715_v20 = vrot.slane %v11471_v15, 1  ;;  %v2883_v35 = vld [vmem:[#allocation2 + $0x400] sm:$0x80] }
 0x453   : > { %v1979_v38 = vrot.slane %v11571_v40, 1  ;;  %v6446_v55 = vrot.slane %v6195_v7, 7  ;;  %v6863_v1 = vadd.f32 %v11588_v0, %v6827_v8  ;;  %v2169_v56 = vadd.f32 %v1977_v9, %v1617_v46  ;;  %v4249_v8 = vld [vmem:[#allocation2 + $0x440] sm:$0x80] }
 0x454   : > { %v4899_v60 = vadd.f32 %v12714_v33, %v4444_v53  ;;  %v3534_v12 = vadd.f32 %v12715_v20, %v3079_v19  ;;  %v11593_v13 = vmul.f32 %v11176_v31, %v12358_v10  ;;  %v11595_v5 = vmul.f32 0.16666667, %v6101_v42 }
 0x455   : > { %v1980_v59 = vsel %vm1886_vm2, %v1977_v9, %v1979_v38  ;;  %v6895_v49 = vadd.f32 %v7227_v6, %v6863_v1  ;;  %v2589_v47 = vrot.slane %v2336_v39, 2  ;;  %v2984_v45 = vmul.f32 %v7788_v29, %v2883_v35 }
 0x456   : > { %v5514_v15 = vadd.f32 %v5317_v48, %v4899_v60  ;;  %v4149_v43 = vadd.f32 %v3953_v54, %v3534_v12  ;;  %v2171_v57 = vadd.f32 %v1980_v59, %v1619_v44  ;;  %v2591_v46 = vrot.slane %v11593_v13, 2  ;;  %v7228_v59 = vld [vmem:[#allocation2] sm:$0xff] }
 0x457   : > { %v6447_v23 = vrot.slane %v11595_v5, 7  ;;  %6927 = vst.msk [vmem:[%s10164_s15 + $0x68] sm:$0xff] %vm432_vm0, %v6895_v49  ;;  %v2785_v54 = vadd.f32 %v2589_v47, %v2169_v56  ;;  %v2986_v44 = vmul.f32 %v11397_v17, %v7788_v29  ;;  %v3185_v26 = vmul.f32 %v11397_v17, %v12359_v4 }
 0x458   : > { %v5616_v31 = vmul.f32 %v8072_v18, %v5514_v15  ;;  %v4445_v32 = vadd.f32 %v4349_v27, %v4149_v43  ;;  %v2592_v48 = vsel %vm2438_vm3, %v2589_v47, %v2591_v46  ;;  %v12716_v53 = vrot.slane %v11495_v2, 1  ;;  %v4969_v2 = vld [vmem:[#allocation2 + $0x450] sm:$0xfe]  ;;  %v1517_v47 = vld [vmem:[#allocation2 + $0x3c8] sm:$0x80] }
 0x459   : > { %v6448_v27 = vsel %vm6302_vm4, %v6446_v55, %v6447_v23  ;;  %v2787_v7 = vadd.f32 %v2592_v48, %v2171_v57  ;;  %v3080_v9 = vadd.f32 %v2984_v45, %v2785_v54  ;;  %v11623_v39 = vmul.f32 %v11400_v3, %v12359_v4 }
 0x45a   : > { %v5718_v11 = vadd.f32 %v8117_v50, %v5616_v31  ;;  %v4900_v19 = vadd.f32 %v12716_v53, %v4445_v32  ;;  %7144 = vmatmul.msk.f32.gmra.mxu3 %vm1216_vm1, %v6448_v27  ;;  %v3343_v42 = vrot.slane %v3185_v26, 1  ;;  %v3702_v17 = vmul.f32 %v12625_v28, %v3603_v22 }
 0x45b   : > { %v3082_v20 = vadd.f32 %v2986_v44, %v2787_v7  ;;  %v11628_v12 = vmul.f32 %v11400_v3, %v12625_v28  ;;  %v3345_v55 = vrot.slane %v11623_v39, 1  ;;  %v4350_v35 = vmul.f32 %v12627_v21, %v4249_v8  ;;  %v2238_v7 = vld [vmem:[#allocation2 + $0x3d8] sm:$0xfe]  ;;  %v4254_v39 = vld [vmem:[#allocation2 + $0x468] sm:$0x7f] }
 0x45c   : > { %v5814_v33 = vadd.f32 3.0, %v5718_v11  ;;  %v5515_v60 = vadd.f32 %v5319_v24, %v4900_v19  ;;  %v3535_v1 = vadd.f32 %v3343_v42, %v3080_v9  ;;  %v3954_v56 = vrot.slane %v3702_v17, 2 }
 0x45d   : > { %v3956_v43 = vrot.slane %v11628_v12, 2  ;;  %v4352_v24 = vmul.f32 %v7228_v59, %v12627_v21  ;;  %v3346_v3 = vsel %vm1886_vm2, %v3343_v42, %v3345_v55  ;;  %v4551_v49 = vmul.f32 %v7228_v59, %v12628_v58  ;;  %v12717_v42 = vld [vmem:[#allocation19_spill] sm:$0xff] }
 0x45e   : > { %v5910_v15 = vmax.f32 %v5814_v33, 0.0  ;;  %v5617_v4 = vmul.f32 %v8163_v63, %v5515_v60  ;;  %v4150_v6 = vadd.f32 %v3954_v56, %v3535_v1  ;;  %v5068_v57 = vmul.f32 %v12548_v52, %v4969_v2  ;;  %v12718_v2 = vld [vmem:[#allocation17_spill] sm:$0xff] }
 0x45f   : > { %v3537_v45 = vadd.f32 %v3346_v3, %v3082_v20  ;;  %v3957_v22 = vsel %vm2438_vm3, %v3954_v56, %v3956_v43  ;;  %v11644_v54 = vrot.slane %v4551_v49, 1  ;;  %v11647_v44 = vmul.f32 %v7228_v59, %v12548_v52 }
 0x460   : > { %v6006_v31 = vmin.f32 %v5910_v15, 6.0  ;;  %v5719_v32 = vadd.f32 %v12626_v16, %v5617_v4  ;;  %v4446_v48 = vadd.f32 %v4350_v35, %v4150_v6  ;;  %v5320_v26 = vrot.slane %v5068_v57, 2  ;;  %v12719_v35 = vld [vmem:[#allocation29_spill] sm:$0xff] }
 0x461   : > { %v4152_v53 = vadd.f32 %v3957_v22, %v3537_v45  ;;  %v1618_v19 = vmul.f32 %v12384_v25, %v1517_v47  ;;  %v5322_v9 = vrot.slane %v11647_v44, 2  ;;  %v1620_v17 = vmul.f32 %v12717_v42, %v12384_v25 }
 0x462   : > { %v6102_v27 = vmul.f32 %v6006_v31, %v5718_v11  ;;  %v5815_v58 = vadd.f32 3.0, %v5719_v32  ;;  %v4901_v8 = vadd.f32 %v11644_v54, %v4446_v48  ;;  %v1819_v1 = vmul.f32 %v12717_v42, %v12718_v2 }
 0x463   : > { %v4448_v20 = vadd.f32 %v4352_v24, %v4152_v53  ;;  %v5323_v11 = vsel %vm2438_vm3, %v5320_v26, %v5322_v9  ;;  %v11661_v15 = vmul.f32 %v12719_v35, %v12718_v2  ;;  %v2337_v4 = vmul.f32 %v7882_v36, %v2238_v7  ;;  %v2884_v24 = vld [vmem:[#allocation2 + $0x408] sm:$0x80] }
 0x464   : > { %v6198_v33 = vmul.f32 0.16666667, %v6102_v27  ;;  %v5911_v60 = vmax.f32 %v5815_v58, 0.0  ;;  %v5516_v56 = vadd.f32 %v5320_v26, %v4901_v8  ;;  %v1978_v49 = vrot.slane %v1819_v1, 1  ;;  %v12721_v1 = vld [vmem:[#allocation25_spill] sm:$0xff] }
 0x465   : > { %v4903_v6 = vadd.f32 %v11644_v54, %v4448_v20  ;;  %v1981_v47 = vrot.slane %v11661_v15, 1  ;;  %v11669_v31 = vmul.f32 %v12719_v35, %v7882_v36  ;;  %v2590_v45 = vrot.slane %v2337_v4, 2  ;;  %v12720_v20 = vld [vmem:[#allocation21_spill] sm:$0xff] }
 0x466   : > { %v6449_v59 = vrot.slane %v6198_v33, 7  ;;  %v6007_v3 = vmin.f32 %v5911_v60, 6.0  ;;  %v5618_v57 = vmul.f32 %v8072_v18, %v5516_v56  ;;  %v2170_v27 = vadd.f32 %v1978_v49, %v1618_v19 }
 0x467   : > { %v5518_v26 = vadd.f32 %v5323_v11, %v4903_v6  ;;  %v1982_v53 = vsel %vm1886_vm2, %v1978_v49, %v1981_v47  ;;  %v2593_v7 = vrot.slane %v11669_v31, 2  ;;  %v2985_v8 = vmul.f32 %v12653_v51, %v2884_v24 }
 0x468   : > { %v6450_v22 = vsel %vm6302_vm4, %v6444_v30, %v6449_v59  ;;  %v6103_v48 = vmul.f32 %v6007_v3, %v5719_v32  ;;  %v5720_v58 = vadd.f32 %v8117_v50, %v5618_v57  ;;  %v2172_v41 = vadd.f32 %v1982_v53, %v1620_v17  ;;  %v3604_v30 = vld [vmem:[#allocation2 + $0x418] sm:$0xfe]  ;;  %v12722_v17 = vld [vmem:[#allocation23_spill] sm:$0xff]  ;;  %v4250_v57 = vld [vmem:[#allocation2 + $0x448] sm:$0x80] }
 0x469   : > { %6687 = vmatmul.f32.gmra.mxu2 %v6450_v22  ;;  %v5620_v33 = vmul.f32 %v8072_v18, %v5518_v26  ;;  %v2786_v60 = vadd.f32 %v2590_v45, %v2170_v27  ;;  %v2594_v19 = vsel %vm2438_vm3, %v2590_v45, %v2593_v7  ;;  %v2987_v2 = vmul.f32 %v12720_v20, %v12653_v51  ;;  %v4252_v27 = vld [vmem:[#allocation2 + $0x458] sm:$0xff] }
 0x46a   : > { %v6199_v42 = vmul.f32 0.16666667, %v6103_v48  ;;  %v5816_v32 = vadd.f32 3.0, %v5720_v58  ;;  %v3186_v11 = vmul.f32 %v12720_v20, %v12721_v1  ;;  %v2788_v4 = vadd.f32 %v2594_v19, %v2172_v41  ;;  %v4485_v41 = vld [vmem:[#allocation2 + $0x468] sm:$0xff] }
 0x46b   : > { %v5722_v35 = vadd.f32 %v8117_v50, %v5620_v33  ;;  %v3081_v59 = vadd.f32 %v2985_v8, %v2786_v60  ;;  %v11691_v6 = vmul.f32 %v12722_v17, %v12721_v1  ;;  %v3703_v24 = vmul.f32 %v8060_v61, %v3604_v30  ;;  %v12723_v1 = vld [vmem:[#allocation27_spill] sm:$0xff] }
 0x46c   : > { %v6451_v56 = vrot.slane %v6199_v42, 7  ;;  %v5912_v3 = vmax.f32 %v5816_v32, 0.0  ;;  %v3344_v49 = vrot.slane %v3186_v11, 1  ;;  %v3083_v48 = vadd.f32 %v2987_v2, %v2788_v4  ;;  %v4970_v32 = vld [vmem:[#allocation2 + $0x458] sm:$0xfe] }
 0x46d   : > { %v5818_v22 = vadd.f32 3.0, %v5722_v35  ;;  %v11699_v26 = vmul.f32 %v12722_v17, %v8060_v61  ;;  %v12311_v8 = vrot.slane %v11691_v6, 1  ;;  %v3955_v33 = vrot.slane %v3703_v24, 2  ;;  %v6643_v17 = vpop.f32.mrf.mxu2  ;;  %v6756_v24 = vpop.f32.mrf.mxu3 }
 0x46e   : > { %v6452_v45 = vsel %vm6302_vm4, %v6447_v23, %v6451_v56  ;;  %v6008_v53 = vmin.f32 %v5912_v3, 6.0  ;;  %v3536_v42 = vadd.f32 %v3344_v49, %v3081_v59  ;;  %v4351_v23 = vmul.f32 %v8098_v37, %v4250_v57 }
 0x46f   : > { %7145 = vmatmul.msk.f32.gmra.mxu3 %vm1216_vm1, %v6452_v45  ;;  %v5914_v60 = vmax.f32 %v5818_v22, 0.0  ;;  %v12312_v5 = vrot.slane %v11699_v26, 2  ;;  %v4353_v30 = vmul.f32 %v8098_v37, %v4252_v27  ;;  %v3348_v20 = vsel %vm1886_vm2, %v3344_v49, %v12311_v8 }
 0x470   : > { %v6104_v19 = vmul.f32 %v6008_v53, %v5720_v58  ;;  %v4151_v2 = vadd.f32 %v3955_v33, %v3536_v42  ;;  %v4552_v11 = vmul.f32 %v12723_v1, %v4252_v27  ;;  %v3538_v4 = vadd.f32 %v3348_v20, %v3083_v48  ;;  %v1520_v42 = vld [vmem:[#allocation2 + $0x3e0] sm:$0x7f] }
 0x471   : > { %v6010_v56 = vmin.f32 %v5914_v60, 6.0  ;;  %v3959_v59 = vsel %vm2438_vm3, %v3955_v33, %v12312_v5  ;;  %v11714_v3 = vmul.f32 %v12723_v1, %v4485_v41  ;;  %v5069_v22 = vmul.f32 %v12682_v62, %v4970_v32  ;;  %v2239_v60 = vld [vmem:[#allocation2 + $0x3f0] sm:$0x1] }
 0x472   : > { %v6200_v57 = vmul.f32 0.16666667, %v6104_v19  ;;  %v4447_v58 = vadd.f32 %v4351_v23, %v4151_v2  ;;  %v4710_v45 = vrot.slane %v4552_v11, 1  ;;  %v4153_v53 = vadd.f32 %v3959_v59, %v3538_v4  ;;  %v2887_v11 = vld [vmem:[#allocation2 + $0x420] sm:$0x7f] }
 0x473   : > { %v6106_v49 = vmul.f32 %v6010_v56, %v5722_v35  ;;  %v4713_v27 = vrot.slane %v11714_v3, 1  ;;  %v11719_v48 = vmul.f32 %v12682_v62, %v4485_v41  ;;  %v5321_v20 = vrot.slane %v5069_v22, 2  ;;  %v3605_v56 = vld [vmem:[#allocation2 + $0x430] sm:$0x1] }
 0x474   : > { %v4902_v33 = vadd.f32 %v4710_v45, %v4447_v58  ;;  %v6757_v1 = vadd.f32 %v6756_v24, %v6643_v17  ;;  %v4449_v5 = vadd.f32 %v4353_v30, %v4153_v53  ;;  %v1621_v41 = vmul.f32 %v12369_v14, %v1520_v42  ;;  %v4971_v53 = vld [vmem:[#allocation2 + $0x470] sm:$0x1]  ;;  %v2240_v42 = vld [vmem:[#allocation2 + $0x3f8] sm:$0x1] }
 0x475   : > { %v11721_v8 = vmul.f32 0.16666667, %v6106_v49  ;;  %v4714_v23 = vsel %vm1886_vm2, %v4710_v45, %v4713_v27  ;;  %v5324_v35 = vrot.slane %v11719_v48, 2  ;;  %v2340_v2 = vmul.f32 %v12358_v10, %v2239_v60  ;;  %v1521_v10 = vld [vmem:[#allocation2 + $0x3e8] sm:$0x7f] }
 0x476   : > { %v5517_v32 = vadd.f32 %v5321_v20, %v4902_v33  ;;  %v6828_v19 = vmul.f32 %v11576_v34, %v6757_v1  ;;  %v6453_v4 = vrot.slane %v6200_v57, 7  ;;  %v4904_v30 = vadd.f32 %v4714_v23, %v4449_v5  ;;  %v7229_v33 = vld [vmem:[%s7497_s28 + $0x70] sm:$0xff] }
 0x477   : > { %v6454_v59 = vrot.slane %v11721_v8, 7  ;;  %v5325_v17 = vsel %vm2438_vm3, %v5321_v20, %v5324_v35  ;;  %v2173_v14 = vadd.f32 %v1979_v38, %v1621_v41  ;;  %v2595_v45 = vrot.slane %v2340_v2, 2 }
 0x478   : > { %v5619_v24 = vmul.f32 %v8163_v63, %v5517_v32  ;;  %v6864_v58 = vadd.f32 %v11588_v0, %v6828_v19  ;;  %v5519_v22 = vadd.f32 %v5325_v17, %v4904_v30  ;;  %v2988_v5 = vmul.f32 %v7788_v29, %v2887_v11  ;;  %v3606_v29 = vld [vmem:[#allocation2 + $0x438] sm:$0x1]  ;;  %v2888_v11 = vld [vmem:[#allocation2 + $0x428] sm:$0x7f] }
 0x479   : > { %v6455_v57 = vsel %vm6302_vm4, %v6453_v4, %v6454_v59  ;;  %v3706_v49 = vmul.f32 %v12625_v28, %v3605_v56  ;;  %v2596_v38 = vsel %vm2438_vm3, %v2591_v46, %v2595_v45  ;;  %v1622_v32 = vmul.f32 %v12384_v25, %v1521_v10  ;;  %v4253_v28 = vld [vmem:[#allocation2 + $0x460] sm:$0x7f]  ;;  %v6759_v10 = vpop.f32.mrf.mxu3 }
 0x47a   : > { %6690 = vmatmul.f32.gmra.mxu2 %v6455_v57  ;;  %v5721_v60 = vadd.f32 %v12626_v16, %v5619_v24  ;;  %v6896_v40 = vadd.f32 %v7229_v33, %v6864_v58  ;;  %v5621_v20 = vmul.f32 %v8163_v63, %v5519_v22  ;;  %v2789_v1 = vadd.f32 %v2596_v38, %v2173_v14  ;;  %v4972_v14 = vld [vmem:[#allocation2 + $0x478] sm:$0x1] }
 0x47b   : > { %v3960_v23 = vrot.slane %v3706_v49, 2  ;;  %v5072_v41 = vmul.f32 %v12548_v52, %v4971_v53  ;;  %v2341_v2 = vmul.f32 %v7882_v36, %v2240_v42  ;;  %v2174_v46 = vadd.f32 %v1981_v47, %v1622_v32 }
 0x47c   : > { %v5817_v19 = vadd.f32 3.0, %v5721_v60  ;;  %6928 = vst.msk [vmem:[%s10164_s15 + $0x70] sm:$0xff] %vm432_vm0, %v6896_v40  ;;  %v5723_v13 = vadd.f32 %v12626_v16, %v5621_v20  ;;  %v3084_v56 = vadd.f32 %v2988_v5, %v2789_v1  ;;  %v3707_v17 = vmul.f32 %v8060_v61, %v3606_v29 }
 0x47d   : > { %v3961_v25 = vsel %vm2438_vm3, %v3956_v43, %v3960_v23  ;;  %v2597_v30 = vrot.slane %v2341_v2, 2  ;;  %v4354_v36 = vmul.f32 %v12627_v21, %v4253_v28  ;;  %v2989_v58 = vmul.f32 %v12653_v51, %v2888_v11  ;;  %v6646_v43 = vpop.f32.mrf.mxu2 }
 0x47e   : > { %v5913_v4 = vmax.f32 %v5817_v19, 0.0  ;;  %v5819_v24 = vadd.f32 3.0, %v5723_v13  ;;  %v3539_v52 = vadd.f32 %v3345_v55, %v3084_v56  ;;  %v5326_v15 = vrot.slane %v5072_v41, 2  ;;  %v7230_v19 = vld [vmem:[%s7497_s28 + $0x78] sm:$0xff] }
 0x47f   : > { %v2598_v12 = vsel %vm2438_vm3, %v2593_v7, %v2597_v30  ;;  %v3962_v47 = vrot.slane %v3707_v17, 2  ;;  %v5073_v55 = vmul.f32 %v12682_v62, %v4972_v14  ;;  %v6760_v21 = vadd.f32 %v6759_v10, %v6646_v43 }
 0x480   : > { %v6009_v45 = vmin.f32 %v5913_v4, 6.0  ;;  %v5915_v57 = vmax.f32 %v5819_v24, 0.0  ;;  %v4154_v61 = vadd.f32 %v3961_v25, %v3539_v52  ;;  %v2790_v22 = vadd.f32 %v2598_v12, %v2174_v46  ;;  %v7231_v24 = vld [vmem:[%s7497_s28 + $0x80] sm:$0xff] }
 0x481   : > { %v5327_v31 = vsel %vm2438_vm3, %v5322_v9, %v5326_v15  ;;  %v12724_v7 = vrot.slane %v11699_v26, 2  ;;  %v6829_v40 = vmul.f32 %v11576_v34, %v6760_v21  ;;  %v12725_v62 = vrot.slane %v11691_v6, 1  ;;  %v6762_v2 = vpop.f32.mrf.mxu3 }
 0x482   : > { %v6105_v5 = vmul.f32 %v6009_v45, %v5721_v60  ;;  %v6011_v49 = vmin.f32 %v5915_v57, 6.0  ;;  %v4450_v51 = vadd.f32 %v4354_v36, %v4154_v61  ;;  %v3085_v53 = vadd.f32 %v2989_v58, %v2790_v22  ;;  %v7232_v57 = vld [vmem:[%s7497_s28 + $0x88] sm:$0xff] }
 0x483   : > { %v3963_v33 = vsel %vm2438_vm3, %v12724_v7, %v3962_v47  ;;  %v4355_v1 = vmul.f32 %v8098_v37, %v4254_v39  ;;  %v5328_v23 = vrot.slane %v5073_v55, 2  ;;  %v6865_v44 = vadd.f32 %v11588_v0, %v6829_v40 }
 0x484   : > { %v6201_v42 = vmul.f32 0.16666667, %v6105_v5  ;;  %v6107_v60 = vmul.f32 %v6011_v49, %v5723_v13  ;;  %v4905_v38 = vadd.f32 %v11644_v54, %v4450_v51  ;;  %v3540_v20 = vadd.f32 %v12725_v62, %v3085_v53 }
 0x485   : > { %v6897_v28 = vadd.f32 %v7230_v19, %v6865_v44  ;;  %v6649_v41 = vpop.f32.mrf.mxu2  ;;  %v5329_v37 = vsel %vm2438_vm3, %v5324_v35, %v5328_v23 }
 0x486   : > { %v6203_v32 = vmul.f32 0.16666667, %v6107_v60  ;;  %v5520_v9 = vadd.f32 %v5327_v31, %v4905_v38  ;;  %v4155_v29 = vadd.f32 %v3963_v33, %v3540_v20  ;;  %v6456_v26 = vrot.slane %v6201_v42, 7  ;;  %v7233_v31 = vld [vmem:[%s7497_s28 + $0x90] sm:$0xff]  ;;  %v7234_v38 = vld [vmem:[%s7497_s28 + $0x98] sm:$0xff] }
 0x487   : > { %v6763_v13 = vadd.f32 %v6762_v2, %v6649_v41  ;;  %6929 = vst.msk [vmem:[%s10164_s15 + $0x78] sm:$0xff] %vm432_vm0, %v6897_v28 }
 0x488   : > { %v6457_v11 = vrot.slane %v6203_v32, 7  ;;  %v5622_v54 = vmul.f32 %v8072_v18, %v5520_v9  ;;  %v4451_v6 = vadd.f32 %v4355_v1, %v4155_v29  ;;  %v7235_v9 = vld [vmem:[%s7497_s28 + $0xa0] sm:$0xff] }
 0x489   : > { %v6830_v25 = vmul.f32 %v11576_v34, %v6763_v13  ;;  %v6765_v58 = vpop.f32.mrf.mxu3 }
 0x48a   : > { %v6458_v56 = vsel %vm6302_vm4, %v6456_v26, %v6457_v11  ;;  %v5724_v46 = vadd.f32 %v8117_v50, %v5622_v54  ;;  %v4906_v4 = vadd.f32 %v4713_v27, %v4451_v6 }
 0x48b   : > { %7146 = vmatmul.msk.f32.gmra.mxu3 %vm1216_vm1, %v6458_v56  ;;  %v6866_v48 = vadd.f32 %v11588_v0, %v6830_v25 }
 0x48c   : > { %v5820_v18 = vadd.f32 3.0, %v5724_v46  ;;  %v5521_v30 = vadd.f32 %v5329_v37, %v4906_v4  ;;  %v7237_v4 = vld [vmem:[%s7497_s28 + $0xb0] sm:$0xff] }
 0x48d   : > { %v6898_v52 = vadd.f32 %v7231_v24, %v6866_v48  ;;  %v6652_v36 = vpop.f32.mrf.mxu2  ;;  %v7238_v24 = vld [vmem:[%s7497_s28 + $0xb8] sm:$0xff] }
 0x48e   : > { %v5916_v17 = vmax.f32 %v5820_v18, 0.0  ;;  %v5623_v35 = vmul.f32 %v8163_v63, %v5521_v30  ;;  %v6766_v27 = vadd.f32 %v6765_v58, %v6652_v36 }
 0x48f   : > { %6930 = vst.msk [vmem:[%s10164_s15 + $0x80] sm:$0xff] %vm432_vm0, %v6898_v52 }
 0x490   : > { %v6012_v50 = vmin.f32 %v5916_v17, 6.0  ;;  %v5725_v3 = vadd.f32 %v12626_v16, %v5623_v35  ;;  %v6831_v15 = vmul.f32 %v11576_v34, %v6766_v27 }
 0x491   : > { %v6768_v5 = vpop.f32.mrf.mxu3 }
 0x492   : > { %v6108_v14 = vmul.f32 %v6012_v50, %v5724_v46  ;;  %v5821_v45 = vadd.f32 3.0, %v5725_v3  ;;  %v6867_v63 = vadd.f32 %v11588_v0, %v6831_v15 }
 0x494   : > { %v6204_v12 = vmul.f32 0.16666667, %v6108_v14  ;;  %v5917_v47 = vmax.f32 %v5821_v45, 0.0  ;;  %v6899_v61 = vadd.f32 %v7232_v57, %v6867_v63  ;;  %v7239_v14 = vld [vmem:[%s7497_s28 + $0xc0] sm:$0xff] }
 0x495   : > { %v6655_v22 = vpop.f32.mrf.mxu2 }
 0x496   : > { %v6459_v43 = vrot.slane %v6204_v12, 7  ;;  %v6013_v10 = vmin.f32 %v5917_v47, 6.0  ;;  %6931 = vst.msk [vmem:[%s10164_s15 + $0x88] sm:$0xff] %vm432_vm0, %v6899_v61  ;;  %v6769_v55 = vadd.f32 %v6768_v5, %v6655_v22 }
 0x498   : > { %v6460_v16 = vsel %vm6302_vm4, %v6454_v59, %v6459_v43  ;;  %v6109_v39 = vmul.f32 %v6013_v10, %v5725_v3  ;;  %v6832_v49 = vmul.f32 %v11576_v34, %v6769_v55  ;;  %v7240_v10 = vld [vmem:[%s7497_s28 + $0xc8] sm:$0xff]  ;;  %v7241_v55 = vld [vmem:[%s7497_s28 + $0xd0] sm:$0xff] }
 0x499   : > { %6693 = vmatmul.f32.gmra.mxu2 %v6460_v16  ;;  %v6771_v7 = vpop.f32.mrf.mxu3 }
 0x49a   : > { %v6205_v21 = vmul.f32 0.16666667, %v6109_v39  ;;  %v6868_v53 = vadd.f32 %v11588_v0, %v6832_v49 }
 0x49c   : > { %v6461_v51 = vrot.slane %v6205_v21, 7  ;;  %v6900_v8 = vadd.f32 %v7233_v31, %v6868_v53 }
 0x49d   : > { %v6658_v59 = vpop.f32.mrf.mxu2 }
 0x49e   : > { %v6462_v42 = vsel %vm6302_vm4, %v6457_v11, %v6461_v51  ;;  %6932 = vst.msk [vmem:[%s10164_s15 + $0x90] sm:$0xff] %vm432_vm0, %v6900_v8  ;;  %v6772_v33 = vadd.f32 %v6771_v7, %v6658_v59  ;;  %v7236_v11 = vld [vmem:[%s7497_s28 + $0xa8] sm:$0xff]  ;;  %v7242_v8 = vld [vmem:[%s7497_s28 + $0xd8] sm:$0xff] }
 0x49f   : > { %7147 = vmatmul.msk.f32.gmra.mxu3 %vm1216_vm1, %v6462_v42 }
 0x4a0   : > { %v6833_v40 = vmul.f32 %v11576_v34, %v6772_v33 }
 0x4a1   : > { %v6774_v1 = vpop.f32.mrf.mxu3 }
 0x4a2   : > { %v6869_v60 = vadd.f32 %v11588_v0, %v6833_v40 }
 0x4a4   : > { %v6901_v62 = vadd.f32 %v7234_v38, %v6869_v60 }
 0x4a5   : > { %v6661_v20 = vpop.f32.mrf.mxu2 }
 0x4a6   : > { %6933 = vst.msk [vmem:[%s10164_s15 + $0x98] sm:$0xff] %vm432_vm0, %v6901_v62  ;;  %v6775_v23 = vadd.f32 %v6774_v1, %v6661_v20  ;;  %v7243_v62 = vld [vmem:[%s7497_s28 + $0xe0] sm:$0xff] }
 0x4a8   : > { %v6834_v44 = vmul.f32 %v11576_v34, %v6775_v23 }
 0x4a9   : > { %v6777_v19 = vpop.f32.mrf.mxu3 }
 0x4aa   : > { %v6870_v32 = vadd.f32 %v11588_v0, %v6834_v44 }
 0x4ac   : > { %v6902_v29 = vadd.f32 %v7235_v9, %v6870_v32 }
 0x4ad   : > { %v6664_v26 = vpop.f32.mrf.mxu2 }
 0x4ae   : > { %6934 = vst.msk [vmem:[%s10164_s15 + $0xa0] sm:$0xff] %vm432_vm0, %v6902_v29  ;;  %v6778_v28 = vadd.f32 %v6777_v19, %v6664_v26  ;;  %v7244_v29 = vld [vmem:[%s7497_s28 + $0xe8] sm:$0xff] }
 0x4b0   : > { %v6835_v41 = vmul.f32 %v11576_v34, %v6778_v28 }
 0x4b1   : > { %v6780_v13 = vpop.f32.mrf.mxu3 }
 0x4b2   : > { %v6871_v2 = vadd.f32 %v11588_v0, %v6835_v41 }
 0x4b4   : > { %v6903_v54 = vadd.f32 %v7236_v11, %v6871_v2 }
 0x4b5   : > { %v6667_v6 = vpop.f32.mrf.mxu2 }
 0x4b6   : > { %6935 = vst.msk [vmem:[%s10164_s15 + $0xa8] sm:$0xff] %vm432_vm0, %v6903_v54  ;;  %v6781_v37 = vadd.f32 %v6780_v13, %v6667_v6  ;;  %v7245_v54 = vld [vmem:[%s7497_s28 + $0xf0] sm:$0xff] }
 0x4b8   : > { %v6836_v56 = vmul.f32 %v11576_v34, %v6781_v37 }
 0x4b9   : > { %v6783_v30 = vpop.f32.mrf.mxu3 }
 0x4ba   : > { %v6872_v46 = vadd.f32 %v11588_v0, %v6836_v56 }
 0x4bc   : > { %v6904_v25 = vadd.f32 %v7237_v4, %v6872_v46 }
 0x4bd   : > { %v6670_v18 = vpop.f32.mrf.mxu2 }
 0x4be   : > { %6936 = vst.msk [vmem:[%s10164_s15 + $0xb0] sm:$0xff] %vm432_vm0, %v6904_v25  ;;  %v6784_v48 = vadd.f32 %v6783_v30, %v6670_v18  ;;  %v7246_v25 = vld [vmem:[%s7497_s28 + $0xf8] sm:$0xff] }
 0x4c0   : > { %v6837_v17 = vmul.f32 %v11576_v34, %v6784_v48 }
 0x4c1   : > { %v6786_v58 = vpop.f32.mrf.mxu3 }
 0x4c2   : > { %v6873_v35 = vadd.f32 %v11588_v0, %v6837_v17 }
 0x4c4   : > { %v6905_v52 = vadd.f32 %v7238_v24, %v6873_v35 }
 0x4c5   : > { %v6673_v36 = vpop.f32.mrf.mxu2 }
 0x4c6   : > { %6937 = vst.msk [vmem:[%s10164_s15 + $0xb8] sm:$0xff] %vm432_vm0, %v6905_v52  ;;  %v6787_v50 = vadd.f32 %v6786_v58, %v6673_v36 }
 0x4c8   : > { %v6838_v3 = vmul.f32 %v11576_v34, %v6787_v50 }
 0x4c9   : > { %v6789_v12 = vpop.f32.mrf.mxu3 }
 0x4ca   : > { %v6874_v27 = vadd.f32 %v11588_v0, %v6838_v3 }
 0x4cc   : > { %v6906_v45 = vadd.f32 %v7239_v14, %v6874_v27 }
 0x4cd   : > { %v6676_v15 = vpop.f32.mrf.mxu2 }
 0x4ce   : > { %6938 = vst.msk [vmem:[%s10164_s15 + $0xc0] sm:$0xff] %vm432_vm0, %v6906_v45  ;;  %v6790_v47 = vadd.f32 %v6789_v12, %v6676_v15 }
 0x4d0   : > { %v6839_v63 = vmul.f32 %v11576_v34, %v6790_v47 }
 0x4d1   : > { %v6792_v22 = vpop.f32.mrf.mxu3 }
 0x4d2   : > { %v6875_v43 = vadd.f32 %v11588_v0, %v6839_v63 }
 0x4d4   : > { %v6907_v57 = vadd.f32 %v7240_v10, %v6875_v43 }
 0x4d5   : > { %v6679_v61 = vpop.f32.mrf.mxu2 }
 0x4d6   : > { %6939 = vst.msk [vmem:[%s10164_s15 + $0xc8] sm:$0xff] %vm432_vm0, %v6907_v57  ;;  %v6793_v5 = vadd.f32 %v6792_v22, %v6679_v61 }
 0x4d8   : > { %v6840_v16 = vmul.f32 %v11576_v34, %v6793_v5 }
 0x4d9   : > { %v6795_v51 = vpop.f32.mrf.mxu3 }
 0x4da   : > { %v6876_v39 = vadd.f32 %v11588_v0, %v6840_v16 }
 0x4dc   : > { %v6908_v21 = vadd.f32 %v7241_v55, %v6876_v39 }
 0x4dd   : > { %v6682_v49 = vpop.f32.mrf.mxu2 }
 0x4de   : > { %6940 = vst.msk [vmem:[%s10164_s15 + $0xd0] sm:$0xff] %vm432_vm0, %v6908_v21  ;;  %v6796_v53 = vadd.f32 %v6795_v51, %v6682_v49 }
 0x4e0   : > { %v6841_v42 = vmul.f32 %v11576_v34, %v6796_v53 }
 0x4e1   : > { %v6798_v33 = vpop.f32.mrf.mxu3 }
 0x4e2   : > { %v6877_v31 = vadd.f32 %v11588_v0, %v6841_v42 }
 0x4e4   : > { %v6909_v59 = vadd.f32 %v7242_v8, %v6877_v31 }
 0x4e5   : > { %v6685_v7 = vpop.f32.mrf.mxu2 }
 0x4e6   : > { %6941 = vst.msk [vmem:[%s10164_s15 + $0xd8] sm:$0xff] %vm432_vm0, %v6909_v59  ;;  %v6799_v40 = vadd.f32 %v6798_v33, %v6685_v7 }
 0x4e8   : > { %v6842_v60 = vmul.f32 %v11576_v34, %v6799_v40 }
 0x4ea   : > { %v6878_v38 = vadd.f32 %v11588_v0, %v6842_v60 }
 0x4ec   : > { %v6910_v20 = vadd.f32 %v7243_v62, %v6878_v38 }
 0x4ed   : > { %v6688_v1 = vpop.f32.mrf.mxu2 }
 0x4ee   : > { %6942 = vst.msk [vmem:[%s10164_s15 + $0xe0] sm:$0xff] %vm432_vm0, %v6910_v20 }
 0x4f2   : > { %v6801_v23 = vpop.f32.mrf.mxu3 }
 0x4f3   : > { %v6802_v44 = vadd.f32 %v6801_v23, %v6688_v1 }
 0x4f5   : > { %v6843_v32 = vmul.f32 %v11576_v34, %v6802_v44 }
 0x4f7   : > { %v6879_v9 = vadd.f32 %v11588_v0, %v6843_v32 }
 0x4f9   : > { %v6911_v26 = vadd.f32 %v7244_v29, %v6879_v9 }
 0x4fb   : > { %6943 = vst.msk [vmem:[%s10164_s15 + $0xe8] sm:$0xff] %vm432_vm0, %v6911_v26 }
 0x4fd   : > { %v6691_v19 = vpop.f32.mrf.mxu2 }
 0x50e   : > { %v6804_v28 = vpop.f32.mrf.mxu3 }
 0x50f   : > { %v6805_v41 = vadd.f32 %v6804_v28, %v6691_v19 }
 0x511   : > { %v6844_v2 = vmul.f32 %v11576_v34, %v6805_v41 }
 0x513   : > { %v6880_v11 = vadd.f32 %v11588_v0, %v6844_v2 }
 0x515   : > { %v6912_v6 = vadd.f32 %v7245_v54, %v6880_v11 }
 0x517   : > { %6944 = vst.msk [vmem:[%s10164_s15 + $0xf0] sm:$0xff] %vm432_vm0, %v6912_v6 }
 0x51c   : > { %v6694_v13 = vpop.f32.mrf.mxu2 }
 0x522   : > { %v6807_v37 = vpop.f32.mrf.mxu3 }
 0x523   : > { %v6808_v56 = vadd.f32 %v6807_v37, %v6694_v13 }
 0x525   : > { %v6845_v46 = vmul.f32 %v11576_v34, %v6808_v56 }
 0x527   : > { %v6881_v4 = vadd.f32 %v11588_v0, %v6845_v46 }
 0x529   : > { %v6913_v18 = vadd.f32 %v7246_v25, %v6881_v4 }
 0x52b   : > { %6945 = vst.msk [vmem:[%s10164_s15 + $0xf8] sm:$0xff] %vm432_vm0, %v6913_v18 }
 0x52c   : > { %7304 = shalt.err (!%p7301_p4)
}
 0x52d   : > { %s7348_s18 = smov 128   ;;  %s7349_s28 = smov 8  }
 0x52e   : > { %7157 = dma.vmem_to_hbm [thread:$0]  (%p7455_p11), %s6960_s29, 4096, %s6962_s23, %s6947_s17, %s7348_s18, %s7348_s18, %s7349_s28  }
 0x52f PF: > { %s6976_s22 = sand.u32 1, %s7331_s13   ;;  %p12727_p7 = scmp.ge.s32.totalorder %s7343_s16, 2 }
 0x530   : > { %s6977_s20 = scalar_lea.sflag [#allocation5], %s6976_s22 }
 0x531   : > { %p7164_p5 = pnand %p12727_p7, %p7459_p12 }
 0x533   : > { %p7165_p8 = pneg %p7164_p5 }
 0x535   : > { %7326 = dma.done.wait (%p7165_p8), %s6977_s20, 4096  }
 0x536   : > { %7328 = vsyncadd (%p7165_p8), %s6977_s20, 4294963200  ;;  %s12728_s16 = sld [smem:[#allocation10_spill]]  ;;  %s12731_s13 = smov %s7335_s14 }
 0x537   : > { %s12729_s21 = sld [smem:[#allocation9_spill]] }
 0x538   : > { %s12730_s15 = sld [smem:[#allocation11_spill]] }
 0x53c   : > { %p23_p10 = scmp.ge.s32.totalorder %s12728_s16, 4  }
 0x53d   : > { %s12732_s14 = smov %s12729_s21 }
 0x53e   :  { %25 = sbr.rel (!%p23_p10) target bundleno = 5 (0x5), region = 115 }
 0x543   :  { %6983 = vsyncpa [#allocation4], 1 }
 0x544   :  { %6985 = vsyncpa [#allocation4 + $0x1], 1 }
 0x545   :  { %6986 = vsyncpa [#allocation5], 1 }
 0x546   :  { %6988 = vsyncpa [#allocation5 + $0x1], 1 }

</bundles_post_ra>
